<compile_context>
chip_gen: v6e
topology: v6e:2x2x1
jax: 0.10.0
libtpu: 0.0.40
codegen_flags: <defaults>
</compile_context>

<pallas_src>
import functools

import jax
import jax.numpy as jnp
from jax.experimental import pallas as pl
from jax.experimental.pallas import tpu as pltpu  # noqa: F401  (kept for TPU backend)

EPS = 1e-5
F32 = jnp.float32
BF16 = jnp.bfloat16

# ---- small-but-faithful DenseNet config (same topology as the torch module) ----
GROWTH_RATE = 8
BLOCK_CONFIG = (2, 2, 2, 2)
NUM_INIT_FEATURES = 16
BN_SIZE = 2
NUM_CLASSES = 10


# ---------------------------- Pallas kernels ----------------------------------
def _bn_relu(x):
    """BatchNorm2d training-mode (biased batch stats over rows), gamma=1/beta=0, + ReLU."""
    m = jnp.mean(x, axis=0, keepdims=True)
    d = x - m
    v = jnp.mean(d * d, axis=0, keepdims=True)
    return jnp.maximum(d * jax.lax.rsqrt(v + EPS), 0.0)


def _fused_mm_kernel(x_ref, w_ref, o_ref, *, pre_bn, post_bn):
    """[BN+ReLU] -> (M,K)@(K,N) on the MXU (bf16 operands, f32 acc) -> [BN+ReLU]."""
    x = x_ref[...]
    if pre_bn:
        x = _bn_relu(x.astype(F32))
    z = jnp.dot(x.astype(BF16), w_ref[...], preferred_element_type=jnp.float32)
    if post_bn:
        z = _bn_relu(z)
    o_ref[...] = z.astype(o_ref.dtype)


def _pool_kernel(x_ref, o_ref, *, kk, op):
    # Window-leading layout: x_ref is (kk, M, C); each tap is a contiguous slab.
    acc = x_ref[0]
    for i in range(1, kk):
        v = x_ref[i]
        acc = jnp.maximum(acc, v) if op == "max" else acc + v
    if op == "avg":
        acc = acc * (1.0 / kk)
    o_ref[...] = acc


def _head_kernel(x_ref, w_ref, b_ref, o_ref):
    """norm5 + ReLU + adaptive_avg_pool2d((1,1)) + Linear, fused.

    x_ref: (N, H*W, C) f32; w_ref: (C, ncls) bf16 pre-scaled by 1/(H*W);
    b_ref: (1, ncls) f32.
    """
    x = x_ref[...]
    m = jnp.mean(jnp.mean(x, axis=1, keepdims=True), axis=0, keepdims=True)
    d = x - m
    v = jnp.mean(jnp.mean(d * d, axis=1, keepdims=True), axis=0, keepdims=True)
    t = jnp.maximum(d * jax.lax.rsqrt(v + EPS), 0.0)
    pooled = jnp.sum(t, axis=1)                                   # (N, C); 1/HW in w
    o_ref[...] = jnp.dot(pooled.astype(BF16), w_ref[...],
                         preferred_element_type=jnp.float32) + b_ref[...]


# ------------------------------ Pallas wrappers --------------------------------
def fused_matmul(x2d, w2d, *, pre_bn=False, post_bn=False, out_dtype=F32):
    """Single-VMEM-block fused [BN+ReLU]->GEMM->[BN+ReLU].  No padding, no grid."""
    m, _ = x2d.shape
    n = w2d.shape[1]
    return pl.pallas_call(
        functools.partial(_fused_mm_kernel, pre_bn=pre_bn, post_bn=post_bn),
        out_shape=jax.ShapeDtypeStruct((m, n), out_dtype),
    )(x2d, w2d.astype(BF16))


def pool2d(x, k, stride, padding, op):
    pad_value = -jnp.inf if op == "max" else 0.0
    slabs, ho, wo = _shifted_slabs(x, k, k, stride, padding, pad_value)
    xr = jnp.stack(slabs, axis=0)                                 # (kk, M, C)
    n, c = x.shape[0], x.shape[3]
    y = pl.pallas_call(
        functools.partial(_pool_kernel, kk=k * k, op=op),
        out_shape=jax.ShapeDtypeStruct((xr.shape[1], c), x.dtype),
    )(xr)
    return y.reshape(n, ho, wo, c)


def classifier_head(x, w, b):
    """x: (N,H,W,C) final features (pre-norm5); w: (ncls, C); b: (ncls,)."""
    n, h, wd, c = x.shape
    hw = h * wd
    xr = x.reshape(n, hw, c).astype(F32)
    w_scaled = (w.T / float(hw)).astype(BF16)                     # fold avg-pool scale
    return pl.pallas_call(
        _head_kernel,
        out_shape=jax.ShapeDtypeStruct((n, w.shape[0]), F32),
    )(xr, w_scaled, b.reshape(1, -1).astype(F32))


# ------------------------------ glue (plain JAX) -------------------------------
def _shifted_slabs(x, kh, kw, stride, padding, pad_value):
    """x: (N,H,W,C) -> list of kh*kw flattened (N*Ho*Wo, C) shifted slabs."""
    n, h, w, c = x.shape
    ho = (h + 2 * padding - kh) // stride + 1
    wo = (w + 2 * padding - kw) // stride + 1
    xp = jnp.pad(x, ((0, 0), (padding, padding), (padding, padding), (0, 0)),
                 constant_values=pad_value)
    slabs = []
    for dy in range(kh):
        for dx in range(kw):
            s = xp[:, dy:dy + stride * (ho - 1) + 1:stride,
                   dx:dx + stride * (wo - 1) + 1:stride, :]
            slabs.append(s.reshape(n * ho * wo, c))
    return slabs, ho, wo


def im2col_2d(x, kh, kw, stride, padding):
    """(N,H,W,C) -> (N*Ho*Wo, kh*kw*C) bf16 patch matrix (feature order dy,dx,c)."""
    slabs, ho, wo = _shifted_slabs(x, kh, kw, stride, padding, 0.0)
    return jnp.concatenate(slabs, axis=1).astype(BF16), ho, wo


def conv_weight_matrix(w):
    """torch (Cout, Cin, kh, kw) -> (kh*kw*Cin, Cout) matching im2col_2d ordering."""
    cout = w.shape[0]
    return jnp.transpose(w, (2, 3, 1, 0)).reshape(-1, cout)


# ------------------------------ parameters -------------------------------------
def init_params(key):
    params = {}
    keys = iter(jax.random.split(key, 64))

    def conv_w(k, cout, cin, ks):
        std = (2.0 / (cin * ks * ks)) ** 0.5
        return jax.random.normal(k, (cout, cin, ks, ks), F32) * std

    params["conv0"] = conv_w(next(keys), NUM_INIT_FEATURES, 3, 7)
    num_features = NUM_INIT_FEATURES
    for bi, num_layers in enumerate(BLOCK_CONFIG):
        for li in range(num_layers):
            cin = num_features + li * GROWTH_RATE
            params[f"b{bi}_l{li}_conv1"] = conv_w(next(keys),
                                                  BN_SIZE * GROWTH_RATE, cin, 1)
            params[f"b{bi}_l{li}_conv2"] = conv_w(next(keys), GROWTH_RATE,
                                                  BN_SIZE * GROWTH_RATE, 3)
        num_features += num_layers * GROWTH_RATE
        if bi != len(BLOCK_CONFIG) - 1:
            params[f"trans{bi}_conv"] = conv_w(next(keys),
                                               num_features // 2, num_features, 1)
            num_features //= 2
    params["classifier_w"] = (jax.random.normal(next(keys),
                                                (NUM_CLASSES, num_features), F32)
                              * (1.0 / num_features) ** 0.5)
    params["classifier_b"] = jnp.zeros((NUM_CLASSES,), F32)  # nn.init.constant_(bias, 0)
    return params


# ------------------------------ forward pass ------------------------------------
@jax.jit
def densenet_forward(params, x_nchw):
    x = jnp.transpose(x_nchw, (0, 2, 3, 1)).astype(F32)           # NCHW -> NHWC
    n = x.shape[0]

    # conv0 (7x7 /2 p3) with fused norm0 + relu0 epilogue.
    a0, ho, wo = im2col_2d(x, 7, 7, 2, 3)
    y = fused_matmul(a0, conv_weight_matrix(params["conv0"]),
                     pre_bn=False, post_bn=True, out_dtype=F32)
    x = y.reshape(n, ho, wo, NUM_INIT_FEATURES)
    x = pool2d(x, 3, 2, 1, "max")                                 # pool0 3x3/2 p1

    for bi, num_layers in enumerate(BLOCK_CONFIG):
        features = [x]
        for li in range(num_layers):
            inp = jnp.concatenate(features, axis=-1)              # torch.cat(inputs, 1)
            nn_, hh, ww, cin = inp.shape
            m = nn_ * hh * ww
            # norm1 + relu1 + conv1(1x1, no im2col) + norm2 + relu2 : one kernel.
            w1 = conv_weight_matrix(params[f"b{bi}_l{li}_conv1"])   # (cin, bn_size*k)
            t = fused_matmul(inp.reshape(m, cin), w1,
                             pre_bn=True, post_bn=True, out_dtype=BF16)
            t = t.reshape(nn_, hh, ww, BN_SIZE * GROWTH_RATE)
            # conv2 3x3 p1: bf16 patch matrix + single-block MXU matmul.
            a2, _, _ = im2col_2d(t, 3, 3, 1, 1)
            w2 = conv_weight_matrix(params[f"b{bi}_l{li}_conv2"])   # (9*bn_size*k, k)
            h = fused_matmul(a2, w2, out_dtype=F32)
            features.append(h.reshape(nn_, hh, ww, GROWTH_RATE))
        x = jnp.concatenate(features, axis=-1)                    # block output concat
        if bi != len(BLOCK_CONFIG) - 1:
            nn_, hh, ww, cf = x.shape
            # transition: norm + relu fused into the 1x1 conv; then 2x2/2 avg pool.
            wt = conv_weight_matrix(params[f"trans{bi}_conv"])     # (cf, cf//2)
            y = fused_matmul(x.reshape(nn_ * hh * ww, cf), wt,
                             pre_bn=True, out_dtype=F32)
            x = pool2d(y.reshape(nn_, hh, ww, cf // 2), 2, 2, 0, "avg")

    # norm5 + relu + adaptive_avg_pool2d((1,1)) + flatten + Linear : one kernel.
    return classifier_head(x, params["classifier_w"], params["classifier_b"])


if __name__ == "__main__":
    root = jax.random.PRNGKey(0)
    k_param, k_x = jax.random.split(root)
    params = init_params(k_param)
    x = jax.random.normal(k_x, (2, 3, 32, 32), F32)               # NCHW like PyTorch
    out = densenet_forward(params, x)
    out = jax.block_until_ready(out)
    assert out.shape == (2, NUM_CLASSES), out.shape
    assert bool(jnp.all(jnp.isfinite(out)))
    print("KERNEL_OK")
</pallas_src>

<mosaic_0001>
module attributes {stable_mosaic.version = 11 : i64} {
  func.func @_fused_mm_kernel(%arg0: memref<512x147xbf16, #tpu.memory_space<vmem>>, %arg1: memref<147x16xbf16, #tpu.memory_space<vmem>>, %arg2: memref<512x16xf32, #tpu.memory_space<vmem>>) attributes {dimension_semantics = [], scalar_prefetch = 0 : i64, scratch_operands = 0 : i64, tpu.core_type = #tpu.core_type<tc>} {
    %c0 = arith.constant 0 : index
    %c0_0 = arith.constant 0 : index
    %0 = vector.load %arg0[%c0, %c0_0] : memref<512x147xbf16, #tpu.memory_space<vmem>>, vector<512x147xbf16>
    %c0_1 = arith.constant 0 : index
    %c0_2 = arith.constant 0 : index
    %1 = vector.load %arg1[%c0_1, %c0_2] : memref<147x16xbf16, #tpu.memory_space<vmem>>, vector<147x16xbf16>
    %cst = arith.constant dense<0.000000e+00> : vector<512x16xf32>
    %2 = tpu.matmul %0, %1, %cst {dimension_numbers = #tpu.dot_dimension_numbers<[1], [0], [0], [1], [0, 0, 1, 1], [], []>} : vector<512x147xbf16>, vector<147x16xbf16>, vector<512x16xf32> -> vector<512x16xf32>
    %cst_3 = arith.constant dense<0.000000e+00> : vector<16xf32>
    %3 = vector.multi_reduction <add>, %2, %cst_3 [0] : vector<512x16xf32> to vector<16xf32>
    %4 = vector.shape_cast %3 : vector<16xf32> to vector<1x16xf32>
    %cst_4 = arith.constant 5.120000e+02 : f32
    %5 = vector.broadcast %cst_4 : f32 to vector<1x16xf32>
    %6 = arith.divf %4, %5 : vector<1x16xf32>
    %7 = vector.broadcast %6 : vector<1x16xf32> to vector<512x16xf32>
    %8 = arith.subf %2, %7 : vector<512x16xf32>
    %9 = arith.mulf %8, %8 : vector<512x16xf32>
    %cst_5 = arith.constant dense<0.000000e+00> : vector<16xf32>
    %10 = vector.multi_reduction <add>, %9, %cst_5 [0] : vector<512x16xf32> to vector<16xf32>
    %11 = vector.shape_cast %10 : vector<16xf32> to vector<1x16xf32>
    %cst_6 = arith.constant 5.120000e+02 : f32
    %12 = vector.broadcast %cst_6 : f32 to vector<1x16xf32>
    %13 = arith.divf %11, %12 : vector<1x16xf32>
    %cst_7 = arith.constant 9.99999974E-6 : f32
    %14 = vector.broadcast %cst_7 : f32 to vector<1x16xf32>
    %15 = arith.addf %13, %14 : vector<1x16xf32>
    %16 = math.rsqrt %15 : vector<1x16xf32>
    %17 = vector.broadcast %16 : vector<1x16xf32> to vector<512x16xf32>
    %18 = arith.mulf %8, %17 : vector<512x16xf32>
    %cst_8 = arith.constant 0.000000e+00 : f32
    %19 = vector.broadcast %cst_8 : f32 to vector<512x16xf32>
    %20 = arith.maximumf %18, %19 : vector<512x16xf32>
    %c0_9 = arith.constant 0 : index
    %c0_10 = arith.constant 0 : index
    %21 = vector.load %arg2[%c0_9, %c0_10] : memref<512x16xf32, #tpu.memory_space<vmem>>, vector<512x16xf32>
    tpu.vector_store %arg2[%c0_9, %c0_10], %20 {strides = array<i32>} : memref<512x16xf32, #tpu.memory_space<vmem>>, vector<512x16xf32>,
    return
  }
}

module attributes {stable_mosaic.version = 11 : i64} {
  func.func @_fused_mm_kernel(%arg0: memref<128x16xf32, #tpu.memory_space<vmem>>, %arg1: memref<16x16xbf16, #tpu.memory_space<vmem>>, %arg2: memref<128x16xbf16, #tpu.memory_space<vmem>>) attributes {dimension_semantics = [], scalar_prefetch = 0 : i64, scratch_operands = 0 : i64, tpu.core_type = #tpu.core_type<tc>} {
    %c0 = arith.constant 0 : index
    %c0_0 = arith.constant 0 : index
    %0 = vector.load %arg0[%c0, %c0_0] : memref<128x16xf32, #tpu.memory_space<vmem>>, vector<128x16xf32>
    %cst = arith.constant dense<0.000000e+00> : vector<16xf32>
    %1 = vector.multi_reduction <add>, %0, %cst [0] : vector<128x16xf32> to vector<16xf32>
    %2 = vector.shape_cast %1 : vector<16xf32> to vector<1x16xf32>
    %cst_1 = arith.constant 1.280000e+02 : f32
    %3 = vector.broadcast %cst_1 : f32 to vector<1x16xf32>
    %4 = arith.divf %2, %3 : vector<1x16xf32>
    %5 = vector.broadcast %4 : vector<1x16xf32> to vector<128x16xf32>
    %6 = arith.subf %0, %5 : vector<128x16xf32>
    %7 = arith.mulf %6, %6 : vector<128x16xf32>
    %cst_2 = arith.constant dense<0.000000e+00> : vector<16xf32>
    %8 = vector.multi_reduction <add>, %7, %cst_2 [0] : vector<128x16xf32> to vector<16xf32>
    %9 = vector.shape_cast %8 : vector<16xf32> to vector<1x16xf32>
    %cst_3 = arith.constant 1.280000e+02 : f32
    %10 = vector.broadcast %cst_3 : f32 to vector<1x16xf32>
    %11 = arith.divf %9, %10 : vector<1x16xf32>
    %cst_4 = arith.constant 9.99999974E-6 : f32
    %12 = vector.broadcast %cst_4 : f32 to vector<1x16xf32>
    %13 = arith.addf %11, %12 : vector<1x16xf32>
    %14 = math.rsqrt %13 : vector<1x16xf32>
    %15 = vector.broadcast %14 : vector<1x16xf32> to vector<128x16xf32>
    %16 = arith.mulf %6, %15 : vector<128x16xf32>
    %cst_5 = arith.constant 0.000000e+00 : f32
    %17 = vector.broadcast %cst_5 : f32 to vector<128x16xf32>
    %18 = arith.maximumf %16, %17 : vector<128x16xf32>
    %19 = arith.truncf %18 : vector<128x16xf32> to vector<128x16xbf16>
    %c0_6 = arith.constant 0 : index
    %c0_7 = arith.constant 0 : index
    %20 = vector.load %arg1[%c0_6, %c0_7] : memref<16x16xbf16, #tpu.memory_space<vmem>>, vector<16x16xbf16>
    %cst_8 = arith.constant dense<0.000000e+00> : vector<128x16xf32>
    %21 = tpu.matmul %19, %20, %cst_8 {dimension_numbers = #tpu.dot_dimension_numbers<[1], [0], [0], [1], [0, 0, 1, 1], [], []>} : vector<128x16xbf16>, vector<16x16xbf16>, vector<128x16xf32> -> vector<128x16xf32>
    %cst_9 = arith.constant dense<0.000000e+00> : vector<16xf32>
    %22 = vector.multi_reduction <add>, %21, %cst_9 [0] : vector<128x16xf32> to vector<16xf32>
    %23 = vector.shape_cast %22 : vector<16xf32> to vector<1x16xf32>
    %cst_10 = arith.constant 1.280000e+02 : f32
    %24 = vector.broadcast %cst_10 : f32 to vector<1x16xf32>
    %25 = arith.divf %23, %24 : vector<1x16xf32>
    %26 = vector.broadcast %25 : vector<1x16xf32> to vector<128x16xf32>
    %27 = arith.subf %21, %26 : vector<128x16xf32>
    %28 = arith.mulf %27, %27 : vector<128x16xf32>
    %cst_11 = arith.constant dense<0.000000e+00> : vector<16xf32>
    %29 = vector.multi_reduction <add>, %28, %cst_11 [0] : vector<128x16xf32> to vector<16xf32>
    %30 = vector.shape_cast %29 : vector<16xf32> to vector<1x16xf32>
    %cst_12 = arith.constant 1.280000e+02 : f32
    %31 = vector.broadcast %cst_12 : f32 to vector<1x16xf32>
    %32 = arith.divf %30, %31 : vector<1x16xf32>
    %cst_13 = arith.constant 9.99999974E-6 : f32
    %33 = vector.broadcast %cst_13 : f32 to vector<1x16xf32>
    %34 = arith.addf %32, %33 : vector<1x16xf32>
    %35 = math.rsqrt %34 : vector<1x16xf32>
    %36 = vector.broadcast %35 : vector<1x16xf32> to vector<128x16xf32>
    %37 = arith.mulf %27, %36 : vector<128x16xf32>
    %cst_14 = arith.constant 0.000000e+00 : f32
    %38 = vector.broadcast %cst_14 : f32 to vector<128x16xf32>
    %39 = arith.maximumf %37, %38 : vector<128x16xf32>
    %40 = arith.truncf %39 : vector<128x16xf32> to vector<128x16xbf16>
    %c0_15 = arith.constant 0 : index
    %c0_16 = arith.constant 0 : index
    %41 = vector.load %arg2[%c0_15, %c0_16] : memref<128x16xbf16, #tpu.memory_space<vmem>>, vector<128x16xbf16>
    tpu.vector_store %arg2[%c0_15, %c0_16], %40 {strides = array<i32>} : memref<128x16xbf16, #tpu.memory_space<vmem>>, vector<128x16xbf16>,
    return
  }
}

module attributes {stable_mosaic.version = 11 : i64} {
  func.func @_pool_kernel(%arg0: memref<9x128x16xf32, #tpu.memory_space<vmem>>, %arg1: memref<128x16xf32, #tpu.memory_space<vmem>>) attributes {dimension_semantics = [], scalar_prefetch = 0 : i64, scratch_operands = 0 : i64, tpu.core_type = #tpu.core_type<tc>} {
    %c0 = arith.constant 0 : index
    %c0_0 = arith.constant 0 : index
    %c0_1 = arith.constant 0 : index
    %0 = vector.load %arg0[%c0, %c0_0, %c0_1] : memref<9x128x16xf32, #tpu.memory_space<vmem>>, vector<1x128x16xf32>
    %1 = vector.shape_cast %0 : vector<1x128x16xf32> to vector<128x16xf32>
    %c1 = arith.constant 1 : index
    %c0_2 = arith.constant 0 : index
    %c0_3 = arith.constant 0 : index
    %2 = vector.load %arg0[%c1, %c0_2, %c0_3] : memref<9x128x16xf32, #tpu.memory_space<vmem>>, vector<1x128x16xf32>
    %3 = vector.shape_cast %2 : vector<1x128x16xf32> to vector<128x16xf32>
    %4 = arith.maximumf %1, %3 : vector<128x16xf32>
    %c2 = arith.constant 2 : index
    %c0_4 = arith.constant 0 : index
    %c0_5 = arith.constant 0 : index
    %5 = vector.load %arg0[%c2, %c0_4, %c0_5] : memref<9x128x16xf32, #tpu.memory_space<vmem>>, vector<1x128x16xf32>
    %6 = vector.shape_cast %5 : vector<1x128x16xf32> to vector<128x16xf32>
    %7 = arith.maximumf %4, %6 : vector<128x16xf32>
    %c3 = arith.constant 3 : index
    %c0_6 = arith.constant 0 : index
    %c0_7 = arith.constant 0 : index
    %8 = vector.load %arg0[%c3, %c0_6, %c0_7] : memref<9x128x16xf32, #tpu.memory_space<vmem>>, vector<1x128x16xf32>
    %9 = vector.shape_cast %8 : vector<1x128x16xf32> to vector<128x16xf32>
    %10 = arith.maximumf %7, %9 : vector<128x16xf32>
    %c4 = arith.constant 4 : index
    %c0_8 = arith.constant 0 : index
    %c0_9 = arith.constant 0 : index
    %11 = vector.load %arg0[%c4, %c0_8, %c0_9] : memref<9x128x16xf32, #tpu.memory_space<vmem>>, vector<1x128x16xf32>
    %12 = vector.shape_cast %11 : vector<1x128x16xf32> to vector<128x16xf32>
    %13 = arith.maximumf %10, %12 : vector<128x16xf32>
    %c5 = arith.constant 5 : index
    %c0_10 = arith.constant 0 : index
    %c0_11 = arith.constant 0 : index
    %14 = vector.load %arg0[%c5, %c0_10, %c0_11] : memref<9x128x16xf32, #tpu.memory_space<vmem>>, vector<1x128x16xf32>
    %15 = vector.shape_cast %14 : vector<1x128x16xf32> to vector<128x16xf32>
    %16 = arith.maximumf %13, %15 : vector<128x16xf32>
    %c6 = arith.constant 6 : index
    %c0_12 = arith.constant 0 : index
    %c0_13 = arith.constant 0 : index
    %17 = vector.load %arg0[%c6, %c0_12, %c0_13] : memref<9x128x16xf32, #tpu.memory_space<vmem>>, vector<1x128x16xf32>
    %18 = vector.shape_cast %17 : vector<1x128x16xf32> to vector<128x16xf32>
    %19 = arith.maximumf %16, %18 : vector<128x16xf32>
    %c7 = arith.constant 7 : index
    %c0_14 = arith.constant 0 : index
    %c0_15 = arith.constant 0 : index
    %20 = vector.load %arg0[%c7, %c0_14, %c0_15] : memref<9x128x16xf32, #tpu.memory_space<vmem>>, vector<1x128x16xf32>
    %21 = vector.shape_cast %20 : vector<1x128x16xf32> to vector<128x16xf32>
    %22 = arith.maximumf %19, %21 : vector<128x16xf32>
    %c8 = arith.constant 8 : index
    %c0_16 = arith.constant 0 : index
    %c0_17 = arith.constant 0 : index
    %23 = vector.load %arg0[%c8, %c0_16, %c0_17] : memref<9x128x16xf32, #tpu.memory_space<vmem>>, vector<1x128x16xf32>
    %24 = vector.shape_cast %23 : vector<1x128x16xf32> to vector<128x16xf32>
    %25 = arith.maximumf %22, %24 : vector<128x16xf32>
    %c0_18 = arith.constant 0 : index
    %c0_19 = arith.constant 0 : index
    %26 = vector.load %arg1[%c0_18, %c0_19] : memref<128x16xf32, #tpu.memory_space<vmem>>, vector<128x16xf32>
    tpu.vector_store %arg1[%c0_18, %c0_19], %25 {strides = array<i32>} : memref<128x16xf32, #tpu.memory_space<vmem>>, vector<128x16xf32>,
    return
  }
}

module attributes {stable_mosaic.version = 11 : i64} {
  func.func @_fused_mm_kernel(%arg0: memref<128x144xbf16, #tpu.memory_space<vmem>>, %arg1: memref<144x8xbf16, #tpu.memory_space<vmem>>, %arg2: memref<128x8xf32, #tpu.memory_space<vmem>>) attributes {dimension_semantics = [], scalar_prefetch = 0 : i64, scratch_operands = 0 : i64, tpu.core_type = #tpu.core_type<tc>} {
    %c0 = arith.constant 0 : index
    %c0_0 = arith.constant 0 : index
    %0 = vector.load %arg0[%c0, %c0_0] : memref<128x144xbf16, #tpu.memory_space<vmem>>, vector<128x144xbf16>
    %c0_1 = arith.constant 0 : index
    %c0_2 = arith.constant 0 : index
    %1 = vector.load %arg1[%c0_1, %c0_2] : memref<144x8xbf16, #tpu.memory_space<vmem>>, vector<144x8xbf16>
    %cst = arith.constant dense<0.000000e+00> : vector<128x8xf32>
    %2 = tpu.matmul %0, %1, %cst {dimension_numbers = #tpu.dot_dimension_numbers<[1], [0], [0], [1], [0, 0, 1, 1], [], []>} : vector<128x144xbf16>, vector<144x8xbf16>, vector<128x8xf32> -> vector<128x8xf32>
    %c0_3 = arith.constant 0 : index
    %c0_4 = arith.constant 0 : index
    %3 = vector.load %arg2[%c0_3, %c0_4] : memref<128x8xf32, #tpu.memory_space<vmem>>, vector<128x8xf32>
    tpu.vector_store %arg2[%c0_3, %c0_4], %2 {strides = array<i32>} : memref<128x8xf32, #tpu.memory_space<vmem>>, vector<128x8xf32>,
    return
  }
}

module attributes {stable_mosaic.version = 11 : i64} {
  func.func @_fused_mm_kernel(%arg0: memref<128x24xf32, #tpu.memory_space<vmem>>, %arg1: memref<24x16xbf16, #tpu.memory_space<vmem>>, %arg2: memref<128x16xbf16, #tpu.memory_space<vmem>>) attributes {dimension_semantics = [], scalar_prefetch = 0 : i64, scratch_operands = 0 : i64, tpu.core_type = #tpu.core_type<tc>} {
    %c0 = arith.constant 0 : index
    %c0_0 = arith.constant 0 : index
    %0 = vector.load %arg0[%c0, %c0_0] : memref<128x24xf32, #tpu.memory_space<vmem>>, vector<128x24xf32>
    %cst = arith.constant dense<0.000000e+00> : vector<24xf32>
    %1 = vector.multi_reduction <add>, %0, %cst [0] : vector<128x24xf32> to vector<24xf32>
    %2 = vector.shape_cast %1 : vector<24xf32> to vector<1x24xf32>
    %cst_1 = arith.constant 1.280000e+02 : f32
    %3 = vector.broadcast %cst_1 : f32 to vector<1x24xf32>
    %4 = arith.divf %2, %3 : vector<1x24xf32>
    %5 = vector.broadcast %4 : vector<1x24xf32> to vector<128x24xf32>
    %6 = arith.subf %0, %5 : vector<128x24xf32>
    %7 = arith.mulf %6, %6 : vector<128x24xf32>
    %cst_2 = arith.constant dense<0.000000e+00> : vector<24xf32>
    %8 = vector.multi_reduction <add>, %7, %cst_2 [0] : vector<128x24xf32> to vector<24xf32>
    %9 = vector.shape_cast %8 : vector<24xf32> to vector<1x24xf32>
    %cst_3 = arith.constant 1.280000e+02 : f32
    %10 = vector.broadcast %cst_3 : f32 to vector<1x24xf32>
    %11 = arith.divf %9, %10 : vector<1x24xf32>
    %cst_4 = arith.constant 9.99999974E-6 : f32
    %12 = vector.broadcast %cst_4 : f32 to vector<1x24xf32>
    %13 = arith.addf %11, %12 : vector<1x24xf32>
    %14 = math.rsqrt %13 : vector<1x24xf32>
    %15 = vector.broadcast %14 : vector<1x24xf32> to vector<128x24xf32>
    %16 = arith.mulf %6, %15 : vector<128x24xf32>
    %cst_5 = arith.constant 0.000000e+00 : f32
    %17 = vector.broadcast %cst_5 : f32 to vector<128x24xf32>
    %18 = arith.maximumf %16, %17 : vector<128x24xf32>
    %19 = arith.truncf %18 : vector<128x24xf32> to vector<128x24xbf16>
    %c0_6 = arith.constant 0 : index
    %c0_7 = arith.constant 0 : index
    %20 = vector.load %arg1[%c0_6, %c0_7] : memref<24x16xbf16, #tpu.memory_space<vmem>>, vector<24x16xbf16>
    %cst_8 = arith.constant dense<0.000000e+00> : vector<128x16xf32>
    %21 = tpu.matmul %19, %20, %cst_8 {dimension_numbers = #tpu.dot_dimension_numbers<[1], [0], [0], [1], [0, 0, 1, 1], [], []>} : vector<128x24xbf16>, vector<24x16xbf16>, vector<128x16xf32> -> vector<128x16xf32>
    %cst_9 = arith.constant dense<0.000000e+00> : vector<16xf32>
    %22 = vector.multi_reduction <add>, %21, %cst_9 [0] : vector<128x16xf32> to vector<16xf32>
    %23 = vector.shape_cast %22 : vector<16xf32> to vector<1x16xf32>
    %cst_10 = arith.constant 1.280000e+02 : f32
    %24 = vector.broadcast %cst_10 : f32 to vector<1x16xf32>
    %25 = arith.divf %23, %24 : vector<1x16xf32>
    %26 = vector.broadcast %25 : vector<1x16xf32> to vector<128x16xf32>
    %27 = arith.subf %21, %26 : vector<128x16xf32>
    %28 = arith.mulf %27, %27 : vector<128x16xf32>
    %cst_11 = arith.constant dense<0.000000e+00> : vector<16xf32>
    %29 = vector.multi_reduction <add>, %28, %cst_11 [0] : vector<128x16xf32> to vector<16xf32>
    %30 = vector.shape_cast %29 : vector<16xf32> to vector<1x16xf32>
    %cst_12 = arith.constant 1.280000e+02 : f32
    %31 = vector.broadcast %cst_12 : f32 to vector<1x16xf32>
    %32 = arith.divf %30, %31 : vector<1x16xf32>
    %cst_13 = arith.constant 9.99999974E-6 : f32
    %33 = vector.broadcast %cst_13 : f32 to vector<1x16xf32>
    %34 = arith.addf %32, %33 : vector<1x16xf32>
    %35 = math.rsqrt %34 : vector<1x16xf32>
    %36 = vector.broadcast %35 : vector<1x16xf32> to vector<128x16xf32>
    %37 = arith.mulf %27, %36 : vector<128x16xf32>
    %cst_14 = arith.constant 0.000000e+00 : f32
    %38 = vector.broadcast %cst_14 : f32 to vector<128x16xf32>
    %39 = arith.maximumf %37, %38 : vector<128x16xf32>
    %40 = arith.truncf %39 : vector<128x16xf32> to vector<128x16xbf16>
    %c0_15 = arith.constant 0 : index
    %c0_16 = arith.constant 0 : index
    %41 = vector.load %arg2[%c0_15, %c0_16] : memref<128x16xbf16, #tpu.memory_space<vmem>>, vector<128x16xbf16>
    tpu.vector_store %arg2[%c0_15, %c0_16], %40 {strides = array<i32>} : memref<128x16xbf16, #tpu.memory_space<vmem>>, vector<128x16xbf16>,
    return
  }
}

module attributes {stable_mosaic.version = 11 : i64} {
  func.func @_fused_mm_kernel(%arg0: memref<128x32xf32, #tpu.memory_space<vmem>>, %arg1: memref<32x16xbf16, #tpu.memory_space<vmem>>, %arg2: memref<128x16xf32, #tpu.memory_space<vmem>>) attributes {dimension_semantics = [], scalar_prefetch = 0 : i64, scratch_operands = 0 : i64, tpu.core_type = #tpu.core_type<tc>} {
    %c0 = arith.constant 0 : index
    %c0_0 = arith.constant 0 : index
    %0 = vector.load %arg0[%c0, %c0_0] : memref<128x32xf32, #tpu.memory_space<vmem>>, vector<128x32xf32>
    %cst = arith.constant dense<0.000000e+00> : vector<32xf32>
    %1 = vector.multi_reduction <add>, %0, %cst [0] : vector<128x32xf32> to vector<32xf32>
    %2 = vector.shape_cast %1 : vector<32xf32> to vector<1x32xf32>
    %cst_1 = arith.constant 1.280000e+02 : f32
    %3 = vector.broadcast %cst_1 : f32 to vector<1x32xf32>
    %4 = arith.divf %2, %3 : vector<1x32xf32>
    %5 = vector.broadcast %4 : vector<1x32xf32> to vector<128x32xf32>
    %6 = arith.subf %0, %5 : vector<128x32xf32>
    %7 = arith.mulf %6, %6 : vector<128x32xf32>
    %cst_2 = arith.constant dense<0.000000e+00> : vector<32xf32>
    %8 = vector.multi_reduction <add>, %7, %cst_2 [0] : vector<128x32xf32> to vector<32xf32>
    %9 = vector.shape_cast %8 : vector<32xf32> to vector<1x32xf32>
    %cst_3 = arith.constant 1.280000e+02 : f32
    %10 = vector.broadcast %cst_3 : f32 to vector<1x32xf32>
    %11 = arith.divf %9, %10 : vector<1x32xf32>
    %cst_4 = arith.constant 9.99999974E-6 : f32
    %12 = vector.broadcast %cst_4 : f32 to vector<1x32xf32>
    %13 = arith.addf %11, %12 : vector<1x32xf32>
    %14 = math.rsqrt %13 : vector<1x32xf32>
    %15 = vector.broadcast %14 : vector<1x32xf32> to vector<128x32xf32>
    %16 = arith.mulf %6, %15 : vector<128x32xf32>
    %cst_5 = arith.constant 0.000000e+00 : f32
    %17 = vector.broadcast %cst_5 : f32 to vector<128x32xf32>
    %18 = arith.maximumf %16, %17 : vector<128x32xf32>
    %19 = arith.truncf %18 : vector<128x32xf32> to vector<128x32xbf16>
    %c0_6 = arith.constant 0 : index
    %c0_7 = arith.constant 0 : index
    %20 = vector.load %arg1[%c0_6, %c0_7] : memref<32x16xbf16, #tpu.memory_space<vmem>>, vector<32x16xbf16>
    %cst_8 = arith.constant dense<0.000000e+00> : vector<128x16xf32>
    %21 = tpu.matmul %19, %20, %cst_8 {dimension_numbers = #tpu.dot_dimension_numbers<[1], [0], [0], [1], [0, 0, 1, 1], [], []>} : vector<128x32xbf16>, vector<32x16xbf16>, vector<128x16xf32> -> vector<128x16xf32>
    %c0_9 = arith.constant 0 : index
    %c0_10 = arith.constant 0 : index
    %22 = vector.load %arg2[%c0_9, %c0_10] : memref<128x16xf32, #tpu.memory_space<vmem>>, vector<128x16xf32>
    tpu.vector_store %arg2[%c0_9, %c0_10], %21 {strides = array<i32>} : memref<128x16xf32, #tpu.memory_space<vmem>>, vector<128x16xf32>,
    return
  }
}

module attributes {stable_mosaic.version = 11 : i64} {
  func.func @_pool_kernel(%arg0: memref<4x32x16xf32, #tpu.memory_space<vmem>>, %arg1: memref<32x16xf32, #tpu.memory_space<vmem>>) attributes {dimension_semantics = [], scalar_prefetch = 0 : i64, scratch_operands = 0 : i64, tpu.core_type = #tpu.core_type<tc>} {
    %c0 = arith.constant 0 : index
    %c0_0 = arith.constant 0 : index
    %c0_1 = arith.constant 0 : index
    %0 = vector.load %arg0[%c0, %c0_0, %c0_1] : memref<4x32x16xf32, #tpu.memory_space<vmem>>, vector<1x32x16xf32>
    %1 = vector.shape_cast %0 : vector<1x32x16xf32> to vector<32x16xf32>
    %c1 = arith.constant 1 : index
    %c0_2 = arith.constant 0 : index
    %c0_3 = arith.constant 0 : index
    %2 = vector.load %arg0[%c1, %c0_2, %c0_3] : memref<4x32x16xf32, #tpu.memory_space<vmem>>, vector<1x32x16xf32>
    %3 = vector.shape_cast %2 : vector<1x32x16xf32> to vector<32x16xf32>
    %4 = arith.addf %1, %3 : vector<32x16xf32>
    %c2 = arith.constant 2 : index
    %c0_4 = arith.constant 0 : index
    %c0_5 = arith.constant 0 : index
    %5 = vector.load %arg0[%c2, %c0_4, %c0_5] : memref<4x32x16xf32, #tpu.memory_space<vmem>>, vector<1x32x16xf32>
    %6 = vector.shape_cast %5 : vector<1x32x16xf32> to vector<32x16xf32>
    %7 = arith.addf %4, %6 : vector<32x16xf32>
    %c3 = arith.constant 3 : index
    %c0_6 = arith.constant 0 : index
    %c0_7 = arith.constant 0 : index
    %8 = vector.load %arg0[%c3, %c0_6, %c0_7] : memref<4x32x16xf32, #tpu.memory_space<vmem>>, vector<1x32x16xf32>
    %9 = vector.shape_cast %8 : vector<1x32x16xf32> to vector<32x16xf32>
    %10 = arith.addf %7, %9 : vector<32x16xf32>
    %cst = arith.constant 2.500000e-01 : f32
    %11 = vector.broadcast %cst : f32 to vector<32x16xf32>
    %12 = arith.mulf %10, %11 : vector<32x16xf32>
    %c0_8 = arith.constant 0 : index
    %c0_9 = arith.constant 0 : index
    %13 = vector.load %arg1[%c0_8, %c0_9] : memref<32x16xf32, #tpu.memory_space<vmem>>, vector<32x16xf32>
    tpu.vector_store %arg1[%c0_8, %c0_9], %12 {strides = array<i32>} : memref<32x16xf32, #tpu.memory_space<vmem>>, vector<32x16xf32>,
    return
  }
}

module attributes {stable_mosaic.version = 11 : i64} {
  func.func @_fused_mm_kernel(%arg0: memref<32x16xf32, #tpu.memory_space<vmem>>, %arg1: memref<16x16xbf16, #tpu.memory_space<vmem>>, %arg2: memref<32x16xbf16, #tpu.memory_space<vmem>>) attributes {dimension_semantics = [], scalar_prefetch = 0 : i64, scratch_operands = 0 : i64, tpu.core_type = #tpu.core_type<tc>} {
    %c0 = arith.constant 0 : index
    %c0_0 = arith.constant 0 : index
    %0 = vector.load %arg0[%c0, %c0_0] : memref<32x16xf32, #tpu.memory_space<vmem>>, vector<32x16xf32>
    %cst = arith.constant dense<0.000000e+00> : vector<16xf32>
    %1 = vector.multi_reduction <add>, %0, %cst [0] : vector<32x16xf32> to vector<16xf32>
    %2 = vector.shape_cast %1 : vector<16xf32> to vector<1x16xf32>
    %cst_1 = arith.constant 3.200000e+01 : f32
    %3 = vector.broadcast %cst_1 : f32 to vector<1x16xf32>
    %4 = arith.divf %2, %3 : vector<1x16xf32>
    %5 = vector.broadcast %4 : vector<1x16xf32> to vector<32x16xf32>
    %6 = arith.subf %0, %5 : vector<32x16xf32>
    %7 = arith.mulf %6, %6 : vector<32x16xf32>
    %cst_2 = arith.constant dense<0.000000e+00> : vector<16xf32>
    %8 = vector.multi_reduction <add>, %7, %cst_2 [0] : vector<32x16xf32> to vector<16xf32>
    %9 = vector.shape_cast %8 : vector<16xf32> to vector<1x16xf32>
    %cst_3 = arith.constant 3.200000e+01 : f32
    %10 = vector.broadcast %cst_3 : f32 to vector<1x16xf32>
    %11 = arith.divf %9, %10 : vector<1x16xf32>
    %cst_4 = arith.constant 9.99999974E-6 : f32
    %12 = vector.broadcast %cst_4 : f32 to vector<1x16xf32>
    %13 = arith.addf %11, %12 : vector<1x16xf32>
    %14 = math.rsqrt %13 : vector<1x16xf32>
    %15 = vector.broadcast %14 : vector<1x16xf32> to vector<32x16xf32>
    %16 = arith.mulf %6, %15 : vector<32x16xf32>
    %cst_5 = arith.constant 0.000000e+00 : f32
    %17 = vector.broadcast %cst_5 : f32 to vector<32x16xf32>
    %18 = arith.maximumf %16, %17 : vector<32x16xf32>
    %19 = arith.truncf %18 : vector<32x16xf32> to vector<32x16xbf16>
    %c0_6 = arith.constant 0 : index
    %c0_7 = arith.constant 0 : index
    %20 = vector.load %arg1[%c0_6, %c0_7] : memref<16x16xbf16, #tpu.memory_space<vmem>>, vector<16x16xbf16>
    %cst_8 = arith.constant dense<0.000000e+00> : vector<32x16xf32>
    %21 = tpu.matmul %19, %20, %cst_8 {dimension_numbers = #tpu.dot_dimension_numbers<[1], [0], [0], [1], [0, 0, 1, 1], [], []>} : vector<32x16xbf16>, vector<16x16xbf16>, vector<32x16xf32> -> vector<32x16xf32>
    %cst_9 = arith.constant dense<0.000000e+00> : vector<16xf32>
    %22 = vector.multi_reduction <add>, %21, %cst_9 [0] : vector<32x16xf32> to vector<16xf32>
    %23 = vector.shape_cast %22 : vector<16xf32> to vector<1x16xf32>
    %cst_10 = arith.constant 3.200000e+01 : f32
    %24 = vector.broadcast %cst_10 : f32 to vector<1x16xf32>
    %25 = arith.divf %23, %24 : vector<1x16xf32>
    %26 = vector.broadcast %25 : vector<1x16xf32> to vector<32x16xf32>
    %27 = arith.subf %21, %26 : vector<32x16xf32>
    %28 = arith.mulf %27, %27 : vector<32x16xf32>
    %cst_11 = arith.constant dense<0.000000e+00> : vector<16xf32>
    %29 = vector.multi_reduction <add>, %28, %cst_11 [0] : vector<32x16xf32> to vector<16xf32>
    %30 = vector.shape_cast %29 : vector<16xf32> to vector<1x16xf32>
    %cst_12 = arith.constant 3.200000e+01 : f32
    %31 = vector.broadcast %cst_12 : f32 to vector<1x16xf32>
    %32 = arith.divf %30, %31 : vector<1x16xf32>
    %cst_13 = arith.constant 9.99999974E-6 : f32
    %33 = vector.broadcast %cst_13 : f32 to vector<1x16xf32>
    %34 = arith.addf %32, %33 : vector<1x16xf32>
    %35 = math.rsqrt %34 : vector<1x16xf32>
    %36 = vector.broadcast %35 : vector<1x16xf32> to vector<32x16xf32>
    %37 = arith.mulf %27, %36 : vector<32x16xf32>
    %cst_14 = arith.constant 0.000000e+00 : f32
    %38 = vector.broadcast %cst_14 : f32 to vector<32x16xf32>
    %39 = arith.maximumf %37, %38 : vector<32x16xf32>
    %40 = arith.truncf %39 : vector<32x16xf32> to vector<32x16xbf16>
    %c0_15 = arith.constant 0 : index
    %c0_16 = arith.constant 0 : index
    %41 = vector.load %arg2[%c0_15, %c0_16] : memref<32x16xbf16, #tpu.memory_space<vmem>>, vector<32x16xbf16>
    tpu.vector_store %arg2[%c0_15, %c0_16], %40 {strides = array<i32>} : memref<32x16xbf16, #tpu.memory_space<vmem>>, vector<32x16xbf16>,
    return
  }
}

module attributes {stable_mosaic.version = 11 : i64} {
  func.func @_fused_mm_kernel(%arg0: memref<32x144xbf16, #tpu.memory_space<vmem>>, %arg1: memref<144x8xbf16, #tpu.memory_space<vmem>>, %arg2: memref<32x8xf32, #tpu.memory_space<vmem>>) attributes {dimension_semantics = [], scalar_prefetch = 0 : i64, scratch_operands = 0 : i64, tpu.core_type = #tpu.core_type<tc>} {
    %c0 = arith.constant 0 : index
    %c0_0 = arith.constant 0 : index
    %0 = vector.load %arg0[%c0, %c0_0] : memref<32x144xbf16, #tpu.memory_space<vmem>>, vector<32x144xbf16>
    %c0_1 = arith.constant 0 : index
    %c0_2 = arith.constant 0 : index
    %1 = vector.load %arg1[%c0_1, %c0_2] : memref<144x8xbf16, #tpu.memory_space<vmem>>, vector<144x8xbf16>
    %cst = arith.constant dense<0.000000e+00> : vector<32x8xf32>
    %2 = tpu.matmul %0, %1, %cst {dimension_numbers = #tpu.dot_dimension_numbers<[1], [0], [0], [1], [0, 0, 1, 1], [], []>} : vector<32x144xbf16>, vector<144x8xbf16>, vector<32x8xf32> -> vector<32x8xf32>
    %c0_3 = arith.constant 0 : index
    %c0_4 = arith.constant 0 : index
    %3 = vector.load %arg2[%c0_3, %c0_4] : memref<32x8xf32, #tpu.memory_space<vmem>>, vector<32x8xf32>
    tpu.vector_store %arg2[%c0_3, %c0_4], %2 {strides = array<i32>} : memref<32x8xf32, #tpu.memory_space<vmem>>, vector<32x8xf32>,
    return
  }
}

module attributes {stable_mosaic.version = 11 : i64} {
  func.func @_fused_mm_kernel(%arg0: memref<32x24xf32, #tpu.memory_space<vmem>>, %arg1: memref<24x16xbf16, #tpu.memory_space<vmem>>, %arg2: memref<32x16xbf16, #tpu.memory_space<vmem>>) attributes {dimension_semantics = [], scalar_prefetch = 0 : i64, scratch_operands = 0 : i64, tpu.core_type = #tpu.core_type<tc>} {
    %c0 = arith.constant 0 : index
    %c0_0 = arith.constant 0 : index
    %0 = vector.load %arg0[%c0, %c0_0] : memref<32x24xf32, #tpu.memory_space<vmem>>, vector<32x24xf32>
    %cst = arith.constant dense<0.000000e+00> : vector<24xf32>
    %1 = vector.multi_reduction <add>, %0, %cst [0] : vector<32x24xf32> to vector<24xf32>
    %2 = vector.shape_cast %1 : vector<24xf32> to vector<1x24xf32>
    %cst_1 = arith.constant 3.200000e+01 : f32
    %3 = vector.broadcast %cst_1 : f32 to vector<1x24xf32>
    %4 = arith.divf %2, %3 : vector<1x24xf32>
    %5 = vector.broadcast %4 : vector<1x24xf32> to vector<32x24xf32>
    %6 = arith.subf %0, %5 : vector<32x24xf32>
    %7 = arith.mulf %6, %6 : vector<32x24xf32>
    %cst_2 = arith.constant dense<0.000000e+00> : vector<24xf32>
    %8 = vector.multi_reduction <add>, %7, %cst_2 [0] : vector<32x24xf32> to vector<24xf32>
    %9 = vector.shape_cast %8 : vector<24xf32> to vector<1x24xf32>
    %cst_3 = arith.constant 3.200000e+01 : f32
    %10 = vector.broadcast %cst_3 : f32 to vector<1x24xf32>
    %11 = arith.divf %9, %10 : vector<1x24xf32>
    %cst_4 = arith.constant 9.99999974E-6 : f32
    %12 = vector.broadcast %cst_4 : f32 to vector<1x24xf32>
    %13 = arith.addf %11, %12 : vector<1x24xf32>
    %14 = math.rsqrt %13 : vector<1x24xf32>
    %15 = vector.broadcast %14 : vector<1x24xf32> to vector<32x24xf32>
    %16 = arith.mulf %6, %15 : vector<32x24xf32>
    %cst_5 = arith.constant 0.000000e+00 : f32
    %17 = vector.broadcast %cst_5 : f32 to vector<32x24xf32>
    %18 = arith.maximumf %16, %17 : vector<32x24xf32>
    %19 = arith.truncf %18 : vector<32x24xf32> to vector<32x24xbf16>
    %c0_6 = arith.constant 0 : index
    %c0_7 = arith.constant 0 : index
    %20 = vector.load %arg1[%c0_6, %c0_7] : memref<24x16xbf16, #tpu.memory_space<vmem>>, vector<24x16xbf16>
    %cst_8 = arith.constant dense<0.000000e+00> : vector<32x16xf32>
    %21 = tpu.matmul %19, %20, %cst_8 {dimension_numbers = #tpu.dot_dimension_numbers<[1], [0], [0], [1], [0, 0, 1, 1], [], []>} : vector<32x24xbf16>, vector<24x16xbf16>, vector<32x16xf32> -> vector<32x16xf32>
    %cst_9 = arith.constant dense<0.000000e+00> : vector<16xf32>
    %22 = vector.multi_reduction <add>, %21, %cst_9 [0] : vector<32x16xf32> to vector<16xf32>
    %23 = vector.shape_cast %22 : vector<16xf32> to vector<1x16xf32>
    %cst_10 = arith.constant 3.200000e+01 : f32
    %24 = vector.broadcast %cst_10 : f32 to vector<1x16xf32>
    %25 = arith.divf %23, %24 : vector<1x16xf32>
    %26 = vector.broadcast %25 : vector<1x16xf32> to vector<32x16xf32>
    %27 = arith.subf %21, %26 : vector<32x16xf32>
    %28 = arith.mulf %27, %27 : vector<32x16xf32>
    %cst_11 = arith.constant dense<0.000000e+00> : vector<16xf32>
    %29 = vector.multi_reduction <add>, %28, %cst_11 [0] : vector<32x16xf32> to vector<16xf32>
    %30 = vector.shape_cast %29 : vector<16xf32> to vector<1x16xf32>
    %cst_12 = arith.constant 3.200000e+01 : f32
    %31 = vector.broadcast %cst_12 : f32 to vector<1x16xf32>
    %32 = arith.divf %30, %31 : vector<1x16xf32>
    %cst_13 = arith.constant 9.99999974E-6 : f32
    %33 = vector.broadcast %cst_13 : f32 to vector<1x16xf32>
    %34 = arith.addf %32, %33 : vector<1x16xf32>
    %35 = math.rsqrt %34 : vector<1x16xf32>
    %36 = vector.broadcast %35 : vector<1x16xf32> to vector<32x16xf32>
    %37 = arith.mulf %27, %36 : vector<32x16xf32>
    %cst_14 = arith.constant 0.000000e+00 : f32
    %38 = vector.broadcast %cst_14 : f32 to vector<32x16xf32>
    %39 = arith.maximumf %37, %38 : vector<32x16xf32>
    %40 = arith.truncf %39 : vector<32x16xf32> to vector<32x16xbf16>
    %c0_15 = arith.constant 0 : index
    %c0_16 = arith.constant 0 : index
    %41 = vector.load %arg2[%c0_15, %c0_16] : memref<32x16xbf16, #tpu.memory_space<vmem>>, vector<32x16xbf16>
    tpu.vector_store %arg2[%c0_15, %c0_16], %40 {strides = array<i32>} : memref<32x16xbf16, #tpu.memory_space<vmem>>, vector<32x16xbf16>,
    return
  }
}

module attributes {stable_mosaic.version = 11 : i64} {
  func.func @_fused_mm_kernel(%arg0: memref<32x32xf32, #tpu.memory_space<vmem>>, %arg1: memref<32x16xbf16, #tpu.memory_space<vmem>>, %arg2: memref<32x16xf32, #tpu.memory_space<vmem>>) attributes {dimension_semantics = [], scalar_prefetch = 0 : i64, scratch_operands = 0 : i64, tpu.core_type = #tpu.core_type<tc>} {
    %c0 = arith.constant 0 : index
    %c0_0 = arith.constant 0 : index
    %0 = vector.load %arg0[%c0, %c0_0] : memref<32x32xf32, #tpu.memory_space<vmem>>, vector<32x32xf32>
    %cst = arith.constant dense<0.000000e+00> : vector<32xf32>
    %1 = vector.multi_reduction <add>, %0, %cst [0] : vector<32x32xf32> to vector<32xf32>
    %2 = vector.shape_cast %1 : vector<32xf32> to vector<1x32xf32>
    %cst_1 = arith.constant 3.200000e+01 : f32
    %3 = vector.broadcast %cst_1 : f32 to vector<1x32xf32>
    %4 = arith.divf %2, %3 : vector<1x32xf32>
    %5 = vector.broadcast %4 : vector<1x32xf32> to vector<32x32xf32>
    %6 = arith.subf %0, %5 : vector<32x32xf32>
    %7 = arith.mulf %6, %6 : vector<32x32xf32>
    %cst_2 = arith.constant dense<0.000000e+00> : vector<32xf32>
    %8 = vector.multi_reduction <add>, %7, %cst_2 [0] : vector<32x32xf32> to vector<32xf32>
    %9 = vector.shape_cast %8 : vector<32xf32> to vector<1x32xf32>
    %cst_3 = arith.constant 3.200000e+01 : f32
    %10 = vector.broadcast %cst_3 : f32 to vector<1x32xf32>
    %11 = arith.divf %9, %10 : vector<1x32xf32>
    %cst_4 = arith.constant 9.99999974E-6 : f32
    %12 = vector.broadcast %cst_4 : f32 to vector<1x32xf32>
    %13 = arith.addf %11, %12 : vector<1x32xf32>
    %14 = math.rsqrt %13 : vector<1x32xf32>
    %15 = vector.broadcast %14 : vector<1x32xf32> to vector<32x32xf32>
    %16 = arith.mulf %6, %15 : vector<32x32xf32>
    %cst_5 = arith.constant 0.000000e+00 : f32
    %17 = vector.broadcast %cst_5 : f32 to vector<32x32xf32>
    %18 = arith.maximumf %16, %17 : vector<32x32xf32>
    %19 = arith.truncf %18 : vector<32x32xf32> to vector<32x32xbf16>
    %c0_6 = arith.constant 0 : index
    %c0_7 = arith.constant 0 : index
    %20 = vector.load %arg1[%c0_6, %c0_7] : memref<32x16xbf16, #tpu.memory_space<vmem>>, vector<32x16xbf16>
    %cst_8 = arith.constant dense<0.000000e+00> : vector<32x16xf32>
    %21 = tpu.matmul %19, %20, %cst_8 {dimension_numbers = #tpu.dot_dimension_numbers<[1], [0], [0], [1], [0, 0, 1, 1], [], []>} : vector<32x32xbf16>, vector<32x16xbf16>, vector<32x16xf32> -> vector<32x16xf32>
    %c0_9 = arith.constant 0 : index
    %c0_10 = arith.constant 0 : index
    %22 = vector.load %arg2[%c0_9, %c0_10] : memref<32x16xf32, #tpu.memory_space<vmem>>, vector<32x16xf32>
    tpu.vector_store %arg2[%c0_9, %c0_10], %21 {strides = array<i32>} : memref<32x16xf32, #tpu.memory_space<vmem>>, vector<32x16xf32>,
    return
  }
}

module attributes {stable_mosaic.version = 11 : i64} {
  func.func @_pool_kernel(%arg0: memref<4x8x16xf32, #tpu.memory_space<vmem>>, %arg1: memref<8x16xf32, #tpu.memory_space<vmem>>) attributes {dimension_semantics = [], scalar_prefetch = 0 : i64, scratch_operands = 0 : i64, tpu.core_type = #tpu.core_type<tc>} {
    %c0 = arith.constant 0 : index
    %c0_0 = arith.constant 0 : index
    %c0_1 = arith.constant 0 : index
    %0 = vector.load %arg0[%c0, %c0_0, %c0_1] : memref<4x8x16xf32, #tpu.memory_space<vmem>>, vector<1x8x16xf32>
    %1 = vector.shape_cast %0 : vector<1x8x16xf32> to vector<8x16xf32>
    %c1 = arith.constant 1 : index
    %c0_2 = arith.constant 0 : index
    %c0_3 = arith.constant 0 : index
    %2 = vector.load %arg0[%c1, %c0_2, %c0_3] : memref<4x8x16xf32, #tpu.memory_space<vmem>>, vector<1x8x16xf32>
    %3 = vector.shape_cast %2 : vector<1x8x16xf32> to vector<8x16xf32>
    %4 = arith.addf %1, %3 : vector<8x16xf32>
    %c2 = arith.constant 2 : index
    %c0_4 = arith.constant 0 : index
    %c0_5 = arith.constant 0 : index
    %5 = vector.load %arg0[%c2, %c0_4, %c0_5] : memref<4x8x16xf32, #tpu.memory_space<vmem>>, vector<1x8x16xf32>
    %6 = vector.shape_cast %5 : vector<1x8x16xf32> to vector<8x16xf32>
    %7 = arith.addf %4, %6 : vector<8x16xf32>
    %c3 = arith.constant 3 : index
    %c0_6 = arith.constant 0 : index
    %c0_7 = arith.constant 0 : index
    %8 = vector.load %arg0[%c3, %c0_6, %c0_7] : memref<4x8x16xf32, #tpu.memory_space<vmem>>, vector<1x8x16xf32>
    %9 = vector.shape_cast %8 : vector<1x8x16xf32> to vector<8x16xf32>
    %10 = arith.addf %7, %9 : vector<8x16xf32>
    %cst = arith.constant 2.500000e-01 : f32
    %11 = vector.broadcast %cst : f32 to vector<8x16xf32>
    %12 = arith.mulf %10, %11 : vector<8x16xf32>
    %c0_8 = arith.constant 0 : index
    %c0_9 = arith.constant 0 : index
    %13 = vector.load %arg1[%c0_8, %c0_9] : memref<8x16xf32, #tpu.memory_space<vmem>>, vector<8x16xf32>
    tpu.vector_store %arg1[%c0_8, %c0_9], %12 {strides = array<i32>} : memref<8x16xf32, #tpu.memory_space<vmem>>, vector<8x16xf32>,
    return
  }
}

module attributes {stable_mosaic.version = 11 : i64} {
  func.func @_fused_mm_kernel(%arg0: memref<8x16xf32, #tpu.memory_space<vmem>>, %arg1: memref<16x16xbf16, #tpu.memory_space<vmem>>, %arg2: memref<8x16xbf16, #tpu.memory_space<vmem>>) attributes {dimension_semantics = [], scalar_prefetch = 0 : i64, scratch_operands = 0 : i64, tpu.core_type = #tpu.core_type<tc>} {
    %c0 = arith.constant 0 : index
    %c0_0 = arith.constant 0 : index
    %0 = vector.load %arg0[%c0, %c0_0] : memref<8x16xf32, #tpu.memory_space<vmem>>, vector<8x16xf32>
    %cst = arith.constant dense<0.000000e+00> : vector<16xf32>
    %1 = vector.multi_reduction <add>, %0, %cst [0] : vector<8x16xf32> to vector<16xf32>
    %2 = vector.shape_cast %1 : vector<16xf32> to vector<1x16xf32>
    %cst_1 = arith.constant 8.000000e+00 : f32
    %3 = vector.broadcast %cst_1 : f32 to vector<1x16xf32>
    %4 = arith.divf %2, %3 : vector<1x16xf32>
    %5 = vector.broadcast %4 : vector<1x16xf32> to vector<8x16xf32>
    %6 = arith.subf %0, %5 : vector<8x16xf32>
    %7 = arith.mulf %6, %6 : vector<8x16xf32>
    %cst_2 = arith.constant dense<0.000000e+00> : vector<16xf32>
    %8 = vector.multi_reduction <add>, %7, %cst_2 [0] : vector<8x16xf32> to vector<16xf32>
    %9 = vector.shape_cast %8 : vector<16xf32> to vector<1x16xf32>
    %cst_3 = arith.constant 8.000000e+00 : f32
    %10 = vector.broadcast %cst_3 : f32 to vector<1x16xf32>
    %11 = arith.divf %9, %10 : vector<1x16xf32>
    %cst_4 = arith.constant 9.99999974E-6 : f32
    %12 = vector.broadcast %cst_4 : f32 to vector<1x16xf32>
    %13 = arith.addf %11, %12 : vector<1x16xf32>
    %14 = math.rsqrt %13 : vector<1x16xf32>
    %15 = vector.broadcast %14 : vector<1x16xf32> to vector<8x16xf32>
    %16 = arith.mulf %6, %15 : vector<8x16xf32>
    %cst_5 = arith.constant 0.000000e+00 : f32
    %17 = vector.broadcast %cst_5 : f32 to vector<8x16xf32>
    %18 = arith.maximumf %16, %17 : vector<8x16xf32>
    %19 = arith.truncf %18 : vector<8x16xf32> to vector<8x16xbf16>
    %c0_6 = arith.constant 0 : index
    %c0_7 = arith.constant 0 : index
    %20 = vector.load %arg1[%c0_6, %c0_7] : memref<16x16xbf16, #tpu.memory_space<vmem>>, vector<16x16xbf16>
    %cst_8 = arith.constant dense<0.000000e+00> : vector<8x16xf32>
    %21 = tpu.matmul %19, %20, %cst_8 {dimension_numbers = #tpu.dot_dimension_numbers<[1], [0], [0], [1], [0, 0, 1, 1], [], []>} : vector<8x16xbf16>, vector<16x16xbf16>, vector<8x16xf32> -> vector<8x16xf32>
    %cst_9 = arith.constant dense<0.000000e+00> : vector<16xf32>
    %22 = vector.multi_reduction <add>, %21, %cst_9 [0] : vector<8x16xf32> to vector<16xf32>
    %23 = vector.shape_cast %22 : vector<16xf32> to vector<1x16xf32>
    %cst_10 = arith.constant 8.000000e+00 : f32
    %24 = vector.broadcast %cst_10 : f32 to vector<1x16xf32>
    %25 = arith.divf %23, %24 : vector<1x16xf32>
    %26 = vector.broadcast %25 : vector<1x16xf32> to vector<8x16xf32>
    %27 = arith.subf %21, %26 : vector<8x16xf32>
    %28 = arith.mulf %27, %27 : vector<8x16xf32>
    %cst_11 = arith.constant dense<0.000000e+00> : vector<16xf32>
    %29 = vector.multi_reduction <add>, %28, %cst_11 [0] : vector<8x16xf32> to vector<16xf32>
    %30 = vector.shape_cast %29 : vector<16xf32> to vector<1x16xf32>
    %cst_12 = arith.constant 8.000000e+00 : f32
    %31 = vector.broadcast %cst_12 : f32 to vector<1x16xf32>
    %32 = arith.divf %30, %31 : vector<1x16xf32>
    %cst_13 = arith.constant 9.99999974E-6 : f32
    %33 = vector.broadcast %cst_13 : f32 to vector<1x16xf32>
    %34 = arith.addf %32, %33 : vector<1x16xf32>
    %35 = math.rsqrt %34 : vector<1x16xf32>
    %36 = vector.broadcast %35 : vector<1x16xf32> to vector<8x16xf32>
    %37 = arith.mulf %27, %36 : vector<8x16xf32>
    %cst_14 = arith.constant 0.000000e+00 : f32
    %38 = vector.broadcast %cst_14 : f32 to vector<8x16xf32>
    %39 = arith.maximumf %37, %38 : vector<8x16xf32>
    %40 = arith.truncf %39 : vector<8x16xf32> to vector<8x16xbf16>
    %c0_15 = arith.constant 0 : index
    %c0_16 = arith.constant 0 : index
    %41 = vector.load %arg2[%c0_15, %c0_16] : memref<8x16xbf16, #tpu.memory_space<vmem>>, vector<8x16xbf16>
    tpu.vector_store %arg2[%c0_15, %c0_16], %40 {strides = array<i32>} : memref<8x16xbf16, #tpu.memory_space<vmem>>, vector<8x16xbf16>,
    return
  }
}

module attributes {stable_mosaic.version = 11 : i64} {
  func.func @_fused_mm_kernel(%arg0: memref<8x144xbf16, #tpu.memory_space<vmem>>, %arg1: memref<144x8xbf16, #tpu.memory_space<vmem>>, %arg2: memref<8x8xf32, #tpu.memory_space<vmem>>) attributes {dimension_semantics = [], scalar_prefetch = 0 : i64, scratch_operands = 0 : i64, tpu.core_type = #tpu.core_type<tc>} {
    %c0 = arith.constant 0 : index
    %c0_0 = arith.constant 0 : index
    %0 = vector.load %arg0[%c0, %c0_0] : memref<8x144xbf16, #tpu.memory_space<vmem>>, vector<8x144xbf16>
    %c0_1 = arith.constant 0 : index
    %c0_2 = arith.constant 0 : index
    %1 = vector.load %arg1[%c0_1, %c0_2] : memref<144x8xbf16, #tpu.memory_space<vmem>>, vector<144x8xbf16>
    %cst = arith.constant dense<0.000000e+00> : vector<8x8xf32>
    %2 = tpu.matmul %0, %1, %cst {dimension_numbers = #tpu.dot_dimension_numbers<[1], [0], [0], [1], [0, 0, 1, 1], [], []>} : vector<8x144xbf16>, vector<144x8xbf16>, vector<8x8xf32> -> vector<8x8xf32>
    %c0_3 = arith.constant 0 : index
    %c0_4 = arith.constant 0 : index
    %3 = vector.load %arg2[%c0_3, %c0_4] : memref<8x8xf32, #tpu.memory_space<vmem>>, vector<8x8xf32>
    tpu.vector_store %arg2[%c0_3, %c0_4], %2 {strides = array<i32>} : memref<8x8xf32, #tpu.memory_space<vmem>>, vector<8x8xf32>,
    return
  }
}

module attributes {stable_mosaic.version = 11 : i64} {
  func.func @_fused_mm_kernel(%arg0: memref<8x24xf32, #tpu.memory_space<vmem>>, %arg1: memref<24x16xbf16, #tpu.memory_space<vmem>>, %arg2: memref<8x16xbf16, #tpu.memory_space<vmem>>) attributes {dimension_semantics = [], scalar_prefetch = 0 : i64, scratch_operands = 0 : i64, tpu.core_type = #tpu.core_type<tc>} {
    %c0 = arith.constant 0 : index
    %c0_0 = arith.constant 0 : index
    %0 = vector.load %arg0[%c0, %c0_0] : memref<8x24xf32, #tpu.memory_space<vmem>>, vector<8x24xf32>
    %cst = arith.constant dense<0.000000e+00> : vector<24xf32>
    %1 = vector.multi_reduction <add>, %0, %cst [0] : vector<8x24xf32> to vector<24xf32>
    %2 = vector.shape_cast %1 : vector<24xf32> to vector<1x24xf32>
    %cst_1 = arith.constant 8.000000e+00 : f32
    %3 = vector.broadcast %cst_1 : f32 to vector<1x24xf32>
    %4 = arith.divf %2, %3 : vector<1x24xf32>
    %5 = vector.broadcast %4 : vector<1x24xf32> to vector<8x24xf32>
    %6 = arith.subf %0, %5 : vector<8x24xf32>
    %7 = arith.mulf %6, %6 : vector<8x24xf32>
    %cst_2 = arith.constant dense<0.000000e+00> : vector<24xf32>
    %8 = vector.multi_reduction <add>, %7, %cst_2 [0] : vector<8x24xf32> to vector<24xf32>
    %9 = vector.shape_cast %8 : vector<24xf32> to vector<1x24xf32>
    %cst_3 = arith.constant 8.000000e+00 : f32
    %10 = vector.broadcast %cst_3 : f32 to vector<1x24xf32>
    %11 = arith.divf %9, %10 : vector<1x24xf32>
    %cst_4 = arith.constant 9.99999974E-6 : f32
    %12 = vector.broadcast %cst_4 : f32 to vector<1x24xf32>
    %13 = arith.addf %11, %12 : vector<1x24xf32>
    %14 = math.rsqrt %13 : vector<1x24xf32>
    %15 = vector.broadcast %14 : vector<1x24xf32> to vector<8x24xf32>
    %16 = arith.mulf %6, %15 : vector<8x24xf32>
    %cst_5 = arith.constant 0.000000e+00 : f32
    %17 = vector.broadcast %cst_5 : f32 to vector<8x24xf32>
    %18 = arith.maximumf %16, %17 : vector<8x24xf32>
    %19 = arith.truncf %18 : vector<8x24xf32> to vector<8x24xbf16>
    %c0_6 = arith.constant 0 : index
    %c0_7 = arith.constant 0 : index
    %20 = vector.load %arg1[%c0_6, %c0_7] : memref<24x16xbf16, #tpu.memory_space<vmem>>, vector<24x16xbf16>
    %cst_8 = arith.constant dense<0.000000e+00> : vector<8x16xf32>
    %21 = tpu.matmul %19, %20, %cst_8 {dimension_numbers = #tpu.dot_dimension_numbers<[1], [0], [0], [1], [0, 0, 1, 1], [], []>} : vector<8x24xbf16>, vector<24x16xbf16>, vector<8x16xf32> -> vector<8x16xf32>
    %cst_9 = arith.constant dense<0.000000e+00> : vector<16xf32>
    %22 = vector.multi_reduction <add>, %21, %cst_9 [0] : vector<8x16xf32> to vector<16xf32>
    %23 = vector.shape_cast %22 : vector<16xf32> to vector<1x16xf32>
    %cst_10 = arith.constant 8.000000e+00 : f32
    %24 = vector.broadcast %cst_10 : f32 to vector<1x16xf32>
    %25 = arith.divf %23, %24 : vector<1x16xf32>
    %26 = vector.broadcast %25 : vector<1x16xf32> to vector<8x16xf32>
    %27 = arith.subf %21, %26 : vector<8x16xf32>
    %28 = arith.mulf %27, %27 : vector<8x16xf32>
    %cst_11 = arith.constant dense<0.000000e+00> : vector<16xf32>
    %29 = vector.multi_reduction <add>, %28, %cst_11 [0] : vector<8x16xf32> to vector<16xf32>
    %30 = vector.shape_cast %29 : vector<16xf32> to vector<1x16xf32>
    %cst_12 = arith.constant 8.000000e+00 : f32
    %31 = vector.broadcast %cst_12 : f32 to vector<1x16xf32>
    %32 = arith.divf %30, %31 : vector<1x16xf32>
    %cst_13 = arith.constant 9.99999974E-6 : f32
    %33 = vector.broadcast %cst_13 : f32 to vector<1x16xf32>
    %34 = arith.addf %32, %33 : vector<1x16xf32>
    %35 = math.rsqrt %34 : vector<1x16xf32>
    %36 = vector.broadcast %35 : vector<1x16xf32> to vector<8x16xf32>
    %37 = arith.mulf %27, %36 : vector<8x16xf32>
    %cst_14 = arith.constant 0.000000e+00 : f32
    %38 = vector.broadcast %cst_14 : f32 to vector<8x16xf32>
    %39 = arith.maximumf %37, %38 : vector<8x16xf32>
    %40 = arith.truncf %39 : vector<8x16xf32> to vector<8x16xbf16>
    %c0_15 = arith.constant 0 : index
    %c0_16 = arith.constant 0 : index
    %41 = vector.load %arg2[%c0_15, %c0_16] : memref<8x16xbf16, #tpu.memory_space<vmem>>, vector<8x16xbf16>
    tpu.vector_store %arg2[%c0_15, %c0_16], %40 {strides = array<i32>} : memref<8x16xbf16, #tpu.memory_space<vmem>>, vector<8x16xbf16>,
    return
  }
}

module attributes {stable_mosaic.version = 11 : i64} {
  func.func @_fused_mm_kernel(%arg0: memref<8x32xf32, #tpu.memory_space<vmem>>, %arg1: memref<32x16xbf16, #tpu.memory_space<vmem>>, %arg2: memref<8x16xf32, #tpu.memory_space<vmem>>) attributes {dimension_semantics = [], scalar_prefetch = 0 : i64, scratch_operands = 0 : i64, tpu.core_type = #tpu.core_type<tc>} {
    %c0 = arith.constant 0 : index
    %c0_0 = arith.constant 0 : index
    %0 = vector.load %arg0[%c0, %c0_0] : memref<8x32xf32, #tpu.memory_space<vmem>>, vector<8x32xf32>
    %cst = arith.constant dense<0.000000e+00> : vector<32xf32>
    %1 = vector.multi_reduction <add>, %0, %cst [0] : vector<8x32xf32> to vector<32xf32>
    %2 = vector.shape_cast %1 : vector<32xf32> to vector<1x32xf32>
    %cst_1 = arith.constant 8.000000e+00 : f32
    %3 = vector.broadcast %cst_1 : f32 to vector<1x32xf32>
    %4 = arith.divf %2, %3 : vector<1x32xf32>
    %5 = vector.broadcast %4 : vector<1x32xf32> to vector<8x32xf32>
    %6 = arith.subf %0, %5 : vector<8x32xf32>
    %7 = arith.mulf %6, %6 : vector<8x32xf32>
    %cst_2 = arith.constant dense<0.000000e+00> : vector<32xf32>
    %8 = vector.multi_reduction <add>, %7, %cst_2 [0] : vector<8x32xf32> to vector<32xf32>
    %9 = vector.shape_cast %8 : vector<32xf32> to vector<1x32xf32>
    %cst_3 = arith.constant 8.000000e+00 : f32
    %10 = vector.broadcast %cst_3 : f32 to vector<1x32xf32>
    %11 = arith.divf %9, %10 : vector<1x32xf32>
    %cst_4 = arith.constant 9.99999974E-6 : f32
    %12 = vector.broadcast %cst_4 : f32 to vector<1x32xf32>
    %13 = arith.addf %11, %12 : vector<1x32xf32>
    %14 = math.rsqrt %13 : vector<1x32xf32>
    %15 = vector.broadcast %14 : vector<1x32xf32> to vector<8x32xf32>
    %16 = arith.mulf %6, %15 : vector<8x32xf32>
    %cst_5 = arith.constant 0.000000e+00 : f32
    %17 = vector.broadcast %cst_5 : f32 to vector<8x32xf32>
    %18 = arith.maximumf %16, %17 : vector<8x32xf32>
    %19 = arith.truncf %18 : vector<8x32xf32> to vector<8x32xbf16>
    %c0_6 = arith.constant 0 : index
    %c0_7 = arith.constant 0 : index
    %20 = vector.load %arg1[%c0_6, %c0_7] : memref<32x16xbf16, #tpu.memory_space<vmem>>, vector<32x16xbf16>
    %cst_8 = arith.constant dense<0.000000e+00> : vector<8x16xf32>
    %21 = tpu.matmul %19, %20, %cst_8 {dimension_numbers = #tpu.dot_dimension_numbers<[1], [0], [0], [1], [0, 0, 1, 1], [], []>} : vector<8x32xbf16>, vector<32x16xbf16>, vector<8x16xf32> -> vector<8x16xf32>
    %c0_9 = arith.constant 0 : index
    %c0_10 = arith.constant 0 : index
    %22 = vector.load %arg2[%c0_9, %c0_10] : memref<8x16xf32, #tpu.memory_space<vmem>>, vector<8x16xf32>
    tpu.vector_store %arg2[%c0_9, %c0_10], %21 {strides = array<i32>} : memref<8x16xf32, #tpu.memory_space<vmem>>, vector<8x16xf32>,
    return
  }
}

module attributes {stable_mosaic.version = 11 : i64} {
  func.func @_pool_kernel(%arg0: memref<4x2x16xf32, #tpu.memory_space<vmem>>, %arg1: memref<2x16xf32, #tpu.memory_space<vmem>>) attributes {dimension_semantics = [], scalar_prefetch = 0 : i64, scratch_operands = 0 : i64, tpu.core_type = #tpu.core_type<tc>} {
    %c0 = arith.constant 0 : index
    %c0_0 = arith.constant 0 : index
    %c0_1 = arith.constant 0 : index
    %0 = vector.load %arg0[%c0, %c0_0, %c0_1] : memref<4x2x16xf32, #tpu.memory_space<vmem>>, vector<1x2x16xf32>
    %1 = vector.shape_cast %0 : vector<1x2x16xf32> to vector<2x16xf32>
    %c1 = arith.constant 1 : index
    %c0_2 = arith.constant 0 : index
    %c0_3 = arith.constant 0 : index
    %2 = vector.load %arg0[%c1, %c0_2, %c0_3] : memref<4x2x16xf32, #tpu.memory_space<vmem>>, vector<1x2x16xf32>
    %3 = vector.shape_cast %2 : vector<1x2x16xf32> to vector<2x16xf32>
    %4 = arith.addf %1, %3 : vector<2x16xf32>
    %c2 = arith.constant 2 : index
    %c0_4 = arith.constant 0 : index
    %c0_5 = arith.constant 0 : index
    %5 = vector.load %arg0[%c2, %c0_4, %c0_5] : memref<4x2x16xf32, #tpu.memory_space<vmem>>, vector<1x2x16xf32>
    %6 = vector.shape_cast %5 : vector<1x2x16xf32> to vector<2x16xf32>
    %7 = arith.addf %4, %6 : vector<2x16xf32>
    %c3 = arith.constant 3 : index
    %c0_6 = arith.constant 0 : index
    %c0_7 = arith.constant 0 : index
    %8 = vector.load %arg0[%c3, %c0_6, %c0_7] : memref<4x2x16xf32, #tpu.memory_space<vmem>>, vector<1x2x16xf32>
    %9 = vector.shape_cast %8 : vector<1x2x16xf32> to vector<2x16xf32>
    %10 = arith.addf %7, %9 : vector<2x16xf32>
    %cst = arith.constant 2.500000e-01 : f32
    %11 = vector.broadcast %cst : f32 to vector<2x16xf32>
    %12 = arith.mulf %10, %11 : vector<2x16xf32>
    %c0_8 = arith.constant 0 : index
    %c0_9 = arith.constant 0 : index
    %13 = vector.load %arg1[%c0_8, %c0_9] : memref<2x16xf32, #tpu.memory_space<vmem>>, vector<2x16xf32>
    tpu.vector_store %arg1[%c0_8, %c0_9], %12 {strides = array<i32>} : memref<2x16xf32, #tpu.memory_space<vmem>>, vector<2x16xf32>,
    return
  }
}

module attributes {stable_mosaic.version = 11 : i64} {
  func.func @_fused_mm_kernel(%arg0: memref<2x16xf32, #tpu.memory_space<vmem>>, %arg1: memref<16x16xbf16, #tpu.memory_space<vmem>>, %arg2: memref<2x16xbf16, #tpu.memory_space<vmem>>) attributes {dimension_semantics = [], scalar_prefetch = 0 : i64, scratch_operands = 0 : i64, tpu.core_type = #tpu.core_type<tc>} {
    %c0 = arith.constant 0 : index
    %c0_0 = arith.constant 0 : index
    %0 = vector.load %arg0[%c0, %c0_0] : memref<2x16xf32, #tpu.memory_space<vmem>>, vector<2x16xf32>
    %cst = arith.constant dense<0.000000e+00> : vector<16xf32>
    %1 = vector.multi_reduction <add>, %0, %cst [0] : vector<2x16xf32> to vector<16xf32>
    %2 = vector.shape_cast %1 : vector<16xf32> to vector<1x16xf32>
    %cst_1 = arith.constant 2.000000e+00 : f32
    %3 = vector.broadcast %cst_1 : f32 to vector<1x16xf32>
    %4 = arith.divf %2, %3 : vector<1x16xf32>
    %5 = vector.broadcast %4 : vector<1x16xf32> to vector<2x16xf32>
    %6 = arith.subf %0, %5 : vector<2x16xf32>
    %7 = arith.mulf %6, %6 : vector<2x16xf32>
    %cst_2 = arith.constant dense<0.000000e+00> : vector<16xf32>
    %8 = vector.multi_reduction <add>, %7, %cst_2 [0] : vector<2x16xf32> to vector<16xf32>
    %9 = vector.shape_cast %8 : vector<16xf32> to vector<1x16xf32>
    %cst_3 = arith.constant 2.000000e+00 : f32
    %10 = vector.broadcast %cst_3 : f32 to vector<1x16xf32>
    %11 = arith.divf %9, %10 : vector<1x16xf32>
    %cst_4 = arith.constant 9.99999974E-6 : f32
    %12 = vector.broadcast %cst_4 : f32 to vector<1x16xf32>
    %13 = arith.addf %11, %12 : vector<1x16xf32>
    %14 = math.rsqrt %13 : vector<1x16xf32>
    %15 = vector.broadcast %14 : vector<1x16xf32> to vector<2x16xf32>
    %16 = arith.mulf %6, %15 : vector<2x16xf32>
    %cst_5 = arith.constant 0.000000e+00 : f32
    %17 = vector.broadcast %cst_5 : f32 to vector<2x16xf32>
    %18 = arith.maximumf %16, %17 : vector<2x16xf32>
    %19 = arith.truncf %18 : vector<2x16xf32> to vector<2x16xbf16>
    %c0_6 = arith.constant 0 : index
    %c0_7 = arith.constant 0 : index
    %20 = vector.load %arg1[%c0_6, %c0_7] : memref<16x16xbf16, #tpu.memory_space<vmem>>, vector<16x16xbf16>
    %cst_8 = arith.constant dense<0.000000e+00> : vector<2x16xf32>
    %21 = tpu.matmul %19, %20, %cst_8 {dimension_numbers = #tpu.dot_dimension_numbers<[1], [0], [0], [1], [0, 0, 1, 1], [], []>} : vector<2x16xbf16>, vector<16x16xbf16>, vector<2x16xf32> -> vector<2x16xf32>
    %cst_9 = arith.constant dense<0.000000e+00> : vector<16xf32>
    %22 = vector.multi_reduction <add>, %21, %cst_9 [0] : vector<2x16xf32> to vector<16xf32>
    %23 = vector.shape_cast %22 : vector<16xf32> to vector<1x16xf32>
    %cst_10 = arith.constant 2.000000e+00 : f32
    %24 = vector.broadcast %cst_10 : f32 to vector<1x16xf32>
    %25 = arith.divf %23, %24 : vector<1x16xf32>
    %26 = vector.broadcast %25 : vector<1x16xf32> to vector<2x16xf32>
    %27 = arith.subf %21, %26 : vector<2x16xf32>
    %28 = arith.mulf %27, %27 : vector<2x16xf32>
    %cst_11 = arith.constant dense<0.000000e+00> : vector<16xf32>
    %29 = vector.multi_reduction <add>, %28, %cst_11 [0] : vector<2x16xf32> to vector<16xf32>
    %30 = vector.shape_cast %29 : vector<16xf32> to vector<1x16xf32>
    %cst_12 = arith.constant 2.000000e+00 : f32
    %31 = vector.broadcast %cst_12 : f32 to vector<1x16xf32>
    %32 = arith.divf %30, %31 : vector<1x16xf32>
    %cst_13 = arith.constant 9.99999974E-6 : f32
    %33 = vector.broadcast %cst_13 : f32 to vector<1x16xf32>
    %34 = arith.addf %32, %33 : vector<1x16xf32>
    %35 = math.rsqrt %34 : vector<1x16xf32>
    %36 = vector.broadcast %35 : vector<1x16xf32> to vector<2x16xf32>
    %37 = arith.mulf %27, %36 : vector<2x16xf32>
    %cst_14 = arith.constant 0.000000e+00 : f32
    %38 = vector.broadcast %cst_14 : f32 to vector<2x16xf32>
    %39 = arith.maximumf %37, %38 : vector<2x16xf32>
    %40 = arith.truncf %39 : vector<2x16xf32> to vector<2x16xbf16>
    %c0_15 = arith.constant 0 : index
    %c0_16 = arith.constant 0 : index
    %41 = vector.load %arg2[%c0_15, %c0_16] : memref<2x16xbf16, #tpu.memory_space<vmem>>, vector<2x16xbf16>
    tpu.vector_store %arg2[%c0_15, %c0_16], %40 {strides = array<i32>} : memref<2x16xbf16, #tpu.memory_space<vmem>>, vector<2x16xbf16>,
    return
  }
}

module attributes {stable_mosaic.version = 11 : i64} {
  func.func @_fused_mm_kernel(%arg0: memref<2x144xbf16, #tpu.memory_space<vmem>>, %arg1: memref<144x8xbf16, #tpu.memory_space<vmem>>, %arg2: memref<2x8xf32, #tpu.memory_space<vmem>>) attributes {dimension_semantics = [], scalar_prefetch = 0 : i64, scratch_operands = 0 : i64, tpu.core_type = #tpu.core_type<tc>} {
    %c0 = arith.constant 0 : index
    %c0_0 = arith.constant 0 : index
    %0 = vector.load %arg0[%c0, %c0_0] : memref<2x144xbf16, #tpu.memory_space<vmem>>, vector<2x144xbf16>
    %c0_1 = arith.constant 0 : index
    %c0_2 = arith.constant 0 : index
    %1 = vector.load %arg1[%c0_1, %c0_2] : memref<144x8xbf16, #tpu.memory_space<vmem>>, vector<144x8xbf16>
    %cst = arith.constant dense<0.000000e+00> : vector<2x8xf32>
    %2 = tpu.matmul %0, %1, %cst {dimension_numbers = #tpu.dot_dimension_numbers<[1], [0], [0], [1], [0, 0, 1, 1], [], []>} : vector<2x144xbf16>, vector<144x8xbf16>, vector<2x8xf32> -> vector<2x8xf32>
    %c0_3 = arith.constant 0 : index
    %c0_4 = arith.constant 0 : index
    %3 = vector.load %arg2[%c0_3, %c0_4] : memref<2x8xf32, #tpu.memory_space<vmem>>, vector<2x8xf32>
    tpu.vector_store %arg2[%c0_3, %c0_4], %2 {strides = array<i32>} : memref<2x8xf32, #tpu.memory_space<vmem>>, vector<2x8xf32>,
    return
  }
}

module attributes {stable_mosaic.version = 11 : i64} {
  func.func @_fused_mm_kernel(%arg0: memref<2x24xf32, #tpu.memory_space<vmem>>, %arg1: memref<24x16xbf16, #tpu.memory_space<vmem>>, %arg2: memref<2x16xbf16, #tpu.memory_space<vmem>>) attributes {dimension_semantics = [], scalar_prefetch = 0 : i64, scratch_operands = 0 : i64, tpu.core_type = #tpu.core_type<tc>} {
    %c0 = arith.constant 0 : index
    %c0_0 = arith.constant 0 : index
    %0 = vector.load %arg0[%c0, %c0_0] : memref<2x24xf32, #tpu.memory_space<vmem>>, vector<2x24xf32>
    %cst = arith.constant dense<0.000000e+00> : vector<24xf32>
    %1 = vector.multi_reduction <add>, %0, %cst [0] : vector<2x24xf32> to vector<24xf32>
    %2 = vector.shape_cast %1 : vector<24xf32> to vector<1x24xf32>
    %cst_1 = arith.constant 2.000000e+00 : f32
    %3 = vector.broadcast %cst_1 : f32 to vector<1x24xf32>
    %4 = arith.divf %2, %3 : vector<1x24xf32>
    %5 = vector.broadcast %4 : vector<1x24xf32> to vector<2x24xf32>
    %6 = arith.subf %0, %5 : vector<2x24xf32>
    %7 = arith.mulf %6, %6 : vector<2x24xf32>
    %cst_2 = arith.constant dense<0.000000e+00> : vector<24xf32>
    %8 = vector.multi_reduction <add>, %7, %cst_2 [0] : vector<2x24xf32> to vector<24xf32>
    %9 = vector.shape_cast %8 : vector<24xf32> to vector<1x24xf32>
    %cst_3 = arith.constant 2.000000e+00 : f32
    %10 = vector.broadcast %cst_3 : f32 to vector<1x24xf32>
    %11 = arith.divf %9, %10 : vector<1x24xf32>
    %cst_4 = arith.constant 9.99999974E-6 : f32
    %12 = vector.broadcast %cst_4 : f32 to vector<1x24xf32>
    %13 = arith.addf %11, %12 : vector<1x24xf32>
    %14 = math.rsqrt %13 : vector<1x24xf32>
    %15 = vector.broadcast %14 : vector<1x24xf32> to vector<2x24xf32>
    %16 = arith.mulf %6, %15 : vector<2x24xf32>
    %cst_5 = arith.constant 0.000000e+00 : f32
    %17 = vector.broadcast %cst_5 : f32 to vector<2x24xf32>
    %18 = arith.maximumf %16, %17 : vector<2x24xf32>
    %19 = arith.truncf %18 : vector<2x24xf32> to vector<2x24xbf16>
    %c0_6 = arith.constant 0 : index
    %c0_7 = arith.constant 0 : index
    %20 = vector.load %arg1[%c0_6, %c0_7] : memref<24x16xbf16, #tpu.memory_space<vmem>>, vector<24x16xbf16>
    %cst_8 = arith.constant dense<0.000000e+00> : vector<2x16xf32>
    %21 = tpu.matmul %19, %20, %cst_8 {dimension_numbers = #tpu.dot_dimension_numbers<[1], [0], [0], [1], [0, 0, 1, 1], [], []>} : vector<2x24xbf16>, vector<24x16xbf16>, vector<2x16xf32> -> vector<2x16xf32>
    %cst_9 = arith.constant dense<0.000000e+00> : vector<16xf32>
    %22 = vector.multi_reduction <add>, %21, %cst_9 [0] : vector<2x16xf32> to vector<16xf32>
    %23 = vector.shape_cast %22 : vector<16xf32> to vector<1x16xf32>
    %cst_10 = arith.constant 2.000000e+00 : f32
    %24 = vector.broadcast %cst_10 : f32 to vector<1x16xf32>
    %25 = arith.divf %23, %24 : vector<1x16xf32>
    %26 = vector.broadcast %25 : vector<1x16xf32> to vector<2x16xf32>
    %27 = arith.subf %21, %26 : vector<2x16xf32>
    %28 = arith.mulf %27, %27 : vector<2x16xf32>
    %cst_11 = arith.constant dense<0.000000e+00> : vector<16xf32>
    %29 = vector.multi_reduction <add>, %28, %cst_11 [0] : vector<2x16xf32> to vector<16xf32>
    %30 = vector.shape_cast %29 : vector<16xf32> to vector<1x16xf32>
    %cst_12 = arith.constant 2.000000e+00 : f32
    %31 = vector.broadcast %cst_12 : f32 to vector<1x16xf32>
    %32 = arith.divf %30, %31 : vector<1x16xf32>
    %cst_13 = arith.constant 9.99999974E-6 : f32
    %33 = vector.broadcast %cst_13 : f32 to vector<1x16xf32>
    %34 = arith.addf %32, %33 : vector<1x16xf32>
    %35 = math.rsqrt %34 : vector<1x16xf32>
    %36 = vector.broadcast %35 : vector<1x16xf32> to vector<2x16xf32>
    %37 = arith.mulf %27, %36 : vector<2x16xf32>
    %cst_14 = arith.constant 0.000000e+00 : f32
    %38 = vector.broadcast %cst_14 : f32 to vector<2x16xf32>
    %39 = arith.maximumf %37, %38 : vector<2x16xf32>
    %40 = arith.truncf %39 : vector<2x16xf32> to vector<2x16xbf16>
    %c0_15 = arith.constant 0 : index
    %c0_16 = arith.constant 0 : index
    %41 = vector.load %arg2[%c0_15, %c0_16] : memref<2x16xbf16, #tpu.memory_space<vmem>>, vector<2x16xbf16>
    tpu.vector_store %arg2[%c0_15, %c0_16], %40 {strides = array<i32>} : memref<2x16xbf16, #tpu.memory_space<vmem>>, vector<2x16xbf16>,
    return
  }
}

module attributes {stable_mosaic.version = 11 : i64} {
  func.func @_head_kernel(%arg0: memref<2x1x32xf32, #tpu.memory_space<vmem>>, %arg1: memref<32x10xbf16, #tpu.memory_space<vmem>>, %arg2: memref<1x10xf32, #tpu.memory_space<vmem>>, %arg3: memref<2x10xf32, #tpu.memory_space<vmem>>) attributes {dimension_semantics = [], scalar_prefetch = 0 : i64, scratch_operands = 0 : i64, tpu.core_type = #tpu.core_type<tc>} {
    %c0 = arith.constant 0 : index
    %c0_0 = arith.constant 0 : index
    %c0_1 = arith.constant 0 : index
    %0 = vector.load %arg0[%c0, %c0_0, %c0_1] : memref<2x1x32xf32, #tpu.memory_space<vmem>>, vector<2x1x32xf32>
    %cst = arith.constant dense<0.000000e+00> : vector<2x32xf32>
    %1 = vector.multi_reduction <add>, %0, %cst [1] : vector<2x1x32xf32> to vector<2x32xf32>
    %2 = vector.shape_cast %1 : vector<2x32xf32> to vector<2x1x32xf32>
    %cst_2 = arith.constant 1.000000e+00 : f32
    %3 = vector.broadcast %cst_2 : f32 to vector<2x1x32xf32>
    %4 = arith.divf %2, %3 : vector<2x1x32xf32>
    %cst_3 = arith.constant dense<0.000000e+00> : vector<1x32xf32>
    %5 = vector.multi_reduction <add>, %4, %cst_3 [0] : vector<2x1x32xf32> to vector<1x32xf32>
    %6 = vector.shape_cast %5 : vector<1x32xf32> to vector<1x1x32xf32>
    %cst_4 = arith.constant 2.000000e+00 : f32
    %7 = vector.broadcast %cst_4 : f32 to vector<1x1x32xf32>
    %8 = arith.divf %6, %7 : vector<1x1x32xf32>
    %9 = vector.broadcast %8 : vector<1x1x32xf32> to vector<2x1x32xf32>
    %10 = arith.subf %0, %9 : vector<2x1x32xf32>
    %11 = arith.mulf %10, %10 : vector<2x1x32xf32>
    %cst_5 = arith.constant dense<0.000000e+00> : vector<2x32xf32>
    %12 = vector.multi_reduction <add>, %11, %cst_5 [1] : vector<2x1x32xf32> to vector<2x32xf32>
    %13 = vector.shape_cast %12 : vector<2x32xf32> to vector<2x1x32xf32>
    %cst_6 = arith.constant 1.000000e+00 : f32
    %14 = vector.broadcast %cst_6 : f32 to vector<2x1x32xf32>
    %15 = arith.divf %13, %14 : vector<2x1x32xf32>
    %cst_7 = arith.constant dense<0.000000e+00> : vector<1x32xf32>
    %16 = vector.multi_reduction <add>, %15, %cst_7 [0] : vector<2x1x32xf32> to vector<1x32xf32>
    %17 = vector.shape_cast %16 : vector<1x32xf32> to vector<1x1x32xf32>
    %cst_8 = arith.constant 2.000000e+00 : f32
    %18 = vector.broadcast %cst_8 : f32 to vector<1x1x32xf32>
    %19 = arith.divf %17, %18 : vector<1x1x32xf32>
    %cst_9 = arith.constant 9.99999974E-6 : f32
    %20 = vector.broadcast %cst_9 : f32 to vector<1x1x32xf32>
    %21 = arith.addf %19, %20 : vector<1x1x32xf32>
    %22 = math.rsqrt %21 : vector<1x1x32xf32>
    %23 = vector.broadcast %22 : vector<1x1x32xf32> to vector<2x1x32xf32>
    %24 = arith.mulf %10, %23 : vector<2x1x32xf32>
    %cst_10 = arith.constant 0.000000e+00 : f32
    %25 = vector.broadcast %cst_10 : f32 to vector<2x1x32xf32>
    %26 = arith.maximumf %24, %25 : vector<2x1x32xf32>
    %cst_11 = arith.constant dense<0.000000e+00> : vector<2x32xf32>
    %27 = vector.multi_reduction <add>, %26, %cst_11 [1] : vector<2x1x32xf32> to vector<2x32xf32>
    %28 = arith.truncf %27 : vector<2x32xf32> to vector<2x32xbf16>
    %c0_12 = arith.constant 0 : index
    %c0_13 = arith.constant 0 : index
    %29 = vector.load %arg1[%c0_12, %c0_13] : memref<32x10xbf16, #tpu.memory_space<vmem>>, vector<32x10xbf16>
    %cst_14 = arith.constant dense<0.000000e+00> : vector<2x10xf32>
    %30 = tpu.matmul %28, %29, %cst_14 {dimension_numbers = #tpu.dot_dimension_numbers<[1], [0], [0], [1], [0, 0, 1, 1], [], []>} : vector<2x32xbf16>, vector<32x10xbf16>, vector<2x10xf32> -> vector<2x10xf32>
    %c0_15 = arith.constant 0 : index
    %c0_16 = arith.constant 0 : index
    %31 = vector.load %arg2[%c0_15, %c0_16] : memref<1x10xf32, #tpu.memory_space<vmem>>, vector<1x10xf32>
    %32 = vector.broadcast %31 : vector<1x10xf32> to vector<2x10xf32>
    %33 = arith.addf %30, %32 : vector<2x10xf32>
    %c0_17 = arith.constant 0 : index
    %c0_18 = arith.constant 0 : index
    %34 = vector.load %arg3[%c0_17, %c0_18] : memref<2x10xf32, #tpu.memory_space<vmem>>, vector<2x10xf32>
    tpu.vector_store %arg3[%c0_17, %c0_18], %33 {strides = array<i32>} : memref<2x10xf32, #tpu.memory_space<vmem>>, vector<2x10xf32>,
    return
  }
}

</mosaic_0001>

<bundles_post_ra>
// kernel: densenet_forward.25
= control target key start
LH: loop header
LB: loop body
LE: loop exit
PB: predicated region body
PF: predicated region fallthrough
CT: control target
= control target key end

     0   :  { %v1665_v0 = vmov 0   ;;  %vm440_vm0 = vcmask 154624   ;;  %vm537_vm1 = vcmask 1040384   ;;  %vm538_vm2 = vcmask 1041408   ;;  %s3220_s1 = inlined_call_operand.vmem [shape: bf16[147,16], index: 1, kind: input, shape index: {}]   ;;  %s3221_s0 = inlined_call_operand.vmem [shape: bf16[512,147], index: 0, kind: input, shape index: {}]   ;;  %s3222_s2 = inlined_call_operand.vmem [shape: f32[512,16], index: 2, kind: output, shape index: {}]  }
   0x1   :  { %544 = vmatprep.subr.bf16.mxu0 %v1665_v0  ;;  %v1557_v1 = vld [vmem:[%s3220_s1 + $0x38] sm:$0xff]   ;;  %1535 = vmatprep.subr.bf16.mxu1 %v1665_v0  ;;  %v1558_v2 = vld [vmem:[%s3220_s1 + $0x30] sm:$0xff]   ;;  %v1559_v3 = vld [vmem:[%s3220_s1 + $0x28] sm:$0xff]   ;;  %v1666_v10 = vmov 65535   ;;  %vm833_vm3 = vcmask 130048  }
   0x2   :  { %545 = vmatpush1.bf16.msra.mxu0 %v1557_v1  ;;  %1545 = vmatpush1.bf16.msra.mxu1 %v1557_v1  ;;  %v1560_v4 = vld [vmem:[%s3220_s1 + $0x20] sm:$0xff]   ;;  %v1561_v6 = vld [vmem:[%s3220_s1 + $0x18] sm:$0xff]   ;;  %v1562_v7 = vld [vmem:[%s3220_s1 + $0x10] sm:$0xff]   ;;  %v539_v11 = vsel %vm537_vm1, 4294967295, %v1666_v10 }
   0x3   :  { %546 = vmatprep.subr.bf16.mxu0 %v1665_v0  ;;  %1536 = vmatprep.subr.bf16.mxu1 %v1665_v0  ;;  %v1569_v5 = vld [vmem:[%s3221_s0 + $0x4] ss:$8 sps:$4 sm:$0xff]   ;;  %v1565_v13 = vld [vmem:[%s3220_s1 + $0x48] ss:$0 sps:$4 sm:$0x33]   ;;  %v540_v14 = vsel %vm538_vm2, %v539_v11, 0 }
   0x4   :  { %1503 = vmatprep.mubr.msk.bf16.mxu0 %vm440_vm0, %v1569_v5  ;;  %v1593_v8 = vld [vmem:[%s3221_s0 + $0x104] ss:$8 sps:$4 sm:$0xff]   ;;  %v542_v15 = vand.u32 %v1565_v13, %v540_v14  ;;  %v1567_v17 = vld [vmem:[%s3221_s0] ss:$8 sps:$4 sm:$0xff]   ;;  %v1570_v19 = vld [vmem:[%s3221_s0 + $0x14] ss:$8 sps:$4 sm:$0xff]  }
   0x5   :  { %v1563_v9 = vld [vmem:[%s3220_s1 + $0x8] sm:$0xff]   ;;  %1519 = vmatprep.mubr.msk.bf16.mxu1 %vm440_vm0, %v1593_v8  ;;  %v1564_v12 = vld [vmem:[%s3220_s1] sm:$0xff]   ;;  %v1597_v20 = vld [vmem:[%s3221_s0 + $0x114] ss:$8 sps:$4 sm:$0xff]  }
   0x6   :  { %547 = vmatpush1.bf16.msra.mxu0 %v1558_v2  ;;  %1546 = vmatpush1.bf16.msra.mxu1 %v1558_v2  ;;  %v1566_v16 = vld [vmem:[%s3220_s1 + $0x40] sm:$0xff]   ;;  %v1572_v21 = vld [vmem:[%s3221_s0 + $0x10] ss:$8 sps:$4 sm:$0xff]   ;;  %v1576_v27 = vld [vmem:[%s3221_s0 + $0x34] ss:$8 sps:$4 sm:$0xff]  }
   0x7   :  { %548 = vmatprep.subr.bf16.mxu0 %v1665_v0  ;;  %1537 = vmatprep.subr.bf16.mxu1 %v1665_v0  ;;  %v1591_v18 = vld [vmem:[%s3221_s0 + $0x100] ss:$8 sps:$4 sm:$0xff]   ;;  %v1599_v22 = vld [vmem:[%s3221_s0 + $0x110] ss:$8 sps:$4 sm:$0xff]   ;;  %v1573_v23 = vld [vmem:[%s3221_s0 + $0x24] ss:$8 sps:$4 sm:$0xff]  }
   0x8   :  { %v1603_v24 = vld [vmem:[%s3221_s0 + $0x124] ss:$8 sps:$4 sm:$0xff]   ;;  %v1575_v25 = vld [vmem:[%s3221_s0 + $0x20] ss:$8 sps:$4 sm:$0xff]   ;;  %v1609_v28 = vld [vmem:[%s3221_s0 + $0x134] ss:$8 sps:$4 sm:$0xff]  }
   0x9   :  { %v1605_v26 = vld [vmem:[%s3221_s0 + $0x120] ss:$8 sps:$4 sm:$0xff]   ;;  %v1578_v29 = vld [vmem:[%s3221_s0 + $0x30] ss:$8 sps:$4 sm:$0xff]   ;;  %v1579_v31 = vld [vmem:[%s3221_s0 + $0x44] ss:$8 sps:$4 sm:$0xff]  }
   0xa   :  { %549 = vmatpush1.bf16.msra.mxu0 %v1559_v3  ;;  %1547 = vmatpush1.bf16.msra.mxu1 %v1559_v3  ;;  %v1611_v30 = vld [vmem:[%s3221_s0 + $0x130] ss:$8 sps:$4 sm:$0xff]   ;;  %v1615_v32 = vld [vmem:[%s3221_s0 + $0x144] ss:$8 sps:$4 sm:$0xff]   ;;  %v1581_v33 = vld [vmem:[%s3221_s0 + $0x40] ss:$8 sps:$4 sm:$0xff]  }
   0xb   :  { %550 = vmatprep.subr.bf16.mxu0 %v1665_v0  ;;  %1538 = vmatprep.subr.bf16.mxu1 %v1665_v0  ;;  %v1617_v34 = vld [vmem:[%s3221_s0 + $0x140] ss:$8 sps:$4 sm:$0xff]   ;;  %v1582_v35 = vld [vmem:[%s3221_s0 + $0x54] ss:$8 sps:$4 sm:$0xff]   ;;  %v1584_v37 = vld [vmem:[%s3221_s0 + $0x50] ss:$8 sps:$4 sm:$0xff]  }
   0xc   :  { %v1621_v36 = vld [vmem:[%s3221_s0 + $0x154] ss:$8 sps:$4 sm:$0xff]   ;;  %v1623_v38 = vld [vmem:[%s3221_s0 + $0x150] ss:$8 sps:$4 sm:$0xff]   ;;  %v1585_v39 = vld [vmem:[%s3221_s0 + $0x64] ss:$8 sps:$4 sm:$0xff]  }
   0xd   :  { %v1627_v40 = vld [vmem:[%s3221_s0 + $0x164] ss:$8 sps:$4 sm:$0xff]   ;;  %v1587_v41 = vld [vmem:[%s3221_s0 + $0x60] ss:$8 sps:$4 sm:$0xff]   ;;  %v1588_v43 = vld [vmem:[%s3221_s0 + $0x74] ss:$8 sps:$4 sm:$0xff]  }
   0xe   :  { %551 = vmatpush1.bf16.msra.mxu0 %v1560_v4  ;;  %1548 = vmatpush1.bf16.msra.mxu1 %v1560_v4  ;;  %v1629_v42 = vld [vmem:[%s3221_s0 + $0x160] ss:$8 sps:$4 sm:$0xff]   ;;  %v1633_v44 = vld [vmem:[%s3221_s0 + $0x174] ss:$8 sps:$4 sm:$0xff]   ;;  %v1590_v45 = vld [vmem:[%s3221_s0 + $0x70] ss:$8 sps:$4 sm:$0xff]  }
   0xf   :  { %552 = vmatprep.subr.bf16.mxu0 %v1665_v0  ;;  %1539 = vmatprep.subr.bf16.mxu1 %v1665_v0  ;;  %v1635_v46 = vld [vmem:[%s3221_s0 + $0x170] ss:$8 sps:$4 sm:$0xff]   ;;  %v1594_v47 = vld [vmem:[%s3221_s0 + $0x84] ss:$8 sps:$4 sm:$0xff]   ;;  %v1596_v49 = vld [vmem:[%s3221_s0 + $0x80] ss:$8 sps:$4 sm:$0xff]  }
  0x10   :  { %v1639_v48 = vld [vmem:[%s3221_s0 + $0x184] ss:$8 sps:$4 sm:$0xff]   ;;  %v1641_v50 = vld [vmem:[%s3221_s0 + $0x180] ss:$8 sps:$4 sm:$0xff]   ;;  %v1600_v51 = vld [vmem:[%s3221_s0 + $0x94] ss:$8 sps:$4 sm:$0xff]  }
  0x11   :  { %v1642_v52 = vld [vmem:[%s3221_s0 + $0x194] ss:$8 sps:$4 sm:$0xff]   ;;  %v1602_v53 = vld [vmem:[%s3221_s0 + $0x90] ss:$8 sps:$4 sm:$0xff]   ;;  %v1606_v55 = vld [vmem:[%s3221_s0 + $0xa4] ss:$8 sps:$4 sm:$0xff]  }
  0x12   :  { %553 = vmatpush1.bf16.msra.mxu0 %v1561_v6  ;;  %1549 = vmatpush1.bf16.msra.mxu1 %v1561_v6  ;;  %v1644_v54 = vld [vmem:[%s3221_s0 + $0x190] ss:$8 sps:$4 sm:$0xff]   ;;  %v1645_v56 = vld [vmem:[%s3221_s0 + $0x1a4] ss:$8 sps:$4 sm:$0xff]   ;;  %v1608_v57 = vld [vmem:[%s3221_s0 + $0xa0] ss:$8 sps:$4 sm:$0xff]  }
  0x13   :  { %554 = vmatprep.subr.bf16.mxu0 %v1665_v0  ;;  %1540 = vmatprep.subr.bf16.mxu1 %v1665_v0  ;;  %v1647_v58 = vld [vmem:[%s3221_s0 + $0x1a0] ss:$8 sps:$4 sm:$0xff]   ;;  %v1612_v59 = vld [vmem:[%s3221_s0 + $0xb4] ss:$8 sps:$4 sm:$0xff]   ;;  %v1614_v61 = vld [vmem:[%s3221_s0 + $0xb0] ss:$8 sps:$4 sm:$0xff]  }
  0x14   :  { %v1648_v60 = vld [vmem:[%s3221_s0 + $0x1b4] ss:$8 sps:$4 sm:$0xff]   ;;  %v1650_v62 = vld [vmem:[%s3221_s0 + $0x1b0] ss:$8 sps:$4 sm:$0xff]   ;;  %v1618_v63 = vld [vmem:[%s3221_s0 + $0xc4] ss:$8 sps:$4 sm:$0xff]  }
  0x15   :  { %v1620_v1 = vld [vmem:[%s3221_s0 + $0xc0] ss:$8 sps:$4 sm:$0xff]   ;;  %v1624_v3 = vld [vmem:[%s3221_s0 + $0xd4] ss:$8 sps:$4 sm:$0xff]   ;;  %v1626_v5 = vld [vmem:[%s3221_s0 + $0xd0] ss:$8 sps:$4 sm:$0xff]  }
  0x16   :  { %555 = vmatpush1.bf16.msra.mxu0 %v1562_v7  ;;  %1550 = vmatpush1.bf16.msra.mxu1 %v1562_v7  ;;  %v1653_v2 = vld [vmem:[%s3221_s0 + $0x1c0] ss:$8 sps:$4 sm:$0xff]   ;;  %v1654_v4 = vld [vmem:[%s3221_s0 + $0x1d4] ss:$8 sps:$4 sm:$0xff]   ;;  %v1656_v6 = vld [vmem:[%s3221_s0 + $0x1d0] ss:$8 sps:$4 sm:$0xff]  }
  0x17   :  { %556 = vmatprep.subr.bf16.mxu0 %v1665_v0  ;;  %1541 = vmatprep.subr.bf16.mxu1 %v1665_v0  ;;  %v1630_v7 = vld [vmem:[%s3221_s0 + $0xe4] ss:$8 sps:$4 sm:$0xff]   ;;  %v1659_v10 = vld [vmem:[%s3221_s0 + $0x1e0] ss:$8 sps:$4 sm:$0xff]   ;;  %v1636_v11 = vld [vmem:[%s3221_s0 + $0xf4] ss:$8 sps:$4 sm:$0xff]  }
  0x18   :  { %v1657_v8 = vld [vmem:[%s3221_s0 + $0x1e4] ss:$8 sps:$4 sm:$0xff]   ;;  %v1638_v13 = vld [vmem:[%s3221_s0 + $0xf0] ss:$8 sps:$4 sm:$0xff]  }
  0x19   :  { %v1662_v14 = vld [vmem:[%s3221_s0 + $0x1f0] ss:$8 sps:$4 sm:$0xff]  }
  0x1a   :  { %557 = vmatpush1.bf16.msra.mxu0 %v1563_v9  ;;  %1551 = vmatpush1.bf16.msra.mxu1 %v1563_v9  ;;  %v1632_v9 = vld [vmem:[%s3221_s0 + $0xe0] ss:$8 sps:$4 sm:$0xff]  }
  0x1b   :  { %558 = vmatprep.subr.bf16.mxu0 %v1665_v0  ;;  %1542 = vmatprep.subr.bf16.mxu1 %v1665_v0 }
  0x1e   :  { %559 = vmatpush1.bf16.msra.mxu0 %v1564_v12  ;;  %1552 = vmatpush1.bf16.msra.mxu1 %v1564_v12  ;;  %v1660_v12 = vld [vmem:[%s3221_s0 + $0x1f4] ss:$8 sps:$4 sm:$0xff]  }
  0x1f   :  { %572 = vmatprep.subr.bf16.mxu0 %v1665_v0  ;;  %1543 = vmatprep.subr.bf16.mxu1 %v1665_v0 }
  0x22   :  { %573 = vmatpush2.bf16.msra.mxu0 %v542_v15  ;;  %1553 = vmatpush2.bf16.msra.mxu1 %v542_v15 }
  0x23   :  { %574 = vmatprep.subr.bf16.mxu0 %v1665_v0  ;;  %1544 = vmatprep.subr.bf16.mxu1 %v1665_v0  ;;  %v1651_v0 = vld [vmem:[%s3221_s0 + $0x1c4] ss:$8 sps:$4 sm:$0xff]  }
  0x26   :  { %575 = vmatpush2.bf16.msra.mxu0 %v1566_v16  ;;  %1554 = vmatpush2.bf16.msra.mxu1 %v1566_v16 }
  0x29   :  { %577 = vmatmul.mubr.bf16.vlgmr.msra.gmra.mxu0 %v1567_v17  ;;  %705 = vmatmul.mubr.bf16.vlgmr.msra.gmra.mxu1 %v1591_v18 }
  0x2a   :  { %1504 = vmatprep.mubr.msk.bf16.mxu0 %vm440_vm0, %v1570_v19  ;;  %1520 = vmatprep.mubr.msk.bf16.mxu1 %vm440_vm0, %v1597_v20 }
  0x31   :  { %585 = vmatmul.mubr.bf16.gmra.mxu0 %v1572_v21  ;;  %713 = vmatmul.mubr.bf16.gmra.mxu1 %v1599_v22 }
  0x32   :  { %1505 = vmatprep.mubr.msk.bf16.mxu0 %vm440_vm0, %v1573_v23  ;;  %1521 = vmatprep.mubr.msk.bf16.mxu1 %vm440_vm0, %v1603_v24 }
  0x39   :  { %593 = vmatmul.mubr.bf16.gmra.mxu0 %v1575_v25  ;;  %721 = vmatmul.mubr.bf16.gmra.mxu1 %v1605_v26 }
  0x3a   :  { %1506 = vmatprep.mubr.msk.bf16.mxu0 %vm440_vm0, %v1576_v27  ;;  %1522 = vmatprep.mubr.msk.bf16.mxu1 %vm440_vm0, %v1609_v28 }
  0x41   :  { %601 = vmatmul.mubr.bf16.gmra.mxu0 %v1578_v29  ;;  %729 = vmatmul.mubr.bf16.gmra.mxu1 %v1611_v30 }
  0x42   :  { %1507 = vmatprep.mubr.msk.bf16.mxu0 %vm440_vm0, %v1579_v31  ;;  %1523 = vmatprep.mubr.msk.bf16.mxu1 %vm440_vm0, %v1615_v32 }
  0x49   :  { %609 = vmatmul.mubr.bf16.gmra.mxu0 %v1581_v33  ;;  %737 = vmatmul.mubr.bf16.gmra.mxu1 %v1617_v34 }
  0x4a   :  { %1508 = vmatprep.mubr.msk.bf16.mxu0 %vm440_vm0, %v1582_v35  ;;  %1524 = vmatprep.mubr.msk.bf16.mxu1 %vm440_vm0, %v1621_v36 }
  0x51   :  { %617 = vmatmul.mubr.bf16.gmra.mxu0 %v1584_v37  ;;  %745 = vmatmul.mubr.bf16.gmra.mxu1 %v1623_v38 }
  0x52   :  { %1509 = vmatprep.mubr.msk.bf16.mxu0 %vm440_vm0, %v1585_v39  ;;  %1525 = vmatprep.mubr.msk.bf16.mxu1 %vm440_vm0, %v1627_v40 }
  0x59   :  { %625 = vmatmul.mubr.bf16.gmra.mxu0 %v1587_v41  ;;  %753 = vmatmul.mubr.bf16.gmra.mxu1 %v1629_v42 }
  0x5a   :  { %1510 = vmatprep.mubr.msk.bf16.mxu0 %vm440_vm0, %v1588_v43  ;;  %1526 = vmatprep.mubr.msk.bf16.mxu1 %vm440_vm0, %v1633_v44 }
  0x61   :  { %633 = vmatmul.mubr.bf16.gmra.mxu0 %v1590_v45  ;;  %761 = vmatmul.mubr.bf16.gmra.mxu1 %v1635_v46 }
  0x62   :  { %1511 = vmatprep.mubr.msk.bf16.mxu0 %vm440_vm0, %v1594_v47  ;;  %1527 = vmatprep.mubr.msk.bf16.mxu1 %vm440_vm0, %v1639_v48 }
  0x69   :  { %641 = vmatmul.mubr.bf16.gmra.mxu0 %v1596_v49  ;;  %769 = vmatmul.mubr.bf16.gmra.mxu1 %v1641_v50 }
  0x6a   :  { %1512 = vmatprep.mubr.msk.bf16.mxu0 %vm440_vm0, %v1600_v51  ;;  %1528 = vmatprep.mubr.msk.bf16.mxu1 %vm440_vm0, %v1642_v52 }
  0x71   :  { %649 = vmatmul.mubr.bf16.gmra.mxu0 %v1602_v53  ;;  %777 = vmatmul.mubr.bf16.gmra.mxu1 %v1644_v54 }
  0x72   :  { %1513 = vmatprep.mubr.msk.bf16.mxu0 %vm440_vm0, %v1606_v55  ;;  %1529 = vmatprep.mubr.msk.bf16.mxu1 %vm440_vm0, %v1645_v56 }
  0x79   :  { %657 = vmatmul.mubr.bf16.gmra.mxu0 %v1608_v57  ;;  %785 = vmatmul.mubr.bf16.gmra.mxu1 %v1647_v58 }
  0x7a   :  { %1514 = vmatprep.mubr.msk.bf16.mxu0 %vm440_vm0, %v1612_v59  ;;  %1530 = vmatprep.mubr.msk.bf16.mxu1 %vm440_vm0, %v1648_v60 }
  0x81   :  { %665 = vmatmul.mubr.bf16.gmra.mxu0 %v1614_v61  ;;  %793 = vmatmul.mubr.bf16.gmra.mxu1 %v1650_v62 }
  0x82   :  { %1515 = vmatprep.mubr.msk.bf16.mxu0 %vm440_vm0, %v1618_v63  ;;  %1531 = vmatprep.mubr.msk.bf16.mxu1 %vm440_vm0, %v1651_v0 }
  0x89   :  { %673 = vmatmul.mubr.bf16.gmra.mxu0 %v1620_v1  ;;  %801 = vmatmul.mubr.bf16.gmra.mxu1 %v1653_v2 }
  0x8a   :  { %1516 = vmatprep.mubr.msk.bf16.mxu0 %vm440_vm0, %v1624_v3  ;;  %1532 = vmatprep.mubr.msk.bf16.mxu1 %vm440_vm0, %v1654_v4 }
  0x91   :  { %681 = vmatmul.mubr.bf16.gmra.mxu0 %v1626_v5  ;;  %809 = vmatmul.mubr.bf16.gmra.mxu1 %v1656_v6 }
  0x92   :  { %1517 = vmatprep.mubr.msk.bf16.mxu0 %vm440_vm0, %v1630_v7  ;;  %1533 = vmatprep.mubr.msk.bf16.mxu1 %vm440_vm0, %v1657_v8 }
  0x99   :  { %689 = vmatmul.mubr.bf16.gmra.mxu0 %v1632_v9  ;;  %817 = vmatmul.mubr.bf16.gmra.mxu1 %v1659_v10 }
  0x9a   :  { %1518 = vmatprep.mubr.msk.bf16.mxu0 %vm440_vm0, %v1636_v11  ;;  %1534 = vmatprep.mubr.msk.bf16.mxu1 %vm440_vm0, %v1660_v12 }
  0xa1   :  { %697 = vmatmul.mubr.bf16.gmra.mxu0 %v1638_v13  ;;  %825 = vmatmul.mubr.bf16.gmra.mxu1 %v1662_v14 }
  0xe9   :  { %v1936_v15 = vpop.f32.mrf.mxu0  ;;  %v1938_v16 = vpop.f32.mrf.mxu1 }
  0xeb   :  { %v580_v17 = vpop.f32.mrf.mxu0  ;;  %v708_v18 = vpop.f32.mrf.mxu1 }
  0xed   :  { %v1940_v19 = vpop.f32.mrf.mxu0  ;;  %v1942_v20 = vpop.f32.mrf.mxu1 }
  0xee   :  { %v835_v17 = vsel %vm833_vm3, %v1940_v19, 0.0 }
  0xef   :  { %v583_v21 = vpop.f32.mrf.mxu0  ;;  %v711_v22 = vpop.f32.mrf.mxu1 }
  0xf0   :  { %v834_v22 = vsel %vm833_vm3, %v1936_v15, 0.0 }
  0xf1   :  { %v1944_v23 = vpop.f32.mrf.mxu0  ;;  %v1946_v24 = vpop.f32.mrf.mxu1 }
  0xf3   :  { %v588_v25 = vpop.f32.mrf.mxu0  ;;  %v716_v26 = vpop.f32.mrf.mxu1 }
  0xf4   :  { %v837_v25 = vsel %vm833_vm3, %v1944_v23, 0.0  ;;  %v836_v26 = vadd.f32 %v835_v17, %v834_v22 }
  0xf5   :  { %v1948_v27 = vpop.f32.mrf.mxu0  ;;  %v1950_v28 = vpop.f32.mrf.mxu1 }
  0xf7   :  { %v591_v29 = vpop.f32.mrf.mxu0  ;;  %v719_v30 = vpop.f32.mrf.mxu1 }
  0xf9   :  { %v1952_v31 = vpop.f32.mrf.mxu0  ;;  %v1954_v32 = vpop.f32.mrf.mxu1 }
  0xfb   :  { %v596_v33 = vpop.f32.mrf.mxu0  ;;  %v724_v34 = vpop.f32.mrf.mxu1 }
  0xfc   :  { %v839_v33 = vsel %vm833_vm3, %v1948_v27, 0.0  ;;  %v838_v34 = vadd.f32 %v837_v25, %v836_v26 }
  0xfd   :  { %v1956_v35 = vpop.f32.mrf.mxu0  ;;  %v1958_v36 = vpop.f32.mrf.mxu1 }
  0xff   :  { %v599_v37 = vpop.f32.mrf.mxu0  ;;  %v727_v38 = vpop.f32.mrf.mxu1 }
 0x101   :  { %v1960_v39 = vpop.f32.mrf.mxu0  ;;  %v1962_v40 = vpop.f32.mrf.mxu1 }
 0x103   :  { %v604_v41 = vpop.f32.mrf.mxu0  ;;  %v732_v42 = vpop.f32.mrf.mxu1 }
 0x104   :  { %v841_v41 = vsel %vm833_vm3, %v1952_v31, 0.0  ;;  %v840_v42 = vadd.f32 %v839_v33, %v838_v34 }
 0x105   :  { %v1964_v43 = vpop.f32.mrf.mxu0  ;;  %v1966_v44 = vpop.f32.mrf.mxu1 }
 0x107   :  { %v607_v45 = vpop.f32.mrf.mxu0  ;;  %v735_v46 = vpop.f32.mrf.mxu1 }
 0x109   :  { %v1968_v47 = vpop.f32.mrf.mxu0  ;;  %v1970_v48 = vpop.f32.mrf.mxu1 }
 0x10b   :  { %v612_v49 = vpop.f32.mrf.mxu0  ;;  %v740_v50 = vpop.f32.mrf.mxu1 }
 0x10c   :  { %v843_v49 = vsel %vm833_vm3, %v1956_v35, 0.0  ;;  %v842_v50 = vadd.f32 %v841_v41, %v840_v42 }
 0x10d   :  { %v1972_v51 = vpop.f32.mrf.mxu0  ;;  %v1974_v52 = vpop.f32.mrf.mxu1 }
 0x10e   :  { %v851_v17 = vsel %vm833_vm3, %v1972_v51, 0.0 }
 0x10f   :  { %v615_v53 = vpop.f32.mrf.mxu0  ;;  %v743_v54 = vpop.f32.mrf.mxu1 }
 0x111   :  { %v1976_v55 = vpop.f32.mrf.mxu0  ;;  %v1978_v56 = vpop.f32.mrf.mxu1 }
 0x113   :  { %v620_v57 = vpop.f32.mrf.mxu0  ;;  %v748_v58 = vpop.f32.mrf.mxu1 }
 0x114   :  { %v845_v57 = vsel %vm833_vm3, %v1960_v39, 0.0  ;;  %v844_v58 = vadd.f32 %v843_v49, %v842_v50 }
 0x115   :  { %v1980_v59 = vpop.f32.mrf.mxu0  ;;  %v1982_v60 = vpop.f32.mrf.mxu1 }
 0x116   :  { %v855_v41 = vsel %vm833_vm3, %v1980_v59, 0.0 }
 0x117   :  { %v623_v61 = vpop.f32.mrf.mxu0  ;;  %v751_v62 = vpop.f32.mrf.mxu1 }
 0x119   :  { %v1984_v63 = vpop.f32.mrf.mxu0  ;;  %v1986_v0 = vpop.f32.mrf.mxu1 }
 0x11a   :  { %v857_v49 = vsel %vm833_vm3, %v1984_v63, 0.0 }
 0x11b   :  { %v628_v1 = vpop.f32.mrf.mxu0  ;;  %v756_v2 = vpop.f32.mrf.mxu1 }
 0x11c   :  { %v847_v1 = vsel %vm833_vm3, %v1964_v43, 0.0  ;;  %v846_v2 = vadd.f32 %v845_v57, %v844_v58 }
 0x11d   :  { %v1988_v3 = vpop.f32.mrf.mxu0  ;;  %v1990_v4 = vpop.f32.mrf.mxu1 }
 0x11f   :  { %v631_v5 = vpop.f32.mrf.mxu0  ;;  %v759_v6 = vpop.f32.mrf.mxu1 }
 0x121   :  { %v1992_v7 = vpop.f32.mrf.mxu0  ;;  %v1994_v8 = vpop.f32.mrf.mxu1 }
 0x123   :  { %v636_v9 = vpop.f32.mrf.mxu0  ;;  %v764_v10 = vpop.f32.mrf.mxu1 }
 0x124   :  { %v849_v9 = vsel %vm833_vm3, %v1968_v47, 0.0  ;;  %v848_v10 = vadd.f32 %v847_v1, %v846_v2 }
 0x125   :  { %v1996_v11 = vpop.f32.mrf.mxu0  ;;  %v1998_v12 = vpop.f32.mrf.mxu1 }
 0x126   :  { %v850_v22 = vadd.f32 %v849_v9, %v848_v10  ;;  %v861_v9 = vsel %vm833_vm3, %v1992_v7, 0.0 }
 0x127   :  { %v639_v13 = vpop.f32.mrf.mxu0  ;;  %v767_v14 = vpop.f32.mrf.mxu1 }
 0x129   :  { %v2002_v18 = vpop.f32.mrf.mxu0  ;;  %v2004_v21 = vpop.f32.mrf.mxu1 }
 0x12a   :  { %3258 = vst [vmem:[#allocation2_spill] sm:$0xff] %v2002_v18 }
 0x12b   :  { %v644_v29 = vpop.f32.mrf.mxu0  ;;  %v772_v30 = vpop.f32.mrf.mxu1 }
 0x12c   :  { %v853_v29 = vsel %vm833_vm3, %v1976_v55, 0.0  ;;  %v852_v30 = vadd.f32 %v851_v17, %v850_v22  ;;  %v863_v17 = vsel %vm833_vm3, %v1996_v11, 0.0 }
 0x12d   :  { %v2012_v37 = vpop.f32.mrf.mxu0  ;;  %v2014_v38 = vpop.f32.mrf.mxu1 }
 0x12e   :  { %3259 = vst [vmem:[#allocation3_spill] sm:$0xff] %v2012_v37  ;;  %v854_v42 = vadd.f32 %v853_v29, %v852_v30 }
 0x12f   :  { %v647_v45 = vpop.f32.mrf.mxu0  ;;  %v775_v46 = vpop.f32.mrf.mxu1 }
 0x130   :  { %v856_v50 = vadd.f32 %v855_v41, %v854_v42 }
 0x131   :  { %v2020_v53 = vpop.f32.mrf.mxu0  ;;  %v2022_v54 = vpop.f32.mrf.mxu1 }
 0x132   :  { %3260 = vst [vmem:[#allocation4_spill] sm:$0xff] %v2020_v53 }
 0x133   :  { %v652_v61 = vpop.f32.mrf.mxu0  ;;  %v780_v62 = vpop.f32.mrf.mxu1 }
 0x134   :  { %v859_v61 = vsel %vm833_vm3, %v1988_v3, 0.0  ;;  %v858_v62 = vadd.f32 %v857_v49, %v856_v50  ;;  %v867_v49 = vsel %vm833_vm3, %v2012_v37, 0.0 }
 0x135   :  { %v2028_v5 = vpop.f32.mrf.mxu0  ;;  %v2030_v6 = vpop.f32.mrf.mxu1 }
 0x136   :  { %3261 = vst [vmem:[#allocation5_spill] sm:$0xff] %v2028_v5  ;;  %v860_v10 = vadd.f32 %v859_v61, %v858_v62  ;;  %v869_v61 = vsel %vm833_vm3, %v2020_v53, 0.0 }
 0x137   :  { %v655_v13 = vpop.f32.mrf.mxu0  ;;  %v783_v14 = vpop.f32.mrf.mxu1 }
 0x138   :  { %v862_v22 = vadd.f32 %v861_v9, %v860_v10 }
 0x139   :  { %v2036_v25 = vpop.f32.mrf.mxu0  ;;  %v2038_v26 = vpop.f32.mrf.mxu1 }
 0x13a   :  { %3262 = vst [vmem:[#allocation6_spill] sm:$0xff] %v2036_v25 }
 0x13b   :  { %v660_v33 = vpop.f32.mrf.mxu0  ;;  %v788_v34 = vpop.f32.mrf.mxu1 }
 0x13c   :  { %v865_v33 = vsel %vm833_vm3, %v2002_v18, 0.0  ;;  %v864_v34 = vadd.f32 %v863_v17, %v862_v22 }
 0x13d   :  { %v2044_v45 = vpop.f32.mrf.mxu0  ;;  %v2046_v46 = vpop.f32.mrf.mxu1 }
 0x13e   :  { %3263 = vst [vmem:[#allocation7_spill] sm:$0xff] %v2044_v45  ;;  %v866_v50 = vadd.f32 %v865_v33, %v864_v34  ;;  %v873_v33 = vsel %vm833_vm3, %v2036_v25, 0.0  ;;  %v875_v53 = vsel %vm833_vm3, %v2044_v45, 0.0 }
 0x13f   :  { %v663_v57 = vpop.f32.mrf.mxu0  ;;  %v791_v58 = vpop.f32.mrf.mxu1 }
 0x140   :  { %v868_v62 = vadd.f32 %v867_v49, %v866_v50 }
 0x141   :  { %v2052_v1 = vpop.f32.mrf.mxu0  ;;  %v2054_v2 = vpop.f32.mrf.mxu1 }
 0x142   :  { %3264 = vst [vmem:[#allocation8_spill] sm:$0xff] %v2052_v1 }
 0x143   :  { %v668_v13 = vpop.f32.mrf.mxu0  ;;  %v796_v14 = vpop.f32.mrf.mxu1 }
 0x144   :  { %v871_v13 = vsel %vm833_vm3, %v2028_v5, 0.0  ;;  %v870_v14 = vadd.f32 %v869_v61, %v868_v62  ;;  %v877_v61 = vsel %vm833_vm3, %v2052_v1, 0.0 }
 0x145   :  { %v2060_v29 = vpop.f32.mrf.mxu0  ;;  %v2062_v30 = vpop.f32.mrf.mxu1 }
 0x146   :  { %3265 = vst [vmem:[#allocation9_spill] sm:$0xff] %v2060_v29  ;;  %v872_v34 = vadd.f32 %v871_v13, %v870_v14  ;;  %v879_v25 = vsel %vm833_vm3, %v2060_v29, 0.0 }
 0x147   :  { %v671_v41 = vpop.f32.mrf.mxu0  ;;  %v799_v42 = vpop.f32.mrf.mxu1 }
 0x148   :  { %v874_v49 = vadd.f32 %v873_v33, %v872_v34 }
 0x149   :  { %v2068_v57 = vpop.f32.mrf.mxu0  ;;  %v2070_v58 = vpop.f32.mrf.mxu1 }
 0x14a   :  { %3266 = vst [vmem:[#allocation10_spill] sm:$0xff] %v2068_v57  ;;  %v876_v62 = vadd.f32 %v875_v53, %v874_v49  ;;  %v881_v33 = vsel %vm833_vm3, %v2068_v57, 0.0 }
 0x14b   :  { %v676_v9 = vpop.f32.mrf.mxu0  ;;  %v804_v10 = vpop.f32.mrf.mxu1 }
 0x14c   :  { %v878_v13 = vadd.f32 %v877_v61, %v876_v62 }
 0x14d   :  { %v2076_v17 = vpop.f32.mrf.mxu0  ;;  %v2078_v22 = vpop.f32.mrf.mxu1 }
 0x14e   :  { %3267 = vst [vmem:[#allocation11_spill] sm:$0xff] %v2076_v17  ;;  %v880_v34 = vadd.f32 %v879_v25, %v878_v13  ;;  %v883_v1 = vsel %vm833_vm3, %v2076_v17, 0.0 }
 0x14f   :  { %v679_v41 = vpop.f32.mrf.mxu0  ;;  %v807_v42 = vpop.f32.mrf.mxu1 }
 0x150   :  { %v882_v53 = vadd.f32 %v881_v33, %v880_v34 }
 0x151   :  { %v2084_v50 = vpop.f32.mrf.mxu0  ;;  %v2086_v9 = vpop.f32.mrf.mxu1 }
 0x152   :  { %3268 = vst [vmem:[#allocation12_spill] sm:$0xff] %v2084_v50  ;;  %3269 = vst [vmem:[#allocation13_spill] sm:$0xff] %v2086_v9  ;;  %v885_v61 = vsel %vm833_vm3, %v2084_v50, 0.0  ;;  %v884_v62 = vadd.f32 %v883_v1, %v882_v53 }
 0x153   :  { %v684_v10 = vpop.f32.mrf.mxu0  ;;  %v812_v5 = vpop.f32.mrf.mxu1 }
 0x154   :  { %v886_v25 = vadd.f32 %v885_v61, %v884_v62 }
 0x155   :  { %v2092_v14 = vpop.f32.mrf.mxu0  ;;  %v2094_v41 = vpop.f32.mrf.mxu1 }
 0x156   :  { %3270 = vst [vmem:[#allocation14_spill] sm:$0xff] %v2092_v14  ;;  %3271 = vst [vmem:[#allocation15_spill] sm:$0xff] %v2094_v41  ;;  %v887_v57 = vsel %vm833_vm3, %v2092_v14, 0.0 }
 0x157   :  { %v687_v42 = vpop.f32.mrf.mxu0  ;;  %v815_v45 = vpop.f32.mrf.mxu1  ;;  %v888_v34 = vadd.f32 %v887_v57, %v886_v25 }
 0x159   :  { %v2100_v49 = vpop.f32.mrf.mxu0  ;;  %v2102_v5 = vpop.f32.mrf.mxu1 }
 0x15a   :  { %3272 = vst [vmem:[#allocation16_spill] sm:$0xff] %v2102_v5  ;;  %v889_v33 = vsel %vm833_vm3, %v2100_v49, 0.0 }
 0x15b   :  { %v692_v10 = vpop.f32.mrf.mxu0  ;;  %v820_v29 = vpop.f32.mrf.mxu1  ;;  %v890_v1 = vadd.f32 %v889_v33, %v888_v34 }
 0x15d   :  { %v2108_v13 = vpop.f32.mrf.mxu0  ;;  %v2110_v45 = vpop.f32.mrf.mxu1 }
 0x15e   :  { %3273 = vst [vmem:[#allocation17_spill] sm:$0xff] %v2108_v13  ;;  %v891_v50 = vsel %vm833_vm3, %v2108_v13, 0.0 }
 0x15f   :  { %v695_v42 = vpop.f32.mrf.mxu0  ;;  %v823_v17 = vpop.f32.mrf.mxu1  ;;  %v892_v62 = vadd.f32 %v891_v50, %v890_v1  ;;  %v899_v50 = vsel %vm833_vm3, %v1942_v20, 0.0 }
 0x160   :  { %v897_v42 = vsel %vm833_vm3, %v1938_v16, 0.0 }
 0x161   :  { %v2116_v53 = vpop.f32.mrf.mxu0  ;;  %v2118_v29 = vpop.f32.mrf.mxu1 }
 0x162   :  { %v893_v61 = vsel %vm833_vm3, %v2116_v53, 0.0 }
 0x163   :  { %v700_v10 = vpop.f32.mrf.mxu0  ;;  %v828_v14 = vpop.f32.mrf.mxu1  ;;  %v894_v37 = vadd.f32 %v893_v61, %v892_v62  ;;  %v903_v62 = vsel %vm833_vm3, %v1950_v28, 0.0 }
 0x164   :  { %v901_v14 = vsel %vm833_vm3, %v1946_v24, 0.0 }
 0x165   :  { %v2122_v18 = vpop.f32.mrf.mxu0  ;;  %v2124_v57 = vpop.f32.mrf.mxu1 }
 0x166   :  { %v895_v17 = vsel %vm833_vm3, %v2122_v18, 0.0 }
 0x167   :  { %v896_v25 = vadd.f32 %v895_v17, %v894_v37  ;;  %v703_v33 = vpop.f32.mrf.mxu0  ;;  %v831_v34 = vpop.f32.mrf.mxu1  ;;  %v905_v37 = vsel %vm833_vm3, %v1954_v32, 0.0 }
 0x168   :  { %v907_v33 = vsel %vm833_vm3, %v1958_v36, 0.0  ;;  %v909_v34 = vsel %vm833_vm3, %v1962_v40, 0.0 }
 0x169   :  { %v898_v13 = vadd.f32 %v897_v42, %v896_v25  ;;  %v911_v42 = vsel %vm833_vm3, %v1966_v44, 0.0 }
 0x16b   :  { %v900_v1 = vadd.f32 %v899_v50, %v898_v13 }
 0x16d   :  { %v902_v61 = vadd.f32 %v901_v14, %v900_v1  ;;  %v913_v1 = vsel %vm833_vm3, %v1970_v48, 0.0 }
 0x16f   :  { %v904_v10 = vadd.f32 %v903_v62, %v902_v61  ;;  %v915_v61 = vsel %vm833_vm3, %v1974_v52, 0.0 }
 0x171   :  { %v906_v17 = vadd.f32 %v905_v37, %v904_v10  ;;  %v917_v10 = vsel %vm833_vm3, %v1978_v56, 0.0 }
 0x173   :  { %v908_v25 = vadd.f32 %v907_v33, %v906_v17  ;;  %v919_v17 = vsel %vm833_vm3, %v1982_v60, 0.0 }
 0x175   :  { %v910_v13 = vadd.f32 %v909_v34, %v908_v25  ;;  %v921_v25 = vsel %vm833_vm3, %v1986_v0, 0.0 }
 0x177   :  { %v912_v50 = vadd.f32 %v911_v42, %v910_v13  ;;  %v923_v13 = vsel %vm833_vm3, %v1990_v4, 0.0 }
 0x179   :  { %v914_v14 = vadd.f32 %v913_v1, %v912_v50  ;;  %v925_v50 = vsel %vm833_vm3, %v1994_v8, 0.0 }
 0x17b   :  { %v916_v62 = vadd.f32 %v915_v61, %v914_v14  ;;  %v927_v14 = vsel %vm833_vm3, %v1998_v12, 0.0 }
 0x17d   :  { %v918_v37 = vadd.f32 %v917_v10, %v916_v62  ;;  %v929_v62 = vsel %vm833_vm3, %v2004_v21, 0.0 }
 0x17f   :  { %v920_v33 = vadd.f32 %v919_v17, %v918_v37  ;;  %v931_v37 = vsel %vm833_vm3, %v2014_v38, 0.0 }
 0x181   :  { %v922_v34 = vadd.f32 %v921_v25, %v920_v33  ;;  %v933_v33 = vsel %vm833_vm3, %v2022_v54, 0.0 }
 0x183   :  { %v924_v42 = vadd.f32 %v923_v13, %v922_v34  ;;  %v935_v34 = vsel %vm833_vm3, %v2030_v6, 0.0 }
 0x185   :  { %v926_v1 = vadd.f32 %v925_v50, %v924_v42  ;;  %v937_v42 = vsel %vm833_vm3, %v2038_v26, 0.0 }
 0x187   :  { %v928_v61 = vadd.f32 %v927_v14, %v926_v1  ;;  %v939_v1 = vsel %vm833_vm3, %v2046_v46, 0.0 }
 0x189   :  { %v930_v10 = vadd.f32 %v929_v62, %v928_v61  ;;  %v941_v61 = vsel %vm833_vm3, %v2054_v2, 0.0 }
 0x18b   :  { %v932_v17 = vadd.f32 %v931_v37, %v930_v10  ;;  %v943_v10 = vsel %vm833_vm3, %v2062_v30, 0.0 }
 0x18d   :  { %v934_v25 = vadd.f32 %v933_v33, %v932_v17  ;;  %v945_v17 = vsel %vm833_vm3, %v2070_v58, 0.0 }
 0x18f   :  { %v936_v13 = vadd.f32 %v935_v34, %v934_v25  ;;  %v947_v25 = vsel %vm833_vm3, %v2078_v22, 0.0 }
 0x191   :  { %v938_v50 = vadd.f32 %v937_v42, %v936_v13  ;;  %v949_v13 = vsel %vm833_vm3, %v2086_v9, 0.0 }
 0x193   :  { %v940_v14 = vadd.f32 %v939_v1, %v938_v50  ;;  %v951_v50 = vsel %vm833_vm3, %v2094_v41, 0.0 }
 0x195   :  { %v942_v62 = vadd.f32 %v941_v61, %v940_v14  ;;  %v953_v14 = vsel %vm833_vm3, %v2102_v5, 0.0 }
 0x197   :  { %v944_v37 = vadd.f32 %v943_v10, %v942_v62  ;;  %v955_v62 = vsel %vm833_vm3, %v2110_v45, 0.0 }
 0x199   :  { %v946_v33 = vadd.f32 %v945_v17, %v944_v37  ;;  %v957_v37 = vsel %vm833_vm3, %v2118_v29, 0.0 }
 0x19b   :  { %v948_v34 = vadd.f32 %v947_v25, %v946_v33  ;;  %v959_v33 = vsel %vm833_vm3, %v2124_v57, 0.0 }
 0x19d   :  { %v950_v42 = vadd.f32 %v949_v13, %v948_v34 }
 0x19f   :  { %v952_v1 = vadd.f32 %v951_v50, %v950_v42 }
 0x1a1   :  { %v954_v61 = vadd.f32 %v953_v14, %v952_v1 }
 0x1a3   :  { %v956_v10 = vadd.f32 %v955_v62, %v954_v61 }
 0x1a5   :  { %v958_v17 = vadd.f32 %v957_v37, %v956_v10 }
 0x1a7   :  { %v960_v25 = vadd.f32 %v959_v33, %v958_v17 }
 0x1a9   :  { %v961_v34 = vrot.slane %v960_v25, 4 }
 0x1ab   :  { %v962_v13 = vadd.f32 %v961_v34, %v960_v25 }
 0x1ad   :  { %v963_v41 = vrot.slane %v962_v13, 2 }
 0x1af   :  { %v964_v42 = vadd.f32 %v963_v41, %v962_v13 }
 0x1b1   :  { %v965_v50 = vrot.slane %v964_v42, 1 }
 0x1b3   :  { %v966_v9 = vadd.f32 %v965_v50, %v964_v42 }
 0x1b5   :  { %v2192_v5 = vmul.f32 0.001953125, %v966_v9 }
 0x1b7   :  { %v2196_v1 = vsub.f32 %v1936_v15, %v2192_v5  ;;  %v2200_v14 = vsub.f32 %v1940_v19, %v2192_v5  ;;  %v2204_v61 = vsub.f32 %v1944_v23, %v2192_v5  ;;  %v2208_v62 = vsub.f32 %v1948_v27, %v2192_v5 }
 0x1b8   :  { %v2216_v15 = vsub.f32 %v1952_v31, %v2192_v5  ;;  %v2222_v23 = vsub.f32 %v1956_v35, %v2192_v5  ;;  %v2230_v33 = vsub.f32 %v1960_v39, %v2192_v5  ;;  %v2237_v35 = vsub.f32 %v1964_v43, %v2192_v5 }
 0x1b9   :  { %v1033_v9 = vmul.f32 %v2196_v1, %v2196_v1  ;;  %v1034_v41 = vmul.f32 %v2200_v14, %v2200_v14  ;;  %v1035_v19 = vmul.f32 %v2204_v61, %v2204_v61  ;;  %v1036_v27 = vmul.f32 %v2208_v62, %v2208_v62 }
 0x1ba   :  { %v1037_v31 = vmul.f32 %v2216_v15, %v2216_v15  ;;  %v1038_v13 = vmul.f32 %v2222_v23, %v2222_v23  ;;  %v2244_v39 = vsub.f32 %v1968_v47, %v2192_v5  ;;  %v2251_v43 = vsub.f32 %v1972_v51, %v2192_v5 }
 0x1bb   :  { %v1097_v10 = vsel %vm833_vm3, %v1033_v9, 0.0  ;;  %v1098_v37 = vsel %vm833_vm3, %v1034_v41, 0.0  ;;  %v1100_v25 = vsel %vm833_vm3, %v1035_v19, 0.0  ;;  %v1102_v42 = vsel %vm833_vm3, %v1036_v27, 0.0 }
 0x1bc   :  { %v1099_v17 = vadd.f32 %v1098_v37, %v1097_v10  ;;  %v1039_v9 = vmul.f32 %v2230_v33, %v2230_v33  ;;  %v1104_v41 = vsel %vm833_vm3, %v1037_v31, 0.0  ;;  %v1040_v10 = vmul.f32 %v2237_v35, %v2237_v35 }
 0x1bd   :  { %v1106_v27 = vsel %vm833_vm3, %v1038_v13, 0.0  ;;  %v2258_v47 = vsub.f32 %v1976_v55, %v2192_v5  ;;  %v2265_v51 = vsub.f32 %v1980_v59, %v2192_v5  ;;  %v2272_v55 = vsub.f32 %v1984_v63, %v2192_v5 }
 0x1be   :  { %v1101_v34 = vadd.f32 %v1100_v25, %v1099_v17  ;;  %v1041_v17 = vmul.f32 %v2244_v39, %v2244_v39  ;;  %v1108_v31 = vsel %vm833_vm3, %v1039_v9, 0.0  ;;  %v1110_v13 = vsel %vm833_vm3, %v1040_v10, 0.0 }
 0x1bf   :  { %v2279_v59 = vsub.f32 %v1988_v3, %v2192_v5  ;;  %v2286_v63 = vsub.f32 %v1992_v7, %v2192_v5  ;;  %v2293_v3 = vsub.f32 %v1996_v11, %v2192_v5 }
 0x1c0   :  { %v1103_v50 = vadd.f32 %v1102_v42, %v1101_v34  ;;  %v1042_v34 = vmul.f32 %v2251_v43, %v2251_v43  ;;  %v1112_v9 = vsel %vm833_vm3, %v1041_v17, 0.0 }
 0x1c1   :  { %3274 = vst [vmem:[#allocation18_spill] sm:$0xff] %v2293_v3 }
 0x1c2   :  { %v1105_v19 = vadd.f32 %v1104_v41, %v1103_v50  ;;  %v1043_v50 = vmul.f32 %v2258_v47, %v2258_v47  ;;  %v1114_v10 = vsel %vm833_vm3, %v1042_v34, 0.0 }
 0x1c4   :  { %v1107_v37 = vadd.f32 %v1106_v27, %v1105_v19  ;;  %v1044_v19 = vmul.f32 %v2265_v51, %v2265_v51  ;;  %v1116_v17 = vsel %vm833_vm3, %v1043_v50, 0.0 }
 0x1c6   :  { %v1109_v25 = vadd.f32 %v1108_v31, %v1107_v37  ;;  %v1045_v37 = vmul.f32 %v2272_v55, %v2272_v55  ;;  %v1118_v34 = vsel %vm833_vm3, %v1044_v19, 0.0 }
 0x1c8   :  { %v1111_v42 = vadd.f32 %v1110_v13, %v1109_v25  ;;  %v1046_v25 = vmul.f32 %v2279_v59, %v2279_v59  ;;  %v1120_v50 = vsel %vm833_vm3, %v1045_v37, 0.0 }
 0x1ca   :  { %v1113_v41 = vadd.f32 %v1112_v9, %v1111_v42  ;;  %v3275_v42 = vld [vmem:[#allocation2_spill] sm:$0xff]  ;;  %v1047_v9 = vmul.f32 %v2286_v63, %v2286_v63  ;;  %v1122_v19 = vsel %vm833_vm3, %v1046_v25, 0.0 }
 0x1cb   :  { %v2300_v7 = vsub.f32 %v3275_v42, %v2192_v5 }
 0x1cc   :  { %v1115_v27 = vadd.f32 %v1114_v10, %v1113_v41  ;;  %v3277_v10 = vld [vmem:[#allocation3_spill] sm:$0xff]  ;;  %v1124_v37 = vsel %vm833_vm3, %v1047_v9, 0.0 }
 0x1cd   :  { %3276 = vst [vmem:[#allocation2_spill] sm:$0xff] %v2300_v7  ;;  %v2307_v11 = vsub.f32 %v3277_v10, %v2192_v5  ;;  %v1049_v42 = vmul.f32 %v2300_v7, %v2300_v7 }
 0x1ce   :  { %v1117_v31 = vadd.f32 %v1116_v17, %v1115_v27  ;;  %v1048_v27 = vmul.f32 %v2293_v3, %v2293_v3 }
 0x1cf   :  { %3278 = vst [vmem:[#allocation3_spill] sm:$0xff] %v2307_v11  ;;  %v1050_v3 = vmul.f32 %v2307_v11, %v2307_v11  ;;  %v1128_v9 = vsel %vm833_vm3, %v1049_v42, 0.0 }
 0x1d0   :  { %v1119_v13 = vadd.f32 %v1118_v34, %v1117_v31  ;;  %v3279_v31 = vld [vmem:[#allocation4_spill] sm:$0xff]  ;;  %v1126_v25 = vsel %vm833_vm3, %v1048_v27, 0.0 }
 0x1d1   :  { %v2314_v34 = vsub.f32 %v3279_v31, %v2192_v5  ;;  %v1130_v27 = vsel %vm833_vm3, %v1050_v3, 0.0 }
 0x1d2   :  { %v1121_v41 = vadd.f32 %v1120_v50, %v1119_v13  ;;  %v3281_v50 = vld [vmem:[#allocation5_spill] sm:$0xff] }
 0x1d3   :  { %3280 = vst [vmem:[#allocation4_spill] sm:$0xff] %v2314_v34  ;;  %v2321_v10 = vsub.f32 %v3281_v50, %v2192_v5  ;;  %v1051_v7 = vmul.f32 %v2314_v34, %v2314_v34 }
 0x1d4   :  { %v1123_v17 = vadd.f32 %v1122_v19, %v1121_v41  ;;  %v3283_v19 = vld [vmem:[#allocation6_spill] sm:$0xff] }
 0x1d5   :  { %3282 = vst [vmem:[#allocation5_spill] sm:$0xff] %v2321_v10  ;;  %v2328_v31 = vsub.f32 %v3283_v19, %v2192_v5  ;;  %v1052_v11 = vmul.f32 %v2321_v10, %v2321_v10  ;;  %v1132_v42 = vsel %vm833_vm3, %v1051_v7, 0.0 }
 0x1d6   :  { %v1125_v13 = vadd.f32 %v1124_v37, %v1123_v17  ;;  %v3285_v37 = vld [vmem:[#allocation7_spill] sm:$0xff] }
 0x1d7   :  { %3284 = vst [vmem:[#allocation6_spill] sm:$0xff] %v2328_v31  ;;  %v2335_v50 = vsub.f32 %v3285_v37, %v2192_v5  ;;  %v1053_v34 = vmul.f32 %v2328_v31, %v2328_v31  ;;  %v1134_v3 = vsel %vm833_vm3, %v1052_v11, 0.0 }
 0x1d8   :  { %v1127_v41 = vadd.f32 %v1126_v25, %v1125_v13  ;;  %v3287_v25 = vld [vmem:[#allocation8_spill] sm:$0xff] }
 0x1d9   :  { %3286 = vst [vmem:[#allocation7_spill] sm:$0xff] %v2335_v50  ;;  %v2342_v19 = vsub.f32 %v3287_v25, %v2192_v5  ;;  %v1054_v10 = vmul.f32 %v2335_v50, %v2335_v50  ;;  %v1136_v7 = vsel %vm833_vm3, %v1053_v34, 0.0 }
 0x1da   :  { %v1129_v17 = vadd.f32 %v1128_v9, %v1127_v41  ;;  %v3289_v9 = vld [vmem:[#allocation9_spill] sm:$0xff] }
 0x1db   :  { %3288 = vst [vmem:[#allocation8_spill] sm:$0xff] %v2342_v19  ;;  %v2349_v37 = vsub.f32 %v3289_v9, %v2192_v5  ;;  %v1055_v31 = vmul.f32 %v2342_v19, %v2342_v19  ;;  %v1138_v11 = vsel %vm833_vm3, %v1054_v10, 0.0 }
 0x1dc   :  { %v1131_v13 = vadd.f32 %v1130_v27, %v1129_v17  ;;  %v3291_v27 = vld [vmem:[#allocation10_spill] sm:$0xff] }
 0x1dd   :  { %3290 = vst [vmem:[#allocation9_spill] sm:$0xff] %v2349_v37  ;;  %v2356_v25 = vsub.f32 %v3291_v27, %v2192_v5  ;;  %v1056_v50 = vmul.f32 %v2349_v37, %v2349_v37  ;;  %v1140_v34 = vsel %vm833_vm3, %v1055_v31, 0.0 }
 0x1de   :  { %v1133_v41 = vadd.f32 %v1132_v42, %v1131_v13  ;;  %v3292_v42 = vld [vmem:[#allocation11_spill] sm:$0xff] }
 0x1df   :  { %v2363_v9 = vsub.f32 %v3292_v42, %v2192_v5  ;;  %v1057_v19 = vmul.f32 %v2356_v25, %v2356_v25  ;;  %v1142_v10 = vsel %vm833_vm3, %v1056_v50, 0.0 }
 0x1e0   :  { %v1135_v17 = vadd.f32 %v1134_v3, %v1133_v41  ;;  %v3294_v3 = vld [vmem:[#allocation12_spill] sm:$0xff] }
 0x1e1   :  { %3293 = vst [vmem:[#allocation10_spill] sm:$0xff] %v2363_v9  ;;  %v2370_v27 = vsub.f32 %v3294_v3, %v2192_v5  ;;  %v1058_v37 = vmul.f32 %v2363_v9, %v2363_v9  ;;  %v1144_v31 = vsel %vm833_vm3, %v1057_v19, 0.0 }
 0x1e2   :  { %v1137_v13 = vadd.f32 %v1136_v7, %v1135_v17  ;;  %v3295_v7 = vld [vmem:[#allocation14_spill] sm:$0xff] }
 0x1e3   :  { %v2377_v42 = vsub.f32 %v3295_v7, %v2192_v5  ;;  %v1059_v3 = vmul.f32 %v2370_v27, %v2370_v27  ;;  %v1146_v50 = vsel %vm833_vm3, %v1058_v37, 0.0 }
 0x1e4   :  { %v1139_v41 = vadd.f32 %v1138_v11, %v1137_v13  ;;  %v2384_v11 = vsub.f32 %v2100_v49, %v2192_v5  ;;  %v2398_v49 = vsub.f32 %v2116_v53, %v2192_v5  ;;  %v2412_v53 = vsub.f32 %v1938_v16, %v2192_v5 }
 0x1e5   :  { %v1060_v9 = vmul.f32 %v2377_v42, %v2377_v42  ;;  %v1148_v19 = vsel %vm833_vm3, %v1059_v3, 0.0  ;;  %v2426_v16 = vsub.f32 %v1946_v24, %v2192_v5  ;;  %v2440_v24 = vsub.f32 %v1954_v32, %v2192_v5 }
 0x1e6   :  { %v1141_v17 = vadd.f32 %v1140_v34, %v1139_v41  ;;  %v3296_v34 = vld [vmem:[#allocation17_spill] sm:$0xff]  ;;  %v2454_v32 = vsub.f32 %v1962_v40, %v2192_v5  ;;  %v2468_v40 = vsub.f32 %v1970_v48, %v2192_v5  ;;  %v2482_v48 = vsub.f32 %v1978_v56, %v2192_v5 }
 0x1e7   :  { %v2391_v7 = vsub.f32 %v3296_v34, %v2192_v5  ;;  %v1150_v37 = vsel %vm833_vm3, %v1060_v9, 0.0  ;;  %v2496_v56 = vsub.f32 %v1986_v0, %v2192_v5  ;;  %v2510_v0 = vsub.f32 %v1994_v8, %v2192_v5 }
 0x1e8   :  { %v1143_v13 = vadd.f32 %v1142_v10, %v1141_v17  ;;  %v1061_v10 = vmul.f32 %v2384_v11, %v2384_v11  ;;  %v2524_v8 = vsub.f32 %v2004_v21, %v2192_v5  ;;  %v2538_v21 = vsub.f32 %v2022_v54, %v2192_v5 }
 0x1e9   :  { %v1062_v34 = vmul.f32 %v2391_v7, %v2391_v7  ;;  %v2552_v54 = vsub.f32 %v2038_v26, %v2192_v5  ;;  %v2566_v26 = vsub.f32 %v2054_v2, %v2192_v5  ;;  %v2580_v2 = vsub.f32 %v2070_v58, %v2192_v5 }
 0x1ea   :  { %v1145_v41 = vadd.f32 %v1144_v31, %v1143_v13  ;;  %v2405_v31 = vsub.f32 %v2122_v18, %v2192_v5  ;;  %v1152_v3 = vsel %vm833_vm3, %v1061_v10, 0.0  ;;  %v2419_v18 = vsub.f32 %v1942_v20, %v2192_v5 }
 0x1eb   :  { %v1154_v9 = vsel %vm833_vm3, %v1062_v34, 0.0  ;;  %v2433_v20 = vsub.f32 %v1950_v28, %v2192_v5  ;;  %v2447_v28 = vsub.f32 %v1958_v36, %v2192_v5  ;;  %v2461_v36 = vsub.f32 %v1966_v44, %v2192_v5  ;;  %3297 = vst [vmem:[#allocation11_spill] sm:$0xff] %v2566_v26  ;;  %3299 = vst [vmem:[#allocation14_spill] sm:$0xff] %v2580_v2 }
 0x1ec   :  { %v1147_v17 = vadd.f32 %v1146_v50, %v1145_v41  ;;  %v1063_v50 = vmul.f32 %v2398_v49, %v2398_v49  ;;  %v2475_v44 = vsub.f32 %v1974_v52, %v2192_v5  ;;  %v2489_v52 = vsub.f32 %v1982_v60, %v2192_v5 }
 0x1ed   :  { %v2503_v60 = vsub.f32 %v1990_v4, %v2192_v5  ;;  %v2517_v4 = vsub.f32 %v1998_v12, %v2192_v5  ;;  %v2531_v12 = vsub.f32 %v2014_v38, %v2192_v5  ;;  %v2545_v38 = vsub.f32 %v2030_v6, %v2192_v5 }
 0x1ee   :  { %v1149_v13 = vadd.f32 %v1148_v19, %v1147_v17  ;;  %v1064_v19 = vmul.f32 %v2405_v31, %v2405_v31  ;;  %v1156_v10 = vsel %vm833_vm3, %v1063_v50, 0.0  ;;  %v2559_v6 = vsub.f32 %v2046_v46, %v2192_v5 }
 0x1ef   :  { %v2573_v46 = vsub.f32 %v2062_v30, %v2192_v5  ;;  %v2587_v30 = vsub.f32 %v2078_v22, %v2192_v5 }
 0x1f0   :  { %v1151_v41 = vadd.f32 %v1150_v37, %v1149_v13  ;;  %v1065_v37 = vmul.f32 %v2412_v53, %v2412_v53  ;;  %v1158_v34 = vsel %vm833_vm3, %v1064_v19, 0.0 }
 0x1f1   :  { %3298 = vst [vmem:[#allocation12_spill] sm:$0xff] %v2573_v46  ;;  %3300 = vst [vmem:[#allocation17_spill] sm:$0xff] %v2587_v30 }
 0x1f2   :  { %v1153_v17 = vadd.f32 %v1152_v3, %v1151_v41  ;;  %v1066_v3 = vmul.f32 %v2419_v18, %v2419_v18  ;;  %v1160_v50 = vsel %vm833_vm3, %v1065_v37, 0.0 }
 0x1f4   :  { %v1155_v13 = vadd.f32 %v1154_v9, %v1153_v17  ;;  %v1067_v9 = vmul.f32 %v2426_v16, %v2426_v16  ;;  %v1162_v19 = vsel %vm833_vm3, %v1066_v3, 0.0 }
 0x1f6   :  { %v1157_v41 = vadd.f32 %v1156_v10, %v1155_v13  ;;  %v1068_v10 = vmul.f32 %v2433_v20, %v2433_v20  ;;  %v1164_v37 = vsel %vm833_vm3, %v1067_v9, 0.0 }
 0x1f8   :  { %v1159_v17 = vadd.f32 %v1158_v34, %v1157_v41  ;;  %v1069_v34 = vmul.f32 %v2440_v24, %v2440_v24  ;;  %v1166_v3 = vsel %vm833_vm3, %v1068_v10, 0.0 }
 0x1fa   :  { %v1161_v13 = vadd.f32 %v1160_v50, %v1159_v17  ;;  %v1070_v50 = vmul.f32 %v2447_v28, %v2447_v28  ;;  %v1168_v9 = vsel %vm833_vm3, %v1069_v34, 0.0 }
 0x1fc   :  { %v1163_v41 = vadd.f32 %v1162_v19, %v1161_v13  ;;  %v1071_v19 = vmul.f32 %v2454_v32, %v2454_v32  ;;  %v1170_v10 = vsel %vm833_vm3, %v1070_v50, 0.0 }
 0x1fe   :  { %v1165_v17 = vadd.f32 %v1164_v37, %v1163_v41  ;;  %v1072_v37 = vmul.f32 %v2461_v36, %v2461_v36  ;;  %v1172_v34 = vsel %vm833_vm3, %v1071_v19, 0.0 }
 0x200   :  { %v1167_v13 = vadd.f32 %v1166_v3, %v1165_v17  ;;  %v1073_v3 = vmul.f32 %v2468_v40, %v2468_v40  ;;  %v1174_v50 = vsel %vm833_vm3, %v1072_v37, 0.0 }
 0x202   :  { %v1169_v41 = vadd.f32 %v1168_v9, %v1167_v13  ;;  %v1074_v9 = vmul.f32 %v2475_v44, %v2475_v44  ;;  %v1176_v19 = vsel %vm833_vm3, %v1073_v3, 0.0 }
 0x204   :  { %v1171_v17 = vadd.f32 %v1170_v10, %v1169_v41  ;;  %v1075_v10 = vmul.f32 %v2482_v48, %v2482_v48  ;;  %v1178_v37 = vsel %vm833_vm3, %v1074_v9, 0.0 }
 0x206   :  { %v1173_v13 = vadd.f32 %v1172_v34, %v1171_v17  ;;  %v1076_v34 = vmul.f32 %v2489_v52, %v2489_v52  ;;  %v1180_v3 = vsel %vm833_vm3, %v1075_v10, 0.0 }
 0x208   :  { %v1175_v41 = vadd.f32 %v1174_v50, %v1173_v13  ;;  %v1077_v50 = vmul.f32 %v2496_v56, %v2496_v56  ;;  %v1182_v9 = vsel %vm833_vm3, %v1076_v34, 0.0 }
 0x20a   :  { %v1177_v17 = vadd.f32 %v1176_v19, %v1175_v41  ;;  %v1078_v19 = vmul.f32 %v2503_v60, %v2503_v60  ;;  %v1184_v10 = vsel %vm833_vm3, %v1077_v50, 0.0 }
 0x20c   :  { %v1179_v13 = vadd.f32 %v1178_v37, %v1177_v17  ;;  %v1079_v37 = vmul.f32 %v2510_v0, %v2510_v0  ;;  %v1186_v34 = vsel %vm833_vm3, %v1078_v19, 0.0 }
 0x20e   :  { %v1181_v41 = vadd.f32 %v1180_v3, %v1179_v13  ;;  %v1080_v3 = vmul.f32 %v2517_v4, %v2517_v4  ;;  %v1188_v50 = vsel %vm833_vm3, %v1079_v37, 0.0 }
 0x210   :  { %v1183_v17 = vadd.f32 %v1182_v9, %v1181_v41  ;;  %v1081_v9 = vmul.f32 %v2524_v8, %v2524_v8  ;;  %v1190_v19 = vsel %vm833_vm3, %v1080_v3, 0.0 }
 0x212   :  { %v1185_v13 = vadd.f32 %v1184_v10, %v1183_v17  ;;  %v1082_v10 = vmul.f32 %v2531_v12, %v2531_v12  ;;  %v1192_v37 = vsel %vm833_vm3, %v1081_v9, 0.0 }
 0x214   :  { %v1187_v41 = vadd.f32 %v1186_v34, %v1185_v13  ;;  %v1083_v34 = vmul.f32 %v2538_v21, %v2538_v21  ;;  %v1194_v3 = vsel %vm833_vm3, %v1082_v10, 0.0 }
 0x216   :  { %v1189_v17 = vadd.f32 %v1188_v50, %v1187_v41  ;;  %v1084_v50 = vmul.f32 %v2545_v38, %v2545_v38  ;;  %v1196_v9 = vsel %vm833_vm3, %v1083_v34, 0.0 }
 0x218   :  { %v1191_v13 = vadd.f32 %v1190_v19, %v1189_v17  ;;  %v1085_v19 = vmul.f32 %v2552_v54, %v2552_v54  ;;  %v1198_v10 = vsel %vm833_vm3, %v1084_v50, 0.0 }
 0x21a   :  { %v1193_v41 = vadd.f32 %v1192_v37, %v1191_v13  ;;  %v1086_v37 = vmul.f32 %v2559_v6, %v2559_v6  ;;  %v1200_v34 = vsel %vm833_vm3, %v1085_v19, 0.0 }
 0x21c   :  { %v1195_v17 = vadd.f32 %v1194_v3, %v1193_v41  ;;  %v1087_v3 = vmul.f32 %v2566_v26, %v2566_v26  ;;  %v1202_v50 = vsel %vm833_vm3, %v1086_v37, 0.0  ;;  %v1089_v26 = vmul.f32 %v2580_v2, %v2580_v2 }
 0x21e   :  { %v1197_v13 = vadd.f32 %v1196_v9, %v1195_v17  ;;  %v1088_v9 = vmul.f32 %v2573_v46, %v2573_v46  ;;  %v1204_v19 = vsel %vm833_vm3, %v1087_v3, 0.0  ;;  %v1090_v46 = vmul.f32 %v2587_v30, %v2587_v30 }
 0x21f   :  { %v1208_v3 = vsel %vm833_vm3, %v1089_v26, 0.0 }
 0x220   :  { %v1199_v41 = vadd.f32 %v1198_v10, %v1197_v13  ;;  %v3301_v10 = vld [vmem:[#allocation13_spill] sm:$0xff]  ;;  %v1206_v37 = vsel %vm833_vm3, %v1088_v9, 0.0  ;;  %v1210_v9 = vsel %vm833_vm3, %v1090_v46, 0.0 }
 0x221   :  { %v2594_v58 = vsub.f32 %v3301_v10, %v2192_v5 }
 0x222   :  { %v1201_v17 = vadd.f32 %v1200_v34, %v1199_v41  ;;  %v3303_v34 = vld [vmem:[#allocation15_spill] sm:$0xff] }
 0x223   :  { %3302 = vst [vmem:[#allocation13_spill] sm:$0xff] %v2594_v58  ;;  %v2601_v22 = vsub.f32 %v3303_v34, %v2192_v5  ;;  %v1091_v2 = vmul.f32 %v2594_v58, %v2594_v58 }
 0x224   :  { %v1203_v13 = vadd.f32 %v1202_v50, %v1201_v17  ;;  %v3305_v50 = vld [vmem:[#allocation16_spill] sm:$0xff] }
 0x225   :  { %3304 = vst [vmem:[#allocation15_spill] sm:$0xff] %v2601_v22  ;;  %v2608_v10 = vsub.f32 %v3305_v50, %v2192_v5  ;;  %v1092_v34 = vmul.f32 %v2601_v22, %v2601_v22  ;;  %v1212_v26 = vsel %vm833_vm3, %v1091_v2, 0.0 }
 0x226   :  { %v1205_v41 = vadd.f32 %v1204_v19, %v1203_v13  ;;  %v2615_v19 = vsub.f32 %v2110_v45, %v2192_v5  ;;  %v2629_v45 = vsub.f32 %v2124_v57, %v2192_v5 }
 0x227   :  { %3306 = vst [vmem:[#allocation16_spill] sm:$0xff] %v2608_v10  ;;  %v1093_v50 = vmul.f32 %v2608_v10, %v2608_v10  ;;  %v1214_v46 = vsel %vm833_vm3, %v1092_v34, 0.0 }
 0x228   :  { %v1207_v17 = vadd.f32 %v1206_v37, %v1205_v41  ;;  %3307 = vst [vmem:[#allocation19_spill] sm:$0xff] %v2615_v19  ;;  %v2622_v37 = vsub.f32 %v2118_v29, %v2192_v5  ;;  %v1096_v2 = vmul.f32 %v2629_v45, %v2629_v45 }
 0x22a   :  { %v1209_v13 = vadd.f32 %v1208_v3, %v1207_v17  ;;  %3308 = vst [vmem:[#allocation20_spill] sm:$0xff] %v2622_v37  ;;  %v1094_v3 = vmul.f32 %v2615_v19, %v2615_v19  ;;  %v1095_v29 = vmul.f32 %v2622_v37, %v2622_v37  ;;  %v1222_v19 = vsel %vm833_vm3, %v1096_v2, 0.0  ;;  %v3312_v2 = vld [vmem:[#allocation4_spill] sm:$0xff] }
 0x22c   :  { %v1211_v41 = vadd.f32 %v1210_v9, %v1209_v13  ;;  %v1216_v9 = vsel %vm833_vm3, %v1093_v50, 0.0  ;;  %v1220_v5 = vsel %vm833_vm3, %v1095_v29, 0.0  ;;  %v3311_v29 = vld [vmem:[#allocation3_spill] sm:$0xff] }
 0x22e   :  { %v1213_v17 = vadd.f32 %v1212_v26, %v1211_v41  ;;  %v1218_v41 = vsel %vm833_vm3, %v1094_v3, 0.0 }
 0x230   :  { %v1215_v13 = vadd.f32 %v1214_v46, %v1213_v17 }
 0x232   :  { %v1217_v22 = vadd.f32 %v1216_v9, %v1215_v13 }
 0x234   :  { %v1219_v26 = vadd.f32 %v1218_v41, %v1217_v22  ;;  %v3313_v41 = vld [vmem:[#allocation5_spill] sm:$0xff] }
 0x236   :  { %v1221_v57 = vadd.f32 %v1220_v5, %v1219_v26  ;;  %v3314_v26 = vld [vmem:[#allocation6_spill] sm:$0xff] }
 0x238   :  { %v1223_v10 = vadd.f32 %v1222_v19, %v1221_v57  ;;  %v3309_v19 = vld [vmem:[#allocation18_spill] sm:$0xff]  ;;  %v3315_v57 = vld [vmem:[#allocation7_spill] sm:$0xff] }
 0x23a   :  { %v1224_v34 = vrot.slane %v1223_v10, 4 }
 0x23c   :  { %v1225_v17 = vadd.f32 %v1224_v34, %v1223_v10 }
 0x23e   :  { %v1226_v46 = vrot.slane %v1225_v17, 2 }
 0x240   :  { %v1227_v58 = vadd.f32 %v1226_v46, %v1225_v17  ;;  %v3316_v17 = vld [vmem:[#allocation8_spill] sm:$0xff] }
 0x242   :  { %v1228_v37 = vrot.slane %v1227_v58, 1 }
 0x244   :  { %v1229_v30 = vadd.f32 %v1228_v37, %v1227_v58  ;;  %v3310_v37 = vld [vmem:[#allocation2_spill] sm:$0xff] }
 0x246   :  { %v1230_v50 = vmul.f32 0.001953125, %v1229_v30 }
 0x248   :  { %v1231_v13 = vadd.f32 1e-05, %v1230_v50  ;;  %v3317_v50 = vld [vmem:[#allocation9_spill] sm:$0xff] }
 0x24a   :  { %1663 = vrsqrt.f32 %v1231_v13 }
 0x257   :  { %v2642_v9 = vpop.eup %1663 }
 0x258   :  { %v2646_v22 = vmul.f32 %v2642_v9, %v2196_v1  ;;  %v2650_v3 = vmul.f32 %v2642_v9, %v2200_v14  ;;  %v2654_v10 = vmul.f32 %v2642_v9, %v2204_v61  ;;  %v2658_v58 = vmul.f32 %v2642_v9, %v2208_v62 }
 0x259   :  { %v2662_v30 = vmul.f32 %v2642_v9, %v2216_v15  ;;  %v2666_v1 = vmul.f32 %v2642_v9, %v2222_v23  ;;  %v2670_v14 = vmul.f32 %v2642_v9, %v2230_v33  ;;  %v2674_v61 = vmul.f32 %v2642_v9, %v2237_v35 }
 0x25a   :  { %v2678_v62 = vmul.f32 %v2642_v9, %v2244_v39  ;;  %v2682_v15 = vmul.f32 %v2642_v9, %v2251_v43  ;;  %v2686_v23 = vmul.f32 %v2642_v9, %v2258_v47  ;;  %v2690_v33 = vmul.f32 %v2642_v9, %v2265_v51 }
 0x25b   :  { %v2694_v35 = vmul.f32 %v2642_v9, %v2272_v55  ;;  %v2698_v39 = vmul.f32 %v2642_v9, %v2279_v59  ;;  %v2702_v43 = vmul.f32 %v2642_v9, %v2286_v63  ;;  %v2706_v47 = vmul.f32 %v2642_v9, %v3309_v19 }
 0x25c   :  { %v2710_v51 = vmul.f32 %v2642_v9, %v3310_v37  ;;  %v2714_v55 = vmul.f32 %v2642_v9, %v3311_v29  ;;  %v2718_v59 = vmul.f32 %v2642_v9, %v3312_v2  ;;  %v2722_v63 = vmul.f32 %v2642_v9, %v3313_v41  ;;  %v3318_v37 = vld [vmem:[#allocation10_spill] sm:$0xff] }
 0x25d   :  { %v2726_v5 = vmul.f32 %v2642_v9, %v3314_v26  ;;  %v2730_v34 = vmul.f32 %v2642_v9, %v3315_v57  ;;  %v2734_v46 = vmul.f32 %v2642_v9, %v3316_v17  ;;  %v2738_v13 = vmul.f32 %v2642_v9, %v3317_v50  ;;  %v3322_v17 = vld [vmem:[#allocation11_spill] sm:$0xff]  ;;  %v3324_v50 = vld [vmem:[#allocation12_spill] sm:$0xff] }
 0x25e   :  { %v2742_v19 = vmul.f32 %v2642_v9, %v2356_v25  ;;  %v2746_v29 = vmul.f32 %v2642_v9, %v3318_v37  ;;  %v2750_v2 = vmul.f32 %v2642_v9, %v2370_v27  ;;  %v2754_v41 = vmul.f32 %v2642_v9, %v2377_v42  ;;  %v3326_v37 = vld [vmem:[#allocation14_spill] sm:$0xff] }
 0x25f   :  { %v2758_v26 = vmul.f32 %v2642_v9, %v2384_v11  ;;  %v2762_v25 = vmul.f32 %v2642_v9, %v2391_v7  ;;  %v2766_v57 = vmul.f32 %v2642_v9, %v2398_v49  ;;  %v2770_v27 = vmul.f32 %v2642_v9, %v2405_v31 }
 0x260   :  { %v2774_v42 = vmul.f32 %v2642_v9, %v2412_v53  ;;  %v2778_v11 = vmul.f32 %v2642_v9, %v2419_v18  ;;  %v2782_v7 = vmul.f32 %v2642_v9, %v2426_v16  ;;  %v2786_v49 = vmul.f32 %v2642_v9, %v2433_v20 }
 0x261   :  { %v2790_v31 = vmul.f32 %v2642_v9, %v2440_v24  ;;  %v2794_v53 = vmul.f32 %v2642_v9, %v2447_v28  ;;  %v2798_v18 = vmul.f32 %v2642_v9, %v2454_v32  ;;  %v2802_v16 = vmul.f32 %v2642_v9, %v2461_v36 }
 0x262   :  { %v2806_v20 = vmul.f32 %v2642_v9, %v2468_v40  ;;  %v2810_v24 = vmul.f32 %v2642_v9, %v2475_v44  ;;  %v2814_v28 = vmul.f32 %v2642_v9, %v2482_v48  ;;  %v2818_v32 = vmul.f32 %v2642_v9, %v2489_v52 }
 0x263   :  { %v2822_v36 = vmul.f32 %v2642_v9, %v2496_v56  ;;  %v2826_v40 = vmul.f32 %v2642_v9, %v2503_v60  ;;  %v2830_v44 = vmul.f32 %v2642_v9, %v2510_v0  ;;  %v2834_v48 = vmul.f32 %v2642_v9, %v2517_v4 }
 0x264   :  { %v2838_v52 = vmul.f32 %v2642_v9, %v2524_v8  ;;  %v2842_v56 = vmul.f32 %v2642_v9, %v2531_v12  ;;  %v2846_v60 = vmul.f32 %v2642_v9, %v2538_v21  ;;  %v2850_v0 = vmul.f32 %v2642_v9, %v2545_v38 }
 0x265   :  { %v2854_v4 = vmul.f32 %v2642_v9, %v2552_v54  ;;  %v2858_v8 = vmul.f32 %v2642_v9, %v2559_v6  ;;  %v2862_v12 = vmul.f32 %v2642_v9, %v3322_v17  ;;  %v2866_v21 = vmul.f32 %v2642_v9, %v3324_v50 }
 0x266   :  { %3319 = vst [vmem:[#allocation18_spill] sm:$0xff] %v2850_v0  ;;  %v2870_v38 = vmul.f32 %v2642_v9, %v3326_v37  ;;  %v3328_v0 = vld [vmem:[#allocation17_spill] sm:$0xff] }
 0x267   :  { %3320 = vst [vmem:[#allocation2_spill] sm:$0xff] %v2854_v4  ;;  %3321 = vst [vmem:[#allocation3_spill] sm:$0xff] %v2858_v8  ;;  %v2874_v54 = vmul.f32 %v2642_v9, %v3328_v0  ;;  %v3329_v4 = vld [vmem:[#allocation13_spill] sm:$0xff]  ;;  %v3331_v8 = vld [vmem:[#allocation15_spill] sm:$0xff] }
 0x268   :  { %3323 = vst [vmem:[#allocation4_spill] sm:$0xff] %v2862_v12  ;;  %3325 = vst [vmem:[#allocation5_spill] sm:$0xff] %v2866_v21  ;;  %v2878_v6 = vmul.f32 %v2642_v9, %v3329_v4  ;;  %v2882_v17 = vmul.f32 %v2642_v9, %v3331_v8  ;;  %v3333_v12 = vld [vmem:[#allocation16_spill] sm:$0xff]  ;;  %v3335_v21 = vld [vmem:[#allocation19_spill] sm:$0xff]  ;;  %v2898_v4 = vmul.f32 %v2642_v9, %v2629_v45  ;;  %v1298_v8 = vmax.f32 %v2650_v3, 0.0 }
 0x269   :  { %3327 = vst [vmem:[#allocation6_spill] sm:$0xff] %v2870_v38  ;;  %v2886_v50 = vmul.f32 %v2642_v9, %v3333_v12  ;;  %v2890_v37 = vmul.f32 %v2642_v9, %v3335_v21  ;;  %v3337_v38 = vld [vmem:[#allocation20_spill] sm:$0xff]  ;;  %v1300_v12 = vmax.f32 %v2658_v58, 0.0  ;;  %v1302_v21 = vmax.f32 %v2666_v1, 0.0 }
 0x26a   :  { %3330 = vst [vmem:[#allocation7_spill] sm:$0xff] %v2878_v6  ;;  %3332 = vst [vmem:[#allocation8_spill] sm:$0xff] %v2882_v17  ;;  %v2894_v0 = vmul.f32 %v2642_v9, %v3337_v38  ;;  %v1297_v6 = vmax.f32 %v2646_v22, 0.0  ;;  %v1299_v17 = vmax.f32 %v2654_v10, 0.0  ;;  %v1304_v38 = vmax.f32 %v2674_v61, 0.0 }
 0x26b   :  { %3334 = vst [vmem:[#allocation9_spill] sm:$0xff] %v2886_v50  ;;  %3336 = vst [vmem:[#allocation10_spill] sm:$0xff] %v2890_v37  ;;  %v1301_v50 = vmax.f32 %v2662_v30, 0.0  ;;  %v1303_v37 = vmax.f32 %v2670_v14, 0.0  ;;  %v1306_v45 = vmax.f32 %v2682_v15, 0.0  ;;  %v1307_v9 = vmax.f32 %v2686_v23, 0.0 }
 0x26c   :  { %3338 = vst [vmem:[#allocation11_spill] sm:$0xff] %v2894_v0  ;;  %v1305_v0 = vmax.f32 %v2678_v62, 0.0  ;;  %v1308_v22 = vmax.f32 %v2690_v33, 0.0  ;;  %1361 = vst.msk [vmem:[%s3222_s2] sm:$0xff] %vm833_vm3, %v1297_v6  ;;  %v1309_v3 = vmax.f32 %v2694_v35, 0.0  ;;  %v1310_v10 = vmax.f32 %v2698_v39, 0.0 }
 0x26d   :  { %1362 = vst.msk [vmem:[%s3222_s2 + $0x8] sm:$0xff] %vm833_vm3, %v1298_v8  ;;  %1363 = vst.msk [vmem:[%s3222_s2 + $0x10] sm:$0xff] %vm833_vm3, %v1299_v17  ;;  %v1311_v58 = vmax.f32 %v2702_v43, 0.0  ;;  %v1312_v30 = vmax.f32 %v2706_v47, 0.0  ;;  %v1313_v1 = vmax.f32 %v2710_v51, 0.0  ;;  %v1314_v14 = vmax.f32 %v2714_v55, 0.0 }
 0x26e   :  { %1364 = vst.msk [vmem:[%s3222_s2 + $0x18] sm:$0xff] %vm833_vm3, %v1300_v12  ;;  %1365 = vst.msk [vmem:[%s3222_s2 + $0x20] sm:$0xff] %vm833_vm3, %v1301_v50  ;;  %v1315_v61 = vmax.f32 %v2718_v59, 0.0  ;;  %v1316_v62 = vmax.f32 %v2722_v63, 0.0  ;;  %v1317_v15 = vmax.f32 %v2726_v5, 0.0  ;;  %v1318_v23 = vmax.f32 %v2730_v34, 0.0 }
 0x26f   :  { %1366 = vst.msk [vmem:[%s3222_s2 + $0x28] sm:$0xff] %vm833_vm3, %v1302_v21  ;;  %1367 = vst.msk [vmem:[%s3222_s2 + $0x30] sm:$0xff] %vm833_vm3, %v1303_v37  ;;  %v1319_v33 = vmax.f32 %v2734_v46, 0.0  ;;  %v1320_v35 = vmax.f32 %v2738_v13, 0.0  ;;  %v1321_v39 = vmax.f32 %v2742_v19, 0.0  ;;  %v1322_v43 = vmax.f32 %v2746_v29, 0.0 }
 0x270   :  { %1368 = vst.msk [vmem:[%s3222_s2 + $0x38] sm:$0xff] %vm833_vm3, %v1304_v38  ;;  %1369 = vst.msk [vmem:[%s3222_s2 + $0x40] sm:$0xff] %vm833_vm3, %v1305_v0  ;;  %v1323_v47 = vmax.f32 %v2750_v2, 0.0  ;;  %v1324_v51 = vmax.f32 %v2754_v41, 0.0  ;;  %v1325_v55 = vmax.f32 %v2758_v26, 0.0  ;;  %v1326_v59 = vmax.f32 %v2762_v25, 0.0 }
 0x271   :  { %1370 = vst.msk [vmem:[%s3222_s2 + $0x48] sm:$0xff] %vm833_vm3, %v1306_v45  ;;  %1371 = vst.msk [vmem:[%s3222_s2 + $0x50] sm:$0xff] %vm833_vm3, %v1307_v9  ;;  %v1327_v63 = vmax.f32 %v2766_v57, 0.0  ;;  %v1328_v5 = vmax.f32 %v2770_v27, 0.0  ;;  %v1329_v34 = vmax.f32 %v2774_v42, 0.0  ;;  %v1330_v46 = vmax.f32 %v2778_v11, 0.0 }
 0x272   :  { %1372 = vst.msk [vmem:[%s3222_s2 + $0x58] sm:$0xff] %vm833_vm3, %v1308_v22  ;;  %1373 = vst.msk [vmem:[%s3222_s2 + $0x60] sm:$0xff] %vm833_vm3, %v1309_v3  ;;  %v1331_v13 = vmax.f32 %v2782_v7, 0.0  ;;  %v1332_v19 = vmax.f32 %v2786_v49, 0.0  ;;  %v1333_v29 = vmax.f32 %v2790_v31, 0.0  ;;  %v1334_v2 = vmax.f32 %v2794_v53, 0.0 }
 0x273   :  { %1374 = vst.msk [vmem:[%s3222_s2 + $0x68] sm:$0xff] %vm833_vm3, %v1310_v10  ;;  %1375 = vst.msk [vmem:[%s3222_s2 + $0x70] sm:$0xff] %vm833_vm3, %v1311_v58  ;;  %v1335_v41 = vmax.f32 %v2798_v18, 0.0  ;;  %v1336_v26 = vmax.f32 %v2802_v16, 0.0  ;;  %v1337_v25 = vmax.f32 %v2806_v20, 0.0  ;;  %v1338_v57 = vmax.f32 %v2810_v24, 0.0 }
 0x274   :  { %1376 = vst.msk [vmem:[%s3222_s2 + $0x78] sm:$0xff] %vm833_vm3, %v1312_v30  ;;  %1377 = vst.msk [vmem:[%s3222_s2 + $0x80] sm:$0xff] %vm833_vm3, %v1313_v1  ;;  %v1339_v27 = vmax.f32 %v2814_v28, 0.0  ;;  %v1340_v42 = vmax.f32 %v2818_v32, 0.0  ;;  %v1341_v11 = vmax.f32 %v2822_v36, 0.0  ;;  %v1342_v7 = vmax.f32 %v2826_v40, 0.0 }
 0x275   :  { %1378 = vst.msk [vmem:[%s3222_s2 + $0x88] sm:$0xff] %vm833_vm3, %v1314_v14  ;;  %1379 = vst.msk [vmem:[%s3222_s2 + $0x90] sm:$0xff] %vm833_vm3, %v1315_v61  ;;  %v1343_v49 = vmax.f32 %v2830_v44, 0.0  ;;  %v1344_v31 = vmax.f32 %v2834_v48, 0.0  ;;  %v1345_v53 = vmax.f32 %v2838_v52, 0.0  ;;  %v1346_v18 = vmax.f32 %v2842_v56, 0.0 }
 0x276   :  { %1380 = vst.msk [vmem:[%s3222_s2 + $0x98] sm:$0xff] %vm833_vm3, %v1316_v62  ;;  %1381 = vst.msk [vmem:[%s3222_s2 + $0xa0] sm:$0xff] %vm833_vm3, %v1317_v15  ;;  %v1347_v16 = vmax.f32 %v2846_v60, 0.0  ;;  %v3339_v20 = vld [vmem:[#allocation18_spill] sm:$0xff]  ;;  %v3341_v36 = vld [vmem:[#allocation3_spill] sm:$0xff]  ;;  %v1354_v17 = vmax.f32 %v2874_v54, 0.0 }
 0x277   :  { %1382 = vst.msk [vmem:[%s3222_s2 + $0xa8] sm:$0xff] %vm833_vm3, %v1318_v23  ;;  %1383 = vst.msk [vmem:[%s3222_s2 + $0xb0] sm:$0xff] %vm833_vm3, %v1319_v33  ;;  %v1348_v24 = vmax.f32 %v3339_v20, 0.0  ;;  %v3340_v28 = vld [vmem:[#allocation2_spill] sm:$0xff]  ;;  %v1350_v40 = vmax.f32 %v3341_v36, 0.0  ;;  %v3342_v44 = vld [vmem:[#allocation4_spill] sm:$0xff] }
 0x278   :  { %1384 = vst.msk [vmem:[%s3222_s2 + $0xb8] sm:$0xff] %vm833_vm3, %v1320_v35  ;;  %1385 = vst.msk [vmem:[%s3222_s2 + $0xc0] sm:$0xff] %vm833_vm3, %v1321_v39  ;;  %v1349_v32 = vmax.f32 %v3340_v28, 0.0  ;;  %v1351_v48 = vmax.f32 %v3342_v44, 0.0  ;;  %v3343_v52 = vld [vmem:[#allocation5_spill] sm:$0xff]  ;;  %v3344_v60 = vld [vmem:[#allocation6_spill] sm:$0xff] }
 0x279   :  { %1386 = vst.msk [vmem:[%s3222_s2 + $0xc8] sm:$0xff] %vm833_vm3, %v1322_v43  ;;  %1387 = vst.msk [vmem:[%s3222_s2 + $0xd0] sm:$0xff] %vm833_vm3, %v1323_v47  ;;  %v1352_v56 = vmax.f32 %v3343_v52, 0.0  ;;  %v1353_v6 = vmax.f32 %v3344_v60, 0.0  ;;  %v3345_v50 = vld [vmem:[#allocation7_spill] sm:$0xff]  ;;  %v3346_v0 = vld [vmem:[#allocation8_spill] sm:$0xff] }
 0x27a   :  { %1388 = vst.msk [vmem:[%s3222_s2 + $0xd8] sm:$0xff] %vm833_vm3, %v1324_v51  ;;  %1389 = vst.msk [vmem:[%s3222_s2 + $0xe0] sm:$0xff] %vm833_vm3, %v1325_v55  ;;  %v1355_v37 = vmax.f32 %v3345_v50, 0.0  ;;  %v1356_v8 = vmax.f32 %v3346_v0, 0.0  ;;  %v3347_v54 = vld [vmem:[#allocation9_spill] sm:$0xff]  ;;  %v3348_v21 = vld [vmem:[#allocation10_spill] sm:$0xff] }
 0x27b   :  { %1390 = vst.msk [vmem:[%s3222_s2 + $0xe8] sm:$0xff] %vm833_vm3, %v1326_v59  ;;  %1391 = vst.msk [vmem:[%s3222_s2 + $0xf0] sm:$0xff] %vm833_vm3, %v1327_v63  ;;  %v1357_v12 = vmax.f32 %v3347_v54, 0.0  ;;  %v1358_v38 = vmax.f32 %v3348_v21, 0.0  ;;  %v3349_v45 = vld [vmem:[#allocation11_spill] sm:$0xff]  ;;  %v1360_v22 = vmax.f32 %v2898_v4, 0.0 }
 0x27c   :  { %1392 = vst.msk [vmem:[%s3222_s2 + $0xf8] sm:$0xff] %vm833_vm3, %v1328_v5  ;;  %1393 = vst.msk [vmem:[%s3222_s2 + $0x100] sm:$0xff] %vm833_vm3, %v1329_v34  ;;  %v1359_v9 = vmax.f32 %v3349_v45, 0.0 }
 0x27d   :  { %1394 = vst.msk [vmem:[%s3222_s2 + $0x108] sm:$0xff] %vm833_vm3, %v1330_v46  ;;  %1395 = vst.msk [vmem:[%s3222_s2 + $0x110] sm:$0xff] %vm833_vm3, %v1331_v13 }
 0x27e   :  { %1396 = vst.msk [vmem:[%s3222_s2 + $0x118] sm:$0xff] %vm833_vm3, %v1332_v19  ;;  %1397 = vst.msk [vmem:[%s3222_s2 + $0x120] sm:$0xff] %vm833_vm3, %v1333_v29 }
 0x27f   :  { %1398 = vst.msk [vmem:[%s3222_s2 + $0x128] sm:$0xff] %vm833_vm3, %v1334_v2  ;;  %1399 = vst.msk [vmem:[%s3222_s2 + $0x130] sm:$0xff] %vm833_vm3, %v1335_v41 }
 0x280   :  { %1400 = vst.msk [vmem:[%s3222_s2 + $0x138] sm:$0xff] %vm833_vm3, %v1336_v26  ;;  %1401 = vst.msk [vmem:[%s3222_s2 + $0x140] sm:$0xff] %vm833_vm3, %v1337_v25 }
 0x281   :  { %1402 = vst.msk [vmem:[%s3222_s2 + $0x148] sm:$0xff] %vm833_vm3, %v1338_v57  ;;  %1403 = vst.msk [vmem:[%s3222_s2 + $0x150] sm:$0xff] %vm833_vm3, %v1339_v27 }
 0x282   :  { %1404 = vst.msk [vmem:[%s3222_s2 + $0x158] sm:$0xff] %vm833_vm3, %v1340_v42  ;;  %1405 = vst.msk [vmem:[%s3222_s2 + $0x160] sm:$0xff] %vm833_vm3, %v1341_v11 }
 0x283   :  { %1406 = vst.msk [vmem:[%s3222_s2 + $0x168] sm:$0xff] %vm833_vm3, %v1342_v7  ;;  %1407 = vst.msk [vmem:[%s3222_s2 + $0x170] sm:$0xff] %vm833_vm3, %v1343_v49 }
 0x284   :  { %1408 = vst.msk [vmem:[%s3222_s2 + $0x178] sm:$0xff] %vm833_vm3, %v1344_v31  ;;  %1409 = vst.msk [vmem:[%s3222_s2 + $0x180] sm:$0xff] %vm833_vm3, %v1345_v53 }
 0x285   :  { %1410 = vst.msk [vmem:[%s3222_s2 + $0x188] sm:$0xff] %vm833_vm3, %v1346_v18  ;;  %1411 = vst.msk [vmem:[%s3222_s2 + $0x190] sm:$0xff] %vm833_vm3, %v1347_v16 }
 0x286   :  { %1412 = vst.msk [vmem:[%s3222_s2 + $0x198] sm:$0xff] %vm833_vm3, %v1348_v24  ;;  %1413 = vst.msk [vmem:[%s3222_s2 + $0x1a0] sm:$0xff] %vm833_vm3, %v1349_v32 }
 0x287   :  { %1414 = vst.msk [vmem:[%s3222_s2 + $0x1a8] sm:$0xff] %vm833_vm3, %v1350_v40  ;;  %1415 = vst.msk [vmem:[%s3222_s2 + $0x1b0] sm:$0xff] %vm833_vm3, %v1351_v48 }
 0x288   :  { %1416 = vst.msk [vmem:[%s3222_s2 + $0x1b8] sm:$0xff] %vm833_vm3, %v1352_v56  ;;  %1417 = vst.msk [vmem:[%s3222_s2 + $0x1c0] sm:$0xff] %vm833_vm3, %v1353_v6 }
 0x289   :  { %1418 = vst.msk [vmem:[%s3222_s2 + $0x1c8] sm:$0xff] %vm833_vm3, %v1354_v17  ;;  %1419 = vst.msk [vmem:[%s3222_s2 + $0x1d0] sm:$0xff] %vm833_vm3, %v1355_v37 }
 0x28a   :  { %1420 = vst.msk [vmem:[%s3222_s2 + $0x1d8] sm:$0xff] %vm833_vm3, %v1356_v8  ;;  %1421 = vst.msk [vmem:[%s3222_s2 + $0x1e0] sm:$0xff] %vm833_vm3, %v1357_v12 }
 0x28b   :  { %1422 = vst.msk [vmem:[%s3222_s2 + $0x1e8] sm:$0xff] %vm833_vm3, %v1358_v38  ;;  %1423 = vst.msk [vmem:[%s3222_s2 + $0x1f0] sm:$0xff] %vm833_vm3, %v1359_v9 }
 0x28c   :  { %1424 = vst.msk [vmem:[%s3222_s2 + $0x1f8] sm:$0xff] %vm833_vm3, %v1360_v22 }

// kernel: densenet_forward.27
= control target key start
LH: loop header
LB: loop body
LE: loop exit
PB: predicated region body
PF: predicated region fallthrough
CT: control target
= control target key end

     0   :  { %vm28_vm0 = vcmask 130048   ;;  %vm515_vm1 = vcmask 125952   ;;  %s942_s1 = inlined_call_operand.vmem [shape: bf16[16,16], index: 1, kind: input, shape index: {}]   ;;  %s943_s0 = inlined_call_operand.vmem [shape: f32[128,16], index: 0, kind: input, shape index: {}]   ;;  %s944_s2 = inlined_call_operand.vmem [shape: bf16[128,16], index: 2, kind: output, shape index: {}]  }
   0x1   :  { %v606_v0 = vld [vmem:[%s942_s1] sm:$0xff]   ;;  %v13_v2 = vld [vmem:[%s943_s0 + $0x8] sm:$0xff]  ;;  %v14_v3 = vld [vmem:[%s943_s0 + $0x10] sm:$0xff] }
   0x2   :  { %v12_v1 = vld [vmem:[%s943_s0] sm:$0xff]  ;;  %586 = vmatprep.subr.bf16.mxu0 %v606_v0  ;;  %v15_v4 = vld [vmem:[%s943_s0 + $0x18] sm:$0xff]  ;;  %v30_v6 = vsel %vm28_vm0, %v13_v2, 0.0  ;;  %v32_v7 = vsel %vm28_vm0, %v14_v3, 0.0  ;;  %604 = vmatprep.subr.bf16.mxu1 %v606_v0  ;;  %v17_v11 = vld [vmem:[%s943_s0 + $0x28] sm:$0xff] }
   0x3   :  { %v29_v5 = vsel %vm28_vm0, %v12_v1, 0.0  ;;  %587 = vmatpush3.bf16.msra.mxu0 %v606_v0  ;;  %v16_v8 = vld [vmem:[%s943_s0 + $0x20] sm:$0xff]  ;;  %605 = vmatpush3.bf16.msra.mxu1 %v606_v0  ;;  %v34_v10 = vsel %vm28_vm0, %v15_v4, 0.0  ;;  %v18_v14 = vld [vmem:[%s943_s0 + $0x30] sm:$0xff]  ;;  %v38_v16 = vsel %vm28_vm0, %v17_v11, 0.0  ;;  %v19_v17 = vld [vmem:[%s943_s0 + $0x38] sm:$0xff] }
   0x4   :  { %v31_v9 = vadd.f32 %v30_v6, %v29_v5  ;;  %v36_v13 = vsel %vm28_vm0, %v16_v8, 0.0  ;;  %v40_v19 = vsel %vm28_vm0, %v18_v14, 0.0  ;;  %v20_v20 = vld [vmem:[%s943_s0 + $0x40] sm:$0xff]  ;;  %v42_v22 = vsel %vm28_vm0, %v19_v17, 0.0  ;;  %v21_v23 = vld [vmem:[%s943_s0 + $0x48] sm:$0xff]  ;;  %v22_v26 = vld [vmem:[%s943_s0 + $0x50] sm:$0xff] }
   0x5   :  { %v44_v25 = vsel %vm28_vm0, %v20_v20, 0.0  ;;  %v46_v28 = vsel %vm28_vm0, %v21_v23, 0.0  ;;  %v23_v29 = vld [vmem:[%s943_s0 + $0x58] sm:$0xff]  ;;  %v48_v31 = vsel %vm28_vm0, %v22_v26, 0.0  ;;  %v24_v32 = vld [vmem:[%s943_s0 + $0x60] sm:$0xff]  ;;  %v25_v35 = vld [vmem:[%s943_s0 + $0x68] sm:$0xff] }
   0x6   :  { %v33_v12 = vadd.f32 %v32_v7, %v31_v9  ;;  %v50_v34 = vsel %vm28_vm0, %v23_v29, 0.0  ;;  %v52_v37 = vsel %vm28_vm0, %v24_v32, 0.0  ;;  %v26_v38 = vld [vmem:[%s943_s0 + $0x70] sm:$0xff]  ;;  %v54_v40 = vsel %vm28_vm0, %v25_v35, 0.0  ;;  %v27_v41 = vld [vmem:[%s943_s0 + $0x78] sm:$0xff] }
   0x7   :  { %v56_v43 = vsel %vm28_vm0, %v26_v38, 0.0  ;;  %v58_v45 = vsel %vm28_vm0, %v27_v41, 0.0 }
   0x8   :  { %v35_v15 = vadd.f32 %v34_v10, %v33_v12 }
   0xa   :  { %v37_v18 = vadd.f32 %v36_v13, %v35_v15 }
   0xc   :  { %v39_v21 = vadd.f32 %v38_v16, %v37_v18 }
   0xe   :  { %v41_v24 = vadd.f32 %v40_v19, %v39_v21 }
  0x10   :  { %v43_v27 = vadd.f32 %v42_v22, %v41_v24 }
  0x12   :  { %v45_v30 = vadd.f32 %v44_v25, %v43_v27 }
  0x14   :  { %v47_v33 = vadd.f32 %v46_v28, %v45_v30 }
  0x16   :  { %v49_v36 = vadd.f32 %v48_v31, %v47_v33 }
  0x18   :  { %v51_v39 = vadd.f32 %v50_v34, %v49_v36 }
  0x1a   :  { %v53_v42 = vadd.f32 %v52_v37, %v51_v39 }
  0x1c   :  { %v55_v44 = vadd.f32 %v54_v40, %v53_v42 }
  0x1e   :  { %v57_v46 = vadd.f32 %v56_v43, %v55_v44 }
  0x20   :  { %v59_v47 = vadd.f32 %v58_v45, %v57_v46 }
  0x22   :  { %v60_v48 = vrot.slane %v59_v47, 4 }
  0x24   :  { %v61_v49 = vadd.f32 %v60_v48, %v59_v47 }
  0x26   :  { %v62_v50 = vrot.slane %v61_v49, 2 }
  0x28   :  { %v63_v51 = vadd.f32 %v62_v50, %v61_v49 }
  0x2a   :  { %v64_v52 = vrot.slane %v63_v51, 1 }
  0x2c   :  { %v65_v53 = vadd.f32 %v64_v52, %v63_v51 }
  0x2e   :  { %v67_v54 = vmul.f32 0.0078125, %v65_v53 }
  0x30   :  { %v693_v55 = vsub.f32 %v12_v1, %v67_v54  ;;  %v695_v56 = vsub.f32 %v13_v2, %v67_v54  ;;  %v697_v57 = vsub.f32 %v14_v3, %v67_v54  ;;  %v699_v58 = vsub.f32 %v15_v4, %v67_v54 }
  0x31   :  { %v701_v59 = vsub.f32 %v16_v8, %v67_v54  ;;  %v709_v63 = vsub.f32 %v17_v11, %v67_v54  ;;  %v713_v1 = vsub.f32 %v18_v14, %v67_v54  ;;  %v720_v7 = vsub.f32 %v19_v17, %v67_v54 }
  0x32   :  { %v84_v60 = vmul.f32 %v693_v55, %v693_v55  ;;  %v85_v61 = vmul.f32 %v695_v56, %v695_v56  ;;  %v86_v62 = vmul.f32 %v697_v57, %v697_v57  ;;  %v87_v0 = vmul.f32 %v699_v58, %v699_v58 }
  0x33   :  { %v88_v2 = vmul.f32 %v701_v59, %v701_v59  ;;  %v89_v8 = vmul.f32 %v709_v63, %v709_v63  ;;  %v725_v11 = vsub.f32 %v20_v20, %v67_v54  ;;  %v90_v12 = vmul.f32 %v713_v1, %v713_v1 }
  0x34   :  { %v100_v3 = vsel %vm28_vm0, %v84_v60, 0.0  ;;  %v101_v4 = vsel %vm28_vm0, %v85_v61, 0.0  ;;  %v103_v5 = vsel %vm28_vm0, %v86_v62, 0.0  ;;  %v105_v9 = vsel %vm28_vm0, %v87_v0, 0.0 }
  0x35   :  { %v102_v6 = vadd.f32 %v101_v4, %v100_v3  ;;  %v107_v13 = vsel %vm28_vm0, %v88_v2, 0.0  ;;  %v730_v15 = vsub.f32 %v21_v23, %v67_v54  ;;  %v91_v16 = vmul.f32 %v720_v7, %v720_v7 }
  0x36   :  { %v109_v17 = vsel %vm28_vm0, %v89_v8, 0.0  ;;  %v735_v19 = vsub.f32 %v22_v26, %v67_v54  ;;  %v92_v20 = vmul.f32 %v725_v11, %v725_v11  ;;  %v111_v21 = vsel %vm28_vm0, %v90_v12, 0.0 }
  0x37   :  { %v104_v10 = vadd.f32 %v103_v5, %v102_v6  ;;  %v740_v24 = vsub.f32 %v23_v29, %v67_v54  ;;  %v93_v23 = vmul.f32 %v730_v15, %v730_v15  ;;  %v113_v25 = vsel %vm28_vm0, %v91_v16, 0.0 }
  0x38   :  { %v745_v28 = vsub.f32 %v24_v32, %v67_v54  ;;  %v94_v26 = vmul.f32 %v735_v19, %v735_v19  ;;  %v115_v30 = vsel %vm28_vm0, %v92_v20, 0.0  ;;  %v81_v33 = vsub.f32 %v25_v35, %v67_v54 }
  0x39   :  { %v106_v14 = vadd.f32 %v105_v9, %v104_v10  ;;  %v95_v34 = vmul.f32 %v740_v24, %v740_v24  ;;  %v117_v29 = vsel %vm28_vm0, %v93_v23, 0.0  ;;  %v82_v37 = vsub.f32 %v26_v38, %v67_v54 }
  0x3a   :  { %v96_v39 = vmul.f32 %v745_v28, %v745_v28  ;;  %v119_v32 = vsel %vm28_vm0, %v94_v26, 0.0  ;;  %v83_v42 = vsub.f32 %v27_v41, %v67_v54  ;;  %v97_v43 = vmul.f32 %v81_v33, %v81_v33 }
  0x3b   :  { %v108_v18 = vadd.f32 %v107_v13, %v106_v14  ;;  %v121_v44 = vsel %vm28_vm0, %v95_v34, 0.0  ;;  %v98_v46 = vmul.f32 %v82_v37, %v82_v37 }
  0x3c   :  { %v123_v35 = vsel %vm28_vm0, %v96_v39, 0.0  ;;  %v99_v48 = vmul.f32 %v83_v42, %v83_v42  ;;  %v125_v49 = vsel %vm28_vm0, %v97_v43, 0.0 }
  0x3d   :  { %v110_v22 = vadd.f32 %v109_v17, %v108_v18  ;;  %v127_v38 = vsel %vm28_vm0, %v98_v46, 0.0 }
  0x3e   :  { %v129_v52 = vsel %vm28_vm0, %v99_v48, 0.0 }
  0x3f   :  { %v112_v27 = vadd.f32 %v111_v21, %v110_v22 }
  0x41   :  { %v114_v31 = vadd.f32 %v113_v25, %v112_v27 }
  0x43   :  { %v116_v36 = vadd.f32 %v115_v30, %v114_v31 }
  0x45   :  { %v118_v40 = vadd.f32 %v117_v29, %v116_v36 }
  0x47   :  { %v120_v45 = vadd.f32 %v119_v32, %v118_v40 }
  0x49   :  { %v122_v47 = vadd.f32 %v121_v44, %v120_v45 }
  0x4b   :  { %v124_v50 = vadd.f32 %v123_v35, %v122_v47 }
  0x4d   :  { %v126_v51 = vadd.f32 %v125_v49, %v124_v50 }
  0x4f   :  { %v128_v53 = vadd.f32 %v127_v38, %v126_v51 }
  0x51   :  { %v130_v60 = vadd.f32 %v129_v52, %v128_v53 }
  0x53   :  { %v131_v41 = vrot.slane %v130_v60, 4 }
  0x55   :  { %v132_v54 = vadd.f32 %v131_v41, %v130_v60 }
  0x57   :  { %v133_v61 = vrot.slane %v132_v54, 2 }
  0x59   :  { %v134_v62 = vadd.f32 %v133_v61, %v132_v54 }
  0x5b   :  { %v135_v0 = vrot.slane %v134_v62, 1 }
  0x5d   :  { %v136_v2 = vadd.f32 %v135_v0, %v134_v62 }
  0x5f   :  { %v137_v3 = vmul.f32 0.0078125, %v136_v2 }
  0x61   :  { %v138_v4 = vadd.f32 1e-05, %v137_v3 }
  0x63   :  { %607 = vrsqrt.f32 %v138_v4 }
  0x70   :  { %v608_v5 = vpop.eup %607 }
  0x71   :  { %v140_v6 = vmul.f32 %v608_v5, %v693_v55  ;;  %v141_v8 = vmul.f32 %v608_v5, %v695_v56  ;;  %v142_v9 = vmul.f32 %v608_v5, %v697_v57  ;;  %v143_v10 = vmul.f32 %v608_v5, %v699_v58 }
  0x72   :  { %v144_v12 = vmul.f32 %v608_v5, %v701_v59  ;;  %v145_v13 = vmul.f32 %v608_v5, %v709_v63  ;;  %v146_v14 = vmul.f32 %v608_v5, %v713_v1  ;;  %v147_v16 = vmul.f32 %v608_v5, %v720_v7 }
  0x73   :  { %v156_v17 = vmax.f32 %v140_v6, 0.0  ;;  %v157_v18 = vmax.f32 %v141_v8, 0.0  ;;  %v158_v20 = vmax.f32 %v142_v9, 0.0  ;;  %v159_v21 = vmax.f32 %v143_v10, 0.0 }
  0x74   :  { %v160_v22 = vmax.f32 %v144_v12, 0.0  ;;  %v161_v55 = vmax.f32 %v145_v13, 0.0  ;;  %v162_v23 = vmax.f32 %v146_v14, 0.0  ;;  %v148_v57 = vmul.f32 %v608_v5, %v725_v11 }
  0x75   :  { %v172_v56 = vpack.c.bf16 %v157_v18, %v156_v17  ;;  %v173_v25 = vpack.c.bf16 %v159_v21, %v158_v20  ;;  %v149_v58 = vmul.f32 %v608_v5, %v730_v15  ;;  %v163_v27 = vmax.f32 %v147_v16, 0.0 }
  0x76   :  { %v174_v59 = vpack.c.bf16 %v161_v55, %v160_v22  ;;  %v150_v63 = vmul.f32 %v608_v5, %v735_v19  ;;  %v151_v1 = vmul.f32 %v608_v5, %v740_v24  ;;  %v164_v7 = vmax.f32 %v148_v57, 0.0 }
  0x77   :  { %588 = vmatprep.mubr.msk.bf16.mxu0 %vm28_vm0, %v172_v56  ;;  %v165_v26 = vmax.f32 %v149_v58, 0.0  ;;  %v152_v30 = vmul.f32 %v608_v5, %v745_v28  ;;  %v153_v31 = vmul.f32 %v608_v5, %v81_v33  ;;  %v154_v11 = vmul.f32 %v608_v5, %v82_v37 }
  0x78   :  { %589 = vmatmul.mubr.msk.bf16.vlgmr.msra.gmra.mxu0 %vm28_vm0, %v173_v25  ;;  %v166_v34 = vmax.f32 %v150_v63, 0.0  ;;  %v167_v29 = vmax.f32 %v151_v1, 0.0  ;;  %v155_v36 = vmul.f32 %v608_v5, %v83_v42  ;;  %v175_v40 = vpack.c.bf16 %v163_v27, %v162_v23 }
  0x79   :  { %592 = vmatprep.mubr.msk.bf16.mxu0 %vm28_vm0, %v174_v59  ;;  %v176_v15 = vpack.c.bf16 %v165_v26, %v164_v7  ;;  %v168_v39 = vmax.f32 %v152_v30, 0.0  ;;  %v169_v19 = vmax.f32 %v153_v31, 0.0  ;;  %v170_v28 = vmax.f32 %v154_v11, 0.0 }
  0x7a   :  { %v177_v32 = vpack.c.bf16 %v167_v29, %v166_v34  ;;  %v171_v33 = vmax.f32 %v155_v36, 0.0 }
  0x7b   :  { %596 = vmatprep.mubr.msk.bf16.mxu1 %vm28_vm0, %v176_v15  ;;  %v178_v24 = vpack.c.bf16 %v169_v19, %v168_v39 }
  0x7c   :  { %597 = vmatmul.mubr.msk.bf16.vlgmr.msra.gmra.mxu1 %vm28_vm0, %v177_v32  ;;  %v179_v37 = vpack.c.bf16 %v171_v33, %v170_v28 }
  0x7d   :  { %600 = vmatprep.mubr.msk.bf16.mxu1 %vm28_vm0, %v178_v24 }
  0x80   :  { %593 = vmatmul.mubr.msk.bf16.gmra.mxu0 %vm28_vm0, %v175_v40 }
  0x84   :  { %601 = vmatmul.mubr.msk.bf16.gmra.mxu1 %vm28_vm0, %v179_v37 }
 0x138   :  { %v590_v42 = vpop.f32.mrf.mxu0 }
 0x139   :  { %v312_v51 = vsel %vm28_vm0, %v590_v42, 0.0 }
 0x13a   :  { %v246_v43 = vpop.f32.mrf.mxu0 }
 0x13b   :  { %v309_v47 = vsel %vm28_vm0, %v246_v43, 0.0 }
 0x13c   :  { %v591_v44 = vpop.f32.mrf.mxu0  ;;  %v782_v45 = vpop.f32.mrf.mxu1 }
 0x13d   :  { %v314_v60 = vsel %vm28_vm0, %v591_v44, 0.0  ;;  %v328_v20 = vsel %vm28_vm0, %v782_v45, 0.0 }
 0x13e   :  { %v249_v46 = vpop.f32.mrf.mxu0  ;;  %v784_v35 = vpop.f32.mrf.mxu1 }
 0x13f   :  { %v310_v48 = vsel %vm28_vm0, %v249_v46, 0.0  ;;  %v324_v13 = vsel %vm28_vm0, %v784_v35, 0.0 }
 0x140   :  { %v311_v49 = vadd.f32 %v310_v48, %v309_v47  ;;  %v594_v50 = vpop.f32.mrf.mxu0  ;;  %v788_v38 = vpop.f32.mrf.mxu1 }
 0x141   :  { %v320_v6 = vsel %vm28_vm0, %v594_v50, 0.0  ;;  %v330_v22 = vsel %vm28_vm0, %v788_v38, 0.0 }
 0x142   :  { %v313_v52 = vadd.f32 %v312_v51, %v311_v49  ;;  %v262_v53 = vpop.f32.mrf.mxu0  ;;  %v281_v61 = vpop.f32.mrf.mxu1 }
 0x143   :  { %v316_v62 = vsel %vm28_vm0, %v262_v53, 0.0  ;;  %v326_v16 = vsel %vm28_vm0, %v281_v61, 0.0 }
 0x144   :  { %v315_v41 = vadd.f32 %v314_v60, %v313_v52  ;;  %v595_v54 = vpop.f32.mrf.mxu0  ;;  %v794_v5 = vpop.f32.mrf.mxu1 }
 0x145   :  { %v322_v9 = vsel %vm28_vm0, %v595_v54, 0.0  ;;  %v336_v59 = vsel %vm28_vm0, %v794_v5, 0.0 }
 0x146   :  { %v317_v0 = vadd.f32 %v316_v62, %v315_v41  ;;  %v265_v2 = vpop.f32.mrf.mxu0  ;;  %v798_v12 = vpop.f32.mrf.mxu1 }
 0x147   :  { %v318_v3 = vsel %vm28_vm0, %v265_v2, 0.0  ;;  %v332_v56 = vsel %vm28_vm0, %v798_v12, 0.0 }
 0x148   :  { %v319_v4 = vadd.f32 %v318_v3, %v317_v0  ;;  %v803_v18 = vpop.f32.mrf.mxu1 }
 0x149   :  { %v338_v63 = vsel %vm28_vm0, %v803_v18, 0.0 }
 0x14a   :  { %v321_v8 = vadd.f32 %v320_v6, %v319_v4  ;;  %v297_v23 = vpop.f32.mrf.mxu1 }
 0x14b   :  { %v334_v57 = vsel %vm28_vm0, %v297_v23, 0.0 }
 0x14c   :  { %v323_v10 = vadd.f32 %v322_v9, %v321_v8 }
 0x14e   :  { %v325_v14 = vadd.f32 %v324_v13, %v323_v10 }
 0x150   :  { %v327_v17 = vadd.f32 %v326_v16, %v325_v14 }
 0x152   :  { %v329_v21 = vadd.f32 %v328_v20, %v327_v17 }
 0x154   :  { %v331_v55 = vadd.f32 %v330_v22, %v329_v21 }
 0x156   :  { %v333_v25 = vadd.f32 %v332_v56, %v331_v55 }
 0x158   :  { %v335_v58 = vadd.f32 %v334_v57, %v333_v25 }
 0x15a   :  { %v337_v27 = vadd.f32 %v336_v59, %v335_v58 }
 0x15c   :  { %v339_v1 = vadd.f32 %v338_v63, %v337_v27 }
 0x15e   :  { %v340_v7 = vrot.slane %v339_v1, 4 }
 0x160   :  { %v341_v26 = vadd.f32 %v340_v7, %v339_v1 }
 0x162   :  { %v342_v30 = vrot.slane %v341_v26, 2 }
 0x164   :  { %v343_v31 = vadd.f32 %v342_v30, %v341_v26 }
 0x166   :  { %v344_v34 = vrot.slane %v343_v31, 1 }
 0x168   :  { %v345_v29 = vadd.f32 %v344_v34, %v343_v31 }
 0x16a   :  { %v346_v11 = vmul.f32 0.0078125, %v345_v29 }
 0x16c   :  { %v816_v36 = vsub.f32 %v246_v43, %v346_v11  ;;  %v818_v15 = vsub.f32 %v249_v46, %v346_v11  ;;  %v820_v39 = vsub.f32 %v590_v42, %v346_v11  ;;  %v822_v19 = vsub.f32 %v591_v44, %v346_v11 }
 0x16d   :  { %v828_v40 = vsub.f32 %v262_v53, %v346_v11  ;;  %v832_v33 = vsub.f32 %v265_v2, %v346_v11  ;;  %v838_v46 = vsub.f32 %v594_v50, %v346_v11  ;;  %v843_v51 = vsub.f32 %v595_v54, %v346_v11 }
 0x16e   :  { %v363_v32 = vmul.f32 %v816_v36, %v816_v36  ;;  %v364_v24 = vmul.f32 %v818_v15, %v818_v15  ;;  %v365_v28 = vmul.f32 %v820_v39, %v820_v39  ;;  %v366_v37 = vmul.f32 %v822_v19, %v822_v19 }
 0x16f   :  { %v367_v47 = vmul.f32 %v828_v40, %v828_v40  ;;  %v368_v52 = vmul.f32 %v832_v33, %v832_v33  ;;  %v355_v41 = vsub.f32 %v784_v35, %v346_v11  ;;  %v369_v50 = vmul.f32 %v838_v46, %v838_v46 }
 0x170   :  { %v379_v42 = vsel %vm28_vm0, %v363_v32, 0.0  ;;  %v380_v43 = vsel %vm28_vm0, %v364_v24, 0.0  ;;  %v382_v48 = vsel %vm28_vm0, %v365_v28, 0.0  ;;  %v384_v53 = vsel %vm28_vm0, %v366_v37, 0.0 }
 0x171   :  { %v381_v44 = vadd.f32 %v380_v43, %v379_v42  ;;  %v386_v62 = vsel %vm28_vm0, %v367_v47, 0.0  ;;  %v356_v2 = vsub.f32 %v281_v61, %v346_v11  ;;  %v370_v3 = vmul.f32 %v843_v51, %v843_v51 }
 0x172   :  { %v388_v54 = vsel %vm28_vm0, %v368_v52, 0.0  ;;  %v357_v6 = vsub.f32 %v782_v45, %v346_v11  ;;  %v371_v8 = vmul.f32 %v355_v41, %v355_v41  ;;  %v390_v9 = vsel %vm28_vm0, %v369_v50, 0.0 }
 0x173   :  { %v383_v49 = vadd.f32 %v382_v48, %v381_v44  ;;  %v358_v35 = vsub.f32 %v788_v38, %v346_v11  ;;  %v372_v13 = vmul.f32 %v356_v2, %v356_v2  ;;  %v392_v14 = vsel %vm28_vm0, %v370_v3, 0.0 }
 0x174   :  { %v359_v61 = vsub.f32 %v798_v12, %v346_v11  ;;  %v373_v17 = vmul.f32 %v357_v6, %v357_v6  ;;  %v394_v20 = vsel %vm28_vm0, %v371_v8, 0.0  ;;  %v360_v22 = vsub.f32 %v297_v23, %v346_v11 }
 0x175   :  { %v385_v60 = vadd.f32 %v384_v53, %v383_v49  ;;  %v374_v55 = vmul.f32 %v358_v35, %v358_v35  ;;  %v396_v45 = vsel %vm28_vm0, %v372_v13, 0.0  ;;  %v361_v25 = vsub.f32 %v794_v5, %v346_v11 }
 0x176   :  { %v375_v57 = vmul.f32 %v359_v61, %v359_v61  ;;  %v398_v38 = vsel %vm28_vm0, %v373_v17, 0.0  ;;  %v362_v59 = vsub.f32 %v803_v18, %v346_v11  ;;  %v376_v27 = vmul.f32 %v360_v22, %v360_v22 }
 0x177   :  { %v387_v0 = vadd.f32 %v386_v62, %v385_v60  ;;  %v400_v12 = vsel %vm28_vm0, %v374_v55, 0.0  ;;  %v377_v1 = vmul.f32 %v361_v25, %v361_v25 }
 0x178   :  { %v402_v7 = vsel %vm28_vm0, %v375_v57, 0.0  ;;  %v378_v26 = vmul.f32 %v362_v59, %v362_v59  ;;  %v404_v30 = vsel %vm28_vm0, %v376_v27, 0.0 }
 0x179   :  { %v389_v4 = vadd.f32 %v388_v54, %v387_v0  ;;  %v406_v5 = vsel %vm28_vm0, %v377_v1, 0.0 }
 0x17a   :  { %v408_v29 = vsel %vm28_vm0, %v378_v26, 0.0 }
 0x17b   :  { %v391_v10 = vadd.f32 %v390_v9, %v389_v4 }
 0x17d   :  { %v393_v16 = vadd.f32 %v392_v14, %v391_v10 }
 0x17f   :  { %v395_v21 = vadd.f32 %v394_v20, %v393_v16 }
 0x181   :  { %v397_v56 = vadd.f32 %v396_v45, %v395_v21 }
 0x183   :  { %v399_v58 = vadd.f32 %v398_v38, %v397_v56 }
 0x185   :  { %v401_v63 = vadd.f32 %v400_v12, %v399_v58 }
 0x187   :  { %v403_v23 = vadd.f32 %v402_v7, %v401_v63 }
 0x189   :  { %v405_v31 = vadd.f32 %v404_v30, %v403_v23 }
 0x18b   :  { %v407_v34 = vadd.f32 %v406_v5, %v405_v31 }
 0x18d   :  { %v409_v32 = vadd.f32 %v408_v29, %v407_v34 }
 0x18f   :  { %v410_v24 = vrot.slane %v409_v32, 4 }
 0x191   :  { %v411_v18 = vadd.f32 %v410_v24, %v409_v32 }
 0x193   :  { %v412_v11 = vrot.slane %v411_v18, 2 }
 0x195   :  { %v413_v28 = vadd.f32 %v412_v11, %v411_v18 }
 0x197   :  { %v414_v37 = vrot.slane %v413_v28, 1 }
 0x199   :  { %v415_v42 = vadd.f32 %v414_v37, %v413_v28 }
 0x19b   :  { %v416_v43 = vmul.f32 0.0078125, %v415_v42 }
 0x19d   :  { %v417_v44 = vadd.f32 1e-05, %v416_v43 }
 0x19f   :  { %609 = vrsqrt.f32 %v417_v44 }
 0x1ac   :  { %v610_v47 = vpop.eup %609 }
 0x1ad   :  { %v419_v48 = vmul.f32 %v610_v47, %v816_v36  ;;  %v420_v49 = vmul.f32 %v610_v47, %v818_v15  ;;  %v421_v52 = vmul.f32 %v610_v47, %v820_v39  ;;  %v422_v53 = vmul.f32 %v610_v47, %v822_v19 }
 0x1ae   :  { %v423_v60 = vmul.f32 %v610_v47, %v828_v40  ;;  %v424_v50 = vmul.f32 %v610_v47, %v832_v33  ;;  %v425_v62 = vmul.f32 %v610_v47, %v838_v46  ;;  %v426_v0 = vmul.f32 %v610_v47, %v843_v51 }
 0x1af   :  { %v427_v3 = vmul.f32 %v610_v47, %v355_v41  ;;  %v428_v54 = vmul.f32 %v610_v47, %v356_v2  ;;  %v429_v4 = vmul.f32 %v610_v47, %v357_v6  ;;  %v430_v8 = vmul.f32 %v610_v47, %v358_v35 }
 0x1b0   :  { %v431_v9 = vmul.f32 %v610_v47, %v359_v61  ;;  %v432_v36 = vmul.f32 %v610_v47, %v360_v22  ;;  %v433_v10 = vmul.f32 %v610_v47, %v361_v25  ;;  %v434_v15 = vmul.f32 %v610_v47, %v362_v59 }
 0x1b1   :  { %v435_v13 = vmax.f32 %v419_v48, 0.0  ;;  %v436_v39 = vmax.f32 %v420_v49, 0.0  ;;  %v437_v14 = vmax.f32 %v421_v52, 0.0  ;;  %v438_v19 = vmax.f32 %v422_v53, 0.0 }
 0x1b2   :  { %v439_v16 = vmax.f32 %v423_v60, 0.0  ;;  %v440_v40 = vmax.f32 %v424_v50, 0.0  ;;  %v441_v17 = vmax.f32 %v425_v62, 0.0  ;;  %v442_v33 = vmax.f32 %v426_v0, 0.0 }
 0x1b3   :  { %v443_v20 = vmax.f32 %v427_v3, 0.0  ;;  %v444_v46 = vmax.f32 %v428_v54, 0.0  ;;  %v445_v21 = vmax.f32 %v429_v4, 0.0  ;;  %v446_v51 = vmax.f32 %v430_v8, 0.0 }
 0x1b4   :  { %v447_v41 = vmax.f32 %v431_v9, 0.0  ;;  %v448_v2 = vmax.f32 %v432_v36, 0.0  ;;  %v449_v6 = vmax.f32 %v433_v10, 0.0  ;;  %v450_v35 = vmax.f32 %v434_v15, 0.0 }
 0x1b5   :  { %v561_v61 = vpack.c.bf16 %v435_v13, %v435_v13  ;;  %v562_v22 = vpack.c.bf16 %v436_v39, %v436_v39  ;;  %v563_v55 = vpack.c.bf16 %v437_v14, %v437_v14  ;;  %v564_v45 = vpack.c.bf16 %v438_v19, %v438_v19 }
 0x1b6   :  { %v565_v56 = vpack.c.bf16 %v439_v16, %v439_v16  ;;  %v566_v25 = vpack.c.bf16 %v440_v40, %v440_v40  ;;  %v567_v57 = vpack.c.bf16 %v441_v17, %v441_v17  ;;  %v568_v38 = vpack.c.bf16 %v442_v33, %v442_v33 }
 0x1b7   :  { %v569_v58 = vpack.c.bf16 %v443_v20, %v443_v20  ;;  %v570_v59 = vpack.c.bf16 %v444_v46, %v444_v46  ;;  %v571_v27 = vpack.c.bf16 %v445_v21, %v445_v21  ;;  %v572_v12 = vpack.c.bf16 %v446_v51, %v446_v51  ;;  %516 = vst.msk [vmem:[%s944_s2] sm:$0xf] %vm515_vm1, %v561_v61 }
 0x1b8   :  { %517 = vst.msk [vmem:[%s944_s2 + $0x4] sm:$0xf] %vm515_vm1, %v562_v22  ;;  %518 = vst.msk [vmem:[%s944_s2 + $0x8] sm:$0xf] %vm515_vm1, %v563_v55  ;;  %v573_v63 = vpack.c.bf16 %v447_v41, %v447_v41  ;;  %v574_v1 = vpack.c.bf16 %v448_v2, %v448_v2  ;;  %v575_v7 = vpack.c.bf16 %v449_v6, %v449_v6 }
 0x1b9   :  { %519 = vst.msk [vmem:[%s944_s2 + $0xc] sm:$0xf] %vm515_vm1, %v564_v45  ;;  %v576_v23 = vpack.c.bf16 %v450_v35, %v450_v35  ;;  %520 = vst.msk [vmem:[%s944_s2 + $0x10] sm:$0xf] %vm515_vm1, %v565_v56 }
 0x1ba   :  { %521 = vst.msk [vmem:[%s944_s2 + $0x14] sm:$0xf] %vm515_vm1, %v566_v25  ;;  %522 = vst.msk [vmem:[%s944_s2 + $0x18] sm:$0xf] %vm515_vm1, %v567_v57 }
 0x1bb   :  { %523 = vst.msk [vmem:[%s944_s2 + $0x1c] sm:$0xf] %vm515_vm1, %v568_v38  ;;  %524 = vst.msk [vmem:[%s944_s2 + $0x20] sm:$0xf] %vm515_vm1, %v569_v58 }
 0x1bc   :  { %525 = vst.msk [vmem:[%s944_s2 + $0x24] sm:$0xf] %vm515_vm1, %v570_v59  ;;  %526 = vst.msk [vmem:[%s944_s2 + $0x28] sm:$0xf] %vm515_vm1, %v571_v27 }
 0x1bd   :  { %527 = vst.msk [vmem:[%s944_s2 + $0x2c] sm:$0xf] %vm515_vm1, %v572_v12  ;;  %528 = vst.msk [vmem:[%s944_s2 + $0x30] sm:$0xf] %vm515_vm1, %v573_v63 }
 0x1be   :  { %529 = vst.msk [vmem:[%s944_s2 + $0x34] sm:$0xf] %vm515_vm1, %v574_v1  ;;  %530 = vst.msk [vmem:[%s944_s2 + $0x38] sm:$0xf] %vm515_vm1, %v575_v7 }
 0x1bf   :  { %531 = vst.msk [vmem:[%s944_s2 + $0x3c] sm:$0xf] %vm515_vm1, %v576_v23 }

// kernel: densenet_forward.26
= control target key start
LH: loop header
LB: loop body
LE: loop exit
PB: predicated region body
PF: predicated region fallthrough
CT: control target
= control target key end

     0   :  { %vm288_vm0 = vcmask 130048   ;;  %s943_s0 = inlined_call_operand.vmem [shape: f32[9,128,16], index: 0, kind: input, shape index: {}]   ;;  %s944_s1 = inlined_call_operand.vmem [shape: f32[128,16], index: 1, kind: output, shape index: {}]  }
   0x1   :  { %v8_v0 = vld [vmem:[%s943_s0] sm:$0xff]  ;;  %v9_v6 = vld [vmem:[%s943_s0 + $0x8] sm:$0xff]  ;;  %v10_v15 = vld [vmem:[%s943_s0 + $0x10] sm:$0xff] }
   0x2   :  { %v309_v1 = vld [vmem:[%s943_s0 + $0x80] sm:$0xff]  ;;  %v310_v7 = vld [vmem:[%s943_s0 + $0x88] sm:$0xff]  ;;  %v311_v16 = vld [vmem:[%s943_s0 + $0x90] sm:$0xff] }
   0x3   :  { %v325_v2 = vld [vmem:[%s943_s0 + $0x100] sm:$0xff]  ;;  %v41_v3 = vmax.f32 %v8_v0, %v309_v1  ;;  %v326_v8 = vld [vmem:[%s943_s0 + $0x108] sm:$0xff]  ;;  %v42_v10 = vmax.f32 %v9_v6, %v310_v7  ;;  %v327_v17 = vld [vmem:[%s943_s0 + $0x110] sm:$0xff]  ;;  %v43_v20 = vmax.f32 %v10_v15, %v311_v16 }
   0x4   :  { %v341_v4 = vld [vmem:[%s943_s0 + $0x180] sm:$0xff]  ;;  %v342_v13 = vld [vmem:[%s943_s0 + $0x188] sm:$0xff]  ;;  %v343_v24 = vld [vmem:[%s943_s0 + $0x190] sm:$0xff] }
   0x5   :  { %v74_v5 = vmax.f32 %v41_v3, %v325_v2  ;;  %v357_v9 = vld [vmem:[%s943_s0 + $0x200] sm:$0xff]  ;;  %v75_v14 = vmax.f32 %v42_v10, %v326_v8  ;;  %v358_v19 = vld [vmem:[%s943_s0 + $0x208] sm:$0xff]  ;;  %v76_v26 = vmax.f32 %v43_v20, %v327_v17  ;;  %v11_v27 = vld [vmem:[%s943_s0 + $0x18] sm:$0xff] }
   0x6   :  { %v373_v12 = vld [vmem:[%s943_s0 + $0x280] sm:$0xff]  ;;  %v374_v23 = vld [vmem:[%s943_s0 + $0x288] sm:$0xff]  ;;  %v312_v28 = vld [vmem:[%s943_s0 + $0x98] sm:$0xff] }
   0x7   :  { %v107_v11 = vmax.f32 %v74_v5, %v341_v4  ;;  %v389_v21 = vld [vmem:[%s943_s0 + $0x300] sm:$0xff]  ;;  %v108_v22 = vmax.f32 %v75_v14, %v342_v13  ;;  %v328_v29 = vld [vmem:[%s943_s0 + $0x118] sm:$0xff]  ;;  %v359_v33 = vld [vmem:[%s943_s0 + $0x210] sm:$0xff]  ;;  %v44_v34 = vmax.f32 %v11_v27, %v312_v28  ;;  %v109_v37 = vmax.f32 %v76_v26, %v343_v24 }
   0x8   :  { %v405_v30 = vld [vmem:[%s943_s0 + $0x380] sm:$0xff]  ;;  %v390_v36 = vld [vmem:[%s943_s0 + $0x308] sm:$0xff]  ;;  %v375_v38 = vld [vmem:[%s943_s0 + $0x290] sm:$0xff] }
   0x9   :  { %v140_v18 = vmax.f32 %v107_v11, %v357_v9  ;;  %v421_v31 = vld [vmem:[%s943_s0 + $0x400] sm:$0xff]  ;;  %v141_v32 = vmax.f32 %v108_v22, %v358_v19  ;;  %v344_v39 = vld [vmem:[%s943_s0 + $0x198] sm:$0xff]  ;;  %v77_v41 = vmax.f32 %v44_v34, %v328_v29  ;;  %v406_v46 = vld [vmem:[%s943_s0 + $0x388] sm:$0xff]  ;;  %v142_v48 = vmax.f32 %v109_v37, %v359_v33 }
   0xa   :  { %v12_v42 = vld [vmem:[%s943_s0 + $0x20] sm:$0xff]  ;;  %v422_v47 = vld [vmem:[%s943_s0 + $0x408] sm:$0xff]  ;;  %v360_v49 = vld [vmem:[%s943_s0 + $0x218] sm:$0xff] }
   0xb   :  { %v173_v25 = vmax.f32 %v140_v18, %v373_v12  ;;  %v174_v40 = vmax.f32 %v141_v32, %v374_v23  ;;  %v313_v43 = vld [vmem:[%s943_s0 + $0xa0] sm:$0xff]  ;;  %v391_v52 = vld [vmem:[%s943_s0 + $0x310] sm:$0xff]  ;;  %v110_v53 = vmax.f32 %v77_v41, %v344_v39  ;;  %v376_v54 = vld [vmem:[%s943_s0 + $0x298] sm:$0xff]  ;;  %v175_v57 = vmax.f32 %v142_v48, %v375_v38 }
   0xc   :  { %v329_v44 = vld [vmem:[%s943_s0 + $0x120] sm:$0xff]  ;;  %v45_v50 = vmax.f32 %v12_v42, %v313_v43  ;;  %v13_v59 = vld [vmem:[%s943_s0 + $0x28] sm:$0xff]  ;;  %v407_v63 = vld [vmem:[%s943_s0 + $0x390] sm:$0xff] }
   0xd   :  { %v206_v35 = vmax.f32 %v173_v25, %v389_v21  ;;  %v207_v51 = vmax.f32 %v174_v40, %v390_v36  ;;  %v345_v55 = vld [vmem:[%s943_s0 + $0x1a0] sm:$0xff]  ;;  %v314_v60 = vld [vmem:[%s943_s0 + $0xa8] sm:$0xff]  ;;  %v423_v0 = vld [vmem:[%s943_s0 + $0x410] sm:$0xff]  ;;  %v143_v1 = vmax.f32 %v110_v53, %v360_v49  ;;  %v208_v4 = vmax.f32 %v175_v57, %v391_v52 }
   0xe   :  { %v78_v58 = vmax.f32 %v45_v50, %v329_v44  ;;  %v330_v61 = vld [vmem:[%s943_s0 + $0x128] sm:$0xff]  ;;  %v361_v2 = vld [vmem:[%s943_s0 + $0x220] sm:$0xff]  ;;  %v46_v3 = vmax.f32 %v13_v59, %v314_v60  ;;  %v392_v5 = vld [vmem:[%s943_s0 + $0x318] sm:$0xff] }
   0xf   :  { %v239_v45 = vmax.f32 %v206_v35, %v405_v30  ;;  %v240_v62 = vmax.f32 %v207_v51, %v406_v46  ;;  %v377_v7 = vld [vmem:[%s943_s0 + $0x2a0] sm:$0xff]  ;;  %v346_v8 = vld [vmem:[%s943_s0 + $0x1a8] sm:$0xff]  ;;  %v176_v10 = vmax.f32 %v143_v1, %v376_v54  ;;  %v14_v12 = vld [vmem:[%s943_s0 + $0x30] sm:$0xff]  ;;  %v241_v15 = vmax.f32 %v208_v4, %v407_v63 }
  0x10   :  { %v111_v6 = vmax.f32 %v78_v58, %v345_v55  ;;  %v79_v11 = vmax.f32 %v46_v3, %v330_v61  ;;  %v315_v13 = vld [vmem:[%s943_s0 + $0xb0] sm:$0xff]  ;;  %v408_v16 = vld [vmem:[%s943_s0 + $0x398] sm:$0xff]  ;;  %v362_v19 = vld [vmem:[%s943_s0 + $0x228] sm:$0xff] }
  0x11   :  { %v272_v56 = vmax.f32 %v239_v45, %v421_v31  ;;  %v273_v9 = vmax.f32 %v240_v62, %v422_v47  ;;  %v331_v14 = vld [vmem:[%s943_s0 + $0x130] sm:$0xff]  ;;  %v424_v17 = vld [vmem:[%s943_s0 + $0x418] sm:$0xff]  ;;  %v47_v20 = vmax.f32 %v14_v12, %v315_v13  ;;  %v209_v21 = vmax.f32 %v176_v10, %v392_v5  ;;  %v393_v22 = vld [vmem:[%s943_s0 + $0x320] sm:$0xff] }
  0x12   :  { %v144_v18 = vmax.f32 %v111_v6, %v361_v2  ;;  %v112_v23 = vmax.f32 %v79_v11, %v346_v8  ;;  %v378_v24 = vld [vmem:[%s943_s0 + $0x2a8] sm:$0xff]  ;;  %v347_v25 = vld [vmem:[%s943_s0 + $0x1b0] sm:$0xff]  ;;  %v274_v26 = vmax.f32 %v241_v15, %v423_v0  ;;  %v15_v29 = vld [vmem:[%s943_s0 + $0x38] sm:$0xff] }
  0x13   :  { %289 = vst.msk [vmem:[%s944_s1] sm:$0xff] %vm288_vm0, %v272_v56  ;;  %290 = vst.msk [vmem:[%s944_s1 + $0x8] sm:$0xff] %vm288_vm0, %v273_v9  ;;  %v80_v28 = vmax.f32 %v47_v20, %v331_v14  ;;  %v316_v30 = vld [vmem:[%s943_s0 + $0xb8] sm:$0xff]  ;;  %v242_v32 = vmax.f32 %v209_v21, %v408_v16  ;;  %v409_v33 = vld [vmem:[%s943_s0 + $0x3a0] sm:$0xff] }
  0x14   :  { %v177_v27 = vmax.f32 %v144_v18, %v377_v7  ;;  %v332_v31 = vld [vmem:[%s943_s0 + $0x138] sm:$0xff]  ;;  %v425_v34 = vld [vmem:[%s943_s0 + $0x420] sm:$0xff]  ;;  %v145_v35 = vmax.f32 %v112_v23, %v362_v19  ;;  %v363_v36 = vld [vmem:[%s943_s0 + $0x230] sm:$0xff]  ;;  %v48_v37 = vmax.f32 %v15_v29, %v316_v30  ;;  %291 = vst.msk [vmem:[%s944_s1 + $0x10] sm:$0xff] %vm288_vm0, %v274_v26 }
  0x15   :  { %v394_v39 = vld [vmem:[%s943_s0 + $0x328] sm:$0xff]  ;;  %v113_v40 = vmax.f32 %v80_v28, %v347_v25  ;;  %v379_v41 = vld [vmem:[%s943_s0 + $0x2b0] sm:$0xff]  ;;  %v348_v42 = vld [vmem:[%s943_s0 + $0x1b8] sm:$0xff]  ;;  %v275_v43 = vmax.f32 %v242_v32, %v424_v17 }
  0x16   :  { %v210_v38 = vmax.f32 %v177_v27, %v393_v22  ;;  %v178_v44 = vmax.f32 %v145_v35, %v378_v24  ;;  %v81_v45 = vmax.f32 %v48_v37, %v332_v31  ;;  %v16_v46 = vld [vmem:[%s943_s0 + $0x40] sm:$0xff]  ;;  %v410_v50 = vld [vmem:[%s943_s0 + $0x3a8] sm:$0xff]  ;;  %v364_v53 = vld [vmem:[%s943_s0 + $0x238] sm:$0xff] }
  0x17   :  { %v317_v47 = vld [vmem:[%s943_s0 + $0xc0] sm:$0xff]  ;;  %v426_v51 = vld [vmem:[%s943_s0 + $0x428] sm:$0xff]  ;;  %v146_v52 = vmax.f32 %v113_v40, %v363_v36  ;;  %292 = vst.msk [vmem:[%s944_s1 + $0x18] sm:$0xff] %vm288_vm0, %v275_v43  ;;  %v395_v56 = vld [vmem:[%s943_s0 + $0x330] sm:$0xff] }
  0x18   :  { %v333_v48 = vld [vmem:[%s943_s0 + $0x140] sm:$0xff]  ;;  %v243_v49 = vmax.f32 %v210_v38, %v409_v33  ;;  %v49_v54 = vmax.f32 %v16_v46, %v317_v47  ;;  %v211_v55 = vmax.f32 %v178_v44, %v394_v39  ;;  %v114_v57 = vmax.f32 %v81_v45, %v348_v42  ;;  %v380_v58 = vld [vmem:[%s943_s0 + $0x2b8] sm:$0xff]  ;;  %v17_v63 = vld [vmem:[%s943_s0 + $0x48] sm:$0xff] }
  0x19   :  { %v349_v59 = vld [vmem:[%s943_s0 + $0x1c0] sm:$0xff]  ;;  %v179_v61 = vmax.f32 %v146_v52, %v379_v41  ;;  %v318_v0 = vld [vmem:[%s943_s0 + $0xc8] sm:$0xff]  ;;  %v411_v3 = vld [vmem:[%s943_s0 + $0x3b0] sm:$0xff] }
  0x1a   :  { %v276_v60 = vmax.f32 %v243_v49, %v425_v34  ;;  %v82_v62 = vmax.f32 %v49_v54, %v333_v48  ;;  %v334_v1 = vld [vmem:[%s943_s0 + $0x148] sm:$0xff]  ;;  %v244_v2 = vmax.f32 %v211_v55, %v410_v50  ;;  %v427_v4 = vld [vmem:[%s943_s0 + $0x430] sm:$0xff]  ;;  %v147_v5 = vmax.f32 %v114_v57, %v364_v53  ;;  %v365_v6 = vld [vmem:[%s943_s0 + $0x240] sm:$0xff] }
  0x1b   :  { %v50_v7 = vmax.f32 %v17_v63, %v318_v0  ;;  %v212_v8 = vmax.f32 %v179_v61, %v395_v56  ;;  %v396_v9 = vld [vmem:[%s943_s0 + $0x338] sm:$0xff]  ;;  %v381_v11 = vld [vmem:[%s943_s0 + $0x2c0] sm:$0xff]  ;;  %v350_v12 = vld [vmem:[%s943_s0 + $0x1c8] sm:$0xff] }
  0x1c   :  { %293 = vst.msk [vmem:[%s944_s1 + $0x20] sm:$0xff] %vm288_vm0, %v276_v60  ;;  %v115_v10 = vmax.f32 %v82_v62, %v349_v59  ;;  %v277_v13 = vmax.f32 %v244_v2, %v426_v51  ;;  %v180_v14 = vmax.f32 %v147_v5, %v380_v58  ;;  %v18_v16 = vld [vmem:[%s943_s0 + $0x50] sm:$0xff]  ;;  %v412_v20 = vld [vmem:[%s943_s0 + $0x3b8] sm:$0xff]  ;;  %v366_v23 = vld [vmem:[%s943_s0 + $0x248] sm:$0xff] }
  0x1d   :  { %v83_v15 = vmax.f32 %v50_v7, %v334_v1  ;;  %v319_v17 = vld [vmem:[%s943_s0 + $0xd0] sm:$0xff]  ;;  %v245_v19 = vmax.f32 %v212_v8, %v411_v3  ;;  %v428_v21 = vld [vmem:[%s943_s0 + $0x438] sm:$0xff]  ;;  %v397_v26 = vld [vmem:[%s943_s0 + $0x340] sm:$0xff] }
  0x1e   :  { %v335_v18 = vld [vmem:[%s943_s0 + $0x150] sm:$0xff]  ;;  %v148_v22 = vmax.f32 %v115_v10, %v365_v6  ;;  %v51_v24 = vmax.f32 %v18_v16, %v319_v17  ;;  %294 = vst.msk [vmem:[%s944_s1 + $0x28] sm:$0xff] %vm288_vm0, %v277_v13  ;;  %v213_v25 = vmax.f32 %v180_v14, %v396_v9  ;;  %v382_v28 = vld [vmem:[%s943_s0 + $0x2c8] sm:$0xff]  ;;  %v19_v33 = vld [vmem:[%s943_s0 + $0x58] sm:$0xff] }
  0x1f   :  { %v116_v27 = vmax.f32 %v83_v15, %v350_v12  ;;  %v351_v29 = vld [vmem:[%s943_s0 + $0x1d0] sm:$0xff]  ;;  %v278_v30 = vmax.f32 %v245_v19, %v427_v4  ;;  %v320_v34 = vld [vmem:[%s943_s0 + $0xd8] sm:$0xff]  ;;  %v413_v37 = vld [vmem:[%s943_s0 + $0x3c0] sm:$0xff] }
  0x20   :  { %v181_v31 = vmax.f32 %v148_v22, %v381_v11  ;;  %v84_v32 = vmax.f32 %v51_v24, %v335_v18  ;;  %v336_v35 = vld [vmem:[%s943_s0 + $0x158] sm:$0xff]  ;;  %v246_v36 = vmax.f32 %v213_v25, %v412_v20  ;;  %v429_v38 = vld [vmem:[%s943_s0 + $0x440] sm:$0xff]  ;;  %v367_v40 = vld [vmem:[%s943_s0 + $0x250] sm:$0xff]  ;;  %v52_v41 = vmax.f32 %v19_v33, %v320_v34 }
  0x21   :  { %v149_v39 = vmax.f32 %v116_v27, %v366_v23  ;;  %295 = vst.msk [vmem:[%s944_s1 + $0x30] sm:$0xff] %vm288_vm0, %v278_v30  ;;  %v398_v43 = vld [vmem:[%s943_s0 + $0x348] sm:$0xff]  ;;  %v383_v45 = vld [vmem:[%s943_s0 + $0x2d0] sm:$0xff]  ;;  %v352_v46 = vld [vmem:[%s943_s0 + $0x1d8] sm:$0xff] }
  0x22   :  { %v214_v42 = vmax.f32 %v181_v31, %v397_v26  ;;  %v117_v44 = vmax.f32 %v84_v32, %v351_v29  ;;  %v279_v47 = vmax.f32 %v246_v36, %v428_v21  ;;  %v85_v49 = vmax.f32 %v52_v41, %v336_v35  ;;  %v20_v50 = vld [vmem:[%s943_s0 + $0x60] sm:$0xff]  ;;  %v414_v54 = vld [vmem:[%s943_s0 + $0x3c8] sm:$0xff]  ;;  %v368_v57 = vld [vmem:[%s943_s0 + $0x258] sm:$0xff] }
  0x23   :  { %v182_v48 = vmax.f32 %v149_v39, %v382_v28  ;;  %v321_v51 = vld [vmem:[%s943_s0 + $0xe0] sm:$0xff]  ;;  %v430_v55 = vld [vmem:[%s943_s0 + $0x448] sm:$0xff]  ;;  %v399_v60 = vld [vmem:[%s943_s0 + $0x350] sm:$0xff] }
  0x24   :  { %v337_v52 = vld [vmem:[%s943_s0 + $0x160] sm:$0xff]  ;;  %v247_v53 = vmax.f32 %v214_v42, %v413_v37  ;;  %v150_v56 = vmax.f32 %v117_v44, %v367_v40  ;;  %v53_v58 = vmax.f32 %v20_v50, %v321_v51  ;;  %296 = vst.msk [vmem:[%s944_s1 + $0x38] sm:$0xff] %vm288_vm0, %v279_v47  ;;  %v118_v61 = vmax.f32 %v85_v49, %v352_v46  ;;  %v384_v62 = vld [vmem:[%s943_s0 + $0x2d8] sm:$0xff]  ;;  %v21_v3 = vld [vmem:[%s943_s0 + $0x68] sm:$0xff] }
  0x25   :  { %v215_v59 = vmax.f32 %v182_v48, %v398_v43  ;;  %v353_v63 = vld [vmem:[%s943_s0 + $0x1e0] sm:$0xff]  ;;  %v322_v4 = vld [vmem:[%s943_s0 + $0xe8] sm:$0xff]  ;;  %v415_v7 = vld [vmem:[%s943_s0 + $0x3d0] sm:$0xff] }
  0x26   :  { %v280_v0 = vmax.f32 %v247_v53, %v429_v38  ;;  %v183_v1 = vmax.f32 %v150_v56, %v383_v45  ;;  %v86_v2 = vmax.f32 %v53_v58, %v337_v52  ;;  %v338_v5 = vld [vmem:[%s943_s0 + $0x168] sm:$0xff]  ;;  %v431_v8 = vld [vmem:[%s943_s0 + $0x450] sm:$0xff]  ;;  %v151_v9 = vmax.f32 %v118_v61, %v368_v57  ;;  %v369_v10 = vld [vmem:[%s943_s0 + $0x260] sm:$0xff] }
  0x27   :  { %v248_v6 = vmax.f32 %v215_v59, %v414_v54  ;;  %v54_v11 = vmax.f32 %v21_v3, %v322_v4  ;;  %v400_v13 = vld [vmem:[%s943_s0 + $0x358] sm:$0xff]  ;;  %v385_v15 = vld [vmem:[%s943_s0 + $0x2e0] sm:$0xff]  ;;  %v354_v16 = vld [vmem:[%s943_s0 + $0x1e8] sm:$0xff] }
  0x28   :  { %297 = vst.msk [vmem:[%s944_s1 + $0x40] sm:$0xff] %vm288_vm0, %v280_v0  ;;  %v216_v12 = vmax.f32 %v183_v1, %v399_v60  ;;  %v119_v14 = vmax.f32 %v86_v2, %v353_v63  ;;  %v184_v18 = vmax.f32 %v151_v9, %v384_v62  ;;  %v22_v20 = vld [vmem:[%s943_s0 + $0x70] sm:$0xff]  ;;  %v416_v24 = vld [vmem:[%s943_s0 + $0x3d8] sm:$0xff]  ;;  %v370_v27 = vld [vmem:[%s943_s0 + $0x268] sm:$0xff] }
  0x29   :  { %v281_v17 = vmax.f32 %v248_v6, %v430_v55  ;;  %v87_v19 = vmax.f32 %v54_v11, %v338_v5  ;;  %v323_v21 = vld [vmem:[%s943_s0 + $0xf0] sm:$0xff]  ;;  %v432_v25 = vld [vmem:[%s943_s0 + $0x458] sm:$0xff]  ;;  %v401_v30 = vld [vmem:[%s943_s0 + $0x360] sm:$0xff] }
  0x2a   :  { %v339_v22 = vld [vmem:[%s943_s0 + $0x170] sm:$0xff]  ;;  %v249_v23 = vmax.f32 %v216_v12, %v415_v7  ;;  %v152_v26 = vmax.f32 %v119_v14, %v369_v10  ;;  %v55_v28 = vmax.f32 %v22_v20, %v323_v21  ;;  %v217_v29 = vmax.f32 %v184_v18, %v400_v13  ;;  %v386_v32 = vld [vmem:[%s943_s0 + $0x2e8] sm:$0xff]  ;;  %v23_v37 = vld [vmem:[%s943_s0 + $0x78] sm:$0xff] }
  0x2b   :  { %298 = vst.msk [vmem:[%s944_s1 + $0x48] sm:$0xff] %vm288_vm0, %v281_v17  ;;  %v120_v31 = vmax.f32 %v87_v19, %v354_v16  ;;  %v355_v33 = vld [vmem:[%s943_s0 + $0x1f0] sm:$0xff]  ;;  %v324_v38 = vld [vmem:[%s943_s0 + $0xf8] sm:$0xff]  ;;  %v417_v41 = vld [vmem:[%s943_s0 + $0x3e0] sm:$0xff] }
  0x2c   :  { %v282_v34 = vmax.f32 %v249_v23, %v431_v8  ;;  %v185_v35 = vmax.f32 %v152_v26, %v385_v15  ;;  %v88_v36 = vmax.f32 %v55_v28, %v339_v22  ;;  %v340_v39 = vld [vmem:[%s943_s0 + $0x178] sm:$0xff]  ;;  %v250_v40 = vmax.f32 %v217_v29, %v416_v24  ;;  %v371_v43 = vld [vmem:[%s943_s0 + $0x270] sm:$0xff]  ;;  %v402_v46 = vld [vmem:[%s943_s0 + $0x368] sm:$0xff] }
  0x2d   :  { %v153_v42 = vmax.f32 %v120_v31, %v370_v27  ;;  %v56_v44 = vmax.f32 %v23_v37, %v324_v38  ;;  %v356_v48 = vld [vmem:[%s943_s0 + $0x1f8] sm:$0xff]  ;;  %v433_v50 = vld [vmem:[%s943_s0 + $0x460] sm:$0xff]  ;;  %v387_v52 = vld [vmem:[%s943_s0 + $0x2f0] sm:$0xff] }
  0x2e   :  { %299 = vst.msk [vmem:[%s944_s1 + $0x50] sm:$0xff] %vm288_vm0, %v282_v34  ;;  %v218_v45 = vmax.f32 %v185_v35, %v401_v30  ;;  %v121_v47 = vmax.f32 %v88_v36, %v355_v33  ;;  %v283_v49 = vmax.f32 %v250_v40, %v432_v25  ;;  %v418_v55 = vld [vmem:[%s943_s0 + $0x3e8] sm:$0xff]  ;;  %v372_v57 = vld [vmem:[%s943_s0 + $0x278] sm:$0xff]  ;;  %v403_v59 = vld [vmem:[%s943_s0 + $0x370] sm:$0xff] }
  0x2f   :  { %v186_v51 = vmax.f32 %v153_v42, %v386_v32  ;;  %v89_v53 = vmax.f32 %v56_v44, %v340_v39  ;;  %v434_v62 = vld [vmem:[%s943_s0 + $0x468] sm:$0xff]  ;;  %v388_v0 = vld [vmem:[%s943_s0 + $0x2f8] sm:$0xff]  ;;  %v419_v2 = vld [vmem:[%s943_s0 + $0x3f0] sm:$0xff] }
  0x30   :  { %v251_v54 = vmax.f32 %v218_v45, %v417_v41  ;;  %v154_v56 = vmax.f32 %v121_v47, %v371_v43  ;;  %300 = vst.msk [vmem:[%s944_s1 + $0x58] sm:$0xff] %vm288_vm0, %v283_v49  ;;  %v404_v5 = vld [vmem:[%s943_s0 + $0x378] sm:$0xff]  ;;  %v435_v7 = vld [vmem:[%s943_s0 + $0x470] sm:$0xff] }
  0x31   :  { %v219_v58 = vmax.f32 %v186_v51, %v402_v46  ;;  %v122_v60 = vmax.f32 %v89_v53, %v356_v48  ;;  %v420_v10 = vld [vmem:[%s943_s0 + $0x3f8] sm:$0xff] }
  0x32   :  { %v284_v61 = vmax.f32 %v251_v54, %v433_v50  ;;  %v187_v63 = vmax.f32 %v154_v56, %v387_v52  ;;  %v436_v13 = vld [vmem:[%s943_s0 + $0x478] sm:$0xff] }
  0x33   :  { %v252_v1 = vmax.f32 %v219_v58, %v418_v55  ;;  %v155_v3 = vmax.f32 %v122_v60, %v372_v57 }
  0x34   :  { %301 = vst.msk [vmem:[%s944_s1 + $0x60] sm:$0xff] %vm288_vm0, %v284_v61  ;;  %v220_v4 = vmax.f32 %v187_v63, %v403_v59 }
  0x35   :  { %v285_v6 = vmax.f32 %v252_v1, %v434_v62  ;;  %v188_v8 = vmax.f32 %v155_v3, %v388_v0 }
  0x36   :  { %v253_v9 = vmax.f32 %v220_v4, %v419_v2 }
  0x37   :  { %302 = vst.msk [vmem:[%s944_s1 + $0x68] sm:$0xff] %vm288_vm0, %v285_v6  ;;  %v221_v11 = vmax.f32 %v188_v8, %v404_v5 }
  0x38   :  { %v286_v12 = vmax.f32 %v253_v9, %v435_v7 }
  0x39   :  { %v254_v14 = vmax.f32 %v221_v11, %v420_v10 }
  0x3a   :  { %303 = vst.msk [vmem:[%s944_s1 + $0x70] sm:$0xff] %vm288_vm0, %v286_v12 }
  0x3b   :  { %v287_v15 = vmax.f32 %v254_v14, %v436_v13 }
  0x3d   :  { %304 = vst.msk [vmem:[%s944_s1 + $0x78] sm:$0xff] %vm288_vm0, %v287_v15 }

// kernel: densenet_forward.28
= control target key start
LH: loop header
LB: loop body
LE: loop exit
PB: predicated region body
PF: predicated region fallthrough
CT: control target
= control target key end

     0   :  { %v400_v0 = vmov 0   ;;  %vm172_vm0 = vcmask 130048   ;;  %vm294_vm1 = vcmask 64512   ;;  %s563_s1 = inlined_call_operand.vmem [shape: bf16[144,8], index: 1, kind: input, shape index: {}]   ;;  %s564_s0 = inlined_call_operand.vmem [shape: bf16[128,144], index: 0, kind: input, shape index: {}]   ;;  %s565_s2 = inlined_call_operand.vmem [shape: f32[128,8], index: 2, kind: output, shape index: {}]  }
   0x1   :  { %197 = vmatprep.subr.bf16.mxu0 %v400_v0  ;;  %348 = vmatprep.subr.bf16.mxu1 %v400_v0  ;;  %v367_v1 = vld [vmem:[%s563_s1 + $0x38] sm:$0xff]   ;;  %v368_v2 = vld [vmem:[%s563_s1 + $0x30] sm:$0xff]   ;;  %v369_v3 = vld [vmem:[%s563_s1 + $0x28] sm:$0xff]  }
   0x2   :  { %198 = vmatpush1.bf16.msra.mxu0 %v367_v1  ;;  %357 = vmatpush1.bf16.msra.mxu1 %v367_v1  ;;  %v370_v4 = vld [vmem:[%s563_s1 + $0x20] sm:$0xff]   ;;  %v371_v7 = vld [vmem:[%s563_s1 + $0x18] sm:$0xff]   ;;  %v372_v8 = vld [vmem:[%s563_s1 + $0x10] sm:$0xff]  }
   0x3   :  { %199 = vmatprep.subr.bf16.mxu0 %v400_v0  ;;  %349 = vmatprep.subr.bf16.mxu1 %v400_v0  ;;  %v378_v5 = vld [vmem:[%s564_s0 + $0x4] ss:$8 sps:$4 sm:$0xff]   ;;  %v376_v12 = vld [vmem:[%s564_s0] ss:$8 sps:$4 sm:$0xff]   ;;  %v382_v14 = vld [vmem:[%s564_s0 + $0x14] ss:$8 sps:$4 sm:$0xff]  }
   0x4   :  { %v381_v6 = vld [vmem:[%s564_s0 + $0x44] ss:$8 sps:$4 sm:$0xff]   ;;  %340 = vmatprep.mubr.msk.bf16.mxu0 %vm172_vm0, %v378_v5  ;;  %v379_v13 = vld [vmem:[%s564_s0 + $0x40] ss:$8 sps:$4 sm:$0xff]   ;;  %v384_v15 = vld [vmem:[%s564_s0 + $0x54] ss:$8 sps:$4 sm:$0xff]  }
   0x5   :  { %344 = vmatprep.mubr.msk.bf16.mxu1 %vm172_vm0, %v381_v6  ;;  %v373_v9 = vld [vmem:[%s563_s1 + $0x8] sm:$0xff]   ;;  %v374_v10 = vld [vmem:[%s563_s1] sm:$0xff]   ;;  %v386_v16 = vld [vmem:[%s564_s0 + $0x10] ss:$8 sps:$4 sm:$0xff]  }
   0x6   :  { %200 = vmatpush1.bf16.msra.mxu0 %v368_v2  ;;  %358 = vmatpush1.bf16.msra.mxu1 %v368_v2  ;;  %v375_v11 = vld [vmem:[%s563_s1 + $0x40] sm:$0xff]   ;;  %v387_v17 = vld [vmem:[%s564_s0 + $0x50] ss:$8 sps:$4 sm:$0xff]   ;;  %v394_v22 = vld [vmem:[%s564_s0 + $0x34] ss:$8 sps:$4 sm:$0xff]  }
   0x7   :  { %201 = vmatprep.subr.bf16.mxu0 %v400_v0  ;;  %350 = vmatprep.subr.bf16.mxu1 %v400_v0  ;;  %v388_v18 = vld [vmem:[%s564_s0 + $0x24] ss:$8 sps:$4 sm:$0xff]   ;;  %v392_v20 = vld [vmem:[%s564_s0 + $0x20] ss:$8 sps:$4 sm:$0xff]   ;;  %v396_v23 = vld [vmem:[%s564_s0 + $0x74] ss:$8 sps:$4 sm:$0xff]  }
   0x8   :  { %v390_v19 = vld [vmem:[%s564_s0 + $0x64] ss:$8 sps:$4 sm:$0xff]   ;;  %v393_v21 = vld [vmem:[%s564_s0 + $0x60] ss:$8 sps:$4 sm:$0xff]   ;;  %v398_v24 = vld [vmem:[%s564_s0 + $0x30] ss:$8 sps:$4 sm:$0xff]  }
   0x9   :  { %v399_v25 = vld [vmem:[%s564_s0 + $0x70] ss:$8 sps:$4 sm:$0xff]  }
   0xa   :  { %202 = vmatpush1.bf16.msra.mxu0 %v369_v3  ;;  %359 = vmatpush1.bf16.msra.mxu1 %v369_v3 }
   0xb   :  { %203 = vmatprep.subr.bf16.mxu0 %v400_v0  ;;  %351 = vmatprep.subr.bf16.mxu1 %v400_v0 }
   0xe   :  { %204 = vmatpush1.bf16.msra.mxu0 %v370_v4  ;;  %360 = vmatpush1.bf16.msra.mxu1 %v370_v4 }
   0xf   :  { %205 = vmatprep.subr.bf16.mxu0 %v400_v0  ;;  %352 = vmatprep.subr.bf16.mxu1 %v400_v0 }
  0x12   :  { %206 = vmatpush1.bf16.msra.mxu0 %v371_v7  ;;  %361 = vmatpush1.bf16.msra.mxu1 %v371_v7 }
  0x13   :  { %207 = vmatprep.subr.bf16.mxu0 %v400_v0  ;;  %353 = vmatprep.subr.bf16.mxu1 %v400_v0 }
  0x16   :  { %208 = vmatpush1.bf16.msra.mxu0 %v372_v8  ;;  %362 = vmatpush1.bf16.msra.mxu1 %v372_v8 }
  0x17   :  { %209 = vmatprep.subr.bf16.mxu0 %v400_v0  ;;  %354 = vmatprep.subr.bf16.mxu1 %v400_v0 }
  0x1a   :  { %210 = vmatpush1.bf16.msra.mxu0 %v373_v9  ;;  %363 = vmatpush1.bf16.msra.mxu1 %v373_v9 }
  0x1b   :  { %211 = vmatprep.subr.bf16.mxu0 %v400_v0  ;;  %355 = vmatprep.subr.bf16.mxu1 %v400_v0 }
  0x1e   :  { %212 = vmatpush1.bf16.msra.mxu0 %v374_v10  ;;  %364 = vmatpush1.bf16.msra.mxu1 %v374_v10 }
  0x1f   :  { %227 = vmatprep.subr.bf16.mxu0 %v400_v0  ;;  %356 = vmatprep.subr.bf16.mxu1 %v400_v0 }
  0x22   :  { %228 = vmatpush2.bf16.msra.mxu0 %v375_v11  ;;  %365 = vmatpush2.bf16.msra.mxu1 %v375_v11 }
  0x25   :  { %230 = vmatmul.mubr.bf16.vlgmr.msra.gmra.mxu0 %v376_v12  ;;  %262 = vmatmul.mubr.bf16.vlgmr.msra.gmra.mxu1 %v379_v13 }
  0x26   :  { %341 = vmatprep.mubr.msk.bf16.mxu0 %vm172_vm0, %v382_v14  ;;  %345 = vmatprep.mubr.msk.bf16.mxu1 %vm172_vm0, %v384_v15 }
  0x2d   :  { %238 = vmatmul.mubr.bf16.gmra.mxu0 %v386_v16  ;;  %270 = vmatmul.mubr.bf16.gmra.mxu1 %v387_v17 }
  0x2e   :  { %342 = vmatprep.mubr.msk.bf16.mxu0 %vm172_vm0, %v388_v18  ;;  %346 = vmatprep.mubr.msk.bf16.mxu1 %vm172_vm0, %v390_v19 }
  0x35   :  { %246 = vmatmul.mubr.bf16.gmra.mxu0 %v392_v20  ;;  %278 = vmatmul.mubr.bf16.gmra.mxu1 %v393_v21 }
  0x36   :  { %343 = vmatprep.mubr.msk.bf16.mxu0 %vm172_vm0, %v394_v22  ;;  %347 = vmatprep.mubr.msk.bf16.mxu1 %vm172_vm0, %v396_v23 }
  0x3d   :  { %254 = vmatmul.mubr.bf16.gmra.mxu0 %v398_v24  ;;  %286 = vmatmul.mubr.bf16.gmra.mxu1 %v399_v25 }
  0xe5   :  { %v231_v26 = vpop.f32.mrf.mxu0  ;;  %v263_v27 = vpop.f32.mrf.mxu1 }
  0xe6   :  { %295 = vst.msk [vmem:[%s565_s2] sm:$0xff] %vm294_vm1, %v231_v26  ;;  %303 = vst.msk [vmem:[%s565_s2 + $0x40] sm:$0xff] %vm294_vm1, %v263_v27 }
  0xe7   :  { %v233_v28 = vpop.f32.mrf.mxu0  ;;  %v265_v29 = vpop.f32.mrf.mxu1 }
  0xe9   :  { %v234_v30 = vpop.f32.mrf.mxu0  ;;  %v266_v31 = vpop.f32.mrf.mxu1 }
  0xea   :  { %296 = vst.msk [vmem:[%s565_s2 + $0x8] sm:$0xff] %vm294_vm1, %v234_v30  ;;  %304 = vst.msk [vmem:[%s565_s2 + $0x48] sm:$0xff] %vm294_vm1, %v266_v31 }
  0xeb   :  { %v236_v32 = vpop.f32.mrf.mxu0  ;;  %v268_v33 = vpop.f32.mrf.mxu1 }
  0xed   :  { %v239_v34 = vpop.f32.mrf.mxu0  ;;  %v271_v35 = vpop.f32.mrf.mxu1 }
  0xee   :  { %297 = vst.msk [vmem:[%s565_s2 + $0x10] sm:$0xff] %vm294_vm1, %v239_v34  ;;  %305 = vst.msk [vmem:[%s565_s2 + $0x50] sm:$0xff] %vm294_vm1, %v271_v35 }
  0xef   :  { %v241_v36 = vpop.f32.mrf.mxu0  ;;  %v273_v37 = vpop.f32.mrf.mxu1 }
  0xf1   :  { %v242_v38 = vpop.f32.mrf.mxu0  ;;  %v274_v39 = vpop.f32.mrf.mxu1 }
  0xf2   :  { %298 = vst.msk [vmem:[%s565_s2 + $0x18] sm:$0xff] %vm294_vm1, %v242_v38  ;;  %306 = vst.msk [vmem:[%s565_s2 + $0x58] sm:$0xff] %vm294_vm1, %v274_v39 }
  0xf3   :  { %v244_v40 = vpop.f32.mrf.mxu0  ;;  %v276_v41 = vpop.f32.mrf.mxu1 }
  0xf5   :  { %v247_v42 = vpop.f32.mrf.mxu0  ;;  %v279_v43 = vpop.f32.mrf.mxu1 }
  0xf6   :  { %299 = vst.msk [vmem:[%s565_s2 + $0x20] sm:$0xff] %vm294_vm1, %v247_v42  ;;  %307 = vst.msk [vmem:[%s565_s2 + $0x60] sm:$0xff] %vm294_vm1, %v279_v43 }
  0xf7   :  { %v249_v44 = vpop.f32.mrf.mxu0  ;;  %v281_v45 = vpop.f32.mrf.mxu1 }
  0xf9   :  { %v250_v46 = vpop.f32.mrf.mxu0  ;;  %v282_v47 = vpop.f32.mrf.mxu1 }
  0xfa   :  { %300 = vst.msk [vmem:[%s565_s2 + $0x28] sm:$0xff] %vm294_vm1, %v250_v46  ;;  %308 = vst.msk [vmem:[%s565_s2 + $0x68] sm:$0xff] %vm294_vm1, %v282_v47 }
  0xfb   :  { %v252_v48 = vpop.f32.mrf.mxu0  ;;  %v284_v49 = vpop.f32.mrf.mxu1 }
  0xfd   :  { %v255_v50 = vpop.f32.mrf.mxu0  ;;  %v287_v51 = vpop.f32.mrf.mxu1 }
  0xfe   :  { %301 = vst.msk [vmem:[%s565_s2 + $0x30] sm:$0xff] %vm294_vm1, %v255_v50  ;;  %309 = vst.msk [vmem:[%s565_s2 + $0x70] sm:$0xff] %vm294_vm1, %v287_v51 }
  0xff   :  { %v257_v52 = vpop.f32.mrf.mxu0  ;;  %v289_v53 = vpop.f32.mrf.mxu1 }
 0x101   :  { %v258_v54 = vpop.f32.mrf.mxu0  ;;  %v290_v55 = vpop.f32.mrf.mxu1 }
 0x102   :  { %302 = vst.msk [vmem:[%s565_s2 + $0x38] sm:$0xff] %vm294_vm1, %v258_v54  ;;  %310 = vst.msk [vmem:[%s565_s2 + $0x78] sm:$0xff] %vm294_vm1, %v290_v55 }
 0x103   :  { %v260_v56 = vpop.f32.mrf.mxu0  ;;  %v292_v57 = vpop.f32.mrf.mxu1 }

// kernel: densenet_forward.29
= control target key start
LH: loop header
LB: loop body
LE: loop exit
PB: predicated region body
PF: predicated region fallthrough
CT: control target
= control target key end

     0   :  { %vm216_vm0 = vcmask 1043456   ;;  %vm28_vm1 = vcmask 195584   ;;  %vm317_vm2 = vcmask 130048   ;;  %vm524_vm3 = vcmask 125952   ;;  %s967_s1 = inlined_call_operand.vmem [shape: bf16[24,16], index: 1, kind: input, shape index: {}]   ;;  %s968_s0 = inlined_call_operand.vmem [shape: f32[128,24], index: 0, kind: input, shape index: {}]   ;;  %s969_s2 = inlined_call_operand.vmem [shape: bf16[128,16], index: 2, kind: output, shape index: {}]  }
   0x1   :  { %v623_v0 = vld [vmem:[%s967_s1 + $0x8] ss:$0 sps:$4 sm:$0xff]   ;;  %v624_v1 = vld [vmem:[%s967_s1] sm:$0xff]   ;;  %v14_v5 = vld [vmem:[%s968_s0 + $0x10] sm:$0xff] }
   0x2   :  { %v653_v2 = vld [vmem:[%s968_s0] sm:$0xff]  ;;  %621 = vmatprep.subr.msk.bf16.mxu0 %vm216_vm0, %v623_v0  ;;  %v218_v3 = vsel %vm216_vm0, %v623_v0, 0  ;;  %v13_v4 = vld [vmem:[%s968_s0 + $0x8] sm:$0xff]  ;;  %v15_v6 = vld [vmem:[%s968_s0 + $0x18] sm:$0xff]  ;;  %622 = vmatprep.subr.msk.bf16.mxu1 %vm216_vm0, %v623_v0  ;;  %v32_v9 = vsel %vm28_vm1, %v14_v5, 0.0 }
   0x3   :  { %v29_v7 = vsel %vm28_vm1, %v653_v2, 0.0  ;;  %598 = vmatpush3.bf16.msra.mxu0 %v218_v3  ;;  %v30_v8 = vsel %vm28_vm1, %v13_v4, 0.0  ;;  %619 = vmatpush3.bf16.msra.mxu1 %v218_v3  ;;  %v16_v10 = vld [vmem:[%s968_s0 + $0x20] sm:$0xff]  ;;  %v34_v12 = vsel %vm28_vm1, %v15_v6, 0.0  ;;  %v17_v13 = vld [vmem:[%s968_s0 + $0x28] sm:$0xff]  ;;  %v18_v16 = vld [vmem:[%s968_s0 + $0x30] sm:$0xff] }
   0x4   :  { %599 = vmatprep.subr.bf16.mxu0 %v624_v1  ;;  %v31_v11 = vadd.f32 %v30_v8, %v29_v7  ;;  %618 = vmatprep.subr.bf16.mxu1 %v624_v1  ;;  %v36_v15 = vsel %vm28_vm1, %v16_v10, 0.0  ;;  %v38_v18 = vsel %vm28_vm1, %v17_v13, 0.0  ;;  %v19_v19 = vld [vmem:[%s968_s0 + $0x38] sm:$0xff]  ;;  %v40_v21 = vsel %vm28_vm1, %v18_v16, 0.0  ;;  %v20_v22 = vld [vmem:[%s968_s0 + $0x40] sm:$0xff]  ;;  %v21_v25 = vld [vmem:[%s968_s0 + $0x48] sm:$0xff] }
   0x5   :  { %v42_v24 = vsel %vm28_vm1, %v19_v19, 0.0  ;;  %v44_v27 = vsel %vm28_vm1, %v20_v22, 0.0  ;;  %v22_v28 = vld [vmem:[%s968_s0 + $0x50] sm:$0xff]  ;;  %v46_v30 = vsel %vm28_vm1, %v21_v25, 0.0  ;;  %v23_v31 = vld [vmem:[%s968_s0 + $0x58] sm:$0xff]  ;;  %v24_v34 = vld [vmem:[%s968_s0 + $0x60] sm:$0xff] }
   0x6   :  { %v33_v14 = vadd.f32 %v32_v9, %v31_v11  ;;  %v48_v33 = vsel %vm28_vm1, %v22_v28, 0.0  ;;  %v50_v36 = vsel %vm28_vm1, %v23_v31, 0.0  ;;  %v25_v37 = vld [vmem:[%s968_s0 + $0x68] sm:$0xff]  ;;  %v52_v39 = vsel %vm28_vm1, %v24_v34, 0.0  ;;  %v26_v40 = vld [vmem:[%s968_s0 + $0x70] sm:$0xff]  ;;  %v27_v43 = vld [vmem:[%s968_s0 + $0x78] sm:$0xff] }
   0x7   :  { %600 = vmatpush3.bf16.msra.mxu0 %v624_v1  ;;  %620 = vmatpush3.bf16.msra.mxu1 %v624_v1  ;;  %v54_v42 = vsel %vm28_vm1, %v25_v37, 0.0  ;;  %v56_v45 = vsel %vm28_vm1, %v26_v40, 0.0  ;;  %v58_v47 = vsel %vm28_vm1, %v27_v43, 0.0 }
   0x8   :  { %v35_v17 = vadd.f32 %v34_v12, %v33_v14 }
   0xa   :  { %v37_v20 = vadd.f32 %v36_v15, %v35_v17 }
   0xc   :  { %v39_v23 = vadd.f32 %v38_v18, %v37_v20 }
   0xe   :  { %v41_v26 = vadd.f32 %v40_v21, %v39_v23 }
  0x10   :  { %v43_v29 = vadd.f32 %v42_v24, %v41_v26 }
  0x12   :  { %v45_v32 = vadd.f32 %v44_v27, %v43_v29 }
  0x14   :  { %v47_v35 = vadd.f32 %v46_v30, %v45_v32 }
  0x16   :  { %v49_v38 = vadd.f32 %v48_v33, %v47_v35 }
  0x18   :  { %v51_v41 = vadd.f32 %v50_v36, %v49_v38 }
  0x1a   :  { %v53_v44 = vadd.f32 %v52_v39, %v51_v41 }
  0x1c   :  { %v55_v46 = vadd.f32 %v54_v42, %v53_v44 }
  0x1e   :  { %v57_v48 = vadd.f32 %v56_v45, %v55_v46 }
  0x20   :  { %v59_v49 = vadd.f32 %v58_v47, %v57_v48 }
  0x22   :  { %v60_v50 = vrot.slane %v59_v49, 4 }
  0x24   :  { %v61_v51 = vadd.f32 %v60_v50, %v59_v49 }
  0x26   :  { %v62_v52 = vrot.slane %v61_v51, 2 }
  0x28   :  { %v63_v53 = vadd.f32 %v62_v52, %v61_v51 }
  0x2a   :  { %v64_v54 = vrot.slane %v63_v53, 1 }
  0x2c   :  { %v65_v55 = vadd.f32 %v64_v54, %v63_v53 }
  0x2e   :  { %v67_v56 = vmul.f32 0.0078125, %v65_v55 }
  0x30   :  { %v718_v57 = vsub.f32 %v653_v2, %v67_v56  ;;  %v720_v58 = vsub.f32 %v13_v4, %v67_v56  ;;  %v722_v59 = vsub.f32 %v14_v5, %v67_v56  ;;  %v724_v60 = vsub.f32 %v15_v6, %v67_v56 }
  0x31   :  { %v726_v61 = vsub.f32 %v16_v10, %v67_v56  ;;  %v734_v1 = vsub.f32 %v17_v13, %v67_v56  ;;  %v738_v3 = vsub.f32 %v18_v16, %v67_v56  ;;  %v745_v9 = vsub.f32 %v19_v19, %v67_v56 }
  0x32   :  { %v84_v62 = vmul.f32 %v718_v57, %v718_v57  ;;  %v85_v63 = vmul.f32 %v720_v58, %v720_v58  ;;  %v86_v0 = vmul.f32 %v722_v59, %v722_v59  ;;  %v87_v2 = vmul.f32 %v724_v60, %v724_v60 }
  0x33   :  { %v88_v4 = vmul.f32 %v726_v61, %v726_v61  ;;  %v89_v10 = vmul.f32 %v734_v1, %v734_v1  ;;  %v750_v13 = vsub.f32 %v20_v22, %v67_v56  ;;  %v90_v14 = vmul.f32 %v738_v3, %v738_v3 }
  0x34   :  { %v100_v5 = vsel %vm28_vm1, %v84_v62, 0.0  ;;  %v101_v6 = vsel %vm28_vm1, %v85_v63, 0.0  ;;  %v103_v7 = vsel %vm28_vm1, %v86_v0, 0.0  ;;  %v105_v11 = vsel %vm28_vm1, %v87_v2, 0.0 }
  0x35   :  { %v102_v8 = vadd.f32 %v101_v6, %v100_v5  ;;  %v107_v15 = vsel %vm28_vm1, %v88_v4, 0.0  ;;  %v755_v17 = vsub.f32 %v21_v25, %v67_v56  ;;  %v91_v18 = vmul.f32 %v745_v9, %v745_v9 }
  0x36   :  { %v109_v19 = vsel %vm28_vm1, %v89_v10, 0.0  ;;  %v760_v21 = vsub.f32 %v22_v28, %v67_v56  ;;  %v92_v22 = vmul.f32 %v750_v13, %v750_v13  ;;  %v111_v23 = vsel %vm28_vm1, %v90_v14, 0.0 }
  0x37   :  { %v104_v12 = vadd.f32 %v103_v7, %v102_v8  ;;  %v765_v26 = vsub.f32 %v23_v31, %v67_v56  ;;  %v93_v25 = vmul.f32 %v755_v17, %v755_v17  ;;  %v113_v27 = vsel %vm28_vm1, %v91_v18, 0.0 }
  0x38   :  { %v770_v30 = vsub.f32 %v24_v34, %v67_v56  ;;  %v94_v28 = vmul.f32 %v760_v21, %v760_v21  ;;  %v115_v32 = vsel %vm28_vm1, %v92_v22, 0.0  ;;  %v81_v35 = vsub.f32 %v25_v37, %v67_v56 }
  0x39   :  { %v106_v16 = vadd.f32 %v105_v11, %v104_v12  ;;  %v95_v36 = vmul.f32 %v765_v26, %v765_v26  ;;  %v117_v31 = vsel %vm28_vm1, %v93_v25, 0.0  ;;  %v82_v39 = vsub.f32 %v26_v40, %v67_v56 }
  0x3a   :  { %v96_v41 = vmul.f32 %v770_v30, %v770_v30  ;;  %v119_v34 = vsel %vm28_vm1, %v94_v28, 0.0  ;;  %v83_v44 = vsub.f32 %v27_v43, %v67_v56  ;;  %v97_v45 = vmul.f32 %v81_v35, %v81_v35 }
  0x3b   :  { %v108_v20 = vadd.f32 %v107_v15, %v106_v16  ;;  %v121_v46 = vsel %vm28_vm1, %v95_v36, 0.0  ;;  %v98_v48 = vmul.f32 %v82_v39, %v82_v39 }
  0x3c   :  { %v123_v37 = vsel %vm28_vm1, %v96_v41, 0.0  ;;  %v99_v50 = vmul.f32 %v83_v44, %v83_v44  ;;  %v125_v51 = vsel %vm28_vm1, %v97_v45, 0.0 }
  0x3d   :  { %v110_v24 = vadd.f32 %v109_v19, %v108_v20  ;;  %v127_v40 = vsel %vm28_vm1, %v98_v48, 0.0 }
  0x3e   :  { %v129_v54 = vsel %vm28_vm1, %v99_v50, 0.0 }
  0x3f   :  { %v112_v29 = vadd.f32 %v111_v23, %v110_v24 }
  0x41   :  { %v114_v33 = vadd.f32 %v113_v27, %v112_v29 }
  0x43   :  { %v116_v38 = vadd.f32 %v115_v32, %v114_v33 }
  0x45   :  { %v118_v42 = vadd.f32 %v117_v31, %v116_v38 }
  0x47   :  { %v120_v47 = vadd.f32 %v119_v34, %v118_v42 }
  0x49   :  { %v122_v49 = vadd.f32 %v121_v46, %v120_v47 }
  0x4b   :  { %v124_v52 = vadd.f32 %v123_v37, %v122_v49 }
  0x4d   :  { %v126_v53 = vadd.f32 %v125_v51, %v124_v52 }
  0x4f   :  { %v128_v55 = vadd.f32 %v127_v40, %v126_v53 }
  0x51   :  { %v130_v62 = vadd.f32 %v129_v54, %v128_v55 }
  0x53   :  { %v131_v43 = vrot.slane %v130_v62, 4 }
  0x55   :  { %v132_v56 = vadd.f32 %v131_v43, %v130_v62 }
  0x57   :  { %v133_v63 = vrot.slane %v132_v56, 2 }
  0x59   :  { %v134_v0 = vadd.f32 %v133_v63, %v132_v56 }
  0x5b   :  { %v135_v2 = vrot.slane %v134_v0, 1 }
  0x5d   :  { %v136_v4 = vadd.f32 %v135_v2, %v134_v0 }
  0x5f   :  { %v137_v5 = vmul.f32 0.0078125, %v136_v4 }
  0x61   :  { %v138_v6 = vadd.f32 1e-05, %v137_v5 }
  0x63   :  { %625 = vrsqrt.f32 %v138_v6 }
  0x70   :  { %v626_v7 = vpop.eup %625 }
  0x71   :  { %v140_v8 = vmul.f32 %v626_v7, %v718_v57  ;;  %v141_v10 = vmul.f32 %v626_v7, %v720_v58  ;;  %v142_v11 = vmul.f32 %v626_v7, %v722_v59  ;;  %v143_v12 = vmul.f32 %v626_v7, %v724_v60 }
  0x72   :  { %v144_v14 = vmul.f32 %v626_v7, %v726_v61  ;;  %v145_v15 = vmul.f32 %v626_v7, %v734_v1  ;;  %v146_v16 = vmul.f32 %v626_v7, %v738_v3  ;;  %v147_v18 = vmul.f32 %v626_v7, %v745_v9 }
  0x73   :  { %v156_v19 = vmax.f32 %v140_v8, 0.0  ;;  %v157_v20 = vmax.f32 %v141_v10, 0.0  ;;  %v158_v22 = vmax.f32 %v142_v11, 0.0  ;;  %v159_v23 = vmax.f32 %v143_v12, 0.0 }
  0x74   :  { %v160_v24 = vmax.f32 %v144_v14, 0.0  ;;  %v161_v57 = vmax.f32 %v145_v15, 0.0  ;;  %v162_v25 = vmax.f32 %v146_v16, 0.0  ;;  %v148_v59 = vmul.f32 %v626_v7, %v750_v13 }
  0x75   :  { %v172_v58 = vpack.c.bf16 %v157_v20, %v156_v19  ;;  %v173_v27 = vpack.c.bf16 %v159_v23, %v158_v22  ;;  %v149_v60 = vmul.f32 %v626_v7, %v755_v17  ;;  %v163_v29 = vmax.f32 %v147_v18, 0.0 }
  0x76   :  { %v174_v61 = vpack.c.bf16 %v161_v57, %v160_v24  ;;  %v150_v1 = vmul.f32 %v626_v7, %v760_v21  ;;  %v151_v3 = vmul.f32 %v626_v7, %v765_v26  ;;  %v164_v9 = vmax.f32 %v148_v59, 0.0 }
  0x77   :  { %601 = vmatprep.mubr.msk.bf16.mxu0 %vm28_vm1, %v172_v58  ;;  %v165_v28 = vmax.f32 %v149_v60, 0.0  ;;  %v152_v32 = vmul.f32 %v626_v7, %v770_v30  ;;  %v153_v33 = vmul.f32 %v626_v7, %v81_v35  ;;  %v154_v13 = vmul.f32 %v626_v7, %v82_v39 }
  0x78   :  { %602 = vmatmul.mubr.msk.bf16.vlgmr.msra.gmra.mxu0 %vm28_vm1, %v173_v27  ;;  %v166_v36 = vmax.f32 %v150_v1, 0.0  ;;  %v167_v31 = vmax.f32 %v151_v3, 0.0  ;;  %v155_v38 = vmul.f32 %v626_v7, %v83_v44  ;;  %v175_v42 = vpack.c.bf16 %v163_v29, %v162_v25 }
  0x79   :  { %605 = vmatprep.mubr.msk.bf16.mxu0 %vm28_vm1, %v174_v61  ;;  %v176_v17 = vpack.c.bf16 %v165_v28, %v164_v9  ;;  %v168_v41 = vmax.f32 %v152_v32, 0.0  ;;  %v169_v21 = vmax.f32 %v153_v33, 0.0  ;;  %v170_v30 = vmax.f32 %v154_v13, 0.0 }
  0x7a   :  { %v177_v34 = vpack.c.bf16 %v167_v31, %v166_v36  ;;  %v171_v35 = vmax.f32 %v155_v38, 0.0 }
  0x7b   :  { %609 = vmatprep.mubr.msk.bf16.mxu1 %vm28_vm1, %v176_v17  ;;  %v178_v26 = vpack.c.bf16 %v169_v21, %v168_v41 }
  0x7c   :  { %610 = vmatmul.mubr.msk.bf16.vlgmr.msra.gmra.mxu1 %vm28_vm1, %v177_v34  ;;  %v179_v39 = vpack.c.bf16 %v171_v35, %v170_v30 }
  0x7d   :  { %613 = vmatprep.mubr.msk.bf16.mxu1 %vm28_vm1, %v178_v26 }
  0x80   :  { %606 = vmatmul.mubr.msk.bf16.gmra.mxu0 %vm28_vm1, %v175_v42 }
  0x84   :  { %614 = vmatmul.mubr.msk.bf16.gmra.mxu1 %vm28_vm1, %v179_v39 }
 0x138   :  { %v603_v44 = vpop.f32.mrf.mxu0 }
 0x139   :  { %v321_v53 = vsel %vm317_vm2, %v603_v44, 0.0 }
 0x13a   :  { %v254_v45 = vpop.f32.mrf.mxu0 }
 0x13b   :  { %v318_v49 = vsel %vm317_vm2, %v254_v45, 0.0 }
 0x13c   :  { %v604_v46 = vpop.f32.mrf.mxu0  ;;  %v807_v47 = vpop.f32.mrf.mxu1 }
 0x13d   :  { %v323_v62 = vsel %vm317_vm2, %v604_v46, 0.0  ;;  %v337_v22 = vsel %vm317_vm2, %v807_v47, 0.0 }
 0x13e   :  { %v257_v48 = vpop.f32.mrf.mxu0  ;;  %v809_v37 = vpop.f32.mrf.mxu1 }
 0x13f   :  { %v319_v50 = vsel %vm317_vm2, %v257_v48, 0.0  ;;  %v333_v15 = vsel %vm317_vm2, %v809_v37, 0.0 }
 0x140   :  { %v320_v51 = vadd.f32 %v319_v50, %v318_v49  ;;  %v607_v52 = vpop.f32.mrf.mxu0  ;;  %v813_v40 = vpop.f32.mrf.mxu1 }
 0x141   :  { %v329_v8 = vsel %vm317_vm2, %v607_v52, 0.0  ;;  %v339_v24 = vsel %vm317_vm2, %v813_v40, 0.0 }
 0x142   :  { %v322_v54 = vadd.f32 %v321_v53, %v320_v51  ;;  %v270_v55 = vpop.f32.mrf.mxu0  ;;  %v289_v63 = vpop.f32.mrf.mxu1 }
 0x143   :  { %v325_v0 = vsel %vm317_vm2, %v270_v55, 0.0  ;;  %v335_v18 = vsel %vm317_vm2, %v289_v63, 0.0 }
 0x144   :  { %v324_v43 = vadd.f32 %v323_v62, %v322_v54  ;;  %v608_v56 = vpop.f32.mrf.mxu0  ;;  %v819_v7 = vpop.f32.mrf.mxu1 }
 0x145   :  { %v331_v11 = vsel %vm317_vm2, %v608_v56, 0.0  ;;  %v345_v61 = vsel %vm317_vm2, %v819_v7, 0.0 }
 0x146   :  { %v326_v2 = vadd.f32 %v325_v0, %v324_v43  ;;  %v273_v4 = vpop.f32.mrf.mxu0  ;;  %v823_v14 = vpop.f32.mrf.mxu1 }
 0x147   :  { %v327_v5 = vsel %vm317_vm2, %v273_v4, 0.0  ;;  %v341_v58 = vsel %vm317_vm2, %v823_v14, 0.0 }
 0x148   :  { %v328_v6 = vadd.f32 %v327_v5, %v326_v2  ;;  %v828_v20 = vpop.f32.mrf.mxu1 }
 0x149   :  { %v347_v1 = vsel %vm317_vm2, %v828_v20, 0.0 }
 0x14a   :  { %v330_v10 = vadd.f32 %v329_v8, %v328_v6  ;;  %v305_v25 = vpop.f32.mrf.mxu1 }
 0x14b   :  { %v343_v59 = vsel %vm317_vm2, %v305_v25, 0.0 }
 0x14c   :  { %v332_v12 = vadd.f32 %v331_v11, %v330_v10 }
 0x14e   :  { %v334_v16 = vadd.f32 %v333_v15, %v332_v12 }
 0x150   :  { %v336_v19 = vadd.f32 %v335_v18, %v334_v16 }
 0x152   :  { %v338_v23 = vadd.f32 %v337_v22, %v336_v19 }
 0x154   :  { %v340_v57 = vadd.f32 %v339_v24, %v338_v23 }
 0x156   :  { %v342_v27 = vadd.f32 %v341_v58, %v340_v57 }
 0x158   :  { %v344_v60 = vadd.f32 %v343_v59, %v342_v27 }
 0x15a   :  { %v346_v29 = vadd.f32 %v345_v61, %v344_v60 }
 0x15c   :  { %v348_v3 = vadd.f32 %v347_v1, %v346_v29 }
 0x15e   :  { %v349_v9 = vrot.slane %v348_v3, 4 }
 0x160   :  { %v350_v28 = vadd.f32 %v349_v9, %v348_v3 }
 0x162   :  { %v351_v32 = vrot.slane %v350_v28, 2 }
 0x164   :  { %v352_v33 = vadd.f32 %v351_v32, %v350_v28 }
 0x166   :  { %v353_v36 = vrot.slane %v352_v33, 1 }
 0x168   :  { %v354_v31 = vadd.f32 %v353_v36, %v352_v33 }
 0x16a   :  { %v355_v13 = vmul.f32 0.0078125, %v354_v31 }
 0x16c   :  { %v841_v38 = vsub.f32 %v254_v45, %v355_v13  ;;  %v843_v17 = vsub.f32 %v257_v48, %v355_v13  ;;  %v845_v41 = vsub.f32 %v603_v44, %v355_v13  ;;  %v847_v21 = vsub.f32 %v604_v46, %v355_v13 }
 0x16d   :  { %v853_v42 = vsub.f32 %v270_v55, %v355_v13  ;;  %v857_v35 = vsub.f32 %v273_v4, %v355_v13  ;;  %v863_v48 = vsub.f32 %v607_v52, %v355_v13  ;;  %v868_v53 = vsub.f32 %v608_v56, %v355_v13 }
 0x16e   :  { %v372_v34 = vmul.f32 %v841_v38, %v841_v38  ;;  %v373_v26 = vmul.f32 %v843_v17, %v843_v17  ;;  %v374_v30 = vmul.f32 %v845_v41, %v845_v41  ;;  %v375_v39 = vmul.f32 %v847_v21, %v847_v21 }
 0x16f   :  { %v376_v49 = vmul.f32 %v853_v42, %v853_v42  ;;  %v377_v54 = vmul.f32 %v857_v35, %v857_v35  ;;  %v364_v43 = vsub.f32 %v809_v37, %v355_v13  ;;  %v378_v52 = vmul.f32 %v863_v48, %v863_v48 }
 0x170   :  { %v388_v44 = vsel %vm317_vm2, %v372_v34, 0.0  ;;  %v389_v45 = vsel %vm317_vm2, %v373_v26, 0.0  ;;  %v391_v50 = vsel %vm317_vm2, %v374_v30, 0.0  ;;  %v393_v55 = vsel %vm317_vm2, %v375_v39, 0.0 }
 0x171   :  { %v390_v46 = vadd.f32 %v389_v45, %v388_v44  ;;  %v395_v0 = vsel %vm317_vm2, %v376_v49, 0.0  ;;  %v365_v4 = vsub.f32 %v289_v63, %v355_v13  ;;  %v379_v5 = vmul.f32 %v868_v53, %v868_v53 }
 0x172   :  { %v397_v56 = vsel %vm317_vm2, %v377_v54, 0.0  ;;  %v366_v8 = vsub.f32 %v807_v47, %v355_v13  ;;  %v380_v10 = vmul.f32 %v364_v43, %v364_v43  ;;  %v399_v11 = vsel %vm317_vm2, %v378_v52, 0.0 }
 0x173   :  { %v392_v51 = vadd.f32 %v391_v50, %v390_v46  ;;  %v367_v37 = vsub.f32 %v813_v40, %v355_v13  ;;  %v381_v15 = vmul.f32 %v365_v4, %v365_v4  ;;  %v401_v16 = vsel %vm317_vm2, %v379_v5, 0.0 }
 0x174   :  { %v368_v63 = vsub.f32 %v823_v14, %v355_v13  ;;  %v382_v19 = vmul.f32 %v366_v8, %v366_v8  ;;  %v403_v22 = vsel %vm317_vm2, %v380_v10, 0.0  ;;  %v369_v24 = vsub.f32 %v305_v25, %v355_v13 }
 0x175   :  { %v394_v62 = vadd.f32 %v393_v55, %v392_v51  ;;  %v383_v57 = vmul.f32 %v367_v37, %v367_v37  ;;  %v405_v47 = vsel %vm317_vm2, %v381_v15, 0.0  ;;  %v370_v27 = vsub.f32 %v819_v7, %v355_v13 }
 0x176   :  { %v384_v59 = vmul.f32 %v368_v63, %v368_v63  ;;  %v407_v40 = vsel %vm317_vm2, %v382_v19, 0.0  ;;  %v371_v61 = vsub.f32 %v828_v20, %v355_v13  ;;  %v385_v29 = vmul.f32 %v369_v24, %v369_v24 }
 0x177   :  { %v396_v2 = vadd.f32 %v395_v0, %v394_v62  ;;  %v409_v14 = vsel %vm317_vm2, %v383_v57, 0.0  ;;  %v386_v3 = vmul.f32 %v370_v27, %v370_v27 }
 0x178   :  { %v411_v9 = vsel %vm317_vm2, %v384_v59, 0.0  ;;  %v387_v28 = vmul.f32 %v371_v61, %v371_v61  ;;  %v413_v32 = vsel %vm317_vm2, %v385_v29, 0.0 }
 0x179   :  { %v398_v6 = vadd.f32 %v397_v56, %v396_v2  ;;  %v415_v7 = vsel %vm317_vm2, %v386_v3, 0.0 }
 0x17a   :  { %v417_v31 = vsel %vm317_vm2, %v387_v28, 0.0 }
 0x17b   :  { %v400_v12 = vadd.f32 %v399_v11, %v398_v6 }
 0x17d   :  { %v402_v18 = vadd.f32 %v401_v16, %v400_v12 }
 0x17f   :  { %v404_v23 = vadd.f32 %v403_v22, %v402_v18 }
 0x181   :  { %v406_v58 = vadd.f32 %v405_v47, %v404_v23 }
 0x183   :  { %v408_v60 = vadd.f32 %v407_v40, %v406_v58 }
 0x185   :  { %v410_v1 = vadd.f32 %v409_v14, %v408_v60 }
 0x187   :  { %v412_v25 = vadd.f32 %v411_v9, %v410_v1 }
 0x189   :  { %v414_v33 = vadd.f32 %v413_v32, %v412_v25 }
 0x18b   :  { %v416_v36 = vadd.f32 %v415_v7, %v414_v33 }
 0x18d   :  { %v418_v34 = vadd.f32 %v417_v31, %v416_v36 }
 0x18f   :  { %v419_v26 = vrot.slane %v418_v34, 4 }
 0x191   :  { %v420_v20 = vadd.f32 %v419_v26, %v418_v34 }
 0x193   :  { %v421_v13 = vrot.slane %v420_v20, 2 }
 0x195   :  { %v422_v30 = vadd.f32 %v421_v13, %v420_v20 }
 0x197   :  { %v423_v39 = vrot.slane %v422_v30, 1 }
 0x199   :  { %v424_v44 = vadd.f32 %v423_v39, %v422_v30 }
 0x19b   :  { %v425_v45 = vmul.f32 0.0078125, %v424_v44 }
 0x19d   :  { %v426_v46 = vadd.f32 1e-05, %v425_v45 }
 0x19f   :  { %627 = vrsqrt.f32 %v426_v46 }
 0x1ac   :  { %v628_v49 = vpop.eup %627 }
 0x1ad   :  { %v428_v50 = vmul.f32 %v628_v49, %v841_v38  ;;  %v429_v51 = vmul.f32 %v628_v49, %v843_v17  ;;  %v430_v54 = vmul.f32 %v628_v49, %v845_v41  ;;  %v431_v55 = vmul.f32 %v628_v49, %v847_v21 }
 0x1ae   :  { %v432_v62 = vmul.f32 %v628_v49, %v853_v42  ;;  %v433_v52 = vmul.f32 %v628_v49, %v857_v35  ;;  %v434_v0 = vmul.f32 %v628_v49, %v863_v48  ;;  %v435_v2 = vmul.f32 %v628_v49, %v868_v53 }
 0x1af   :  { %v436_v5 = vmul.f32 %v628_v49, %v364_v43  ;;  %v437_v56 = vmul.f32 %v628_v49, %v365_v4  ;;  %v438_v6 = vmul.f32 %v628_v49, %v366_v8  ;;  %v439_v10 = vmul.f32 %v628_v49, %v367_v37 }
 0x1b0   :  { %v440_v11 = vmul.f32 %v628_v49, %v368_v63  ;;  %v441_v38 = vmul.f32 %v628_v49, %v369_v24  ;;  %v442_v12 = vmul.f32 %v628_v49, %v370_v27  ;;  %v443_v17 = vmul.f32 %v628_v49, %v371_v61 }
 0x1b1   :  { %v444_v15 = vmax.f32 %v428_v50, 0.0  ;;  %v445_v41 = vmax.f32 %v429_v51, 0.0  ;;  %v446_v16 = vmax.f32 %v430_v54, 0.0  ;;  %v447_v21 = vmax.f32 %v431_v55, 0.0 }
 0x1b2   :  { %v448_v18 = vmax.f32 %v432_v62, 0.0  ;;  %v449_v42 = vmax.f32 %v433_v52, 0.0  ;;  %v450_v19 = vmax.f32 %v434_v0, 0.0  ;;  %v451_v35 = vmax.f32 %v435_v2, 0.0 }
 0x1b3   :  { %v452_v22 = vmax.f32 %v436_v5, 0.0  ;;  %v453_v48 = vmax.f32 %v437_v56, 0.0  ;;  %v454_v23 = vmax.f32 %v438_v6, 0.0  ;;  %v455_v53 = vmax.f32 %v439_v10, 0.0 }
 0x1b4   :  { %v456_v43 = vmax.f32 %v440_v11, 0.0  ;;  %v457_v4 = vmax.f32 %v441_v38, 0.0  ;;  %v458_v8 = vmax.f32 %v442_v12, 0.0  ;;  %v459_v37 = vmax.f32 %v443_v17, 0.0 }
 0x1b5   :  { %v571_v63 = vpack.c.bf16 %v444_v15, %v444_v15  ;;  %v572_v24 = vpack.c.bf16 %v445_v41, %v445_v41  ;;  %v573_v57 = vpack.c.bf16 %v446_v16, %v446_v16  ;;  %v574_v47 = vpack.c.bf16 %v447_v21, %v447_v21 }
 0x1b6   :  { %v575_v58 = vpack.c.bf16 %v448_v18, %v448_v18  ;;  %v576_v27 = vpack.c.bf16 %v449_v42, %v449_v42  ;;  %v577_v59 = vpack.c.bf16 %v450_v19, %v450_v19  ;;  %v578_v40 = vpack.c.bf16 %v451_v35, %v451_v35 }
 0x1b7   :  { %v579_v60 = vpack.c.bf16 %v452_v22, %v452_v22  ;;  %v580_v61 = vpack.c.bf16 %v453_v48, %v453_v48  ;;  %v581_v29 = vpack.c.bf16 %v454_v23, %v454_v23  ;;  %v582_v14 = vpack.c.bf16 %v455_v53, %v455_v53  ;;  %525 = vst.msk [vmem:[%s969_s2] sm:$0xf] %vm524_vm3, %v571_v63 }
 0x1b8   :  { %526 = vst.msk [vmem:[%s969_s2 + $0x4] sm:$0xf] %vm524_vm3, %v572_v24  ;;  %527 = vst.msk [vmem:[%s969_s2 + $0x8] sm:$0xf] %vm524_vm3, %v573_v57  ;;  %v583_v1 = vpack.c.bf16 %v456_v43, %v456_v43  ;;  %v584_v3 = vpack.c.bf16 %v457_v4, %v457_v4  ;;  %v585_v9 = vpack.c.bf16 %v458_v8, %v458_v8 }
 0x1b9   :  { %528 = vst.msk [vmem:[%s969_s2 + $0xc] sm:$0xf] %vm524_vm3, %v574_v47  ;;  %v586_v25 = vpack.c.bf16 %v459_v37, %v459_v37  ;;  %529 = vst.msk [vmem:[%s969_s2 + $0x10] sm:$0xf] %vm524_vm3, %v575_v58 }
 0x1ba   :  { %530 = vst.msk [vmem:[%s969_s2 + $0x14] sm:$0xf] %vm524_vm3, %v576_v27  ;;  %531 = vst.msk [vmem:[%s969_s2 + $0x18] sm:$0xf] %vm524_vm3, %v577_v59 }
 0x1bb   :  { %532 = vst.msk [vmem:[%s969_s2 + $0x1c] sm:$0xf] %vm524_vm3, %v578_v40  ;;  %533 = vst.msk [vmem:[%s969_s2 + $0x20] sm:$0xf] %vm524_vm3, %v579_v60 }
 0x1bc   :  { %534 = vst.msk [vmem:[%s969_s2 + $0x24] sm:$0xf] %vm524_vm3, %v580_v61  ;;  %535 = vst.msk [vmem:[%s969_s2 + $0x28] sm:$0xf] %vm524_vm3, %v581_v29 }
 0x1bd   :  { %536 = vst.msk [vmem:[%s969_s2 + $0x2c] sm:$0xf] %vm524_vm3, %v582_v14  ;;  %537 = vst.msk [vmem:[%s969_s2 + $0x30] sm:$0xf] %vm524_vm3, %v583_v1 }
 0x1be   :  { %538 = vst.msk [vmem:[%s969_s2 + $0x34] sm:$0xf] %vm524_vm3, %v584_v3  ;;  %539 = vst.msk [vmem:[%s969_s2 + $0x38] sm:$0xf] %vm524_vm3, %v585_v9 }
 0x1bf   :  { %540 = vst.msk [vmem:[%s969_s2 + $0x3c] sm:$0xf] %vm524_vm3, %v586_v25 }

// kernel: densenet_forward.31
= control target key start
LH: loop header
LB: loop body
LE: loop exit
PB: predicated region body
PF: predicated region fallthrough
CT: control target
= control target key end

     0   :  { %vm28_vm0 = vcmask 261120   ;;  %vm317_vm1 = vcmask 130048   ;;  %s604_s1 = inlined_call_operand.vmem [shape: bf16[32,16], index: 1, kind: input, shape index: {}]   ;;  %s605_s0 = inlined_call_operand.vmem [shape: f32[128,32], index: 0, kind: input, shape index: {}]   ;;  %s606_s2 = inlined_call_operand.vmem [shape: f32[128,16], index: 2, kind: output, shape index: {}]  }
   0x1   :  { %v382_v0 = vld [vmem:[%s604_s1 + $0x8] sm:$0xff]   ;;  %v383_v1 = vld [vmem:[%s604_s1] sm:$0xff]   ;;  %v14_v4 = vld [vmem:[%s605_s0 + $0x10] sm:$0xff] }
   0x2   :  { %358 = vmatprep.subr.bf16.mxu0 %v382_v0  ;;  %378 = vmatprep.subr.bf16.mxu1 %v382_v0  ;;  %v12_v2 = vld [vmem:[%s605_s0] sm:$0xff]  ;;  %v13_v3 = vld [vmem:[%s605_s0 + $0x8] sm:$0xff]  ;;  %v15_v5 = vld [vmem:[%s605_s0 + $0x18] sm:$0xff]  ;;  %v32_v8 = vsel %vm28_vm0, %v14_v4, 0.0 }
   0x3   :  { %359 = vmatpush3.bf16.msra.mxu0 %v382_v0  ;;  %380 = vmatpush3.bf16.msra.mxu1 %v382_v0  ;;  %v29_v6 = vsel %vm28_vm0, %v12_v2, 0.0  ;;  %v30_v7 = vsel %vm28_vm0, %v13_v3, 0.0  ;;  %v16_v9 = vld [vmem:[%s605_s0 + $0x20] sm:$0xff]  ;;  %v34_v11 = vsel %vm28_vm0, %v15_v5, 0.0  ;;  %v17_v12 = vld [vmem:[%s605_s0 + $0x28] sm:$0xff]  ;;  %v18_v15 = vld [vmem:[%s605_s0 + $0x30] sm:$0xff] }
   0x4   :  { %360 = vmatprep.subr.bf16.mxu0 %v383_v1  ;;  %379 = vmatprep.subr.bf16.mxu1 %v383_v1  ;;  %v31_v10 = vadd.f32 %v30_v7, %v29_v6  ;;  %v36_v14 = vsel %vm28_vm0, %v16_v9, 0.0  ;;  %v38_v17 = vsel %vm28_vm0, %v17_v12, 0.0  ;;  %v19_v18 = vld [vmem:[%s605_s0 + $0x38] sm:$0xff]  ;;  %v40_v20 = vsel %vm28_vm0, %v18_v15, 0.0  ;;  %v20_v21 = vld [vmem:[%s605_s0 + $0x40] sm:$0xff]  ;;  %v21_v24 = vld [vmem:[%s605_s0 + $0x48] sm:$0xff] }
   0x5   :  { %v42_v23 = vsel %vm28_vm0, %v19_v18, 0.0  ;;  %v44_v26 = vsel %vm28_vm0, %v20_v21, 0.0  ;;  %v22_v27 = vld [vmem:[%s605_s0 + $0x50] sm:$0xff]  ;;  %v46_v29 = vsel %vm28_vm0, %v21_v24, 0.0  ;;  %v23_v30 = vld [vmem:[%s605_s0 + $0x58] sm:$0xff]  ;;  %v24_v33 = vld [vmem:[%s605_s0 + $0x60] sm:$0xff] }
   0x6   :  { %v33_v13 = vadd.f32 %v32_v8, %v31_v10  ;;  %v48_v32 = vsel %vm28_vm0, %v22_v27, 0.0  ;;  %v50_v35 = vsel %vm28_vm0, %v23_v30, 0.0  ;;  %v25_v36 = vld [vmem:[%s605_s0 + $0x68] sm:$0xff]  ;;  %v52_v38 = vsel %vm28_vm0, %v24_v33, 0.0  ;;  %v26_v39 = vld [vmem:[%s605_s0 + $0x70] sm:$0xff]  ;;  %v27_v42 = vld [vmem:[%s605_s0 + $0x78] sm:$0xff] }
   0x7   :  { %361 = vmatpush3.bf16.msra.mxu0 %v383_v1  ;;  %381 = vmatpush3.bf16.msra.mxu1 %v383_v1  ;;  %v54_v41 = vsel %vm28_vm0, %v25_v36, 0.0  ;;  %v56_v44 = vsel %vm28_vm0, %v26_v39, 0.0  ;;  %v58_v46 = vsel %vm28_vm0, %v27_v42, 0.0 }
   0x8   :  { %v35_v16 = vadd.f32 %v34_v11, %v33_v13 }
   0xa   :  { %v37_v19 = vadd.f32 %v36_v14, %v35_v16 }
   0xc   :  { %v39_v22 = vadd.f32 %v38_v17, %v37_v19 }
   0xe   :  { %v41_v25 = vadd.f32 %v40_v20, %v39_v22 }
  0x10   :  { %v43_v28 = vadd.f32 %v42_v23, %v41_v25 }
  0x12   :  { %v45_v31 = vadd.f32 %v44_v26, %v43_v28 }
  0x14   :  { %v47_v34 = vadd.f32 %v46_v29, %v45_v31 }
  0x16   :  { %v49_v37 = vadd.f32 %v48_v32, %v47_v34 }
  0x18   :  { %v51_v40 = vadd.f32 %v50_v35, %v49_v37 }
  0x1a   :  { %v53_v43 = vadd.f32 %v52_v38, %v51_v40 }
  0x1c   :  { %v55_v45 = vadd.f32 %v54_v41, %v53_v43 }
  0x1e   :  { %v57_v47 = vadd.f32 %v56_v44, %v55_v45 }
  0x20   :  { %v59_v48 = vadd.f32 %v58_v46, %v57_v47 }
  0x22   :  { %v60_v49 = vrot.slane %v59_v48, 4 }
  0x24   :  { %v61_v50 = vadd.f32 %v60_v49, %v59_v48 }
  0x26   :  { %v62_v51 = vrot.slane %v61_v50, 2 }
  0x28   :  { %v63_v52 = vadd.f32 %v62_v51, %v61_v50 }
  0x2a   :  { %v64_v53 = vrot.slane %v63_v52, 1 }
  0x2c   :  { %v65_v54 = vadd.f32 %v64_v53, %v63_v52 }
  0x2e   :  { %v67_v55 = vmul.f32 0.0078125, %v65_v54 }
  0x30   :  { %v471_v56 = vsub.f32 %v12_v2, %v67_v55  ;;  %v473_v57 = vsub.f32 %v13_v3, %v67_v55  ;;  %v475_v58 = vsub.f32 %v14_v4, %v67_v55  ;;  %v477_v59 = vsub.f32 %v15_v5, %v67_v55 }
  0x31   :  { %v479_v60 = vsub.f32 %v16_v9, %v67_v55  ;;  %v487_v0 = vsub.f32 %v17_v12, %v67_v55  ;;  %v491_v2 = vsub.f32 %v18_v15, %v67_v55  ;;  %v498_v8 = vsub.f32 %v19_v18, %v67_v55 }
  0x32   :  { %v84_v61 = vmul.f32 %v471_v56, %v471_v56  ;;  %v85_v62 = vmul.f32 %v473_v57, %v473_v57  ;;  %v86_v63 = vmul.f32 %v475_v58, %v475_v58  ;;  %v87_v1 = vmul.f32 %v477_v59, %v477_v59 }
  0x33   :  { %v88_v3 = vmul.f32 %v479_v60, %v479_v60  ;;  %v89_v9 = vmul.f32 %v487_v0, %v487_v0  ;;  %v76_v12 = vsub.f32 %v20_v21, %v67_v55  ;;  %v90_v13 = vmul.f32 %v491_v2, %v491_v2 }
  0x34   :  { %v100_v4 = vsel %vm28_vm0, %v84_v61, 0.0  ;;  %v101_v5 = vsel %vm28_vm0, %v85_v62, 0.0  ;;  %v103_v6 = vsel %vm28_vm0, %v86_v63, 0.0  ;;  %v105_v10 = vsel %vm28_vm0, %v87_v1, 0.0 }
  0x35   :  { %v102_v7 = vadd.f32 %v101_v5, %v100_v4  ;;  %v107_v14 = vsel %vm28_vm0, %v88_v3, 0.0  ;;  %v77_v16 = vsub.f32 %v21_v24, %v67_v55  ;;  %v91_v17 = vmul.f32 %v498_v8, %v498_v8 }
  0x36   :  { %v109_v18 = vsel %vm28_vm0, %v89_v9, 0.0  ;;  %v78_v20 = vsub.f32 %v22_v27, %v67_v55  ;;  %v92_v22 = vmul.f32 %v76_v12, %v76_v12  ;;  %v111_v23 = vsel %vm28_vm0, %v90_v13, 0.0 }
  0x37   :  { %v104_v11 = vadd.f32 %v103_v6, %v102_v7  ;;  %v79_v26 = vsub.f32 %v23_v30, %v67_v55  ;;  %v93_v21 = vmul.f32 %v77_v16, %v77_v16  ;;  %v113_v28 = vsel %vm28_vm0, %v91_v17, 0.0 }
  0x38   :  { %v80_v31 = vsub.f32 %v24_v33, %v67_v55  ;;  %v94_v32 = vmul.f32 %v78_v20, %v78_v20  ;;  %v115_v24 = vsel %vm28_vm0, %v92_v22, 0.0  ;;  %v81_v35 = vsub.f32 %v25_v36, %v67_v55 }
  0x39   :  { %v106_v15 = vadd.f32 %v105_v10, %v104_v11  ;;  %v95_v37 = vmul.f32 %v79_v26, %v79_v26  ;;  %v117_v38 = vsel %vm28_vm0, %v93_v21, 0.0  ;;  %v513_v27 = vsub.f32 %v26_v39, %v67_v55 }
  0x3a   :  { %v96_v41 = vmul.f32 %v80_v31, %v80_v31  ;;  %v119_v43 = vsel %vm28_vm0, %v94_v32, 0.0  ;;  %v83_v44 = vsub.f32 %v27_v42, %v67_v55  ;;  %v97_v45 = vmul.f32 %v81_v35, %v81_v35 }
  0x3b   :  { %v108_v19 = vadd.f32 %v107_v14, %v106_v15  ;;  %v121_v46 = vsel %vm28_vm0, %v95_v37, 0.0  ;;  %v98_v47 = vmul.f32 %v513_v27, %v513_v27 }
  0x3c   :  { %v123_v36 = vsel %vm28_vm0, %v96_v41, 0.0  ;;  %v99_v49 = vmul.f32 %v83_v44, %v83_v44  ;;  %v125_v50 = vsel %vm28_vm0, %v97_v45, 0.0 }
  0x3d   :  { %v110_v25 = vadd.f32 %v109_v18, %v108_v19  ;;  %v127_v51 = vsel %vm28_vm0, %v98_v47, 0.0 }
  0x3e   :  { %v129_v53 = vsel %vm28_vm0, %v99_v49, 0.0 }
  0x3f   :  { %v112_v29 = vadd.f32 %v111_v23, %v110_v25 }
  0x41   :  { %v114_v34 = vadd.f32 %v113_v28, %v112_v29 }
  0x43   :  { %v116_v40 = vadd.f32 %v115_v24, %v114_v34 }
  0x45   :  { %v118_v30 = vadd.f32 %v117_v38, %v116_v40 }
  0x47   :  { %v120_v33 = vadd.f32 %v119_v43, %v118_v30 }
  0x49   :  { %v122_v48 = vadd.f32 %v121_v46, %v120_v33 }
  0x4b   :  { %v124_v39 = vadd.f32 %v123_v36, %v122_v48 }
  0x4d   :  { %v126_v52 = vadd.f32 %v125_v50, %v124_v39 }
  0x4f   :  { %v128_v42 = vadd.f32 %v127_v51, %v126_v52 }
  0x51   :  { %v130_v54 = vadd.f32 %v129_v53, %v128_v42 }
  0x53   :  { %v131_v55 = vrot.slane %v130_v54, 4 }
  0x55   :  { %v132_v61 = vadd.f32 %v131_v55, %v130_v54 }
  0x57   :  { %v133_v62 = vrot.slane %v132_v61, 2 }
  0x59   :  { %v134_v63 = vadd.f32 %v133_v62, %v132_v61 }
  0x5b   :  { %v135_v1 = vrot.slane %v134_v63, 1 }
  0x5d   :  { %v136_v3 = vadd.f32 %v135_v1, %v134_v63 }
  0x5f   :  { %v137_v4 = vmul.f32 0.0078125, %v136_v3 }
  0x61   :  { %v138_v5 = vadd.f32 1e-05, %v137_v4 }
  0x63   :  { %384 = vrsqrt.f32 %v138_v5 }
  0x70   :  { %v385_v6 = vpop.eup %384 }
  0x71   :  { %v140_v7 = vmul.f32 %v385_v6, %v471_v56  ;;  %v141_v9 = vmul.f32 %v385_v6, %v473_v57  ;;  %v148_v10 = vmul.f32 %v385_v6, %v76_v12  ;;  %v149_v11 = vmul.f32 %v385_v6, %v77_v16 }
  0x72   :  { %v142_v13 = vmul.f32 %v385_v6, %v475_v58  ;;  %v143_v14 = vmul.f32 %v385_v6, %v477_v59  ;;  %v150_v15 = vmul.f32 %v385_v6, %v78_v20  ;;  %v151_v17 = vmul.f32 %v385_v6, %v79_v26 }
  0x73   :  { %v156_v18 = vmax.f32 %v140_v7, 0.0  ;;  %v157_v19 = vmax.f32 %v141_v9, 0.0  ;;  %v164_v22 = vmax.f32 %v148_v10, 0.0  ;;  %v165_v23 = vmax.f32 %v149_v11, 0.0 }
  0x74   :  { %v158_v25 = vmax.f32 %v142_v13, 0.0  ;;  %v159_v21 = vmax.f32 %v143_v14, 0.0  ;;  %v166_v28 = vmax.f32 %v150_v15, 0.0  ;;  %v167_v29 = vmax.f32 %v151_v17, 0.0 }
  0x75   :  { %v172_v32 = vpack.c.bf16 %v157_v19, %v156_v18  ;;  %v176_v56 = vpack.c.bf16 %v165_v23, %v164_v22  ;;  %v144_v57 = vmul.f32 %v385_v6, %v479_v60  ;;  %v145_v12 = vmul.f32 %v385_v6, %v487_v0 }
  0x76   :  { %v173_v16 = vpack.c.bf16 %v159_v21, %v158_v25  ;;  %v177_v58 = vpack.c.bf16 %v167_v29, %v166_v28  ;;  %v152_v24 = vmul.f32 %v385_v6, %v80_v31  ;;  %v153_v59 = vmul.f32 %v385_v6, %v81_v35 }
  0x77   :  { %362 = vmatprep.mubr.msk.bf16.mxu0 %vm28_vm0, %v172_v32  ;;  %370 = vmatprep.mubr.msk.bf16.mxu1 %vm28_vm0, %v176_v56  ;;  %v160_v20 = vmax.f32 %v144_v57, 0.0  ;;  %v161_v26 = vmax.f32 %v145_v12, 0.0  ;;  %v146_v34 = vmul.f32 %v385_v6, %v491_v2  ;;  %v147_v37 = vmul.f32 %v385_v6, %v498_v8 }
  0x78   :  { %363 = vmatmul.mubr.msk.bf16.vlgmr.msra.gmra.mxu0 %vm28_vm0, %v173_v16  ;;  %371 = vmatmul.mubr.msk.bf16.vlgmr.msra.gmra.mxu1 %vm28_vm0, %v177_v58  ;;  %v168_v60 = vmax.f32 %v152_v24, 0.0  ;;  %v169_v0 = vmax.f32 %v153_v59, 0.0  ;;  %v154_v38 = vmul.f32 %v385_v6, %v513_v27  ;;  %v155_v31 = vmul.f32 %v385_v6, %v83_v44 }
  0x79   :  { %v174_v35 = vpack.c.bf16 %v161_v26, %v160_v20  ;;  %v162_v40 = vmax.f32 %v146_v34, 0.0  ;;  %v163_v41 = vmax.f32 %v147_v37, 0.0 }
  0x7a   :  { %v178_v43 = vpack.c.bf16 %v169_v0, %v168_v60  ;;  %v170_v30 = vmax.f32 %v154_v38, 0.0  ;;  %v171_v45 = vmax.f32 %v155_v31, 0.0 }
  0x7b   :  { %366 = vmatprep.mubr.msk.bf16.mxu0 %vm28_vm0, %v174_v35  ;;  %v175_v2 = vpack.c.bf16 %v163_v41, %v162_v40 }
  0x7c   :  { %374 = vmatprep.mubr.msk.bf16.mxu1 %vm28_vm0, %v178_v43  ;;  %v179_v8 = vpack.c.bf16 %v171_v45, %v170_v30 }
  0x80   :  { %367 = vmatmul.mubr.msk.bf16.gmra.mxu0 %vm28_vm0, %v175_v2  ;;  %375 = vmatmul.mubr.msk.bf16.gmra.mxu1 %vm28_vm0, %v179_v8 }
 0x138   :  { %v364_v46 = vpop.f32.mrf.mxu0  ;;  %v372_v27 = vpop.f32.mrf.mxu1 }
 0x139   :  { %320 = vst.msk [vmem:[%s606_s2 + $0x10] sm:$0xff] %vm317_vm1, %v364_v46  ;;  %328 = vst.msk [vmem:[%s606_s2 + $0x50] sm:$0xff] %vm317_vm1, %v372_v27 }
 0x13a   :  { %v254_v44 = vpop.f32.mrf.mxu0  ;;  %v286_v33 = vpop.f32.mrf.mxu1 }
 0x13b   :  { %318 = vst.msk [vmem:[%s606_s2] sm:$0xff] %vm317_vm1, %v254_v44  ;;  %326 = vst.msk [vmem:[%s606_s2 + $0x40] sm:$0xff] %vm317_vm1, %v286_v33 }
 0x13c   :  { %v365_v47 = vpop.f32.mrf.mxu0  ;;  %v373_v36 = vpop.f32.mrf.mxu1 }
 0x13d   :  { %321 = vst.msk [vmem:[%s606_s2 + $0x18] sm:$0xff] %vm317_vm1, %v365_v47  ;;  %329 = vst.msk [vmem:[%s606_s2 + $0x58] sm:$0xff] %vm317_vm1, %v373_v36 }
 0x13e   :  { %v257_v48 = vpop.f32.mrf.mxu0  ;;  %v289_v49 = vpop.f32.mrf.mxu1 }
 0x13f   :  { %319 = vst.msk [vmem:[%s606_s2 + $0x8] sm:$0xff] %vm317_vm1, %v257_v48  ;;  %327 = vst.msk [vmem:[%s606_s2 + $0x48] sm:$0xff] %vm317_vm1, %v289_v49 }
 0x140   :  { %v368_v50 = vpop.f32.mrf.mxu0  ;;  %v376_v39 = vpop.f32.mrf.mxu1 }
 0x141   :  { %324 = vst.msk [vmem:[%s606_s2 + $0x30] sm:$0xff] %vm317_vm1, %v368_v50  ;;  %332 = vst.msk [vmem:[%s606_s2 + $0x70] sm:$0xff] %vm317_vm1, %v376_v39 }
 0x142   :  { %v270_v51 = vpop.f32.mrf.mxu0  ;;  %v302_v52 = vpop.f32.mrf.mxu1 }
 0x143   :  { %322 = vst.msk [vmem:[%s606_s2 + $0x20] sm:$0xff] %vm317_vm1, %v270_v51  ;;  %330 = vst.msk [vmem:[%s606_s2 + $0x60] sm:$0xff] %vm317_vm1, %v302_v52 }
 0x144   :  { %v369_v53 = vpop.f32.mrf.mxu0  ;;  %v377_v42 = vpop.f32.mrf.mxu1 }
 0x145   :  { %325 = vst.msk [vmem:[%s606_s2 + $0x38] sm:$0xff] %vm317_vm1, %v369_v53  ;;  %333 = vst.msk [vmem:[%s606_s2 + $0x78] sm:$0xff] %vm317_vm1, %v377_v42 }
 0x146   :  { %v273_v54 = vpop.f32.mrf.mxu0  ;;  %v305_v55 = vpop.f32.mrf.mxu1 }
 0x147   :  { %323 = vst.msk [vmem:[%s606_s2 + $0x28] sm:$0xff] %vm317_vm1, %v273_v54  ;;  %331 = vst.msk [vmem:[%s606_s2 + $0x68] sm:$0xff] %vm317_vm1, %v305_v55 }

// kernel: densenet_forward.32
= control target key start
LH: loop header
LB: loop body
LE: loop exit
PB: predicated region body
PF: predicated region fallthrough
CT: control target
= control target key end

     0   :  { %vm43_vm0 = vcmask 130048   ;;  %s134_s0 = inlined_call_operand.vmem [shape: f32[4,32,16], index: 0, kind: input, shape index: {}]   ;;  %s135_s1 = inlined_call_operand.vmem [shape: f32[32,16], index: 1, kind: output, shape index: {}]  }
   0x1   :  { %v8_v0 = vld [vmem:[%s134_s0] sm:$0xff]  ;;  %v9_v4 = vld [vmem:[%s134_s0 + $0x8] sm:$0xff]  ;;  %v10_v9 = vld [vmem:[%s134_s0 + $0x10] sm:$0xff] }
   0x2   :  { %v52_v1 = vld [vmem:[%s134_s0 + $0x20] sm:$0xff]  ;;  %v53_v5 = vld [vmem:[%s134_s0 + $0x28] sm:$0xff]  ;;  %v54_v12 = vld [vmem:[%s134_s0 + $0x30] sm:$0xff] }
   0x3   :  { %v56_v2 = vld [vmem:[%s134_s0 + $0x40] sm:$0xff]  ;;  %v17_v3 = vadd.f32 %v52_v1, %v8_v0  ;;  %v18_v7 = vadd.f32 %v53_v5, %v9_v4  ;;  %v57_v8 = vld [vmem:[%s134_s0 + $0x48] sm:$0xff]  ;;  %v58_v13 = vld [vmem:[%s134_s0 + $0x50] sm:$0xff]  ;;  %v19_v15 = vadd.f32 %v54_v12, %v10_v9 }
   0x4   :  { %v60_v6 = vld [vmem:[%s134_s0 + $0x60] sm:$0xff]  ;;  %v61_v11 = vld [vmem:[%s134_s0 + $0x68] sm:$0xff]  ;;  %v11_v16 = vld [vmem:[%s134_s0 + $0x18] sm:$0xff] }
   0x5   :  { %v26_v10 = vadd.f32 %v56_v2, %v17_v3  ;;  %v27_v14 = vadd.f32 %v57_v8, %v18_v7  ;;  %v55_v17 = vld [vmem:[%s134_s0 + $0x38] sm:$0xff]  ;;  %v62_v20 = vld [vmem:[%s134_s0 + $0x70] sm:$0xff]  ;;  %v28_v23 = vadd.f32 %v58_v13, %v19_v15 }
   0x6   :  { %v59_v18 = vld [vmem:[%s134_s0 + $0x58] sm:$0xff]  ;;  %v20_v21 = vadd.f32 %v55_v17, %v11_v16 }
   0x7   :  { %v35_v19 = vadd.f32 %v60_v6, %v26_v10  ;;  %v36_v22 = vadd.f32 %v61_v11, %v27_v14  ;;  %v63_v24 = vld [vmem:[%s134_s0 + $0x78] sm:$0xff]  ;;  %v37_v28 = vadd.f32 %v62_v20, %v28_v23 }
   0x8   :  { %v29_v26 = vadd.f32 %v59_v18, %v20_v21 }
   0x9   :  { %v39_v25 = vmul.f32 0.25, %v35_v19  ;;  %v40_v27 = vmul.f32 0.25, %v36_v22  ;;  %v41_v30 = vmul.f32 0.25, %v37_v28 }
   0xa   :  { %v38_v29 = vadd.f32 %v63_v24, %v29_v26 }
   0xb   :  { %44 = vst.msk [vmem:[%s135_s1] sm:$0xff] %vm43_vm0, %v39_v25  ;;  %45 = vst.msk [vmem:[%s135_s1 + $0x8] sm:$0xff] %vm43_vm0, %v40_v27 }
   0xc   :  { %v42_v31 = vmul.f32 0.25, %v38_v29  ;;  %46 = vst.msk [vmem:[%s135_s1 + $0x10] sm:$0xff] %vm43_vm0, %v41_v30 }
   0xe   :  { %47 = vst.msk [vmem:[%s135_s1 + $0x18] sm:$0xff] %vm43_vm0, %v42_v31 }

// kernel: densenet_forward.33
= control target key start
LH: loop header
LB: loop body
LE: loop exit
PB: predicated region body
PF: predicated region fallthrough
CT: control target
= control target key end

     0   :  { %vm16_vm0 = vcmask 130048   ;;  %vm191_vm1 = vcmask 125952   ;;  %s285_s1 = inlined_call_operand.vmem [shape: bf16[16,16], index: 1, kind: input, shape index: {}]   ;;  %s286_s0 = inlined_call_operand.vmem [shape: f32[32,16], index: 0, kind: input, shape index: {}]   ;;  %s287_s2 = inlined_call_operand.vmem [shape: bf16[32,16], index: 2, kind: output, shape index: {}]  }
   0x1   :  { %v220_v0 = vld [vmem:[%s285_s1] sm:$0xff]   ;;  %v13_v2 = vld [vmem:[%s286_s0 + $0x8] sm:$0xff]  ;;  %v14_v3 = vld [vmem:[%s286_s0 + $0x10] sm:$0xff] }
   0x2   :  { %v12_v1 = vld [vmem:[%s286_s0] sm:$0xff]  ;;  %214 = vmatprep.subr.bf16.mxu0 %v220_v0  ;;  %v15_v4 = vld [vmem:[%s286_s0 + $0x18] sm:$0xff]  ;;  %v18_v6 = vsel %vm16_vm0, %v13_v2, 0.0  ;;  %v20_v7 = vsel %vm16_vm0, %v14_v3, 0.0 }
   0x3   :  { %v17_v5 = vsel %vm16_vm0, %v12_v1, 0.0  ;;  %215 = vmatpush3.bf16.msra.mxu0 %v220_v0  ;;  %v22_v9 = vsel %vm16_vm0, %v15_v4, 0.0 }
   0x4   :  { %v19_v8 = vadd.f32 %v18_v6, %v17_v5 }
   0x6   :  { %v21_v10 = vadd.f32 %v20_v7, %v19_v8 }
   0x8   :  { %v23_v11 = vadd.f32 %v22_v9, %v21_v10 }
   0xa   :  { %v24_v12 = vrot.slane %v23_v11, 4 }
   0xc   :  { %v25_v13 = vadd.f32 %v24_v12, %v23_v11 }
   0xe   :  { %v26_v14 = vrot.slane %v25_v13, 2 }
  0x10   :  { %v27_v15 = vadd.f32 %v26_v14, %v25_v13 }
  0x12   :  { %v28_v16 = vrot.slane %v27_v15, 1 }
  0x14   :  { %v29_v17 = vadd.f32 %v28_v16, %v27_v15 }
  0x16   :  { %v31_v18 = vmul.f32 0.03125, %v29_v17 }
  0x18   :  { %v32_v19 = vsub.f32 %v12_v1, %v31_v18  ;;  %v33_v20 = vsub.f32 %v13_v2, %v31_v18  ;;  %v34_v21 = vsub.f32 %v14_v3, %v31_v18  ;;  %v35_v22 = vsub.f32 %v15_v4, %v31_v18 }
  0x1a   :  { %v36_v23 = vmul.f32 %v32_v19, %v32_v19  ;;  %v37_v24 = vmul.f32 %v33_v20, %v33_v20  ;;  %v38_v25 = vmul.f32 %v34_v21, %v34_v21  ;;  %v39_v26 = vmul.f32 %v35_v22, %v35_v22 }
  0x1c   :  { %v40_v27 = vsel %vm16_vm0, %v36_v23, 0.0  ;;  %v41_v28 = vsel %vm16_vm0, %v37_v24, 0.0  ;;  %v43_v29 = vsel %vm16_vm0, %v38_v25, 0.0  ;;  %v45_v31 = vsel %vm16_vm0, %v39_v26, 0.0 }
  0x1d   :  { %v42_v30 = vadd.f32 %v41_v28, %v40_v27 }
  0x1f   :  { %v44_v32 = vadd.f32 %v43_v29, %v42_v30 }
  0x21   :  { %v46_v33 = vadd.f32 %v45_v31, %v44_v32 }
  0x23   :  { %v47_v34 = vrot.slane %v46_v33, 4 }
  0x25   :  { %v48_v35 = vadd.f32 %v47_v34, %v46_v33 }
  0x27   :  { %v49_v36 = vrot.slane %v48_v35, 2 }
  0x29   :  { %v50_v37 = vadd.f32 %v49_v36, %v48_v35 }
  0x2b   :  { %v51_v38 = vrot.slane %v50_v37, 1 }
  0x2d   :  { %v52_v39 = vadd.f32 %v51_v38, %v50_v37 }
  0x2f   :  { %v53_v40 = vmul.f32 0.03125, %v52_v39 }
  0x31   :  { %v54_v41 = vadd.f32 1e-05, %v53_v40 }
  0x33   :  { %221 = vrsqrt.f32 %v54_v41 }
  0x40   :  { %v222_v42 = vpop.eup %221 }
  0x41   :  { %v56_v43 = vmul.f32 %v222_v42, %v32_v19  ;;  %v57_v44 = vmul.f32 %v222_v42, %v33_v20  ;;  %v58_v45 = vmul.f32 %v222_v42, %v34_v21  ;;  %v59_v46 = vmul.f32 %v222_v42, %v35_v22 }
  0x43   :  { %v60_v47 = vmax.f32 %v56_v43, 0.0  ;;  %v61_v48 = vmax.f32 %v57_v44, 0.0  ;;  %v62_v49 = vmax.f32 %v58_v45, 0.0  ;;  %v63_v50 = vmax.f32 %v59_v46, 0.0 }
  0x45   :  { %v64_v51 = vpack.c.bf16 %v61_v48, %v60_v47  ;;  %v65_v52 = vpack.c.bf16 %v63_v50, %v62_v49 }
  0x47   :  { %216 = vmatprep.mubr.msk.bf16.mxu0 %vm16_vm0, %v64_v51 }
  0x48   :  { %217 = vmatmul.mubr.msk.bf16.vlgmr.msra.gmra.mxu0 %vm16_vm0, %v65_v52 }
 0x108   :  { %v218_v53 = vpop.f32.mrf.mxu0 }
 0x109   :  { %v132_v60 = vsel %vm16_vm0, %v218_v53, 0.0 }
 0x10a   :  { %v114_v54 = vpop.f32.mrf.mxu0 }
 0x10b   :  { %v129_v57 = vsel %vm16_vm0, %v114_v54, 0.0 }
 0x10c   :  { %v219_v55 = vpop.f32.mrf.mxu0 }
 0x10d   :  { %v134_v62 = vsel %vm16_vm0, %v219_v55, 0.0 }
 0x10e   :  { %v117_v56 = vpop.f32.mrf.mxu0 }
 0x10f   :  { %v130_v58 = vsel %vm16_vm0, %v117_v56, 0.0 }
 0x110   :  { %v131_v59 = vadd.f32 %v130_v58, %v129_v57 }
 0x112   :  { %v133_v61 = vadd.f32 %v132_v60, %v131_v59 }
 0x114   :  { %v135_v63 = vadd.f32 %v134_v62, %v133_v61 }
 0x116   :  { %v136_v0 = vrot.slane %v135_v63, 4 }
 0x118   :  { %v137_v1 = vadd.f32 %v136_v0, %v135_v63 }
 0x11a   :  { %v138_v2 = vrot.slane %v137_v1, 2 }
 0x11c   :  { %v139_v3 = vadd.f32 %v138_v2, %v137_v1 }
 0x11e   :  { %v140_v4 = vrot.slane %v139_v3, 1 }
 0x120   :  { %v141_v5 = vadd.f32 %v140_v4, %v139_v3 }
 0x122   :  { %v142_v6 = vmul.f32 0.03125, %v141_v5 }
 0x124   :  { %v143_v7 = vsub.f32 %v114_v54, %v142_v6  ;;  %v144_v8 = vsub.f32 %v117_v56, %v142_v6  ;;  %v145_v9 = vsub.f32 %v218_v53, %v142_v6  ;;  %v146_v10 = vsub.f32 %v219_v55, %v142_v6 }
 0x126   :  { %v147_v11 = vmul.f32 %v143_v7, %v143_v7  ;;  %v148_v12 = vmul.f32 %v144_v8, %v144_v8  ;;  %v149_v13 = vmul.f32 %v145_v9, %v145_v9  ;;  %v150_v14 = vmul.f32 %v146_v10, %v146_v10 }
 0x128   :  { %v151_v15 = vsel %vm16_vm0, %v147_v11, 0.0  ;;  %v152_v16 = vsel %vm16_vm0, %v148_v12, 0.0  ;;  %v154_v18 = vsel %vm16_vm0, %v149_v13, 0.0  ;;  %v156_v20 = vsel %vm16_vm0, %v150_v14, 0.0 }
 0x129   :  { %v153_v17 = vadd.f32 %v152_v16, %v151_v15 }
 0x12b   :  { %v155_v19 = vadd.f32 %v154_v18, %v153_v17 }
 0x12d   :  { %v157_v21 = vadd.f32 %v156_v20, %v155_v19 }
 0x12f   :  { %v158_v22 = vrot.slane %v157_v21, 4 }
 0x131   :  { %v159_v23 = vadd.f32 %v158_v22, %v157_v21 }
 0x133   :  { %v160_v24 = vrot.slane %v159_v23, 2 }
 0x135   :  { %v161_v25 = vadd.f32 %v160_v24, %v159_v23 }
 0x137   :  { %v162_v26 = vrot.slane %v161_v25, 1 }
 0x139   :  { %v163_v27 = vadd.f32 %v162_v26, %v161_v25 }
 0x13b   :  { %v164_v28 = vmul.f32 0.03125, %v163_v27 }
 0x13d   :  { %v165_v29 = vadd.f32 1e-05, %v164_v28 }
 0x13f   :  { %223 = vrsqrt.f32 %v165_v29 }
 0x14c   :  { %v224_v30 = vpop.eup %223 }
 0x14d   :  { %v167_v31 = vmul.f32 %v224_v30, %v143_v7  ;;  %v168_v32 = vmul.f32 %v224_v30, %v144_v8  ;;  %v169_v33 = vmul.f32 %v224_v30, %v145_v9  ;;  %v170_v34 = vmul.f32 %v224_v30, %v146_v10 }
 0x14f   :  { %v171_v35 = vmax.f32 %v167_v31, 0.0  ;;  %v172_v36 = vmax.f32 %v168_v32, 0.0  ;;  %v173_v37 = vmax.f32 %v169_v33, 0.0  ;;  %v174_v38 = vmax.f32 %v170_v34, 0.0 }
 0x151   :  { %v207_v39 = vpack.c.bf16 %v171_v35, %v171_v35  ;;  %v208_v40 = vpack.c.bf16 %v172_v36, %v172_v36  ;;  %v209_v41 = vpack.c.bf16 %v173_v37, %v173_v37  ;;  %v210_v42 = vpack.c.bf16 %v174_v38, %v174_v38 }
 0x153   :  { %192 = vst.msk [vmem:[%s287_s2] sm:$0xf] %vm191_vm1, %v207_v39  ;;  %193 = vst.msk [vmem:[%s287_s2 + $0x4] sm:$0xf] %vm191_vm1, %v208_v40 }
 0x154   :  { %194 = vst.msk [vmem:[%s287_s2 + $0x8] sm:$0xf] %vm191_vm1, %v209_v41  ;;  %195 = vst.msk [vmem:[%s287_s2 + $0xc] sm:$0xf] %vm191_vm1, %v210_v42 }

// kernel: densenet_forward.34
= control target key start
LH: loop header
LB: loop body
LE: loop exit
PB: predicated region body
PF: predicated region fallthrough
CT: control target
= control target key end

     0   :  { %v220_v0 = vmov 0   ;;  %vm106_vm0 = vcmask 130048   ;;  %vm162_vm1 = vcmask 64512   ;;  %s287_s1 = inlined_call_operand.vmem [shape: bf16[144,8], index: 1, kind: input, shape index: {}]   ;;  %s288_s0 = inlined_call_operand.vmem [shape: bf16[32,144], index: 0, kind: input, shape index: {}]   ;;  %s289_s2 = inlined_call_operand.vmem [shape: f32[32,8], index: 2, kind: output, shape index: {}]  }
   0x1   :  { %113 = vmatprep.subr.bf16.mxu0 %v220_v0  ;;  %186 = vmatprep.subr.bf16.mxu1 %v220_v0  ;;  %v205_v1 = vld [vmem:[%s287_s1 + $0x38] sm:$0xff]   ;;  %v206_v2 = vld [vmem:[%s287_s1 + $0x30] sm:$0xff]   ;;  %v207_v3 = vld [vmem:[%s287_s1 + $0x28] sm:$0xff]  }
   0x2   :  { %114 = vmatpush1.bf16.msra.mxu0 %v205_v1  ;;  %195 = vmatpush1.bf16.msra.mxu1 %v205_v1  ;;  %v208_v4 = vld [vmem:[%s287_s1 + $0x20] sm:$0xff]   ;;  %v219_v6 = vld [vmem:[%s288_s0 + $0x14] ss:$8 sps:$4 sm:$0xff]   ;;  %v211_v9 = vld [vmem:[%s287_s1 + $0x8] sm:$0xff]  }
   0x3   :  { %115 = vmatprep.subr.bf16.mxu0 %v220_v0  ;;  %187 = vmatprep.subr.bf16.mxu1 %v220_v0  ;;  %v216_v5 = vld [vmem:[%s288_s0 + $0x4] ss:$8 sps:$4 sm:$0xff]   ;;  %v209_v7 = vld [vmem:[%s287_s1 + $0x18] sm:$0xff]   ;;  %v210_v8 = vld [vmem:[%s287_s1 + $0x10] sm:$0xff]  }
   0x4   :  { %184 = vmatprep.mubr.msk.bf16.mxu0 %vm106_vm0, %v216_v5  ;;  %185 = vmatprep.mubr.msk.bf16.mxu1 %vm106_vm0, %v219_v6  ;;  %v212_v10 = vld [vmem:[%s287_s1] sm:$0xff]   ;;  %v217_v13 = vld [vmem:[%s288_s0 + $0x10] ss:$8 sps:$4 sm:$0xff]  }
   0x5   :  { %v213_v11 = vld [vmem:[%s287_s1 + $0x40] sm:$0xff]  }
   0x6   :  { %116 = vmatpush1.bf16.msra.mxu0 %v206_v2  ;;  %196 = vmatpush1.bf16.msra.mxu1 %v206_v2  ;;  %v214_v12 = vld [vmem:[%s288_s0] ss:$8 sps:$4 sm:$0xff]  }
   0x7   :  { %117 = vmatprep.subr.bf16.mxu0 %v220_v0  ;;  %188 = vmatprep.subr.bf16.mxu1 %v220_v0 }
   0xa   :  { %118 = vmatpush1.bf16.msra.mxu0 %v207_v3  ;;  %197 = vmatpush1.bf16.msra.mxu1 %v207_v3 }
   0xb   :  { %119 = vmatprep.subr.bf16.mxu0 %v220_v0  ;;  %189 = vmatprep.subr.bf16.mxu1 %v220_v0 }
   0xe   :  { %120 = vmatpush1.bf16.msra.mxu0 %v208_v4  ;;  %198 = vmatpush1.bf16.msra.mxu1 %v208_v4 }
   0xf   :  { %121 = vmatprep.subr.bf16.mxu0 %v220_v0  ;;  %190 = vmatprep.subr.bf16.mxu1 %v220_v0 }
  0x12   :  { %122 = vmatpush1.bf16.msra.mxu0 %v209_v7  ;;  %199 = vmatpush1.bf16.msra.mxu1 %v209_v7 }
  0x13   :  { %123 = vmatprep.subr.bf16.mxu0 %v220_v0  ;;  %191 = vmatprep.subr.bf16.mxu1 %v220_v0 }
  0x16   :  { %124 = vmatpush1.bf16.msra.mxu0 %v210_v8  ;;  %200 = vmatpush1.bf16.msra.mxu1 %v210_v8 }
  0x17   :  { %125 = vmatprep.subr.bf16.mxu0 %v220_v0  ;;  %192 = vmatprep.subr.bf16.mxu1 %v220_v0 }
  0x1a   :  { %126 = vmatpush1.bf16.msra.mxu0 %v211_v9  ;;  %201 = vmatpush1.bf16.msra.mxu1 %v211_v9 }
  0x1b   :  { %127 = vmatprep.subr.bf16.mxu0 %v220_v0  ;;  %193 = vmatprep.subr.bf16.mxu1 %v220_v0 }
  0x1e   :  { %128 = vmatpush1.bf16.msra.mxu0 %v212_v10  ;;  %202 = vmatpush1.bf16.msra.mxu1 %v212_v10 }
  0x1f   :  { %143 = vmatprep.subr.bf16.mxu0 %v220_v0  ;;  %194 = vmatprep.subr.bf16.mxu1 %v220_v0 }
  0x22   :  { %144 = vmatpush2.bf16.msra.mxu0 %v213_v11  ;;  %203 = vmatpush2.bf16.msra.mxu1 %v213_v11 }
  0x25   :  { %146 = vmatmul.mubr.bf16.vlgmr.msra.gmra.mxu0 %v214_v12  ;;  %154 = vmatmul.mubr.bf16.vlgmr.msra.gmra.mxu1 %v217_v13 }
  0xe5   :  { %v147_v14 = vpop.f32.mrf.mxu0  ;;  %v155_v15 = vpop.f32.mrf.mxu1 }
  0xe6   :  { %163 = vst.msk [vmem:[%s289_s2] sm:$0xff] %vm162_vm1, %v147_v14  ;;  %165 = vst.msk [vmem:[%s289_s2 + $0x10] sm:$0xff] %vm162_vm1, %v155_v15 }
  0xe7   :  { %v149_v16 = vpop.f32.mrf.mxu0  ;;  %v157_v17 = vpop.f32.mrf.mxu1 }
  0xe9   :  { %v150_v18 = vpop.f32.mrf.mxu0  ;;  %v158_v19 = vpop.f32.mrf.mxu1 }
  0xea   :  { %164 = vst.msk [vmem:[%s289_s2 + $0x8] sm:$0xff] %vm162_vm1, %v150_v18  ;;  %166 = vst.msk [vmem:[%s289_s2 + $0x18] sm:$0xff] %vm162_vm1, %v158_v19 }
  0xeb   :  { %v152_v20 = vpop.f32.mrf.mxu0  ;;  %v160_v21 = vpop.f32.mrf.mxu1 }

// kernel: densenet_forward.37
= control target key start
LH: loop header
LB: loop body
LE: loop exit
PB: predicated region body
PF: predicated region fallthrough
CT: control target
= control target key end

     0   :  { %vm16_vm0 = vcmask 261120   ;;  %vm137_vm1 = vcmask 130048   ;;  %s221_s1 = inlined_call_operand.vmem [shape: bf16[32,16], index: 1, kind: input, shape index: {}]   ;;  %s222_s0 = inlined_call_operand.vmem [shape: f32[32,32], index: 0, kind: input, shape index: {}]   ;;  %s223_s2 = inlined_call_operand.vmem [shape: f32[32,16], index: 2, kind: output, shape index: {}]  }
   0x1   :  { %v162_v0 = vld [vmem:[%s221_s1 + $0x8] sm:$0xff]   ;;  %v163_v1 = vld [vmem:[%s221_s1] sm:$0xff]   ;;  %v14_v4 = vld [vmem:[%s222_s0 + $0x10] sm:$0xff] }
   0x2   :  { %154 = vmatprep.subr.bf16.mxu0 %v162_v0  ;;  %v12_v2 = vld [vmem:[%s222_s0] sm:$0xff]  ;;  %v13_v3 = vld [vmem:[%s222_s0 + $0x8] sm:$0xff]  ;;  %v15_v5 = vld [vmem:[%s222_s0 + $0x18] sm:$0xff]  ;;  %v20_v8 = vsel %vm16_vm0, %v14_v4, 0.0 }
   0x3   :  { %155 = vmatpush3.bf16.msra.mxu0 %v162_v0  ;;  %v17_v6 = vsel %vm16_vm0, %v12_v2, 0.0  ;;  %v18_v7 = vsel %vm16_vm0, %v13_v3, 0.0  ;;  %v22_v10 = vsel %vm16_vm0, %v15_v5, 0.0 }
   0x4   :  { %156 = vmatprep.subr.bf16.mxu0 %v163_v1  ;;  %v19_v9 = vadd.f32 %v18_v7, %v17_v6 }
   0x6   :  { %v21_v11 = vadd.f32 %v20_v8, %v19_v9 }
   0x7   :  { %157 = vmatpush3.bf16.msra.mxu0 %v163_v1 }
   0x8   :  { %v23_v12 = vadd.f32 %v22_v10, %v21_v11 }
   0xa   :  { %v24_v13 = vrot.slane %v23_v12, 4 }
   0xc   :  { %v25_v14 = vadd.f32 %v24_v13, %v23_v12 }
   0xe   :  { %v26_v15 = vrot.slane %v25_v14, 2 }
  0x10   :  { %v27_v16 = vadd.f32 %v26_v15, %v25_v14 }
  0x12   :  { %v28_v17 = vrot.slane %v27_v16, 1 }
  0x14   :  { %v29_v18 = vadd.f32 %v28_v17, %v27_v16 }
  0x16   :  { %v31_v19 = vmul.f32 0.03125, %v29_v18 }
  0x18   :  { %v32_v20 = vsub.f32 %v12_v2, %v31_v19  ;;  %v33_v21 = vsub.f32 %v13_v3, %v31_v19  ;;  %v34_v22 = vsub.f32 %v14_v4, %v31_v19  ;;  %v35_v23 = vsub.f32 %v15_v5, %v31_v19 }
  0x1a   :  { %v36_v24 = vmul.f32 %v32_v20, %v32_v20  ;;  %v37_v25 = vmul.f32 %v33_v21, %v33_v21  ;;  %v38_v26 = vmul.f32 %v34_v22, %v34_v22  ;;  %v39_v27 = vmul.f32 %v35_v23, %v35_v23 }
  0x1c   :  { %v40_v28 = vsel %vm16_vm0, %v36_v24, 0.0  ;;  %v41_v29 = vsel %vm16_vm0, %v37_v25, 0.0  ;;  %v43_v30 = vsel %vm16_vm0, %v38_v26, 0.0  ;;  %v45_v32 = vsel %vm16_vm0, %v39_v27, 0.0 }
  0x1d   :  { %v42_v31 = vadd.f32 %v41_v29, %v40_v28 }
  0x1f   :  { %v44_v33 = vadd.f32 %v43_v30, %v42_v31 }
  0x21   :  { %v46_v34 = vadd.f32 %v45_v32, %v44_v33 }
  0x23   :  { %v47_v35 = vrot.slane %v46_v34, 4 }
  0x25   :  { %v48_v36 = vadd.f32 %v47_v35, %v46_v34 }
  0x27   :  { %v49_v37 = vrot.slane %v48_v36, 2 }
  0x29   :  { %v50_v38 = vadd.f32 %v49_v37, %v48_v36 }
  0x2b   :  { %v51_v39 = vrot.slane %v50_v38, 1 }
  0x2d   :  { %v52_v40 = vadd.f32 %v51_v39, %v50_v38 }
  0x2f   :  { %v53_v41 = vmul.f32 0.03125, %v52_v40 }
  0x31   :  { %v54_v42 = vadd.f32 1e-05, %v53_v41 }
  0x33   :  { %164 = vrsqrt.f32 %v54_v42 }
  0x40   :  { %v165_v43 = vpop.eup %164 }
  0x41   :  { %v56_v44 = vmul.f32 %v165_v43, %v32_v20  ;;  %v57_v45 = vmul.f32 %v165_v43, %v33_v21  ;;  %v58_v46 = vmul.f32 %v165_v43, %v34_v22  ;;  %v59_v47 = vmul.f32 %v165_v43, %v35_v23 }
  0x43   :  { %v60_v48 = vmax.f32 %v56_v44, 0.0  ;;  %v61_v49 = vmax.f32 %v57_v45, 0.0  ;;  %v62_v50 = vmax.f32 %v58_v46, 0.0  ;;  %v63_v51 = vmax.f32 %v59_v47, 0.0 }
  0x45   :  { %v64_v52 = vpack.c.bf16 %v61_v49, %v60_v48  ;;  %v65_v53 = vpack.c.bf16 %v63_v51, %v62_v50 }
  0x47   :  { %158 = vmatprep.mubr.msk.bf16.mxu0 %vm16_vm0, %v64_v52 }
  0x48   :  { %159 = vmatmul.mubr.msk.bf16.vlgmr.msra.gmra.mxu0 %vm16_vm0, %v65_v53 }
 0x108   :  { %v160_v54 = vpop.f32.mrf.mxu0 }
 0x109   :  { %140 = vst.msk [vmem:[%s223_s2 + $0x10] sm:$0xff] %vm137_vm1, %v160_v54 }
 0x10a   :  { %v122_v55 = vpop.f32.mrf.mxu0 }
 0x10b   :  { %138 = vst.msk [vmem:[%s223_s2] sm:$0xff] %vm137_vm1, %v122_v55 }
 0x10c   :  { %v161_v56 = vpop.f32.mrf.mxu0 }
 0x10d   :  { %141 = vst.msk [vmem:[%s223_s2 + $0x18] sm:$0xff] %vm137_vm1, %v161_v56 }
 0x10e   :  { %v125_v57 = vpop.f32.mrf.mxu0 }
 0x10f   :  { %139 = vst.msk [vmem:[%s223_s2 + $0x8] sm:$0xff] %vm137_vm1, %v125_v57 }

// kernel: densenet_forward.35
= control target key start
LH: loop header
LB: loop body
LE: loop exit
PB: predicated region body
PF: predicated region fallthrough
CT: control target
= control target key end

     0   :  { %vm84_vm0 = vcmask 1043456   ;;  %vm16_vm1 = vcmask 195584   ;;  %vm137_vm2 = vcmask 130048   ;;  %vm200_vm3 = vcmask 125952   ;;  %s303_s1 = inlined_call_operand.vmem [shape: bf16[24,16], index: 1, kind: input, shape index: {}]   ;;  %s304_s0 = inlined_call_operand.vmem [shape: f32[32,24], index: 0, kind: input, shape index: {}]   ;;  %s305_s2 = inlined_call_operand.vmem [shape: bf16[32,16], index: 2, kind: output, shape index: {}]  }
   0x1   :  { %v234_v0 = vld [vmem:[%s303_s1 + $0x8] ss:$0 sps:$4 sm:$0xff]   ;;  %v235_v1 = vld [vmem:[%s303_s1] sm:$0xff]   ;;  %v14_v5 = vld [vmem:[%s304_s0 + $0x10] sm:$0xff] }
   0x2   :  { %v12_v2 = vld [vmem:[%s304_s0] sm:$0xff]  ;;  %233 = vmatprep.subr.msk.bf16.mxu0 %vm84_vm0, %v234_v0  ;;  %v86_v3 = vsel %vm84_vm0, %v234_v0, 0  ;;  %v13_v4 = vld [vmem:[%s304_s0 + $0x8] sm:$0xff]  ;;  %v15_v6 = vld [vmem:[%s304_s0 + $0x18] sm:$0xff]  ;;  %v20_v9 = vsel %vm16_vm1, %v14_v5, 0.0 }
   0x3   :  { %v17_v7 = vsel %vm16_vm1, %v12_v2, 0.0  ;;  %226 = vmatpush3.bf16.msra.mxu0 %v86_v3  ;;  %v18_v8 = vsel %vm16_vm1, %v13_v4, 0.0  ;;  %v22_v11 = vsel %vm16_vm1, %v15_v6, 0.0 }
   0x4   :  { %227 = vmatprep.subr.bf16.mxu0 %v235_v1  ;;  %v19_v10 = vadd.f32 %v18_v8, %v17_v7 }
   0x6   :  { %v21_v12 = vadd.f32 %v20_v9, %v19_v10 }
   0x7   :  { %228 = vmatpush3.bf16.msra.mxu0 %v235_v1 }
   0x8   :  { %v23_v13 = vadd.f32 %v22_v11, %v21_v12 }
   0xa   :  { %v24_v14 = vrot.slane %v23_v13, 4 }
   0xc   :  { %v25_v15 = vadd.f32 %v24_v14, %v23_v13 }
   0xe   :  { %v26_v16 = vrot.slane %v25_v15, 2 }
  0x10   :  { %v27_v17 = vadd.f32 %v26_v16, %v25_v15 }
  0x12   :  { %v28_v18 = vrot.slane %v27_v17, 1 }
  0x14   :  { %v29_v19 = vadd.f32 %v28_v18, %v27_v17 }
  0x16   :  { %v31_v20 = vmul.f32 0.03125, %v29_v19 }
  0x18   :  { %v32_v21 = vsub.f32 %v12_v2, %v31_v20  ;;  %v33_v22 = vsub.f32 %v13_v4, %v31_v20  ;;  %v34_v23 = vsub.f32 %v14_v5, %v31_v20  ;;  %v35_v24 = vsub.f32 %v15_v6, %v31_v20 }
  0x1a   :  { %v36_v25 = vmul.f32 %v32_v21, %v32_v21  ;;  %v37_v26 = vmul.f32 %v33_v22, %v33_v22  ;;  %v38_v27 = vmul.f32 %v34_v23, %v34_v23  ;;  %v39_v28 = vmul.f32 %v35_v24, %v35_v24 }
  0x1c   :  { %v40_v29 = vsel %vm16_vm1, %v36_v25, 0.0  ;;  %v41_v30 = vsel %vm16_vm1, %v37_v26, 0.0  ;;  %v43_v31 = vsel %vm16_vm1, %v38_v27, 0.0  ;;  %v45_v33 = vsel %vm16_vm1, %v39_v28, 0.0 }
  0x1d   :  { %v42_v32 = vadd.f32 %v41_v30, %v40_v29 }
  0x1f   :  { %v44_v34 = vadd.f32 %v43_v31, %v42_v32 }
  0x21   :  { %v46_v35 = vadd.f32 %v45_v33, %v44_v34 }
  0x23   :  { %v47_v36 = vrot.slane %v46_v35, 4 }
  0x25   :  { %v48_v37 = vadd.f32 %v47_v36, %v46_v35 }
  0x27   :  { %v49_v38 = vrot.slane %v48_v37, 2 }
  0x29   :  { %v50_v39 = vadd.f32 %v49_v38, %v48_v37 }
  0x2b   :  { %v51_v40 = vrot.slane %v50_v39, 1 }
  0x2d   :  { %v52_v41 = vadd.f32 %v51_v40, %v50_v39 }
  0x2f   :  { %v53_v42 = vmul.f32 0.03125, %v52_v41 }
  0x31   :  { %v54_v43 = vadd.f32 1e-05, %v53_v42 }
  0x33   :  { %236 = vrsqrt.f32 %v54_v43 }
  0x40   :  { %v237_v44 = vpop.eup %236 }
  0x41   :  { %v56_v45 = vmul.f32 %v237_v44, %v32_v21  ;;  %v57_v46 = vmul.f32 %v237_v44, %v33_v22  ;;  %v58_v47 = vmul.f32 %v237_v44, %v34_v23  ;;  %v59_v48 = vmul.f32 %v237_v44, %v35_v24 }
  0x43   :  { %v60_v49 = vmax.f32 %v56_v45, 0.0  ;;  %v61_v50 = vmax.f32 %v57_v46, 0.0  ;;  %v62_v51 = vmax.f32 %v58_v47, 0.0  ;;  %v63_v52 = vmax.f32 %v59_v48, 0.0 }
  0x45   :  { %v64_v53 = vpack.c.bf16 %v61_v50, %v60_v49  ;;  %v65_v54 = vpack.c.bf16 %v63_v52, %v62_v51 }
  0x47   :  { %229 = vmatprep.mubr.msk.bf16.mxu0 %vm16_vm1, %v64_v53 }
  0x48   :  { %230 = vmatmul.mubr.msk.bf16.vlgmr.msra.gmra.mxu0 %vm16_vm1, %v65_v54 }
 0x108   :  { %v231_v55 = vpop.f32.mrf.mxu0 }
 0x109   :  { %v141_v62 = vsel %vm137_vm2, %v231_v55, 0.0 }
 0x10a   :  { %v122_v56 = vpop.f32.mrf.mxu0 }
 0x10b   :  { %v138_v59 = vsel %vm137_vm2, %v122_v56, 0.0 }
 0x10c   :  { %v232_v57 = vpop.f32.mrf.mxu0 }
 0x10d   :  { %v143_v0 = vsel %vm137_vm2, %v232_v57, 0.0 }
 0x10e   :  { %v125_v58 = vpop.f32.mrf.mxu0 }
 0x10f   :  { %v139_v60 = vsel %vm137_vm2, %v125_v58, 0.0 }
 0x110   :  { %v140_v61 = vadd.f32 %v139_v60, %v138_v59 }
 0x112   :  { %v142_v63 = vadd.f32 %v141_v62, %v140_v61 }
 0x114   :  { %v144_v1 = vadd.f32 %v143_v0, %v142_v63 }
 0x116   :  { %v145_v2 = vrot.slane %v144_v1, 4 }
 0x118   :  { %v146_v3 = vadd.f32 %v145_v2, %v144_v1 }
 0x11a   :  { %v147_v4 = vrot.slane %v146_v3, 2 }
 0x11c   :  { %v148_v5 = vadd.f32 %v147_v4, %v146_v3 }
 0x11e   :  { %v149_v6 = vrot.slane %v148_v5, 1 }
 0x120   :  { %v150_v7 = vadd.f32 %v149_v6, %v148_v5 }
 0x122   :  { %v151_v8 = vmul.f32 0.03125, %v150_v7 }
 0x124   :  { %v152_v9 = vsub.f32 %v122_v56, %v151_v8  ;;  %v153_v10 = vsub.f32 %v125_v58, %v151_v8  ;;  %v154_v11 = vsub.f32 %v231_v55, %v151_v8  ;;  %v155_v12 = vsub.f32 %v232_v57, %v151_v8 }
 0x126   :  { %v156_v13 = vmul.f32 %v152_v9, %v152_v9  ;;  %v157_v14 = vmul.f32 %v153_v10, %v153_v10  ;;  %v158_v15 = vmul.f32 %v154_v11, %v154_v11  ;;  %v159_v16 = vmul.f32 %v155_v12, %v155_v12 }
 0x128   :  { %v160_v17 = vsel %vm137_vm2, %v156_v13, 0.0  ;;  %v161_v18 = vsel %vm137_vm2, %v157_v14, 0.0  ;;  %v163_v20 = vsel %vm137_vm2, %v158_v15, 0.0  ;;  %v165_v22 = vsel %vm137_vm2, %v159_v16, 0.0 }
 0x129   :  { %v162_v19 = vadd.f32 %v161_v18, %v160_v17 }
 0x12b   :  { %v164_v21 = vadd.f32 %v163_v20, %v162_v19 }
 0x12d   :  { %v166_v23 = vadd.f32 %v165_v22, %v164_v21 }
 0x12f   :  { %v167_v24 = vrot.slane %v166_v23, 4 }
 0x131   :  { %v168_v25 = vadd.f32 %v167_v24, %v166_v23 }
 0x133   :  { %v169_v26 = vrot.slane %v168_v25, 2 }
 0x135   :  { %v170_v27 = vadd.f32 %v169_v26, %v168_v25 }
 0x137   :  { %v171_v28 = vrot.slane %v170_v27, 1 }
 0x139   :  { %v172_v29 = vadd.f32 %v171_v28, %v170_v27 }
 0x13b   :  { %v173_v30 = vmul.f32 0.03125, %v172_v29 }
 0x13d   :  { %v174_v31 = vadd.f32 1e-05, %v173_v30 }
 0x13f   :  { %238 = vrsqrt.f32 %v174_v31 }
 0x14c   :  { %v239_v32 = vpop.eup %238 }
 0x14d   :  { %v176_v33 = vmul.f32 %v239_v32, %v152_v9  ;;  %v177_v34 = vmul.f32 %v239_v32, %v153_v10  ;;  %v178_v35 = vmul.f32 %v239_v32, %v154_v11  ;;  %v179_v36 = vmul.f32 %v239_v32, %v155_v12 }
 0x14f   :  { %v180_v37 = vmax.f32 %v176_v33, 0.0  ;;  %v181_v38 = vmax.f32 %v177_v34, 0.0  ;;  %v182_v39 = vmax.f32 %v178_v35, 0.0  ;;  %v183_v40 = vmax.f32 %v179_v36, 0.0 }
 0x151   :  { %v217_v41 = vpack.c.bf16 %v180_v37, %v180_v37  ;;  %v218_v42 = vpack.c.bf16 %v181_v38, %v181_v38  ;;  %v219_v43 = vpack.c.bf16 %v182_v39, %v182_v39  ;;  %v220_v44 = vpack.c.bf16 %v183_v40, %v183_v40 }
 0x153   :  { %201 = vst.msk [vmem:[%s305_s2] sm:$0xf] %vm200_vm3, %v217_v41  ;;  %202 = vst.msk [vmem:[%s305_s2 + $0x4] sm:$0xf] %vm200_vm3, %v218_v42 }
 0x154   :  { %203 = vst.msk [vmem:[%s305_s2 + $0x8] sm:$0xf] %vm200_vm3, %v219_v43  ;;  %204 = vst.msk [vmem:[%s305_s2 + $0xc] sm:$0xf] %vm200_vm3, %v220_v44 }

// kernel: densenet_forward.38
= control target key start
LH: loop header
LB: loop body
LE: loop exit
PB: predicated region body
PF: predicated region fallthrough
CT: control target
= control target key end

     0   :  { %vm19_vm0 = vcmask 130048   ;;  %s53_s0 = inlined_call_operand.vmem [shape: f32[4,8,16], index: 0, kind: input, shape index: {}]   ;;  %s54_s1 = inlined_call_operand.vmem [shape: f32[8,16], index: 1, kind: output, shape index: {}]  }
   0x1   :  { %v8_v0 = vld [vmem:[%s53_s0] sm:$0xff]  ;;  %v25_v1 = vld [vmem:[%s53_s0 + $0x8] sm:$0xff]  ;;  %v26_v2 = vld [vmem:[%s53_s0 + $0x10] sm:$0xff] }
   0x2   :  { %v11_v3 = vadd.f32 %v25_v1, %v8_v0  ;;  %v27_v4 = vld [vmem:[%s53_s0 + $0x18] sm:$0xff] }
   0x4   :  { %v14_v5 = vadd.f32 %v26_v2, %v11_v3 }
   0x6   :  { %v17_v6 = vadd.f32 %v27_v4, %v14_v5 }
   0x8   :  { %v18_v7 = vmul.f32 0.25, %v17_v6 }
   0xa   :  { %20 = vst.msk [vmem:[%s54_s1] sm:$0xff] %vm19_vm0, %v18_v7 }

// kernel: densenet_forward.39
= control target key start
LH: loop header
LB: loop body
LE: loop exit
PB: predicated region body
PF: predicated region fallthrough
CT: control target
= control target key end

     0   :  { %vm13_vm0 = vcmask 130048   ;;  %v135_v0 = vmov 0.0   ;;  %vm136_vm1 = vmmov 0   ;;  %vm112_vm2 = vcmask 125952   ;;  %s166_s1 = inlined_call_operand.vmem [shape: bf16[16,16], index: 1, kind: input, shape index: {}]   ;;  %s167_s0 = inlined_call_operand.vmem [shape: f32[8,16], index: 0, kind: input, shape index: {}]   ;;  %s168_s2 = inlined_call_operand.vmem [shape: bf16[8,16], index: 2, kind: output, shape index: {}]  }
   0x1   :  { %122 = vmatprep.subr.bf16.mxu0 %v135_v0  ;;  %v130_v1 = vld [vmem:[%s166_s1] sm:$0xff]   ;;  %124 = vmatprep.mubr.msk.bf16.mxu0 %vm136_vm1, %v135_v0 }
   0x2   :  { %v12_v2 = vld [vmem:[%s167_s0] sm:$0xff]  ;;  %123 = vmatpush3.bf16.msra.mxu0 %v130_v1 }
   0x3   :  { %v14_v3 = vsel %vm13_vm0, %v12_v2, 0.0 }
   0x4   :  { %v15_v4 = vrot.slane %v14_v3, 4 }
   0x6   :  { %v16_v5 = vadd.f32 %v15_v4, %v14_v3 }
   0x8   :  { %v17_v6 = vrot.slane %v16_v5, 2 }
   0xa   :  { %v18_v7 = vadd.f32 %v17_v6, %v16_v5 }
   0xc   :  { %v19_v8 = vrot.slane %v18_v7, 1 }
   0xe   :  { %v20_v9 = vadd.f32 %v19_v8, %v18_v7 }
  0x10   :  { %v22_v10 = vmul.f32 0.125, %v20_v9 }
  0x12   :  { %v23_v11 = vsub.f32 %v12_v2, %v22_v10 }
  0x14   :  { %v24_v12 = vmul.f32 %v23_v11, %v23_v11 }
  0x16   :  { %v25_v13 = vsel %vm13_vm0, %v24_v12, 0.0 }
  0x17   :  { %v26_v14 = vrot.slane %v25_v13, 4 }
  0x19   :  { %v27_v15 = vadd.f32 %v26_v14, %v25_v13 }
  0x1b   :  { %v28_v16 = vrot.slane %v27_v15, 2 }
  0x1d   :  { %v29_v17 = vadd.f32 %v28_v16, %v27_v15 }
  0x1f   :  { %v30_v18 = vrot.slane %v29_v17, 1 }
  0x21   :  { %v31_v19 = vadd.f32 %v30_v18, %v29_v17 }
  0x23   :  { %v32_v20 = vmul.f32 0.125, %v31_v19 }
  0x25   :  { %v33_v21 = vadd.f32 1e-05, %v32_v20 }
  0x27   :  { %131 = vrsqrt.f32 %v33_v21 }
  0x34   :  { %v132_v22 = vpop.eup %131 }
  0x35   :  { %v35_v23 = vmul.f32 %v132_v22, %v23_v11 }
  0x37   :  { %v36_v24 = vmax.f32 %v35_v23, 0.0 }
  0x39   :  { %v37_v25 = vpack.c.bf16 %v36_v24, %v36_v24 }
  0x3b   :  { %125 = vmatmul.mubr.msk.bf16.vlgmr.msra.gmra.mxu0 %vm13_vm0, %v37_v25 }
  0xfb   :  { %v83_v26 = vpop.f32.mrf.mxu0 }
  0xfc   :  { %v89_v27 = vsel %vm13_vm0, %v83_v26, 0.0 }
  0xfd   :  { %v90_v28 = vrot.slane %v89_v27, 4  ;;  %v126_v29 = vpop.f32.mrf.mxu0 }
  0xff   :  { %v91_v30 = vadd.f32 %v90_v28, %v89_v27  ;;  %v86_v31 = vpop.f32.mrf.mxu0 }
 0x101   :  { %v92_v32 = vrot.slane %v91_v30, 2  ;;  %v127_v33 = vpop.f32.mrf.mxu0 }
 0x103   :  { %v93_v34 = vadd.f32 %v92_v32, %v91_v30 }
 0x105   :  { %v94_v35 = vrot.slane %v93_v34, 1 }
 0x107   :  { %v95_v36 = vadd.f32 %v94_v35, %v93_v34 }
 0x109   :  { %v96_v37 = vmul.f32 0.125, %v95_v36 }
 0x10b   :  { %v97_v38 = vsub.f32 %v83_v26, %v96_v37 }
 0x10d   :  { %v98_v39 = vmul.f32 %v97_v38, %v97_v38 }
 0x10f   :  { %v99_v40 = vsel %vm13_vm0, %v98_v39, 0.0 }
 0x110   :  { %v100_v41 = vrot.slane %v99_v40, 4 }
 0x112   :  { %v101_v42 = vadd.f32 %v100_v41, %v99_v40 }
 0x114   :  { %v102_v43 = vrot.slane %v101_v42, 2 }
 0x116   :  { %v103_v44 = vadd.f32 %v102_v43, %v101_v42 }
 0x118   :  { %v104_v45 = vrot.slane %v103_v44, 1 }
 0x11a   :  { %v105_v46 = vadd.f32 %v104_v45, %v103_v44 }
 0x11c   :  { %v106_v47 = vmul.f32 0.125, %v105_v46 }
 0x11e   :  { %v107_v48 = vadd.f32 1e-05, %v106_v47 }
 0x120   :  { %133 = vrsqrt.f32 %v107_v48 }
 0x12d   :  { %v134_v49 = vpop.eup %133 }
 0x12e   :  { %v109_v50 = vmul.f32 %v134_v49, %v97_v38 }
 0x130   :  { %v110_v51 = vmax.f32 %v109_v50, 0.0 }
 0x132   :  { %v111_v52 = vpack.c.bf16 %v110_v51, %v110_v51 }
 0x134   :  { %113 = vst.msk [vmem:[%s168_s2] sm:$0xf] %vm112_vm2, %v111_v52 }

// kernel: densenet_forward.40
= control target key start
LH: loop header
LB: loop body
LE: loop exit
PB: predicated region body
PF: predicated region fallthrough
CT: control target
= control target key end

     0   :  { %v165_v0 = vmov 0   ;;  %vm91_vm0 = vcmask 130048   ;;  %vm135_vm1 = vcmask 64512   ;;  %s214_s1 = inlined_call_operand.vmem [shape: bf16[144,8], index: 1, kind: input, shape index: {}]   ;;  %s215_s0 = inlined_call_operand.vmem [shape: bf16[8,144], index: 0, kind: input, shape index: {}]   ;;  %s216_s2 = inlined_call_operand.vmem [shape: f32[8,8], index: 2, kind: output, shape index: {}]  }
   0x1   :  { %95 = vmatprep.subr.bf16.mxu0 %v165_v0  ;;  %v154_v1 = vld [vmem:[%s214_s1 + $0x38] sm:$0xff]   ;;  %v155_v2 = vld [vmem:[%s214_s1 + $0x30] sm:$0xff]   ;;  %v156_v3 = vld [vmem:[%s214_s1 + $0x28] sm:$0xff]  }
   0x2   :  { %96 = vmatpush1.bf16.msra.mxu0 %v154_v1  ;;  %v12_v4 = vld [vmem:[%s215_s0] sm:$0xff]  ;;  %v158_v7 = vld [vmem:[%s214_s1 + $0x18] sm:$0xff]   ;;  %v159_v8 = vld [vmem:[%s214_s1 + $0x10] sm:$0xff]  }
   0x3   :  { %97 = vmatprep.subr.bf16.mxu0 %v165_v0  ;;  %v157_v5 = vld [vmem:[%s214_s1 + $0x20] sm:$0xff]   ;;  %v142_v6 = vcombine.high %v12_v4, %v12_v4  ;;  %v160_v9 = vld [vmem:[%s214_s1 + $0x8] sm:$0xff]   ;;  %v141_v12 = vcombine.low %v12_v4, %v12_v4 }
   0x4   :  { %v161_v10 = vld [vmem:[%s214_s1] sm:$0xff]  }
   0x5   :  { %152 = vmatprep.mubr.msk.bf16.mxu0 %vm91_vm0, %v142_v6  ;;  %v162_v11 = vld [vmem:[%s214_s1 + $0x40] sm:$0xff]  }
   0x6   :  { %98 = vmatpush1.bf16.msra.mxu0 %v155_v2 }
   0x7   :  { %99 = vmatprep.subr.bf16.mxu0 %v165_v0 }
   0xa   :  { %100 = vmatpush1.bf16.msra.mxu0 %v156_v3 }
   0xb   :  { %101 = vmatprep.subr.bf16.mxu0 %v165_v0 }
   0xe   :  { %102 = vmatpush1.bf16.msra.mxu0 %v157_v5 }
   0xf   :  { %103 = vmatprep.subr.bf16.mxu0 %v165_v0 }
  0x12   :  { %104 = vmatpush1.bf16.msra.mxu0 %v158_v7 }
  0x13   :  { %105 = vmatprep.subr.bf16.mxu0 %v165_v0 }
  0x16   :  { %106 = vmatpush1.bf16.msra.mxu0 %v159_v8 }
  0x17   :  { %107 = vmatprep.subr.bf16.mxu0 %v165_v0 }
  0x1a   :  { %108 = vmatpush1.bf16.msra.mxu0 %v160_v9 }
  0x1b   :  { %109 = vmatprep.subr.bf16.mxu0 %v165_v0 }
  0x1e   :  { %110 = vmatpush1.bf16.msra.mxu0 %v161_v10 }
  0x1f   :  { %125 = vmatprep.subr.bf16.mxu0 %v165_v0 }
  0x22   :  { %126 = vmatpush2.bf16.msra.mxu0 %v162_v11 }
  0x25   :  { %128 = vmatmul.mubr.bf16.vlgmr.msra.gmra.mxu0 %v141_v12 }
  0xe5   :  { %v129_v13 = vpop.f32.mrf.mxu0 }
  0xe6   :  { %136 = vst.msk [vmem:[%s216_s2] sm:$0xff] %vm135_vm1, %v129_v13 }
  0xe7   :  { %v131_v14 = vpop.f32.mrf.mxu0 }
  0xe9   :  { %v132_v15 = vpop.f32.mrf.mxu0 }
  0xeb   :  { %v133_v16 = vpop.f32.mrf.mxu0 }

// kernel: densenet_forward.41
= control target key start
LH: loop header
LB: loop body
LE: loop exit
PB: predicated region body
PF: predicated region fallthrough
CT: control target
= control target key end

     0   :  { %vm53_vm0 = vcmask 1043456   ;;  %vm13_vm1 = vcmask 195584   ;;  %v149_v0 = vmov 0.0   ;;  %vm150_vm2 = vmmov 0   ;;  %s181_s1 = inlined_call_operand.vmem [shape: bf16[24,16], index: 1, kind: input, shape index: {}]   ;;  %s182_s0 = inlined_call_operand.vmem [shape: f32[8,24], index: 0, kind: input, shape index: {}]   ;;  %s183_s2 = inlined_call_operand.vmem [shape: bf16[8,16], index: 2, kind: output, shape index: {}]  }
   0x1   :  { %133 = vmatprep.subr.bf16.mxu0 %v149_v0  ;;  %v143_v1 = vld [vmem:[%s181_s1 + $0x8] ss:$0 sps:$4 sm:$0xff]   ;;  %137 = vmatprep.mubr.msk.bf16.mxu0 %vm150_vm2, %v149_v0  ;;  %v12_v2 = vld [vmem:[%s182_s0] sm:$0xff]  ;;  %vm97_vm3 = vcmask 130048   ;;  %vm121_vm4 = vcmask 125952  }
   0x2   :  { %v55_v3 = vsel %vm53_vm0, %v143_v1, 0  ;;  %v14_v4 = vsel %vm13_vm1, %v12_v2, 0.0  ;;  %v144_v5 = vld [vmem:[%s181_s1] sm:$0xff]  }
   0x3   :  { %134 = vmatpush3.bf16.msra.mxu0 %v55_v3  ;;  %v15_v6 = vrot.slane %v14_v4, 4 }
   0x4   :  { %135 = vmatprep.subr.bf16.mxu0 %v149_v0 }
   0x5   :  { %v16_v7 = vadd.f32 %v15_v6, %v14_v4 }
   0x7   :  { %136 = vmatpush3.bf16.msra.mxu0 %v144_v5  ;;  %v17_v8 = vrot.slane %v16_v7, 2 }
   0x9   :  { %v18_v9 = vadd.f32 %v17_v8, %v16_v7 }
   0xb   :  { %v19_v10 = vrot.slane %v18_v9, 1 }
   0xd   :  { %v20_v11 = vadd.f32 %v19_v10, %v18_v9 }
   0xf   :  { %v22_v12 = vmul.f32 0.125, %v20_v11 }
  0x11   :  { %v23_v13 = vsub.f32 %v12_v2, %v22_v12 }
  0x13   :  { %v24_v14 = vmul.f32 %v23_v13, %v23_v13 }
  0x15   :  { %v25_v15 = vsel %vm13_vm1, %v24_v14, 0.0 }
  0x16   :  { %v26_v16 = vrot.slane %v25_v15, 4 }
  0x18   :  { %v27_v17 = vadd.f32 %v26_v16, %v25_v15 }
  0x1a   :  { %v28_v18 = vrot.slane %v27_v17, 2 }
  0x1c   :  { %v29_v19 = vadd.f32 %v28_v18, %v27_v17 }
  0x1e   :  { %v30_v20 = vrot.slane %v29_v19, 1 }
  0x20   :  { %v31_v21 = vadd.f32 %v30_v20, %v29_v19 }
  0x22   :  { %v32_v22 = vmul.f32 0.125, %v31_v21 }
  0x24   :  { %v33_v23 = vadd.f32 1e-05, %v32_v22 }
  0x26   :  { %145 = vrsqrt.f32 %v33_v23 }
  0x33   :  { %v146_v24 = vpop.eup %145 }
  0x34   :  { %v35_v25 = vmul.f32 %v146_v24, %v23_v13 }
  0x36   :  { %v36_v26 = vmax.f32 %v35_v25, 0.0 }
  0x38   :  { %v37_v27 = vpack.c.bf16 %v36_v26, %v36_v26 }
  0x3a   :  { %138 = vmatmul.mubr.msk.bf16.vlgmr.msra.gmra.mxu0 %vm13_vm1, %v37_v27 }
  0xfa   :  { %v91_v28 = vpop.f32.mrf.mxu0 }
  0xfb   :  { %v98_v29 = vsel %vm97_vm3, %v91_v28, 0.0 }
  0xfc   :  { %v99_v30 = vrot.slane %v98_v29, 4  ;;  %v139_v31 = vpop.f32.mrf.mxu0 }
  0xfe   :  { %v100_v32 = vadd.f32 %v99_v30, %v98_v29  ;;  %v94_v33 = vpop.f32.mrf.mxu0 }
 0x100   :  { %v101_v34 = vrot.slane %v100_v32, 2  ;;  %v140_v35 = vpop.f32.mrf.mxu0 }
 0x102   :  { %v102_v36 = vadd.f32 %v101_v34, %v100_v32 }
 0x104   :  { %v103_v37 = vrot.slane %v102_v36, 1 }
 0x106   :  { %v104_v38 = vadd.f32 %v103_v37, %v102_v36 }
 0x108   :  { %v105_v39 = vmul.f32 0.125, %v104_v38 }
 0x10a   :  { %v106_v40 = vsub.f32 %v91_v28, %v105_v39 }
 0x10c   :  { %v107_v41 = vmul.f32 %v106_v40, %v106_v40 }
 0x10e   :  { %v108_v42 = vsel %vm97_vm3, %v107_v41, 0.0 }
 0x10f   :  { %v109_v43 = vrot.slane %v108_v42, 4 }
 0x111   :  { %v110_v44 = vadd.f32 %v109_v43, %v108_v42 }
 0x113   :  { %v111_v45 = vrot.slane %v110_v44, 2 }
 0x115   :  { %v112_v46 = vadd.f32 %v111_v45, %v110_v44 }
 0x117   :  { %v113_v47 = vrot.slane %v112_v46, 1 }
 0x119   :  { %v114_v48 = vadd.f32 %v113_v47, %v112_v46 }
 0x11b   :  { %v115_v49 = vmul.f32 0.125, %v114_v48 }
 0x11d   :  { %v116_v50 = vadd.f32 1e-05, %v115_v49 }
 0x11f   :  { %147 = vrsqrt.f32 %v116_v50 }
 0x12c   :  { %v148_v51 = vpop.eup %147 }
 0x12d   :  { %v118_v52 = vmul.f32 %v148_v51, %v106_v40 }
 0x12f   :  { %v119_v53 = vmax.f32 %v118_v52, 0.0 }
 0x131   :  { %v120_v54 = vpack.c.bf16 %v119_v53, %v119_v53 }
 0x133   :  { %122 = vst.msk [vmem:[%s183_s2] sm:$0xf] %vm121_vm4, %v120_v54 }

// kernel: densenet_forward.43
= control target key start
LH: loop header
LB: loop body
LE: loop exit
PB: predicated region body
PF: predicated region fallthrough
CT: control target
= control target key end

     0   :  { %v123_v0 = vmov 0.0   ;;  %vm124_vm0 = vmmov 0   ;;  %vm13_vm1 = vcmask 261120   ;;  %vm97_vm2 = vcmask 130048   ;;  %s155_s1 = inlined_call_operand.vmem [shape: bf16[32,16], index: 1, kind: input, shape index: {}]   ;;  %s156_s0 = inlined_call_operand.vmem [shape: f32[8,32], index: 0, kind: input, shape index: {}]   ;;  %s157_s2 = inlined_call_operand.vmem [shape: f32[8,16], index: 2, kind: output, shape index: {}]  }
   0x1   :  { %109 = vmatprep.subr.bf16.mxu0 %v123_v0  ;;  %v119_v1 = vld [vmem:[%s155_s1 + $0x8] sm:$0xff]   ;;  %113 = vmatprep.mubr.msk.bf16.mxu0 %vm124_vm0, %v123_v0  ;;  %v120_v2 = vld [vmem:[%s155_s1] sm:$0xff]  }
   0x2   :  { %110 = vmatpush3.bf16.msra.mxu0 %v119_v1  ;;  %v12_v3 = vld [vmem:[%s156_s0] sm:$0xff] }
   0x3   :  { %111 = vmatprep.subr.bf16.mxu0 %v123_v0  ;;  %v14_v4 = vsel %vm13_vm1, %v12_v3, 0.0 }
   0x4   :  { %v15_v5 = vrot.slane %v14_v4, 4 }
   0x6   :  { %112 = vmatpush3.bf16.msra.mxu0 %v120_v2  ;;  %v16_v6 = vadd.f32 %v15_v5, %v14_v4 }
   0x8   :  { %v17_v7 = vrot.slane %v16_v6, 2 }
   0xa   :  { %v18_v8 = vadd.f32 %v17_v7, %v16_v6 }
   0xc   :  { %v19_v9 = vrot.slane %v18_v8, 1 }
   0xe   :  { %v20_v10 = vadd.f32 %v19_v9, %v18_v8 }
  0x10   :  { %v22_v11 = vmul.f32 0.125, %v20_v10 }
  0x12   :  { %v23_v12 = vsub.f32 %v12_v3, %v22_v11 }
  0x14   :  { %v24_v13 = vmul.f32 %v23_v12, %v23_v12 }
  0x16   :  { %v25_v14 = vsel %vm13_vm1, %v24_v13, 0.0 }
  0x17   :  { %v26_v15 = vrot.slane %v25_v14, 4 }
  0x19   :  { %v27_v16 = vadd.f32 %v26_v15, %v25_v14 }
  0x1b   :  { %v28_v17 = vrot.slane %v27_v16, 2 }
  0x1d   :  { %v29_v18 = vadd.f32 %v28_v17, %v27_v16 }
  0x1f   :  { %v30_v19 = vrot.slane %v29_v18, 1 }
  0x21   :  { %v31_v20 = vadd.f32 %v30_v19, %v29_v18 }
  0x23   :  { %v32_v21 = vmul.f32 0.125, %v31_v20 }
  0x25   :  { %v33_v22 = vadd.f32 1e-05, %v32_v21 }
  0x27   :  { %121 = vrsqrt.f32 %v33_v22 }
  0x34   :  { %v122_v23 = vpop.eup %121 }
  0x35   :  { %v35_v24 = vmul.f32 %v122_v23, %v23_v12 }
  0x37   :  { %v36_v25 = vmax.f32 %v35_v24, 0.0 }
  0x39   :  { %v37_v26 = vpack.c.bf16 %v36_v25, %v36_v25 }
  0x3b   :  { %114 = vmatmul.mubr.msk.bf16.vlgmr.msra.gmra.mxu0 %vm13_vm1, %v37_v26 }
  0xfb   :  { %v91_v27 = vpop.f32.mrf.mxu0 }
  0xfc   :  { %98 = vst.msk [vmem:[%s157_s2] sm:$0xff] %vm97_vm2, %v91_v27 }
  0xfd   :  { %v115_v28 = vpop.f32.mrf.mxu0 }
  0xff   :  { %v94_v29 = vpop.f32.mrf.mxu0 }
 0x101   :  { %v116_v30 = vpop.f32.mrf.mxu0 }

// kernel: densenet_forward.44
= control target key start
LH: loop header
LB: loop body
LE: loop exit
PB: predicated region body
PF: predicated region fallthrough
CT: control target
= control target key end

     0   :  { %vm19_vm0 = vcmask 123904   ;;  %s53_s0 = inlined_call_operand.vmem [shape: f32[4,2,16], index: 0, kind: input, shape index: {}]   ;;  %s54_s1 = inlined_call_operand.vmem [shape: f32[2,16], index: 1, kind: output, shape index: {}]  }
   0x1   :  { %v8_v0 = vld [vmem:[%s53_s0] sm:$0x3]  ;;  %v25_v1 = vld [vmem:[%s53_s0 + $0x2] sm:$0x3]  ;;  %v26_v2 = vld [vmem:[%s53_s0 + $0x4] sm:$0x3] }
   0x2   :  { %v11_v3 = vadd.f32 %v25_v1, %v8_v0  ;;  %v27_v4 = vld [vmem:[%s53_s0 + $0x6] sm:$0x3] }
   0x4   :  { %v14_v5 = vadd.f32 %v26_v2, %v11_v3 }
   0x6   :  { %v17_v6 = vadd.f32 %v27_v4, %v14_v5 }
   0x8   :  { %v18_v7 = vmul.f32 0.25, %v17_v6 }
   0xa   :  { %20 = vst.msk [vmem:[%s54_s1] sm:$0x3] %vm19_vm0, %v18_v7 }

// kernel: densenet_forward.45
= control target key start
LH: loop header
LB: loop body
LE: loop exit
PB: predicated region body
PF: predicated region fallthrough
CT: control target
= control target key end

     0   :  { %vm13_vm0 = vcmask 123904   ;;  %v136_v0 = vmov 0.0   ;;  %vm137_vm1 = vmmov 0   ;;  %vm46_vm2 = vcmask 130048   ;;  %s166_s1 = inlined_call_operand.vmem [shape: bf16[16,16], index: 1, kind: input, shape index: {}]   ;;  %s167_s0 = inlined_call_operand.vmem [shape: f32[2,16], index: 0, kind: input, shape index: {}]   ;;  %s168_s2 = inlined_call_operand.vmem [shape: bf16[2,16], index: 2, kind: output, shape index: {}]  }
   0x1   :  { %123 = vmatprep.subr.bf16.mxu0 %v136_v0  ;;  %v131_v1 = vld [vmem:[%s166_s1] sm:$0xff]   ;;  %125 = vmatprep.mubr.msk.bf16.mxu0 %vm137_vm1, %v136_v0  ;;  %vm113_vm3 = vcmask 122880  }
   0x2   :  { %v12_v2 = vld [vmem:[%s167_s0] sm:$0x3]  ;;  %124 = vmatpush3.bf16.msra.mxu0 %v131_v1 }
   0x3   :  { %v14_v3 = vsel %vm13_vm0, %v12_v2, 0.0 }
   0x4   :  { %v15_v4 = vrot.slane %v14_v3, 4 }
   0x6   :  { %v16_v5 = vadd.f32 %v15_v4, %v14_v3 }
   0x8   :  { %v17_v6 = vrot.slane %v16_v5, 2 }
   0xa   :  { %v18_v7 = vadd.f32 %v17_v6, %v16_v5 }
   0xc   :  { %v19_v8 = vrot.slane %v18_v7, 1 }
   0xe   :  { %v20_v9 = vadd.f32 %v19_v8, %v18_v7 }
  0x10   :  { %v22_v10 = vmul.f32 0.5, %v20_v9 }
  0x12   :  { %v23_v11 = vsub.f32 %v12_v2, %v22_v10 }
  0x14   :  { %v24_v12 = vmul.f32 %v23_v11, %v23_v11 }
  0x16   :  { %v25_v13 = vsel %vm13_vm0, %v24_v12, 0.0 }
  0x17   :  { %v26_v14 = vrot.slane %v25_v13, 4 }
  0x19   :  { %v27_v15 = vadd.f32 %v26_v14, %v25_v13 }
  0x1b   :  { %v28_v16 = vrot.slane %v27_v15, 2 }
  0x1d   :  { %v29_v17 = vadd.f32 %v28_v16, %v27_v15 }
  0x1f   :  { %v30_v18 = vrot.slane %v29_v17, 1 }
  0x21   :  { %v31_v19 = vadd.f32 %v30_v18, %v29_v17 }
  0x23   :  { %v32_v20 = vmul.f32 0.5, %v31_v19 }
  0x25   :  { %v33_v21 = vadd.f32 1e-05, %v32_v20 }
  0x27   :  { %132 = vrsqrt.f32 %v33_v21 }
  0x34   :  { %v133_v22 = vpop.eup %132 }
  0x35   :  { %v35_v23 = vmul.f32 %v133_v22, %v23_v11 }
  0x37   :  { %v36_v24 = vmax.f32 %v35_v23, 0.0 }
  0x39   :  { %v37_v25 = vpack.c.bf16 %v36_v24, %v36_v24 }
  0x3b   :  { %126 = vmatmul.mubr.msk.bf16.vlgmr.msra.gmra.mxu0 %vm46_vm2, %v37_v25 }
  0xfb   :  { %v84_v26 = vpop.f32.mrf.mxu0 }
  0xfc   :  { %v90_v27 = vsel %vm13_vm0, %v84_v26, 0.0 }
  0xfd   :  { %v91_v28 = vrot.slane %v90_v27, 4  ;;  %v127_v29 = vpop.f32.mrf.mxu0 }
  0xff   :  { %v92_v30 = vadd.f32 %v91_v28, %v90_v27  ;;  %v87_v31 = vpop.f32.mrf.mxu0 }
 0x101   :  { %v93_v32 = vrot.slane %v92_v30, 2  ;;  %v128_v33 = vpop.f32.mrf.mxu0 }
 0x103   :  { %v94_v34 = vadd.f32 %v93_v32, %v92_v30 }
 0x105   :  { %v95_v35 = vrot.slane %v94_v34, 1 }
 0x107   :  { %v96_v36 = vadd.f32 %v95_v35, %v94_v34 }
 0x109   :  { %v97_v37 = vmul.f32 0.5, %v96_v36 }
 0x10b   :  { %v98_v38 = vsub.f32 %v84_v26, %v97_v37 }
 0x10d   :  { %v99_v39 = vmul.f32 %v98_v38, %v98_v38 }
 0x10f   :  { %v100_v40 = vsel %vm13_vm0, %v99_v39, 0.0 }
 0x110   :  { %v101_v41 = vrot.slane %v100_v40, 4 }
 0x112   :  { %v102_v42 = vadd.f32 %v101_v41, %v100_v40 }
 0x114   :  { %v103_v43 = vrot.slane %v102_v42, 2 }
 0x116   :  { %v104_v44 = vadd.f32 %v103_v43, %v102_v42 }
 0x118   :  { %v105_v45 = vrot.slane %v104_v44, 1 }
 0x11a   :  { %v106_v46 = vadd.f32 %v105_v45, %v104_v44 }
 0x11c   :  { %v107_v47 = vmul.f32 0.5, %v106_v46 }
 0x11e   :  { %v108_v48 = vadd.f32 1e-05, %v107_v47 }
 0x120   :  { %134 = vrsqrt.f32 %v108_v48 }
 0x12d   :  { %v135_v49 = vpop.eup %134 }
 0x12e   :  { %v110_v50 = vmul.f32 %v135_v49, %v98_v38 }
 0x130   :  { %v111_v51 = vmax.f32 %v110_v50, 0.0 }
 0x132   :  { %v112_v52 = vpack.c.bf16 %v111_v51, %v111_v51 }
 0x134   :  { %114 = vst.msk [vmem:[%s168_s2] sm:$0x1] %vm113_vm3, %v112_v52 }

// kernel: densenet_forward.46
= control target key start
LH: loop header
LB: loop body
LE: loop exit
PB: predicated region body
PF: predicated region fallthrough
CT: control target
= control target key end

     0   :  { %v181_v0 = vmov 0   ;;  %v182_v2 = vmov 1966171168   ;;  %v43_v4 = vlaneseq  ;;  %vm109_vm0 = vcmask 130048   ;;  %s231_s1 = inlined_call_operand.vmem [shape: bf16[144,8], index: 1, kind: input, shape index: {}]   ;;  %s232_s0 = inlined_call_operand.vmem [shape: bf16[2,144], index: 0, kind: input, shape index: {}]   ;;  %s233_s2 = inlined_call_operand.vmem [shape: f32[2,8], index: 2, kind: output, shape index: {}]  }
   0x1   :  { %113 = vmatprep.subr.bf16.mxu0 %v181_v0  ;;  %v172_v1 = vld [vmem:[%s231_s1 + $0x38] sm:$0xff]   ;;  %v41_v3 = vunpack.c.l.s4 %v182_v2  ;;  %v173_v5 = vld [vmem:[%s231_s1 + $0x30] sm:$0xff]   ;;  %v174_v8 = vld [vmem:[%s231_s1 + $0x28] sm:$0xff]   ;;  %vm153_vm1 = vcmask 58368  }
   0x2   :  { %114 = vmatpush1.bf16.msra.mxu0 %v172_v1  ;;  %v44_v7 = vshrl.u32 %v43_v4, 7  ;;  %v159_v10 = vld.sshfl [vmem:[%s232_s0] sm:$0x11 pattern:$0x75316420]  ;;  %v176_v14 = vld [vmem:[%s231_s1 + $0x18] sm:$0xff]  }
   0x3   :  { %115 = vmatprep.subr.bf16.mxu0 %v181_v0  ;;  %v42_v6 = vunpack.c.0.s8 %v41_v3  ;;  %v175_v11 = vld [vmem:[%s231_s1 + $0x20] sm:$0xff]   ;;  %v39_v12 = vcombine.high %v159_v10, %v159_v10  ;;  %v177_v15 = vld [vmem:[%s231_s1 + $0x10] sm:$0xff]   ;;  %v178_v16 = vld [vmem:[%s231_s1 + $0x8] sm:$0xff]  }
   0x4   :  { %v179_v17 = vld [vmem:[%s231_s1] sm:$0xff]  }
   0x5   :  { %v45_v9 = vsub.s32 %v42_v6, %v44_v7  ;;  %v180_v18 = vld [vmem:[%s231_s1 + $0x40] sm:$0xff]  }
   0x6   :  { %116 = vmatpush1.bf16.msra.mxu0 %v173_v5 }
   0x7   :  { %117 = vmatprep.subr.bf16.mxu0 %v181_v0  ;;  %v53_v13 = vrot.slane %v39_v12, %v45_v9  ;;  %v46_v19 = vrot.slane %v159_v10, %v45_v9 }
   0x9   :  { %169 = vmatprep.mubr.msk.bf16.mxu0 %vm109_vm0, %v53_v13 }
   0xa   :  { %118 = vmatpush1.bf16.msra.mxu0 %v174_v8 }
   0xb   :  { %119 = vmatprep.subr.bf16.mxu0 %v181_v0 }
   0xe   :  { %120 = vmatpush1.bf16.msra.mxu0 %v175_v11 }
   0xf   :  { %121 = vmatprep.subr.bf16.mxu0 %v181_v0 }
  0x12   :  { %122 = vmatpush1.bf16.msra.mxu0 %v176_v14 }
  0x13   :  { %123 = vmatprep.subr.bf16.mxu0 %v181_v0 }
  0x16   :  { %124 = vmatpush1.bf16.msra.mxu0 %v177_v15 }
  0x17   :  { %125 = vmatprep.subr.bf16.mxu0 %v181_v0 }
  0x1a   :  { %126 = vmatpush1.bf16.msra.mxu0 %v178_v16 }
  0x1b   :  { %127 = vmatprep.subr.bf16.mxu0 %v181_v0 }
  0x1e   :  { %128 = vmatpush1.bf16.msra.mxu0 %v179_v17 }
  0x1f   :  { %143 = vmatprep.subr.bf16.mxu0 %v181_v0 }
  0x22   :  { %144 = vmatpush2.bf16.msra.mxu0 %v180_v18 }
  0x25   :  { %146 = vmatmul.mubr.bf16.vlgmr.msra.gmra.mxu0 %v46_v19 }
  0xe5   :  { %v147_v20 = vpop.f32.mrf.mxu0 }
  0xe6   :  { %154 = vst.msk [vmem:[%s233_s2] sm:$0x3] %vm153_vm1, %v147_v20 }
  0xe7   :  { %v149_v21 = vpop.f32.mrf.mxu0 }
  0xe9   :  { %v150_v22 = vpop.f32.mrf.mxu0 }
  0xeb   :  { %v151_v23 = vpop.f32.mrf.mxu0 }

// kernel: densenet_forward.47
= control target key start
LH: loop header
LB: loop body
LE: loop exit
PB: predicated region body
PF: predicated region fallthrough
CT: control target
= control target key end

     0   :  { %vm54_vm0 = vcmask 1043456   ;;  %vm13_vm1 = vcmask 189440   ;;  %v150_v0 = vmov 0.0   ;;  %vm151_vm2 = vmmov 0   ;;  %s181_s1 = inlined_call_operand.vmem [shape: bf16[24,16], index: 1, kind: input, shape index: {}]   ;;  %s182_s0 = inlined_call_operand.vmem [shape: f32[2,24], index: 0, kind: input, shape index: {}]   ;;  %s183_s2 = inlined_call_operand.vmem [shape: bf16[2,16], index: 2, kind: output, shape index: {}]  }
   0x1   :  { %134 = vmatprep.subr.bf16.mxu0 %v150_v0  ;;  %v144_v1 = vld [vmem:[%s181_s1 + $0x8] ss:$0 sps:$4 sm:$0xff]   ;;  %138 = vmatprep.mubr.msk.bf16.mxu0 %vm151_vm2, %v150_v0  ;;  %v12_v2 = vld [vmem:[%s182_s0] sm:$0x3]  ;;  %vm50_vm3 = vcmask 195584   ;;  %vm98_vm4 = vcmask 123904  }
   0x2   :  { %v56_v3 = vsel %vm54_vm0, %v144_v1, 0  ;;  %v14_v4 = vsel %vm13_vm1, %v12_v2, 0.0  ;;  %v145_v5 = vld [vmem:[%s181_s1] sm:$0xff]   ;;  %vm122_vm5 = vcmask 122880  }
   0x3   :  { %135 = vmatpush3.bf16.msra.mxu0 %v56_v3  ;;  %v15_v6 = vrot.slane %v14_v4, 4 }
   0x4   :  { %136 = vmatprep.subr.bf16.mxu0 %v150_v0 }
   0x5   :  { %v16_v7 = vadd.f32 %v15_v6, %v14_v4 }
   0x7   :  { %137 = vmatpush3.bf16.msra.mxu0 %v145_v5  ;;  %v17_v8 = vrot.slane %v16_v7, 2 }
   0x9   :  { %v18_v9 = vadd.f32 %v17_v8, %v16_v7 }
   0xb   :  { %v19_v10 = vrot.slane %v18_v9, 1 }
   0xd   :  { %v20_v11 = vadd.f32 %v19_v10, %v18_v9 }
   0xf   :  { %v22_v12 = vmul.f32 0.5, %v20_v11 }
  0x11   :  { %v23_v13 = vsub.f32 %v12_v2, %v22_v12 }
  0x13   :  { %v24_v14 = vmul.f32 %v23_v13, %v23_v13 }
  0x15   :  { %v25_v15 = vsel %vm13_vm1, %v24_v14, 0.0 }
  0x16   :  { %v26_v16 = vrot.slane %v25_v15, 4 }
  0x18   :  { %v27_v17 = vadd.f32 %v26_v16, %v25_v15 }
  0x1a   :  { %v28_v18 = vrot.slane %v27_v17, 2 }
  0x1c   :  { %v29_v19 = vadd.f32 %v28_v18, %v27_v17 }
  0x1e   :  { %v30_v20 = vrot.slane %v29_v19, 1 }
  0x20   :  { %v31_v21 = vadd.f32 %v30_v20, %v29_v19 }
  0x22   :  { %v32_v22 = vmul.f32 0.5, %v31_v21 }
  0x24   :  { %v33_v23 = vadd.f32 1e-05, %v32_v22 }
  0x26   :  { %146 = vrsqrt.f32 %v33_v23 }
  0x33   :  { %v147_v24 = vpop.eup %146 }
  0x34   :  { %v35_v25 = vmul.f32 %v147_v24, %v23_v13 }
  0x36   :  { %v36_v26 = vmax.f32 %v35_v25, 0.0 }
  0x38   :  { %v37_v27 = vpack.c.bf16 %v36_v26, %v36_v26 }
  0x3a   :  { %139 = vmatmul.mubr.msk.bf16.vlgmr.msra.gmra.mxu0 %vm50_vm3, %v37_v27 }
  0xfa   :  { %v92_v28 = vpop.f32.mrf.mxu0 }
  0xfb   :  { %v99_v29 = vsel %vm98_vm4, %v92_v28, 0.0 }
  0xfc   :  { %v100_v30 = vrot.slane %v99_v29, 4  ;;  %v140_v31 = vpop.f32.mrf.mxu0 }
  0xfe   :  { %v101_v32 = vadd.f32 %v100_v30, %v99_v29  ;;  %v95_v33 = vpop.f32.mrf.mxu0 }
 0x100   :  { %v102_v34 = vrot.slane %v101_v32, 2  ;;  %v141_v35 = vpop.f32.mrf.mxu0 }
 0x102   :  { %v103_v36 = vadd.f32 %v102_v34, %v101_v32 }
 0x104   :  { %v104_v37 = vrot.slane %v103_v36, 1 }
 0x106   :  { %v105_v38 = vadd.f32 %v104_v37, %v103_v36 }
 0x108   :  { %v106_v39 = vmul.f32 0.5, %v105_v38 }
 0x10a   :  { %v107_v40 = vsub.f32 %v92_v28, %v106_v39 }
 0x10c   :  { %v108_v41 = vmul.f32 %v107_v40, %v107_v40 }
 0x10e   :  { %v109_v42 = vsel %vm98_vm4, %v108_v41, 0.0 }
 0x10f   :  { %v110_v43 = vrot.slane %v109_v42, 4 }
 0x111   :  { %v111_v44 = vadd.f32 %v110_v43, %v109_v42 }
 0x113   :  { %v112_v45 = vrot.slane %v111_v44, 2 }
 0x115   :  { %v113_v46 = vadd.f32 %v112_v45, %v111_v44 }
 0x117   :  { %v114_v47 = vrot.slane %v113_v46, 1 }
 0x119   :  { %v115_v48 = vadd.f32 %v114_v47, %v113_v46 }
 0x11b   :  { %v116_v49 = vmul.f32 0.5, %v115_v48 }
 0x11d   :  { %v117_v50 = vadd.f32 1e-05, %v116_v49 }
 0x11f   :  { %148 = vrsqrt.f32 %v117_v50 }
 0x12c   :  { %v149_v51 = vpop.eup %148 }
 0x12d   :  { %v119_v52 = vmul.f32 %v149_v51, %v107_v40 }
 0x12f   :  { %v120_v53 = vmax.f32 %v119_v52, 0.0 }
 0x131   :  { %v121_v54 = vpack.c.bf16 %v120_v53, %v120_v53 }
 0x133   :  { %123 = vst.msk [vmem:[%s183_s2] sm:$0x1] %vm122_vm5, %v121_v54 }

// kernel: densenet_forward.49
= control target key start
LH: loop header
LB: loop body
LE: loop exit
PB: predicated region body
PF: predicated region fallthrough
CT: control target
= control target key end

     0   :  { %v181_v1 = vmov 0.0   ;;  %vm182_vm0 = vmmov 0   ;;  %vm20_vm1 = vcmask 253952   ;;  %s222_s0 = inlined_call_operand.vmem [shape: f32[2,1,32], index: 0, kind: input, shape index: {}]   ;;  %s223_s1 = inlined_call_operand.vmem [shape: bf16[32,10], index: 1, kind: input, shape index: {}]   ;;  %s224_s2 = inlined_call_operand.vmem [shape: f32[1,10], index: 2, kind: input, shape index: {}]   ;;  %s225_s3 = inlined_call_operand.hbm [shape: f32[2,10], index: 3, kind: output, shape index: {}]  }
   0x1   :  { %v155_v0 = vld [vmem:[%s223_s1 + $0x8] sm:$0xff]   ;;  %144 = vmatprep.subr.bf16.mxu0 %v181_v1  ;;  %v156_v2 = vld [vmem:[%s223_s1] sm:$0xff]   ;;  %148 = vmatprep.mubr.msk.bf16.mxu0 %vm182_vm0, %v181_v1 }
   0x2   :  { %145 = vmatpush3.bf16.msra.mxu0 %v155_v0  ;;  %v16_v3 = vld [vmem:[%s222_s0] sm:$0x1]  ;;  %v17_v4 = vld [vmem:[%s222_s0 + $0x1] sm:$0x1] }
   0x3   :  { %146 = vmatprep.subr.bf16.mxu0 %v181_v1  ;;  %v21_v5 = vsel %vm20_vm1, %v16_v3, 0.0  ;;  %v22_v6 = vsel %vm20_vm1, %v17_v4, 0.0 }
   0x4   :  { %v23_v7 = vadd.f32 %v22_v6, %v21_v5 }
   0x5   :  { %8 = vsyncpa [#allocation3], 0  ;;  %vm62_vm2 = vcmask 1041409   ;;  %vm77_vm3 = vcmask 261120   ;;  %v137_v30 = vld [vmem:[%s224_s2] ss:$0 sm:$0xff] }
   0x6   :  { %147 = vmatpush3.bf16.msra.mxu0 %v156_v2  ;;  %v25_v8 = vmul.f32 0.5, %v23_v7  ;;  %s183_s20 = smov [#allocation2]   ;;  %vm121_vm4 = vcmask 74752  }
   0x7   :  { %s129_s21 = sshll.u32 %s183_s20, 4  ;;  %s130_s21 = int_to_ptr.vmem [resolvable:$true] %s129_s21 }
   0x8   :  { %v26_v9 = vsub.f32 %v16_v3, %v25_v8  ;;  %v27_v10 = vsub.f32 %v17_v4, %v25_v8  ;;  %s159_s22 = scalar_lea.vmem %s130_s21, 32  ;;  %p164_p1 = scmp.lt.s32.totalorder %s130_s21, %s130_s21 }
   0x9   :  { %p160_p0 = scmp.ne.s32.totalorder %s130_s21, %s159_s22  ;;  %p165_p2 = scmp.lt.s32.totalorder %s159_s22, %s159_s22 }
   0xa   :  { %v28_v11 = vmul.f32 %v26_v9, %v26_v9  ;;  %v29_v12 = vmul.f32 %v27_v10, %v27_v10 }
   0xb   :  { %p166_p3 = por %p165_p2, %p164_p1 }
   0xc   :  { %v32_v13 = vsel %vm20_vm1, %v28_v11, 0.0  ;;  %v33_v14 = vsel %vm20_vm1, %v29_v12, 0.0 }
   0xd   :  { %v34_v15 = vadd.f32 %v33_v14, %v32_v13  ;;  %p167_p4 = pnand %p166_p3, %p160_p0 }
   0xf   :  { %v35_v16 = vmul.f32 0.5, %v34_v15 }
  0x11   :  { %v36_v17 = vadd.f32 1e-05, %v35_v16 }
  0x13   :  { %157 = vrsqrt.f32 %v36_v17 }
  0x20   :  { %v158_v18 = vpop.eup %157 }
  0x21   :  { %v38_v19 = vmul.f32 %v158_v18, %v26_v9  ;;  %v39_v20 = vmul.f32 %v158_v18, %v27_v10 }
  0x23   :  { %v40_v21 = vmax.f32 %v38_v19, 0.0  ;;  %v41_v22 = vmax.f32 %v39_v20, 0.0 }
  0x25   :  { %v44_v23 = vpack.c.bf16 %v40_v21, %v40_v21  ;;  %v45_v24 = vpack.c.bf16 %v41_v22, %v41_v22 }
  0x27   :  { %v59_v25 = vunpack.c.l.b16 %v44_v23  ;;  %v60_v26 = vunpack.c.l.b16 %v45_v24 }
  0x29   :  { %v61_v27 = vrot.slane %v60_v26, 7 }
  0x2b   :  { %v63_v28 = vsel %vm62_vm2, %v61_v27, %v59_v25 }
  0x2c   :  { %v64_v29 = vpack.c.b16 %v63_v28, %v63_v28 }
  0x2e   :  { %149 = vmatmul.mubr.msk.bf16.vlgmr.msra.gmra.mxu0 %vm77_vm3, %v64_v29 }
  0xee   :  { %v115_v31 = vpop.f32.mrf.mxu0 }
  0xef   :  { %v116_v32 = vadd.f32 %v137_v30, %v115_v31 }
  0xf0   :  { %v150_v33 = vpop.f32.mrf.mxu0 }
  0xf1   :  { %122 = vst.msk [vmem:[#allocation2] sm:$0x3] %vm121_vm4, %v116_v32 }
  0xf2   :  { %v118_v34 = vpop.f32.mrf.mxu0 }
  0xf3   :  { %170 = shalt.err (!%p167_p4)
}
  0xf4   :  { %132 = dma.vmem_to_hbm [thread:$0]  %s130_s21, 32, %s225_s3, [#allocation3]   ;;  %v151_v35 = vpop.f32.mrf.mxu0 }
  0xf5   :  { %179 = dma.done.wait [#allocation3], 32  }
  0xf6   :  { %180 = vsyncadd [#allocation3], 4294967264 }
  0xf7   :  { %136 = vsyncpa [#allocation3], 1 }

</bundles_post_ra>
